<compile_context>
chip_gen: v6e
topology: v6e:2x2x1
jax: 0.10.0
libtpu: 0.0.40
codegen_flags: <defaults>
</compile_context>

<pallas_src>
import jax
import jax.numpy as jnp
from jax.experimental import pallas as pl
from jax.experimental.pallas import tpu as pltpu

# ---------------- model hyper-parameters (from Decoder.__init__) -------------
DIM_IN = 512
DIM_H1 = 1024
DIM_H2 = 2048
NV = 64            # synthetic template mesh: number of vertices
NF = 128           # synthetic template mesh: number of faces
B = 2              # batch size

CENTROID_SCALE = 0.1
BIAS_SCALE = 1.0
OBJ_SCALE = 0.5

NV3 = NV * 3       # 192  (flat, lane-dense vertex layout)
NHEAD = NV3 + 3    # 195  (bias columns [0:192], centroid columns [192:195])


# ---------------------------- Pallas kernel ----------------------------------
def decoder_kernel(x_ref, w1_ref, b1_ref, w2_ref, b2_ref, wh_ref, bh_ref,
                   logit_ref, sgn_ref, sel_ref, out_ref):
    """Single-step fused MLP + vertex epilogue; all weights VMEM-resident.

      h1   = relu(x  @ w1 + b1)
      h2   = relu(h1 @ w2 + b2)
      head = h2 @ [w_bias | w_centroid] + [b_bias | b_centroid]
      vertex epilogue in flat (B, NV*3) layout.
    """
    h1 = jnp.maximum(
        jnp.dot(x_ref[...], w1_ref[...], preferred_element_type=jnp.float32)
        + b1_ref[...], 0.0)
    h2 = jnp.maximum(
        jnp.dot(h1.astype(jnp.bfloat16), w2_ref[...],
                preferred_element_type=jnp.float32) + b2_ref[...], 0.0)
    head = jnp.dot(h2.astype(jnp.bfloat16), wh_ref[...],
                   preferred_element_type=jnp.float32) + bh_ref[...]

    bias = head[:, :NV3] * BIAS_SCALE                   # (B, NV3)
    cent = head[:, NV3:NHEAD] * CENTROID_SCALE          # (B, 3)
    c = jnp.tanh(cent)                                  # (B, 3)
    # Tile the per-component centroid across the flat (NV*3) layout via a tiny
    # 0/1 selector matmul (guaranteed lowering, no reshape inside the kernel).
    c_flat = jnp.dot(c, sel_ref[...],
                     preferred_element_type=jnp.float32)  # (B, NV3)

    v = jax.nn.sigmoid(logit_ref[...] + bias) * sgn_ref[...]
    v = (jnp.maximum(v, 0.0) * (1.0 - c_flat)
         - jnp.maximum(-v, 0.0) * (1.0 + c_flat))
    out_ref[...] = (v + c_flat) * 0.5


# ------------------------ one-time parameter prep -----------------------------
def prepare_params(params, vertices_base):
    """Everything that does not depend on x: do it ONCE, not per forward call."""
    w1, b1, w2, b2, wc, bc, wb, bb = params

    # Static template-mesh terms (mesh never changes between forwards).
    # NOTE: requires 0 < |v| * OBJ_SCALE < 1 per coordinate, else logit is
    # inf/nan (same behaviour as the original torch code).
    base = vertices_base.reshape(1, NV3) * OBJ_SCALE
    sgn = jnp.sign(base)
    babs = jnp.abs(base)
    logit = jnp.log(babs / (1.0 - babs))

    # Selector: sel[c, j] = 1 iff flat index j belongs to component c (j%3==c).
    sel = (jnp.arange(3, dtype=jnp.int32)[:, None]
           == (jnp.arange(NV3, dtype=jnp.int32)[None, :] % 3)).astype(jnp.float32)

    # bf16 weights (halves HBM traffic); biases stay f32; f32 MXU accumulation.
    w1_bf = w1.astype(jnp.bfloat16)
    w2_bf = w2.astype(jnp.bfloat16)
    wh_bf = jnp.concatenate([wb, wc], axis=1).astype(jnp.bfloat16)  # (H2, NHEAD)
    bh = jnp.concatenate([bb, bc], axis=1)                          # (1, NHEAD)

    return (w1_bf, b1, w2_bf, b2, wh_bf, bh, logit, sgn, sel)


# ---------------------------- jitted forward ----------------------------------
@jax.jit
def decoder_forward(x, prepared, faces):
    w1_bf, b1, w2_bf, b2, wh_bf, bh, logit, sgn, sel = prepared
    x_bf = x.astype(jnp.bfloat16)

    verts_flat = pl.pallas_call(
        decoder_kernel,
        out_shape=jax.ShapeDtypeStruct((B, NV3), jnp.float32),
        compiler_params=pltpu.CompilerParams(
            vmem_limit_bytes=32 * 1024 * 1024,   # explicit (v5e default is 16 MiB)
        ),
    )(x_bf, w1_bf, b1, w2_bf, b2, wh_bf, bh, logit, sgn, sel)

    vertices = verts_flat.reshape(B, NV, 3)
    # faces: pure batch replication (glue, no compute)
    faces_out = jnp.broadcast_to(faces[None, :, :], (B, NF, 3))
    return vertices, faces_out


# --------------------------- references (pure JAX) -----------------------------
def decoder_reference_f32(x, params, vertices_base, faces):
    """Exact f32 port of the torch forward."""
    w1, b1, w2, b2, wc, bc, wb, bb = params
    h1 = jnp.maximum(x @ w1 + b1, 0.0)
    h2 = jnp.maximum(h1 @ w2 + b2, 0.0)
    centroid = (h2 @ wc + bc) * CENTROID_SCALE
    bias = ((h2 @ wb + bb) * BIAS_SCALE).reshape(B, NV, 3)
    base = vertices_base * OBJ_SCALE
    sgn = jnp.sign(base)
    base = jnp.abs(base)
    base = jnp.log(base / (1.0 - base))
    c = jnp.tanh(centroid)[:, None, :]
    v = jax.nn.sigmoid(base[None] + bias) * sgn[None]
    v = jnp.maximum(v, 0.0) * (1.0 - c) - jnp.maximum(-v, 0.0) * (c + 1.0)
    v = (v + c) * 0.5
    return v, jnp.broadcast_to(faces[None], (B, NF, 3))


def decoder_reference_bf16(x, params, vertices_base, faces):
    """Same math with the same bf16 weight/activation casts as the kernel."""
    w1, b1, w2, b2, wc, bc, wb, bb = params
    x_bf = x.astype(jnp.bfloat16)
    h1 = jnp.maximum(jnp.dot(x_bf, w1.astype(jnp.bfloat16),
                             preferred_element_type=jnp.float32) + b1, 0.0)
    h2 = jnp.maximum(jnp.dot(h1.astype(jnp.bfloat16), w2.astype(jnp.bfloat16),
                             preferred_element_type=jnp.float32) + b2, 0.0)
    h2_bf = h2.astype(jnp.bfloat16)
    centroid = (jnp.dot(h2_bf, wc.astype(jnp.bfloat16),
                        preferred_element_type=jnp.float32) + bc) * CENTROID_SCALE
    bias = ((jnp.dot(h2_bf, wb.astype(jnp.bfloat16),
                     preferred_element_type=jnp.float32) + bb)
            * BIAS_SCALE).reshape(B, NV, 3)
    base = vertices_base * OBJ_SCALE
    sgn = jnp.sign(base)
    base = jnp.abs(base)
    base = jnp.log(base / (1.0 - base))
    c = jnp.tanh(centroid)[:, None, :]
    v = jax.nn.sigmoid(base[None] + bias) * sgn[None]
    v = jnp.maximum(v, 0.0) * (1.0 - c) - jnp.maximum(-v, 0.0) * (c + 1.0)
    v = (v + c) * 0.5
    return v, jnp.broadcast_to(faces[None], (B, NF, 3))


# ------------------------------ init helpers -----------------------------------
def init_linear(key, fan_in, fan_out):
    kw, kb = jax.random.split(key)
    bound = 1.0 / (fan_in ** 0.5)
    w = jax.random.uniform(kw, (fan_in, fan_out), jnp.float32, -bound, bound)
    b = jax.random.uniform(kb, (1, fan_out), jnp.float32, -bound, bound)
    return w, b


if __name__ == "__main__":
    key = jax.random.PRNGKey(0)
    k_x, k_vb, k_f, k1, k2, k3, k4 = jax.random.split(key, 7)

    # synthetic deterministic "template mesh" (instead of loading an .obj)
    # TODO(synk): real Decoder loads vertices/faces from an .obj via metadr.Mesh
    mag = jax.random.uniform(k_vb, (NV, 3), jnp.float32, 0.1, 0.9)
    sgn0 = jnp.where(jax.random.bernoulli(k_vb, 0.5, (NV, 3)), 1.0, -1.0)
    vertices_base = mag * sgn0                 # |v * 0.5| in (0.05, 0.45): logit finite
    faces = jax.random.randint(k_f, (NF, 3), 0, NV, jnp.int32)

    # deterministic parameter init (PyTorch-Linear-style uniform)
    w1, b1 = init_linear(k1, DIM_IN, DIM_H1)
    w2, b2 = init_linear(k2, DIM_H1, DIM_H2)
    wc, bc = init_linear(k3, DIM_H2, 3)
    wb, bb = init_linear(k4, DIM_H2, NV * 3)
    params = (w1, b1, w2, b2, wc, bc, wb, bb)

    x = jax.random.normal(k_x, (B, DIM_IN), jnp.float32)

    # One-time weight prep (bf16 casts, head concat, static mesh terms).
    prepared = prepare_params(params, vertices_base)
    prepared = jax.block_until_ready(prepared)

    verts, faces_out = decoder_forward(x, prepared, faces)
    verts = jax.block_until_ready(verts)
    faces_out = jax.block_until_ready(faces_out)

    assert verts.shape == (B, NV, 3) and faces_out.shape == (B, NF, 3)

    # Tight check against a bf16-matched reference (verifies kernel mechanics).
    verts_ref_bf16, faces_ref = decoder_reference_bf16(x, params, vertices_base, faces)
    assert jnp.allclose(verts, verts_ref_bf16, rtol=3e-3, atol=3e-3)

    # Loose check against the exact f32 reference (bf16 weight quantization error).
    verts_ref_f32, _ = decoder_reference_f32(x, params, vertices_base, faces)
    assert jnp.allclose(verts, verts_ref_f32, rtol=3e-2, atol=3e-2)

    assert jnp.array_equal(faces_out, faces_ref)

    print("KERNEL_OK")
</pallas_src>

<mosaic_0001>
module attributes {stable_mosaic.version = 11 : i64} {
  func.func @decoder_kernel(%arg0: memref<2x512xbf16, #tpu.memory_space<vmem>>, %arg1: memref<512x1024xbf16, #tpu.memory_space<vmem>>, %arg2: memref<1x1024xf32, #tpu.memory_space<vmem>>, %arg3: memref<1024x2048xbf16, #tpu.memory_space<vmem>>, %arg4: memref<1x2048xf32, #tpu.memory_space<vmem>>, %arg5: memref<2048x195xbf16, #tpu.memory_space<vmem>>, %arg6: memref<1x195xf32, #tpu.memory_space<vmem>>, %arg7: memref<1x192xf32, #tpu.memory_space<vmem>>, %arg8: memref<1x192xf32, #tpu.memory_space<vmem>>, %arg9: memref<3x192xf32, #tpu.memory_space<vmem>>, %arg10: memref<2x192xf32, #tpu.memory_space<vmem>>) attributes {dimension_semantics = [], scalar_prefetch = 0 : i64, scratch_operands = 0 : i64, tpu.core_type = #tpu.core_type<tc>} {
    %c0 = arith.constant 0 : index
    %c0_0 = arith.constant 0 : index
    %0 = vector.load %arg0[%c0, %c0_0] : memref<2x512xbf16, #tpu.memory_space<vmem>>, vector<2x512xbf16>
    %c0_1 = arith.constant 0 : index
    %c0_2 = arith.constant 0 : index
    %1 = vector.load %arg1[%c0_1, %c0_2] : memref<512x1024xbf16, #tpu.memory_space<vmem>>, vector<512x1024xbf16>
    %cst = arith.constant dense<0.000000e+00> : vector<2x1024xf32>
    %2 = tpu.matmul %0, %1, %cst {dimension_numbers = #tpu.dot_dimension_numbers<[1], [0], [0], [1], [0, 0, 1, 1], [], []>} : vector<2x512xbf16>, vector<512x1024xbf16>, vector<2x1024xf32> -> vector<2x1024xf32>
    %c0_3 = arith.constant 0 : index
    %c0_4 = arith.constant 0 : index
    %3 = vector.load %arg2[%c0_3, %c0_4] : memref<1x1024xf32, #tpu.memory_space<vmem>>, vector<1x1024xf32>
    %4 = vector.broadcast %3 : vector<1x1024xf32> to vector<2x1024xf32>
    %5 = arith.addf %2, %4 : vector<2x1024xf32>
    %cst_5 = arith.constant 0.000000e+00 : f32
    %6 = vector.broadcast %cst_5 : f32 to vector<2x1024xf32>
    %7 = arith.maximumf %5, %6 : vector<2x1024xf32>
    %8 = arith.truncf %7 : vector<2x1024xf32> to vector<2x1024xbf16>
    %c0_6 = arith.constant 0 : index
    %c0_7 = arith.constant 0 : index
    %9 = vector.load %arg3[%c0_6, %c0_7] : memref<1024x2048xbf16, #tpu.memory_space<vmem>>, vector<1024x2048xbf16>
    %cst_8 = arith.constant dense<0.000000e+00> : vector<2x2048xf32>
    %10 = tpu.matmul %8, %9, %cst_8 {dimension_numbers = #tpu.dot_dimension_numbers<[1], [0], [0], [1], [0, 0, 1, 1], [], []>} : vector<2x1024xbf16>, vector<1024x2048xbf16>, vector<2x2048xf32> -> vector<2x2048xf32>
    %c0_9 = arith.constant 0 : index
    %c0_10 = arith.constant 0 : index
    %11 = vector.load %arg4[%c0_9, %c0_10] : memref<1x2048xf32, #tpu.memory_space<vmem>>, vector<1x2048xf32>
    %12 = vector.broadcast %11 : vector<1x2048xf32> to vector<2x2048xf32>
    %13 = arith.addf %10, %12 : vector<2x2048xf32>
    %cst_11 = arith.constant 0.000000e+00 : f32
    %14 = vector.broadcast %cst_11 : f32 to vector<2x2048xf32>
    %15 = arith.maximumf %13, %14 : vector<2x2048xf32>
    %16 = arith.truncf %15 : vector<2x2048xf32> to vector<2x2048xbf16>
    %c0_12 = arith.constant 0 : index
    %c0_13 = arith.constant 0 : index
    %17 = vector.load %arg5[%c0_12, %c0_13] : memref<2048x195xbf16, #tpu.memory_space<vmem>>, vector<2048x195xbf16>
    %cst_14 = arith.constant dense<0.000000e+00> : vector<2x195xf32>
    %18 = tpu.matmul %16, %17, %cst_14 {dimension_numbers = #tpu.dot_dimension_numbers<[1], [0], [0], [1], [0, 0, 1, 1], [], []>} : vector<2x2048xbf16>, vector<2048x195xbf16>, vector<2x195xf32> -> vector<2x195xf32>
    %c0_15 = arith.constant 0 : index
    %c0_16 = arith.constant 0 : index
    %19 = vector.load %arg6[%c0_15, %c0_16] : memref<1x195xf32, #tpu.memory_space<vmem>>, vector<1x195xf32>
    %20 = vector.broadcast %19 : vector<1x195xf32> to vector<2x195xf32>
    %21 = arith.addf %18, %20 : vector<2x195xf32>
    %22 = vector.extract_strided_slice %21 {offsets = [0, 0], sizes = [2, 192], strides = [1, 1]} : vector<2x195xf32> to vector<2x192xf32>
    %cst_17 = arith.constant 1.000000e+00 : f32
    %23 = vector.broadcast %cst_17 : f32 to vector<2x192xf32>
    %24 = arith.mulf %22, %23 : vector<2x192xf32>
    %25 = vector.extract_strided_slice %21 {offsets = [0, 192], sizes = [2, 3], strides = [1, 1]} : vector<2x195xf32> to vector<2x3xf32>
    %cst_18 = arith.constant 1.000000e-01 : f32
    %26 = vector.broadcast %cst_18 : f32 to vector<2x3xf32>
    %27 = arith.mulf %25, %26 : vector<2x3xf32>
    %28 = math.tanh %27 : vector<2x3xf32>
    %c0_19 = arith.constant 0 : index
    %c0_20 = arith.constant 0 : index
    %29 = vector.load %arg9[%c0_19, %c0_20] : memref<3x192xf32, #tpu.memory_space<vmem>>, vector<3x192xf32>
    %cst_21 = arith.constant dense<0.000000e+00> : vector<2x192xf32>
    %30 = tpu.matmul %28, %29, %cst_21 {dimension_numbers = #tpu.dot_dimension_numbers<[1], [0], [0], [1], [0, 0, 1, 1], [], []>} : vector<2x3xf32>, vector<3x192xf32>, vector<2x192xf32> -> vector<2x192xf32>
    %c0_22 = arith.constant 0 : index
    %c0_23 = arith.constant 0 : index
    %31 = vector.load %arg7[%c0_22, %c0_23] : memref<1x192xf32, #tpu.memory_space<vmem>>, vector<1x192xf32>
    %32 = vector.broadcast %31 : vector<1x192xf32> to vector<2x192xf32>
    %33 = arith.addf %32, %24 : vector<2x192xf32>
    %34 = arith.negf %33 : vector<2x192xf32>
    %35 = math.exp %34 : vector<2x192xf32>
    %cst_24 = arith.constant 1.000000e+00 : f32
    %36 = vector.broadcast %cst_24 : f32 to vector<2x192xf32>
    %37 = arith.addf %36, %35 : vector<2x192xf32>
    %38 = arith.divf %36, %37 : vector<2x192xf32>
    %c0_25 = arith.constant 0 : index
    %c0_26 = arith.constant 0 : index
    %39 = vector.load %arg8[%c0_25, %c0_26] : memref<1x192xf32, #tpu.memory_space<vmem>>, vector<1x192xf32>
    %40 = vector.broadcast %39 : vector<1x192xf32> to vector<2x192xf32>
    %41 = arith.mulf %38, %40 : vector<2x192xf32>
    %cst_27 = arith.constant 0.000000e+00 : f32
    %42 = vector.broadcast %cst_27 : f32 to vector<2x192xf32>
    %43 = arith.maximumf %41, %42 : vector<2x192xf32>
    %cst_28 = arith.constant 1.000000e+00 : f32
    %44 = vector.broadcast %cst_28 : f32 to vector<2x192xf32>
    %45 = arith.subf %44, %30 : vector<2x192xf32>
    %46 = arith.mulf %43, %45 : vector<2x192xf32>
    %cst_29 = arith.constant 0.000000e+00 : f32
    %47 = vector.broadcast %cst_29 : f32 to vector<2x192xf32>
    %48 = arith.subf %47, %41 : vector<2x192xf32>
    %cst_30 = arith.constant 0.000000e+00 : f32
    %49 = vector.broadcast %cst_30 : f32 to vector<2x192xf32>
    %50 = arith.maximumf %48, %49 : vector<2x192xf32>
    %cst_31 = arith.constant 1.000000e+00 : f32
    %51 = vector.broadcast %cst_31 : f32 to vector<2x192xf32>
    %52 = arith.addf %51, %30 : vector<2x192xf32>
    %53 = arith.mulf %50, %52 : vector<2x192xf32>
    %54 = arith.subf %46, %53 : vector<2x192xf32>
    %55 = arith.addf %54, %30 : vector<2x192xf32>
    %cst_32 = arith.constant 5.000000e-01 : f32
    %56 = vector.broadcast %cst_32 : f32 to vector<2x192xf32>
    %57 = arith.mulf %55, %56 : vector<2x192xf32>
    %c0_33 = arith.constant 0 : index
    %c0_34 = arith.constant 0 : index
    %58 = vector.load %arg10[%c0_33, %c0_34] : memref<2x192xf32, #tpu.memory_space<vmem>>, vector<2x192xf32>
    tpu.vector_store %arg10[%c0_33, %c0_34], %57 {strides = array<i32>} : memref<2x192xf32, #tpu.memory_space<vmem>>, vector<2x192xf32>,
    return
  }
}

</mosaic_0001>

<bundles_post_ra>
// kernel: decoder_forward.1
= control target key start
LH: loop header
LB: loop body
LE: loop exit
PB: predicated region body
PF: predicated region fallthrough
CT: control target
= control target key end

     0   :  { %15 = vsyncpa [#allocation3], 0  ;;  %s15079_s0 = inlined_call_operand.vmem [shape: bf16[2,512], index: 0, kind: input, shape index: {}]   ;;  %s15080_s1 = inlined_call_operand.hbm [shape: bf16[512,1024], index: 1, kind: input, shape index: {}]   ;;  %s15081_s2 = inlined_call_operand.hbm [shape: f32[1,1024], index: 2, kind: input, shape index: {}]   ;;  %s15082_s3 = inlined_call_operand.hbm [shape: bf16[1024,2048], index: 3, kind: input, shape index: {}]   ;;  %s15083_s4 = inlined_call_operand.hbm [shape: f32[1,2048], index: 4, kind: input, shape index: {}]   ;;  %s15084_s5 = inlined_call_operand.vmem [shape: bf16[2048,195], index: 5, kind: input, shape index: {}]   ;;  %s15085_s6 = inlined_call_operand.hbm [shape: f32[1,195], index: 6, kind: input, shape index: {}]   ;;  %s15086_s7 = inlined_call_operand.hbm [shape: f32[1,192], index: 7, kind: input, shape index: {}]   ;;  %s15087_s8 = inlined_call_operand.hbm [shape: f32[1,192], index: 8, kind: input, shape index: {}]   ;;  %s15088_s9 = inlined_call_operand.hbm [shape: f32[3,192], index: 9, kind: input, shape index: {}]   ;;  %s15089_s10 = inlined_call_operand.vmem [shape: f32[2,192], index: 10, kind: output, shape index: {}]  }
   0x1   :  { %16 = vsyncpa [#allocation5], 0 }
   0x2   :  { %17 = vsyncpa [#allocation8], 0 }
   0x3   :  { %18 = vsyncpa [#allocation11], 0 }
   0x4   :  { %19 = vsyncpa [#allocation14], 0  ;;  %s13829_s13 = smov [#allocation4]   ;;  %s13830_s15 = smov [#allocation7]  }
   0x5   :  { %s40_s14 = sshll.u32 %s13829_s13, 4  ;;  %s62_s16 = sshll.u32 %s13830_s15, 4  ;;  %s41_s14 = int_to_ptr.vmem [resolvable:$true] %s40_s14  ;;  %s63_s16 = int_to_ptr.vmem [resolvable:$true] %s62_s16 }
   0x6   :  { %s13667_s17 = scalar_lea.vmem %s41_s14, 128  ;;  %p13672_p1 = scmp.lt.s32.totalorder %s41_s14, %s41_s14 }
   0x7   :  { %p13668_p0 = scmp.ne.s32.totalorder %s41_s14, %s13667_s17  ;;  %p13673_p2 = scmp.lt.s32.totalorder %s13667_s17, %s13667_s17 }
   0x9   :  { %p13674_p3 = por %p13673_p2, %p13672_p1 }
   0xb   :  { %p13675_p4 = pnand %p13674_p3, %p13668_p0 }
   0xd   :  { %13678 = shalt.err (!%p13675_p4)
}
   0xe   :  { %43 = dma.hbm_to_vmem [thread:$0]  %s15081_s2, 128, %s41_s14, [#allocation5]  }
   0xf   :  { %s13687_s20 = scalar_lea.vmem %s63_s16, 256  ;;  %p13692_p6 = scmp.lt.s32.totalorder %s63_s16, %s63_s16 }
  0x10   :  { %p13688_p5 = scmp.ne.s32.totalorder %s63_s16, %s13687_s20  ;;  %p13693_p7 = scmp.lt.s32.totalorder %s13687_s20, %s13687_s20 }
  0x12   :  { %p13694_p8 = por %p13693_p7, %p13692_p6 }
  0x14   :  { %p13695_p9 = pnand %p13694_p8, %p13688_p5 }
  0x16   :  { %13698 = shalt.err (!%p13695_p9)
}
  0x17   :  { %65 = dma.hbm_to_vmem [thread:$0]  %s15083_s4, 256, %s63_s16, [#allocation8]  }
  0x18   :  { %s13831_s23 = smov [#allocation10]   ;;  %s13832_s25 = smov [#allocation2]  }
  0x19   :  { %s84_s24 = sshll.u32 %s13831_s23, 4  ;;  %s27_s26 = sshll.u32 %s13832_s25, 4  ;;  %s85_s24 = int_to_ptr.vmem [resolvable:$true] %s84_s24  ;;  %s28_s26 = int_to_ptr.vmem [resolvable:$true] %s27_s26 }
  0x1a   :  { %s13707_s27 = scalar_lea.vmem %s85_s24, 32  ;;  %p13712_p11 = scmp.lt.s32.totalorder %s85_s24, %s85_s24 }
  0x1b   :  { %p13708_p10 = scmp.ne.s32.totalorder %s85_s24, %s13707_s27  ;;  %p13713_p12 = scmp.lt.s32.totalorder %s13707_s27, %s13707_s27 }
  0x1d   :  { %p13714_p13 = por %p13713_p12, %p13712_p11 }
  0x1f   :  { %p13715_p0 = pnand %p13714_p13, %p13708_p10 }
  0x21   :  { %13718 = shalt.err (!%p13715_p0)
}
  0x22   :  { %87 = dma.hbm_to_vmem [thread:$0]  %s15086_s7, 32, %s85_s24, [#allocation11]  }
  0x23   :  { %s13727_s29 = scalar_lea.vmem %s28_s26, 32768  ;;  %p13732_p2 = scmp.lt.s32.totalorder %s28_s26, %s28_s26 }
  0x24   :  { %p13728_p1 = scmp.ne.s32.totalorder %s28_s26, %s13727_s29  ;;  %p13733_p3 = scmp.lt.s32.totalorder %s13727_s29, %s13727_s29 }
  0x26   :  { %p13734_p4 = por %p13733_p3, %p13732_p2 }
  0x28   :  { %p13735_p5 = pnand %p13734_p4, %p13728_p1 }
  0x2a   :  { %13738 = shalt.err (!%p13735_p5)
}
  0x2b   :  { %s13833_s4 = smov 512   ;;  %s13834_s30 = smov 32  }
  0x2c   :  { %33 = dma.hbm_to_vmem [thread:$0]  %s15080_s1, 32768, %s28_s26, [#allocation3], %s13833_s4, %s13833_s4, %s13834_s30  }
  0x2d   :  { %s13835_s13 = smov [#allocation6]  }
  0x2e   :  { %s49_s14 = sshll.u32 %s13835_s13, 4  ;;  %s50_s14 = int_to_ptr.vmem [resolvable:$true] %s49_s14 }
  0x2f   :  { %s13747_s15 = scalar_lea.vmem %s50_s14, 131072  ;;  %p13752_p7 = scmp.lt.s32.totalorder %s50_s14, %s50_s14 }
  0x30   :  { %p13748_p6 = scmp.ne.s32.totalorder %s50_s14, %s13747_s15  ;;  %p13753_p8 = scmp.lt.s32.totalorder %s13747_s15, %s13747_s15 }
  0x32   :  { %p13754_p9 = por %p13753_p8, %p13752_p7 }
  0x34   :  { %p13755_p10 = pnand %p13754_p9, %p13748_p6 }
  0x36   :  { %13758 = shalt.err (!%p13755_p10)
}
  0x37   :  { %s13836_s7 = smov 1024   ;;  %s13837_s16 = smov 64  }
  0x38   :  { %55 = dma.hbm_to_vmem [thread:$0]  %s15082_s3, 131072, %s50_s14, [#allocation5], %s13836_s7, %s13836_s7, %s13837_s16  }
  0x39   :  { %s13838_s19 = smov [#allocation9]   ;;  %s13839_s1 = smov [#allocation12]  }
  0x3a   :  { %s74_s20 = sshll.u32 %s13838_s19, 4  ;;  %s94_s21 = sshll.u32 %s13839_s1, 4  ;;  %s75_s20 = int_to_ptr.vmem [resolvable:$true] %s74_s20  ;;  %s95_s21 = int_to_ptr.vmem [resolvable:$true] %s94_s21 }
  0x3b   :  { %s13767_s22 = scalar_lea.vmem %s75_s20, 32  ;;  %p13772_p12 = scmp.lt.s32.totalorder %s75_s20, %s75_s20 }
  0x3c   :  { %p13768_p11 = scmp.ne.s32.totalorder %s75_s20, %s13767_s22  ;;  %p13773_p13 = scmp.lt.s32.totalorder %s13767_s22, %s13767_s22 }
  0x3e   :  { %p13774_p0 = por %p13773_p13, %p13772_p12 }
  0x40   :  { %p13775_p1 = pnand %p13774_p0, %p13768_p11 }
  0x42   :  { %13778 = shalt.err (!%p13775_p1)
}
  0x43   :  { %77 = dma.hbm_to_vmem [thread:$0]  %s15085_s6, 32, %s75_s20, [#allocation8]  }
  0x44   :  { %s13787_s25 = scalar_lea.vmem %s95_s21, 32  ;;  %p13792_p3 = scmp.lt.s32.totalorder %s95_s21, %s95_s21 }
  0x45   :  { %p13788_p2 = scmp.ne.s32.totalorder %s95_s21, %s13787_s25  ;;  %p13793_p4 = scmp.lt.s32.totalorder %s13787_s25, %s13787_s25 }
  0x47   :  { %p13794_p5 = por %p13793_p4, %p13792_p3 }
  0x49   :  { %p13795_p6 = pnand %p13794_p5, %p13788_p2 }
  0x4b   :  { %13798 = shalt.err (!%p13795_p6)
}
  0x4c   :  { %97 = dma.hbm_to_vmem [thread:$0]  %s15087_s8, 32, %s95_s21, [#allocation11]  }
  0x4d   :  { %s13840_s27 = smov [#allocation13]  }
  0x4e   :  { %s104_s2 = sshll.u32 %s13840_s27, 4  ;;  %s105_s2 = int_to_ptr.vmem [resolvable:$true] %s104_s2 }
  0x4f   :  { %s13807_s28 = scalar_lea.vmem %s105_s2, 128  ;;  %p13812_p8 = scmp.lt.s32.totalorder %s105_s2, %s105_s2 }
  0x50   :  { %p13808_p7 = scmp.ne.s32.totalorder %s105_s2, %s13807_s28  ;;  %p13813_p9 = scmp.lt.s32.totalorder %s13807_s28, %s13807_s28 }
  0x52   :  { %p13814_p10 = por %p13813_p9, %p13812_p8 }
  0x54   :  { %p13815_p11 = pnand %p13814_p10, %p13808_p7 }
  0x56   :  { %13818 = shalt.err (!%p13815_p11)
}
  0x57   :  { %107 = dma.hbm_to_vmem [thread:$0]  %s15088_s9, 128, %s105_s2, [#allocation14]  }
  0x58   :  { %13819 = dma.done.wait [#allocation3], 32768  }
  0x59   :  { %13820 = vsyncadd [#allocation3], 4294934528 }
  0x5a   :  { %13821 = dma.done.wait [#allocation5], 131200  }
  0x5b   :  { %13822 = vsyncadd [#allocation5], 4294836096 }
  0x5c   :  { %13823 = dma.done.wait [#allocation8], 288  }
  0x5d   :  { %13824 = vsyncadd [#allocation8], 4294967008 }
  0x5e   :  { %13825 = dma.done.wait [#allocation11], 64  }
  0x5f   :  { %13826 = vsyncadd [#allocation11], 4294967232 }
  0x60   :  { %13827 = dma.done.wait [#allocation14], 128  }
  0x61   :  { %13828 = vsyncadd [#allocation14], 4294967168  ;;  %v189_v0 = vld [vmem:[#allocation2 + $0x1c0] sm:$0xff]  ;;  %v391_v35 = vlaneseq  ;;  %v13841_v36 = vmov 1966171168   ;;  %vm11543_vm0 = vcmask 1042432  }
  0x62   :  { %v193_v1 = vld [vmem:[#allocation2 + $0x1e0] sm:$0xff]  ;;  %v441_v37 = vunpack.c.l.s4 %v13841_v36  ;;  %vm11540_vm1 = vcmask 23552   ;;  %vm11690_vm2 = vcmask 1041408   ;;  %vm11691_vm3 = vcmask 519170  }
  0x63   :  { %v317_v2 = vld [vmem:[#allocation2 + $0x5c0] sm:$0xff]  ;;  %v11761_v3 = vcombine.high %v189_v0, %v193_v1  ;;  %v11760_v5 = vcombine.low %v189_v0, %v193_v1  ;;  %v13924_v46 = vshrl.u32 %v391_v35, 7  ;;  %vm11692_vm4 = vmor %vm11691_vm3, %vm11690_vm2 }
  0x64   :  { %v321_v4 = vld [vmem:[#allocation2 + $0x5e0] sm:$0xff]  ;;  %v442_v47 = vunpack.c.0.s8 %v441_v37 }
  0x65   :  { %v181_v6 = vld [vmem:[#allocation2 + $0x180] sm:$0xff]  ;;  %v11889_v8 = vcombine.high %v317_v2, %v321_v4  ;;  %v11888_v9 = vcombine.low %v317_v2, %v321_v4  ;;  %1740 = vmatprep.subr.bf16.mxu0 %v11761_v3 }
  0x66   :  { %v185_v7 = vld [vmem:[#allocation2 + $0x1a0] sm:$0xff]  ;;  %1741 = vmatpush1.bf16.msra.mxu0 %v11760_v5  ;;  %v13927_v56 = vsub.s32 %v442_v47, %v13924_v46 }
  0x67   :  { %v11753_v10 = vcombine.high %v181_v6, %v185_v7  ;;  %v309_v11 = vld [vmem:[#allocation2 + $0x580] sm:$0xff]  ;;  %1781 = vmatprep.subr.bf16.mxu1 %v11889_v8  ;;  %v11752_v18 = vcombine.low %v181_v6, %v185_v7 }
  0x68   :  { %v313_v12 = vld [vmem:[#allocation2 + $0x5a0] sm:$0xff]  ;;  %1782 = vmatpush1.bf16.msra.mxu1 %v11888_v9 }
  0x69   :  { %v173_v13 = vld [vmem:[#allocation2 + $0x140] sm:$0xff]  ;;  %v11881_v14 = vcombine.high %v309_v11, %v313_v12  ;;  %1742 = vmatprep.subr.bf16.mxu0 %v11753_v10  ;;  %v11880_v19 = vcombine.low %v309_v11, %v313_v12 }
  0x6a   :  { %v177_v15 = vld [vmem:[#allocation2 + $0x160] sm:$0xff]  ;;  %1743 = vmatpush1.bf16.msra.mxu0 %v11752_v18 }
  0x6b   :  { %v301_v16 = vld [vmem:[#allocation2 + $0x540] sm:$0xff]  ;;  %v11745_v20 = vcombine.high %v173_v13, %v177_v15  ;;  %1783 = vmatprep.subr.bf16.mxu1 %v11881_v14  ;;  %v11744_v26 = vcombine.low %v173_v13, %v177_v15 }
  0x6c   :  { %v305_v17 = vld [vmem:[#allocation2 + $0x560] sm:$0xff]  ;;  %1784 = vmatpush1.bf16.msra.mxu1 %v11880_v19 }
  0x6d   :  { %v11873_v21 = vcombine.high %v301_v16, %v305_v17  ;;  %v165_v22 = vld [vmem:[#allocation2 + $0x100] sm:$0xff]  ;;  %1744 = vmatprep.subr.bf16.mxu0 %v11745_v20  ;;  %v11872_v27 = vcombine.low %v301_v16, %v305_v17 }
  0x6e   :  { %v169_v23 = vld [vmem:[#allocation2 + $0x120] sm:$0xff]  ;;  %1745 = vmatpush1.bf16.msra.mxu0 %v11744_v26 }
  0x6f   :  { %v293_v24 = vld [vmem:[#allocation2 + $0x500] sm:$0xff]  ;;  %v11737_v28 = vcombine.high %v165_v22, %v169_v23  ;;  %1785 = vmatprep.subr.bf16.mxu1 %v11873_v21  ;;  %v11736_v34 = vcombine.low %v165_v22, %v169_v23 }
  0x70   :  { %v297_v25 = vld [vmem:[#allocation2 + $0x520] sm:$0xff]  ;;  %1786 = vmatpush1.bf16.msra.mxu1 %v11872_v27 }
  0x71   :  { %v11865_v29 = vcombine.high %v293_v24, %v297_v25  ;;  %v157_v30 = vld [vmem:[#allocation2 + $0xc0] sm:$0xff]  ;;  %1746 = vmatprep.subr.bf16.mxu0 %v11737_v28  ;;  %v11864_v38 = vcombine.low %v293_v24, %v297_v25 }
  0x72   :  { %v161_v31 = vld [vmem:[#allocation2 + $0xe0] sm:$0xff]  ;;  %1747 = vmatpush1.bf16.msra.mxu0 %v11736_v34 }
  0x73   :  { %v285_v32 = vld [vmem:[#allocation2 + $0x4c0] sm:$0xff]  ;;  %v11729_v39 = vcombine.high %v157_v30, %v161_v31  ;;  %1787 = vmatprep.subr.bf16.mxu1 %v11865_v29  ;;  %v11728_v45 = vcombine.low %v157_v30, %v161_v31 }
  0x74   :  { %v289_v33 = vld [vmem:[#allocation2 + $0x4e0] sm:$0xff]  ;;  %1788 = vmatpush1.bf16.msra.mxu1 %v11864_v38 }
  0x75   :  { %v11857_v40 = vcombine.high %v285_v32, %v289_v33  ;;  %v149_v41 = vld [vmem:[#allocation2 + $0x80] sm:$0xff]  ;;  %1748 = vmatprep.subr.bf16.mxu0 %v11729_v39  ;;  %v11856_v48 = vcombine.low %v285_v32, %v289_v33 }
  0x76   :  { %v153_v42 = vld [vmem:[#allocation2 + $0xa0] sm:$0xff]  ;;  %1749 = vmatpush1.bf16.msra.mxu0 %v11728_v45 }
  0x77   :  { %v277_v43 = vld [vmem:[#allocation2 + $0x480] sm:$0xff]  ;;  %v11721_v49 = vcombine.high %v149_v41, %v153_v42  ;;  %1789 = vmatprep.subr.bf16.mxu1 %v11857_v40  ;;  %v11720_v55 = vcombine.low %v149_v41, %v153_v42 }
  0x78   :  { %v281_v44 = vld [vmem:[#allocation2 + $0x4a0] sm:$0xff]  ;;  %1790 = vmatpush1.bf16.msra.mxu1 %v11856_v48 }
  0x79   :  { %v11849_v50 = vcombine.high %v277_v43, %v281_v44  ;;  %v141_v51 = vld [vmem:[#allocation2 + $0x40] sm:$0xff]  ;;  %1750 = vmatprep.subr.bf16.mxu0 %v11721_v49  ;;  %v11848_v57 = vcombine.low %v277_v43, %v281_v44 }
  0x7a   :  { %v145_v52 = vld [vmem:[#allocation2 + $0x60] sm:$0xff]  ;;  %1751 = vmatpush1.bf16.msra.mxu0 %v11720_v55 }
  0x7b   :  { %v269_v53 = vld [vmem:[#allocation2 + $0x440] sm:$0xff]  ;;  %v11713_v58 = vcombine.high %v141_v51, %v145_v52  ;;  %1791 = vmatprep.subr.bf16.mxu1 %v11849_v50  ;;  %v11712_v2 = vcombine.low %v141_v51, %v145_v52 }
  0x7c   :  { %v273_v54 = vld [vmem:[#allocation2 + $0x460] sm:$0xff]  ;;  %1792 = vmatpush1.bf16.msra.mxu1 %v11848_v57 }
  0x7d   :  { %v13932_v59 = vld.sshfl [vmem:[%s15079_s0] sm:$0x33 pattern:$0x75316420]  ;;  %v11841_v60 = vcombine.high %v269_v53, %v273_v54  ;;  %1752 = vmatprep.subr.bf16.mxu0 %v11713_v58  ;;  %v11840_v4 = vcombine.low %v269_v53, %v273_v54 }
  0x7e   :  { %v133_v61 = vld [vmem:[#allocation2] sm:$0xff]  ;;  %v439_v63 = vcombine.high %v13932_v59, %v13932_v59  ;;  %1753 = vmatpush1.bf16.msra.mxu0 %v11712_v2 }
  0x7f   :  { %v137_v62 = vld [vmem:[#allocation2 + $0x20] sm:$0xff]  ;;  %1793 = vmatprep.subr.bf16.mxu1 %v11841_v60 }
  0x80   :  { %v261_v0 = vld [vmem:[#allocation2 + $0x400] sm:$0xff]  ;;  %v13937_v3 = vrot.slane %v439_v63, %v13927_v56  ;;  %v11705_v5 = vcombine.high %v133_v61, %v137_v62  ;;  %v11704_v12 = vcombine.low %v133_v61, %v137_v62  ;;  %1794 = vmatpush1.bf16.msra.mxu1 %v11840_v4 }
  0x81   :  { %v265_v1 = vld [vmem:[#allocation2 + $0x420] sm:$0xff] }
  0x82   :  { %v11833_v6 = vcombine.high %v261_v0, %v265_v1  ;;  %v253_v7 = vld [vmem:[#allocation2 + $0x3c0] sm:$0xff]  ;;  %1772 = vmatprep.mubr.bf16.mxu0 %v13937_v3  ;;  %v13942_v9 = vcombine.high %v13937_v3, %v13937_v3  ;;  %1754 = vmatprep.subr.bf16.mxu0 %v11705_v5  ;;  %v11832_v13 = vcombine.low %v261_v0, %v265_v1 }
  0x83   :  { %v257_v8 = vld [vmem:[#allocation2 + $0x3e0] sm:$0xff]  ;;  %1755 = vmatpush1.bf16.msra.mxu0 %v11704_v12 }
  0x84   :  { %v381_v10 = vld [vmem:[#allocation2 + $0x7c0] sm:$0xff]  ;;  %1813 = vmatprep.mubr.bf16.mxu1 %v13942_v9  ;;  %v11825_v14 = vcombine.high %v253_v7, %v257_v8  ;;  %1795 = vmatprep.subr.bf16.mxu1 %v11833_v6  ;;  %v11824_v20 = vcombine.low %v253_v7, %v257_v8 }
  0x85   :  { %v385_v11 = vld [vmem:[#allocation2 + $0x7e0] sm:$0xff]  ;;  %1796 = vmatpush1.bf16.msra.mxu1 %v11832_v13  ;;  %v190_v13 = vld [vmem:[#allocation2 + $0x1c8] sm:$0xff] }
  0x86   :  { %v11953_v15 = vcombine.high %v381_v10, %v385_v11  ;;  %v245_v16 = vld [vmem:[#allocation2 + $0x380] sm:$0xff]  ;;  %1756 = vmatprep.subr.bf16.mxu0 %v11825_v14  ;;  %v11952_v21 = vcombine.low %v381_v10, %v385_v11  ;;  %v194_v14 = vld [vmem:[#allocation2 + $0x1e8] sm:$0xff] }
  0x87   :  { %v249_v17 = vld [vmem:[#allocation2 + $0x3a0] sm:$0xff]  ;;  %1757 = vmatpush2.bf16.msra.mxu0 %v11824_v20  ;;  %v11763_v20 = vcombine.high %v190_v13, %v194_v14 }
  0x88   :  { %v373_v18 = vld [vmem:[#allocation2 + $0x780] sm:$0xff]  ;;  %v11817_v22 = vcombine.high %v245_v16, %v249_v17  ;;  %1797 = vmatprep.subr.bf16.mxu1 %v11953_v15  ;;  %v11816_v28 = vcombine.low %v245_v16, %v249_v17  ;;  %v318_v15 = vld [vmem:[#allocation2 + $0x5c8] sm:$0xff] }
  0x89   :  { %v377_v19 = vld [vmem:[#allocation2 + $0x7a0] sm:$0xff]  ;;  %1798 = vmatpush2.bf16.msra.mxu1 %v11952_v21  ;;  %v322_v16 = vld [vmem:[#allocation2 + $0x5e8] sm:$0xff] }
  0x8a   :  { %v11945_v23 = vcombine.high %v373_v18, %v377_v19  ;;  %v237_v24 = vld [vmem:[#allocation2 + $0x340] sm:$0xff]  ;;  %1758 = vmatprep.subr.bf16.mxu0 %v11817_v22  ;;  %v11944_v29 = vcombine.low %v373_v18, %v377_v19  ;;  %v13947_v18 = vrot.slane %v13932_v59, %v13927_v56  ;;  %v11891_v21 = vcombine.high %v318_v15, %v322_v16  ;;  %v182_v22 = vld [vmem:[#allocation2 + $0x188] sm:$0xff] }
  0x8b   :  { %v241_v25 = vld [vmem:[#allocation2 + $0x360] sm:$0xff]  ;;  %1759 = vmatpush2.bf16.msra.mxu0 %v11816_v28  ;;  %v11890_v56 = vcombine.low %v318_v15, %v322_v16  ;;  %v174_v28 = vld [vmem:[#allocation2 + $0x148] sm:$0xff] }
  0x8c   :  { %v365_v26 = vld [vmem:[#allocation2 + $0x740] sm:$0xff]  ;;  %v11809_v30 = vcombine.high %v237_v24, %v241_v25  ;;  %1799 = vmatprep.subr.bf16.mxu1 %v11945_v23  ;;  %v11808_v36 = vcombine.low %v237_v24, %v241_v25  ;;  %v186_v23 = vld [vmem:[#allocation2 + $0x1a8] sm:$0xff] }
  0x8d   :  { %v369_v27 = vld [vmem:[#allocation2 + $0x760] sm:$0xff]  ;;  %1800 = vmatpush2.bf16.msra.mxu1 %v11944_v29  ;;  %v310_v24 = vld [vmem:[#allocation2 + $0x588] sm:$0xff]  ;;  %v11755_v59 = vcombine.high %v182_v22, %v186_v23 }
  0x8e   :  { %v11937_v31 = vcombine.high %v365_v26, %v369_v27  ;;  %v229_v32 = vld [vmem:[#allocation2 + $0x300] sm:$0xff]  ;;  %1760 = vmatprep.subr.bf16.mxu0 %v11809_v30  ;;  %v11936_v37 = vcombine.low %v365_v26, %v369_v27  ;;  %v314_v25 = vld [vmem:[#allocation2 + $0x5a8] sm:$0xff]  ;;  %v13951_v26 = vcombine.high %v13947_v18, %v13947_v18  ;;  %v11762_v27 = vcombine.low %v190_v13, %v194_v14 }
  0x8f   :  { %v233_v33 = vld [vmem:[#allocation2 + $0x320] sm:$0xff]  ;;  %1761 = vmatpush2.bf16.msra.mxu0 %v11808_v36  ;;  %v178_v29 = vld [vmem:[#allocation2 + $0x168] sm:$0xff] }
  0x90   :  { %v357_v34 = vld [vmem:[#allocation2 + $0x700] sm:$0xff]  ;;  %v11801_v38 = vcombine.high %v229_v32, %v233_v33  ;;  %1801 = vmatprep.subr.bf16.mxu1 %v11937_v31  ;;  %v11800_v44 = vcombine.low %v229_v32, %v233_v33  ;;  %v302_v30 = vld [vmem:[#allocation2 + $0x548] sm:$0xff]  ;;  %v11883_v31 = vcombine.high %v310_v24, %v314_v25  ;;  %v11754_v33 = vcombine.low %v182_v22, %v186_v23 }
  0x91   :  { %v361_v35 = vld [vmem:[#allocation2 + $0x720] sm:$0xff]  ;;  %1802 = vmatpush2.bf16.msra.mxu1 %v11936_v37  ;;  %v306_v32 = vld [vmem:[#allocation2 + $0x568] sm:$0xff] }
  0x92   :  { %v11929_v39 = vcombine.high %v357_v34, %v361_v35  ;;  %v221_v40 = vld [vmem:[#allocation2 + $0x2c0] sm:$0xff]  ;;  %1762 = vmatprep.subr.bf16.mxu0 %v11801_v38  ;;  %v11928_v45 = vcombine.low %v357_v34, %v361_v35  ;;  %v11882_v34 = vcombine.low %v310_v24, %v314_v25  ;;  %v11747_v35 = vcombine.high %v174_v28, %v178_v29  ;;  %v166_v36 = vld [vmem:[#allocation2 + $0x108] sm:$0xff] }
  0x93   :  { %v225_v41 = vld [vmem:[#allocation2 + $0x2e0] sm:$0xff]  ;;  %1763 = vmatpush2.bf16.msra.mxu0 %v11800_v44  ;;  %v170_v37 = vld [vmem:[#allocation2 + $0x128] sm:$0xff] }
  0x94   :  { %v349_v42 = vld [vmem:[#allocation2 + $0x6c0] sm:$0xff]  ;;  %v11793_v47 = vcombine.high %v221_v40, %v225_v41  ;;  %1803 = vmatprep.subr.bf16.mxu1 %v11929_v39  ;;  %v11792_v53 = vcombine.low %v221_v40, %v225_v41  ;;  %v294_v38 = vld [vmem:[#allocation2 + $0x508] sm:$0xff]  ;;  %v11875_v39 = vcombine.high %v302_v30, %v306_v32  ;;  %v11746_v41 = vcombine.low %v174_v28, %v178_v29 }
  0x95   :  { %v353_v43 = vld [vmem:[#allocation2 + $0x6e0] sm:$0xff]  ;;  %1804 = vmatpush2.bf16.msra.mxu1 %v11928_v45  ;;  %v298_v40 = vld [vmem:[#allocation2 + $0x528] sm:$0xff] }
  0x96   :  { %v11921_v48 = vcombine.high %v349_v42, %v353_v43  ;;  %v213_v49 = vld [vmem:[#allocation2 + $0x280] sm:$0xff]  ;;  %1764 = vmatprep.subr.bf16.mxu0 %v11793_v47  ;;  %v11920_v54 = vcombine.low %v349_v42, %v353_v43  ;;  %v11874_v42 = vcombine.low %v302_v30, %v306_v32  ;;  %v11739_v43 = vcombine.high %v166_v36, %v170_v37  ;;  %v158_v44 = vld [vmem:[#allocation2 + $0xc8] sm:$0xff] }
  0x97   :  { %v217_v50 = vld [vmem:[#allocation2 + $0x2a0] sm:$0xff]  ;;  %1765 = vmatpush2.bf16.msra.mxu0 %v11792_v53  ;;  %v162_v45 = vld [vmem:[#allocation2 + $0xe8] sm:$0xff] }
  0x98   :  { %v341_v51 = vld [vmem:[#allocation2 + $0x680] sm:$0xff]  ;;  %v11785_v55 = vcombine.high %v213_v49, %v217_v50  ;;  %1805 = vmatprep.subr.bf16.mxu1 %v11921_v48  ;;  %v11784_v63 = vcombine.low %v213_v49, %v217_v50  ;;  %v286_v47 = vld [vmem:[#allocation2 + $0x4c8] sm:$0xff]  ;;  %v11867_v48 = vcombine.high %v294_v38, %v298_v40  ;;  %v11738_v50 = vcombine.low %v166_v36, %v170_v37 }
  0x99   :  { %v345_v52 = vld [vmem:[#allocation2 + $0x6a0] sm:$0xff]  ;;  %1806 = vmatpush2.bf16.msra.mxu1 %v11920_v54  ;;  %v290_v49 = vld [vmem:[#allocation2 + $0x4e8] sm:$0xff] }
  0x9a   :  { %v11913_v57 = vcombine.high %v341_v51, %v345_v52  ;;  %v205_v58 = vld [vmem:[#allocation2 + $0x240] sm:$0xff]  ;;  %1766 = vmatprep.subr.bf16.mxu0 %v11785_v55  ;;  %v11912_v0 = vcombine.low %v341_v51, %v345_v52  ;;  %v11866_v51 = vcombine.low %v294_v38, %v298_v40  ;;  %v11731_v52 = vcombine.high %v158_v44, %v162_v45  ;;  %v150_v53 = vld [vmem:[#allocation2 + $0x88] sm:$0xff] }
  0x9b   :  { %v209_v60 = vld [vmem:[#allocation2 + $0x260] sm:$0xff]  ;;  %1767 = vmatpush2.bf16.msra.mxu0 %v11784_v63  ;;  %v154_v54 = vld [vmem:[#allocation2 + $0xa8] sm:$0xff] }
  0x9c   :  { %v333_v61 = vld [vmem:[#allocation2 + $0x640] sm:$0xff]  ;;  %v11777_v1 = vcombine.high %v205_v58, %v209_v60  ;;  %1807 = vmatprep.subr.bf16.mxu1 %v11913_v57  ;;  %v11776_v8 = vcombine.low %v205_v58, %v209_v60  ;;  %v278_v55 = vld [vmem:[#allocation2 + $0x488] sm:$0xff]  ;;  %v11859_v57 = vcombine.high %v286_v47, %v290_v49  ;;  %v11730_v60 = vcombine.low %v158_v44, %v162_v45 }
  0x9d   :  { %v337_v62 = vld [vmem:[#allocation2 + $0x660] sm:$0xff]  ;;  %1808 = vmatpush2.bf16.msra.mxu1 %v11912_v0  ;;  %v282_v58 = vld [vmem:[#allocation2 + $0x4a8] sm:$0xff] }
  0x9e   :  { %v11905_v2 = vcombine.high %v333_v61, %v337_v62  ;;  %v197_v4 = vld [vmem:[#allocation2 + $0x200] sm:$0xff]  ;;  %1768 = vmatprep.subr.bf16.mxu0 %v11777_v1  ;;  %v11904_v10 = vcombine.low %v333_v61, %v337_v62  ;;  %v11858_v61 = vcombine.low %v286_v47, %v290_v49  ;;  %v11723_v62 = vcombine.high %v150_v53, %v154_v54  ;;  %v142_v63 = vld [vmem:[#allocation2 + $0x48] sm:$0xff] }
  0x9f   :  { %v201_v5 = vld [vmem:[#allocation2 + $0x220] sm:$0xff]  ;;  %1769 = vmatpush2.bf16.msra.mxu0 %v11776_v8  ;;  %v146_v0 = vld [vmem:[#allocation2 + $0x68] sm:$0xff] }
  0xa0   :  { %v325_v6 = vld [vmem:[#allocation2 + $0x600] sm:$0xff]  ;;  %v11769_v11 = vcombine.high %v197_v4, %v201_v5  ;;  %1809 = vmatprep.subr.bf16.mxu1 %v11905_v2  ;;  %v11768_v17 = vcombine.low %v197_v4, %v201_v5  ;;  %v270_v1 = vld [vmem:[#allocation2 + $0x448] sm:$0xff]  ;;  %v11851_v2 = vcombine.high %v278_v55, %v282_v58  ;;  %v11722_v5 = vcombine.low %v150_v53, %v154_v54 }
  0xa1   :  { %v329_v7 = vld [vmem:[#allocation2 + $0x620] sm:$0xff]  ;;  %1810 = vmatpush2.bf16.msra.mxu1 %v11904_v10  ;;  %v274_v4 = vld [vmem:[#allocation2 + $0x468] sm:$0xff]  ;;  %v11714_v14 = vcombine.low %v142_v63, %v146_v0 }
  0xa2   :  { %v11897_v12 = vcombine.high %v325_v6, %v329_v7  ;;  %1770 = vmatprep.subr.bf16.mxu0 %v11769_v11  ;;  %v11896_v19 = vcombine.low %v325_v6, %v329_v7  ;;  %v11850_v6 = vcombine.low %v278_v55, %v282_v58  ;;  %v11715_v7 = vcombine.high %v142_v63, %v146_v0  ;;  %v134_v8 = vld [vmem:[#allocation2 + $0x8] sm:$0xff] }
  0xa3   :  { %1771 = vmatpush2.bf16.msra.mxu0 %v11768_v17  ;;  %v138_v10 = vld [vmem:[#allocation2 + $0x28] sm:$0xff]  ;;  %v11842_v15 = vcombine.low %v270_v1, %v274_v4 }
  0xa4   :  { %1811 = vmatprep.subr.bf16.mxu1 %v11897_v12  ;;  %1822 = vmatprep.subr.bf16.mxu0 %v11763_v20  ;;  %v262_v11 = vld [vmem:[#allocation2 + $0x408] sm:$0xff]  ;;  %v11843_v12 = vcombine.high %v270_v1, %v274_v4  ;;  %v11707_v16 = vcombine.high %v134_v8, %v138_v10  ;;  %v11706_v23 = vcombine.low %v134_v8, %v138_v10 }
  0xa5   :  { %1812 = vmatpush2.bf16.msra.mxu1 %v11896_v19  ;;  %v266_v13 = vld [vmem:[#allocation2 + $0x428] sm:$0xff] }
  0xa6   :  { %1863 = vmatprep.subr.bf16.mxu1 %v11891_v21  ;;  %1773 = vmatmul.mubr.bf16.vlgmr.msra.gmra.mxu0 %v13947_v18  ;;  %v254_v17 = vld [vmem:[#allocation2 + $0x3c8] sm:$0xff]  ;;  %v11835_v21 = vcombine.high %v262_v11, %v266_v13  ;;  %v11834_v24 = vcombine.low %v262_v11, %v266_v13 }
  0xa7   :  { %1823 = vmatpush1.bf16.msra.mxu0 %v11762_v27  ;;  %1854 = vmatprep.mubr.bf16.mxu0 %v13937_v3  ;;  %v258_v19 = vld [vmem:[#allocation2 + $0x3e8] sm:$0xff] }
  0xa8   :  { %1814 = vmatmul.mubr.bf16.vlgmr.msra.gmra.mxu1 %v13951_v26  ;;  %1824 = vmatprep.subr.bf16.mxu0 %v11755_v59  ;;  %v382_v20 = vld [vmem:[#allocation2 + $0x7c8] sm:$0xff]  ;;  %v11827_v25 = vcombine.high %v254_v17, %v258_v19  ;;  %v11826_v30 = vcombine.low %v254_v17, %v258_v19 }
  0xa9   :  { %1864 = vmatpush1.bf16.msra.mxu1 %v11890_v56  ;;  %1895 = vmatprep.mubr.bf16.mxu1 %v13942_v9  ;;  %v386_v22 = vld [vmem:[#allocation2 + $0x7e8] sm:$0xff] }
  0xaa   :  { %1865 = vmatprep.subr.bf16.mxu1 %v11883_v31  ;;  %v246_v27 = vld [vmem:[#allocation2 + $0x388] sm:$0xff]  ;;  %v11955_v28 = vcombine.high %v382_v20, %v386_v22  ;;  %v11954_v31 = vcombine.low %v382_v20, %v386_v22 }
  0xab   :  { %1825 = vmatpush1.bf16.msra.mxu0 %v11754_v33  ;;  %v250_v56 = vld [vmem:[#allocation2 + $0x3a8] sm:$0xff] }
  0xac   :  { %1826 = vmatprep.subr.bf16.mxu0 %v11747_v35  ;;  %v374_v59 = vld [vmem:[#allocation2 + $0x788] sm:$0xff]  ;;  %v11819_v32 = vcombine.high %v246_v27, %v250_v56  ;;  %v11818_v38 = vcombine.low %v246_v27, %v250_v56  ;;  %v323_v56 = vld [vmem:[#allocation2 + $0x5f0] sm:$0xff] }
  0xad   :  { %1866 = vmatpush1.bf16.msra.mxu1 %v11882_v34  ;;  %v378_v29 = vld [vmem:[#allocation2 + $0x7a8] sm:$0xff] }
  0xae   :  { %1867 = vmatprep.subr.bf16.mxu1 %v11875_v39  ;;  %v238_v33 = vld [vmem:[#allocation2 + $0x348] sm:$0xff]  ;;  %v11947_v36 = vcombine.high %v374_v59, %v378_v29  ;;  %v11946_v39 = vcombine.low %v374_v59, %v378_v29 }
  0xaf   :  { %1827 = vmatpush1.bf16.msra.mxu0 %v11746_v41  ;;  %v242_v34 = vld [vmem:[#allocation2 + $0x368] sm:$0xff] }
  0xb0   :  { %1828 = vmatprep.subr.bf16.mxu0 %v11739_v43  ;;  %v366_v35 = vld [vmem:[#allocation2 + $0x748] sm:$0xff]  ;;  %v11811_v40 = vcombine.high %v238_v33, %v242_v34  ;;  %v11810_v47 = vcombine.low %v238_v33, %v242_v34  ;;  %v315_v34 = vld [vmem:[#allocation2 + $0x5b0] sm:$0xff] }
  0xb1   :  { %1868 = vmatpush1.bf16.msra.mxu1 %v11874_v42  ;;  %v370_v37 = vld [vmem:[#allocation2 + $0x768] sm:$0xff] }
  0xb2   :  { %1869 = vmatprep.subr.bf16.mxu1 %v11867_v48  ;;  %v230_v41 = vld [vmem:[#allocation2 + $0x308] sm:$0xff]  ;;  %v11939_v44 = vcombine.high %v366_v35, %v370_v37  ;;  %v11938_v48 = vcombine.low %v366_v35, %v370_v37 }
  0xb3   :  { %1829 = vmatpush1.bf16.msra.mxu0 %v11738_v50  ;;  %v234_v42 = vld [vmem:[#allocation2 + $0x328] sm:$0xff] }
  0xb4   :  { %1830 = vmatprep.subr.bf16.mxu0 %v11731_v52  ;;  %v358_v43 = vld [vmem:[#allocation2 + $0x708] sm:$0xff]  ;;  %v11803_v49 = vcombine.high %v230_v41, %v234_v42  ;;  %v11802_v55 = vcombine.low %v230_v41, %v234_v42  ;;  %v307_v41 = vld [vmem:[#allocation2 + $0x570] sm:$0xff] }
  0xb5   :  { %1870 = vmatpush1.bf16.msra.mxu1 %v11866_v51  ;;  %v362_v45 = vld [vmem:[#allocation2 + $0x728] sm:$0xff] }
  0xb6   :  { %1871 = vmatprep.subr.bf16.mxu1 %v11859_v57  ;;  %v222_v50 = vld [vmem:[#allocation2 + $0x2c8] sm:$0xff]  ;;  %v11931_v53 = vcombine.high %v358_v43, %v362_v45  ;;  %v11930_v57 = vcombine.low %v358_v43, %v362_v45  ;;  %v171_v45 = vld [vmem:[#allocation2 + $0x130] sm:$0xff] }
  0xb7   :  { %1831 = vmatpush1.bf16.msra.mxu0 %v11730_v60  ;;  %v226_v51 = vld [vmem:[#allocation2 + $0x2e8] sm:$0xff] }
  0xb8   :  { %1832 = vmatprep.subr.bf16.mxu0 %v11723_v62  ;;  %v350_v52 = vld [vmem:[#allocation2 + $0x6c8] sm:$0xff]  ;;  %v11795_v58 = vcombine.high %v222_v50, %v226_v51  ;;  %v11794_v1 = vcombine.low %v222_v50, %v226_v51  ;;  %v299_v50 = vld [vmem:[#allocation2 + $0x530] sm:$0xff] }
  0xb9   :  { %1872 = vmatpush1.bf16.msra.mxu1 %v11858_v61  ;;  %v354_v54 = vld [vmem:[#allocation2 + $0x6e8] sm:$0xff] }
  0xba   :  { %1873 = vmatprep.subr.bf16.mxu1 %v11851_v2  ;;  %v214_v60 = vld [vmem:[#allocation2 + $0x288] sm:$0xff]  ;;  %v11923_v63 = vcombine.high %v350_v52, %v354_v54  ;;  %v11922_v2 = vcombine.low %v350_v52, %v354_v54  ;;  %v163_v54 = vld [vmem:[#allocation2 + $0xf0] sm:$0xff] }
  0xbb   :  { %1833 = vmatpush1.bf16.msra.mxu0 %v11722_v5  ;;  %v218_v61 = vld [vmem:[#allocation2 + $0x2a8] sm:$0xff] }
  0xbc   :  { %1834 = vmatprep.subr.bf16.mxu0 %v11715_v7  ;;  %v342_v62 = vld [vmem:[#allocation2 + $0x688] sm:$0xff]  ;;  %v11787_v4 = vcombine.high %v214_v60, %v218_v61  ;;  %v11786_v11 = vcombine.low %v214_v60, %v218_v61  ;;  %v291_v60 = vld [vmem:[#allocation2 + $0x4f0] sm:$0xff] }
  0xbd   :  { %1874 = vmatpush1.bf16.msra.mxu1 %v11850_v6  ;;  %v346_v0 = vld [vmem:[#allocation2 + $0x6a8] sm:$0xff] }
  0xbe   :  { %1875 = vmatprep.subr.bf16.mxu1 %v11843_v12  ;;  %v206_v5 = vld [vmem:[#allocation2 + $0x248] sm:$0xff]  ;;  %v11915_v8 = vcombine.high %v342_v62, %v346_v0  ;;  %v11914_v12 = vcombine.low %v342_v62, %v346_v0 }
  0xbf   :  { %1835 = vmatpush1.bf16.msra.mxu0 %v11714_v14  ;;  %v210_v6 = vld [vmem:[#allocation2 + $0x268] sm:$0xff] }
  0xc0   :  { %1836 = vmatprep.subr.bf16.mxu0 %v11707_v16  ;;  %v334_v7 = vld [vmem:[#allocation2 + $0x648] sm:$0xff]  ;;  %v11779_v13 = vcombine.high %v206_v5, %v210_v6  ;;  %v11778_v20 = vcombine.low %v206_v5, %v210_v6  ;;  %v283_v6 = vld [vmem:[#allocation2 + $0x4b0] sm:$0xff] }
  0xc1   :  { %1876 = vmatpush1.bf16.msra.mxu1 %v11842_v15  ;;  %v338_v10 = vld [vmem:[#allocation2 + $0x668] sm:$0xff] }
  0xc2   :  { %1877 = vmatprep.subr.bf16.mxu1 %v11835_v21  ;;  %v198_v14 = vld [vmem:[#allocation2 + $0x208] sm:$0xff]  ;;  %v11907_v17 = vcombine.high %v334_v7, %v338_v10  ;;  %v11906_v21 = vcombine.low %v334_v7, %v338_v10  ;;  %v147_v10 = vld [vmem:[#allocation2 + $0x70] sm:$0xff] }
  0xc3   :  { %1837 = vmatpush1.bf16.msra.mxu0 %v11706_v23  ;;  %v202_v15 = vld [vmem:[#allocation2 + $0x228] sm:$0xff]  ;;  %v191_v23 = vld [vmem:[#allocation2 + $0x1d0] sm:$0xff] }
  0xc4   :  { %1838 = vmatprep.subr.bf16.mxu0 %v11827_v25  ;;  %v326_v16 = vld [vmem:[#allocation2 + $0x608] sm:$0xff]  ;;  %v11771_v22 = vcombine.high %v198_v14, %v202_v15  ;;  %v319_v25 = vld [vmem:[#allocation2 + $0x5d0] sm:$0xff]  ;;  %v11770_v59 = vcombine.low %v198_v14, %v202_v15 }
  0xc5   :  { %1878 = vmatpush1.bf16.msra.mxu1 %v11834_v24  ;;  %v330_v19 = vld [vmem:[#allocation2 + $0x628] sm:$0xff]  ;;  %v195_v24 = vld [vmem:[#allocation2 + $0x1f0] sm:$0xff]  ;;  %v11893_v33 = vcombine.high %v319_v25, %v323_v56  ;;  %v11892_v37 = vcombine.low %v319_v25, %v323_v56 }
  0xc6   :  { %1879 = vmatprep.subr.bf16.mxu1 %v11955_v28  ;;  %v11899_v27 = vcombine.high %v326_v16, %v330_v19  ;;  %v11898_v28 = vcombine.low %v326_v16, %v330_v19  ;;  %v11765_v29 = vcombine.high %v191_v23, %v195_v24  ;;  %v11764_v35 = vcombine.low %v191_v23, %v195_v24  ;;  %v275_v14 = vld [vmem:[#allocation2 + $0x470] sm:$0xff] }
  0xc7   :  { %1839 = vmatpush2.bf16.msra.mxu0 %v11826_v30  ;;  %v183_v30 = vld [vmem:[#allocation2 + $0x190] sm:$0xff] }
  0xc8   :  { %1840 = vmatprep.subr.bf16.mxu0 %v11819_v32  ;;  %v311_v32 = vld [vmem:[#allocation2 + $0x590] sm:$0xff] }
  0xc9   :  { %1880 = vmatpush2.bf16.msra.mxu1 %v11954_v31  ;;  %v187_v31 = vld [vmem:[#allocation2 + $0x1b0] sm:$0xff]  ;;  %v11885_v42 = vcombine.high %v311_v32, %v315_v34 }
  0xca   :  { %1881 = vmatprep.subr.bf16.mxu1 %v11947_v36  ;;  %v175_v36 = vld [vmem:[#allocation2 + $0x150] sm:$0xff]  ;;  %v11756_v43 = vcombine.low %v183_v30, %v187_v31 }
  0xcb   :  { %1841 = vmatpush2.bf16.msra.mxu0 %v11818_v38  ;;  %v11757_v38 = vcombine.high %v183_v30, %v187_v31  ;;  %v139_v19 = vld [vmem:[#allocation2 + $0x30] sm:$0xff] }
  0xcc   :  { %1842 = vmatprep.subr.bf16.mxu0 %v11811_v40  ;;  %v303_v40 = vld [vmem:[#allocation2 + $0x550] sm:$0xff] }
  0xcd   :  { %1882 = vmatpush2.bf16.msra.mxu1 %v11946_v39  ;;  %v179_v39 = vld [vmem:[#allocation2 + $0x170] sm:$0xff]  ;;  %v11877_v51 = vcombine.high %v303_v40, %v307_v41 }
  0xce   :  { %1883 = vmatprep.subr.bf16.mxu1 %v11939_v44  ;;  %v167_v44 = vld [vmem:[#allocation2 + $0x110] sm:$0xff]  ;;  %v11748_v52 = vcombine.low %v175_v36, %v179_v39 }
  0xcf   :  { %1843 = vmatpush2.bf16.msra.mxu0 %v11810_v47  ;;  %v11884_v47 = vcombine.low %v311_v32, %v315_v34  ;;  %v11740_v62 = vcombine.low %v167_v44, %v171_v45  ;;  %v267_v23 = vld [vmem:[#allocation2 + $0x430] sm:$0xff] }
  0xd0   :  { %1844 = vmatprep.subr.bf16.mxu0 %v11803_v49  ;;  %v295_v49 = vld [vmem:[#allocation2 + $0x510] sm:$0xff] }
  0xd1   :  { %1884 = vmatpush2.bf16.msra.mxu1 %v11938_v48  ;;  %v11749_v48 = vcombine.high %v175_v36, %v179_v39  ;;  %v11869_v61 = vcombine.high %v295_v49, %v299_v50  ;;  %v259_v56 = vld [vmem:[#allocation2 + $0x3f0] sm:$0xff] }
  0xd2   :  { %1885 = vmatprep.subr.bf16.mxu1 %v11931_v53  ;;  %v159_v53 = vld [vmem:[#allocation2 + $0xd0] sm:$0xff] }
  0xd3   :  { %1845 = vmatpush2.bf16.msra.mxu0 %v11802_v55  ;;  %v11876_v55 = vcombine.low %v303_v40, %v307_v41  ;;  %v11733_v0 = vcombine.high %v159_v53, %v163_v54  ;;  %v11732_v7 = vcombine.low %v159_v53, %v163_v54  ;;  %v387_v30 = vld [vmem:[#allocation2 + $0x7f0] sm:$0xff] }
  0xd4   :  { %1846 = vmatprep.subr.bf16.mxu0 %v11795_v58  ;;  %v287_v58 = vld [vmem:[#allocation2 + $0x4d0] sm:$0xff] }
  0xd5   :  { %1886 = vmatpush2.bf16.msra.mxu1 %v11930_v57  ;;  %v11741_v57 = vcombine.high %v167_v44, %v171_v45  ;;  %v11861_v5 = vcombine.high %v287_v58, %v291_v60  ;;  %v251_v34 = vld [vmem:[#allocation2 + $0x3b0] sm:$0xff] }
  0xd6   :  { %1887 = vmatprep.subr.bf16.mxu1 %v11923_v63  ;;  %v11868_v63 = vcombine.low %v295_v49, %v299_v50  ;;  %v239_v41 = vld [vmem:[#allocation2 + $0x350] sm:$0xff] }
  0xd7   :  { %1847 = vmatpush2.bf16.msra.mxu0 %v11794_v1  ;;  %v151_v1 = vld [vmem:[#allocation2 + $0x90] sm:$0xff] }
  0xd8   :  { %1848 = vmatprep.subr.bf16.mxu0 %v11787_v4  ;;  %v279_v4 = vld [vmem:[#allocation2 + $0x490] sm:$0xff] }
  0xd9   :  { %1888 = vmatpush2.bf16.msra.mxu1 %v11922_v2  ;;  %v155_v2 = vld [vmem:[#allocation2 + $0xb0] sm:$0xff]  ;;  %v11853_v15 = vcombine.high %v279_v4, %v283_v6 }
  0xda   :  { %1889 = vmatprep.subr.bf16.mxu1 %v11915_v8  ;;  %v143_v8 = vld [vmem:[#allocation2 + $0x50] sm:$0xff]  ;;  %v11724_v16 = vcombine.low %v151_v1, %v155_v2 }
  0xdb   :  { %1849 = vmatpush2.bf16.msra.mxu0 %v11786_v11  ;;  %v11860_v11 = vcombine.low %v287_v58, %v291_v60  ;;  %v11716_v25 = vcombine.low %v143_v8, %v147_v10  ;;  %v367_v45 = vld [vmem:[#allocation2 + $0x750] sm:$0xff] }
  0xdc   :  { %1850 = vmatprep.subr.bf16.mxu0 %v11779_v13  ;;  %v271_v13 = vld [vmem:[#allocation2 + $0x450] sm:$0xff] }
  0xdd   :  { %1890 = vmatpush2.bf16.msra.mxu1 %v11914_v12  ;;  %v11725_v12 = vcombine.high %v151_v1, %v155_v2  ;;  %v11845_v24 = vcombine.high %v271_v13, %v275_v14  ;;  %v231_v50 = vld [vmem:[#allocation2 + $0x310] sm:$0xff] }
  0xde   :  { %1891 = vmatprep.subr.bf16.mxu1 %v11907_v17  ;;  %v135_v17 = vld [vmem:[#allocation2 + $0x10] sm:$0xff] }
  0xdf   :  { %1851 = vmatpush2.bf16.msra.mxu0 %v11778_v20  ;;  %v11852_v20 = vcombine.low %v279_v4, %v283_v6  ;;  %v11708_v32 = vcombine.low %v135_v17, %v139_v19  ;;  %v359_v54 = vld [vmem:[#allocation2 + $0x710] sm:$0xff] }
  0xe0   :  { %1852 = vmatprep.subr.bf16.mxu0 %v11771_v22  ;;  %v263_v22 = vld [vmem:[#allocation2 + $0x410] sm:$0xff] }
  0xe1   :  { %1892 = vmatpush2.bf16.msra.mxu1 %v11906_v21  ;;  %v11717_v21 = vcombine.high %v143_v8, %v147_v10  ;;  %v11837_v31 = vcombine.high %v263_v22, %v267_v23  ;;  %v223_v60 = vld [vmem:[#allocation2 + $0x2d0] sm:$0xff] }
  0xe2   :  { %1893 = vmatprep.subr.bf16.mxu1 %v11899_v27  ;;  %v255_v27 = vld [vmem:[#allocation2 + $0x3d0] sm:$0xff] }
  0xe3   :  { %1853 = vmatpush2.bf16.msra.mxu0 %v11770_v59  ;;  %v11844_v59 = vcombine.low %v271_v13, %v275_v14  ;;  %v11829_v36 = vcombine.high %v255_v27, %v259_v56  ;;  %v11828_v40 = vcombine.low %v255_v27, %v259_v56  ;;  %v355_v1 = vld [vmem:[#allocation2 + $0x6f0] sm:$0xff] }
  0xe4   :  { %1904 = vmatprep.subr.bf16.mxu0 %v11765_v29  ;;  %v383_v29 = vld [vmem:[#allocation2 + $0x7d0] sm:$0xff] }
  0xe5   :  { %1894 = vmatpush2.bf16.msra.mxu1 %v11898_v28  ;;  %v11709_v28 = vcombine.high %v135_v17, %v139_v19  ;;  %v11957_v39 = vcombine.high %v383_v29, %v387_v30  ;;  %v219_v6 = vld [vmem:[#allocation2 + $0x2b0] sm:$0xff] }
  0xe6   :  { %1945 = vmatprep.subr.bf16.mxu1 %v11893_v33  ;;  %1855 = vmatmul.mubr.bf16.vlgmr.msra.gmra.mxu0 %v13947_v18  ;;  %v247_v33 = vld [vmem:[#allocation2 + $0x390] sm:$0xff] }
  0xe7   :  { %1905 = vmatpush1.bf16.msra.mxu0 %v11764_v35  ;;  %1936 = vmatprep.mubr.bf16.mxu0 %v13937_v3  ;;  %v11836_v35 = vcombine.low %v263_v22, %v267_v23  ;;  %v11821_v44 = vcombine.high %v247_v33, %v251_v34  ;;  %v11820_v49 = vcombine.low %v247_v33, %v251_v34  ;;  %v343_v10 = vld [vmem:[#allocation2 + $0x690] sm:$0xff]  ;;  %v320_v34 = vld [vmem:[#allocation2 + $0x5d8] sm:$0xff] }
  0xe8   :  { %1896 = vmatmul.mubr.bf16.vlgmr.msra.gmra.mxu1 %v13951_v26  ;;  %1906 = vmatprep.subr.bf16.mxu0 %v11757_v38  ;;  %v379_v38 = vld [vmem:[#allocation2 + $0x7b0] sm:$0xff] }
  0xe9   :  { %1946 = vmatpush1.bf16.msra.mxu1 %v11892_v37  ;;  %1977 = vmatprep.mubr.bf16.mxu1 %v13942_v9  ;;  %v375_v37 = vld [vmem:[#allocation2 + $0x790] sm:$0xff] }
  0xea   :  { %1947 = vmatprep.subr.bf16.mxu1 %v11885_v42  ;;  %v243_v42 = vld [vmem:[#allocation2 + $0x370] sm:$0xff] }
  0xeb   :  { %1907 = vmatpush1.bf16.msra.mxu0 %v11756_v43  ;;  %v11956_v43 = vcombine.low %v383_v29, %v387_v30  ;;  %v11813_v53 = vcombine.high %v239_v41, %v243_v42  ;;  %v11812_v58 = vcombine.low %v239_v41, %v243_v42  ;;  %v207_v14 = vld [vmem:[#allocation2 + $0x250] sm:$0xff]  ;;  %v192_v30 = vld [vmem:[#allocation2 + $0x1d8] sm:$0xff] }
  0xec   :  { %1908 = vmatprep.subr.bf16.mxu0 %v11749_v48  ;;  %v11949_v48 = vcombine.high %v375_v37, %v379_v38  ;;  %v335_v19 = vld [vmem:[#allocation2 + $0x650] sm:$0xff]  ;;  %v188_v42 = vld [vmem:[#allocation2 + $0x1b8] sm:$0xff] }
  0xed   :  { %1948 = vmatpush1.bf16.msra.mxu1 %v11884_v47  ;;  %v371_v47 = vld [vmem:[#allocation2 + $0x770] sm:$0xff] }
  0xee   :  { %1949 = vmatprep.subr.bf16.mxu1 %v11877_v51  ;;  %v235_v51 = vld [vmem:[#allocation2 + $0x330] sm:$0xff] }
  0xef   :  { %1909 = vmatpush1.bf16.msra.mxu0 %v11748_v52  ;;  %v11948_v52 = vcombine.low %v375_v37, %v379_v38  ;;  %v11804_v4 = vcombine.low %v231_v50, %v235_v51  ;;  %v199_v23 = vld [vmem:[#allocation2 + $0x210] sm:$0xff] }
  0xf0   :  { %1910 = vmatprep.subr.bf16.mxu0 %v11741_v57  ;;  %v11941_v57 = vcombine.high %v367_v45, %v371_v47  ;;  %v327_v56 = vld [vmem:[#allocation2 + $0x610] sm:$0xff] }
  0xf1   :  { %1950 = vmatpush1.bf16.msra.mxu1 %v11876_v55  ;;  %v363_v55 = vld [vmem:[#allocation2 + $0x730] sm:$0xff] }
  0xf2   :  { %1951 = vmatprep.subr.bf16.mxu1 %v11869_v61  ;;  %v227_v61 = vld [vmem:[#allocation2 + $0x2f0] sm:$0xff]  ;;  %v11933_v2 = vcombine.high %v359_v54, %v363_v55 }
  0xf3   :  { %1911 = vmatpush1.bf16.msra.mxu0 %v11740_v62  ;;  %v11940_v62 = vcombine.low %v367_v45, %v371_v47  ;;  %v11797_v8 = vcombine.high %v223_v60, %v227_v61  ;;  %v11796_v13 = vcombine.low %v223_v60, %v227_v61  ;;  %v168_v60 = vld [vmem:[#allocation2 + $0x118] sm:$0xff] }
  0xf4   :  { %1912 = vmatprep.subr.bf16.mxu0 %v11733_v0  ;;  %v351_v0 = vld [vmem:[#allocation2 + $0x6d0] sm:$0xff]  ;;  %v172_v61 = vld [vmem:[#allocation2 + $0x138] sm:$0xff] }
  0xf5   :  { %1952 = vmatpush1.bf16.msra.mxu1 %v11868_v63  ;;  %v11805_v63 = vcombine.high %v231_v50, %v235_v51  ;;  %v176_v50 = vld [vmem:[#allocation2 + $0x158] sm:$0xff] }
  0xf6   :  { %1953 = vmatprep.subr.bf16.mxu1 %v11861_v5  ;;  %v215_v5 = vld [vmem:[#allocation2 + $0x290] sm:$0xff]  ;;  %v180_v51 = vld [vmem:[#allocation2 + $0x178] sm:$0xff] }
  0xf7   :  { %1913 = vmatpush1.bf16.msra.mxu0 %v11732_v7  ;;  %v11932_v7 = vcombine.low %v359_v54, %v363_v55  ;;  %v11789_v17 = vcombine.high %v215_v5, %v219_v6  ;;  %v11788_v22 = vcombine.low %v215_v5, %v219_v6  ;;  %v160_v5 = vld [vmem:[#allocation2 + $0xd8] sm:$0xff] }
  0xf8   :  { %1914 = vmatprep.subr.bf16.mxu0 %v11725_v12  ;;  %v11925_v12 = vcombine.high %v351_v0, %v355_v1  ;;  %v164_v6 = vld [vmem:[#allocation2 + $0xf8] sm:$0xff] }
  0xf9   :  { %1954 = vmatpush1.bf16.msra.mxu1 %v11860_v11  ;;  %v347_v11 = vld [vmem:[#allocation2 + $0x6b0] sm:$0xff] }
  0xfa   :  { %1955 = vmatprep.subr.bf16.mxu1 %v11853_v15  ;;  %v211_v15 = vld [vmem:[#allocation2 + $0x270] sm:$0xff] }
  0xfb   :  { %1915 = vmatpush1.bf16.msra.mxu0 %v11724_v16  ;;  %v11924_v16 = vcombine.low %v351_v0, %v355_v1  ;;  %v11781_v27 = vcombine.high %v207_v14, %v211_v15  ;;  %v11780_v29 = vcombine.low %v207_v14, %v211_v15  ;;  %v11750_v0 = vcombine.low %v176_v50, %v180_v51  ;;  %v280_v14 = vld [vmem:[#allocation2 + $0x498] sm:$0xff] }
  0xfc   :  { %1916 = vmatprep.subr.bf16.mxu0 %v11717_v21  ;;  %v11917_v21 = vcombine.high %v343_v10, %v347_v11  ;;  %v284_v15 = vld [vmem:[#allocation2 + $0x4b8] sm:$0xff] }
  0xfd   :  { %1956 = vmatpush1.bf16.msra.mxu1 %v11852_v20  ;;  %v339_v20 = vld [vmem:[#allocation2 + $0x670] sm:$0xff] }
  0xfe   :  { %1957 = vmatprep.subr.bf16.mxu1 %v11845_v24  ;;  %v203_v24 = vld [vmem:[#allocation2 + $0x230] sm:$0xff] }
  0xff   :  { %1917 = vmatpush1.bf16.msra.mxu0 %v11716_v25  ;;  %v11916_v25 = vcombine.low %v343_v10, %v347_v11  ;;  %v11773_v33 = vcombine.high %v199_v23, %v203_v24  ;;  %v11772_v37 = vcombine.low %v199_v23, %v203_v24  ;;  %v11742_v10 = vcombine.low %v168_v60, %v172_v61  ;;  %v272_v23 = vld [vmem:[#allocation2 + $0x458] sm:$0xff] }
 0x100   :  { %1918 = vmatprep.subr.bf16.mxu0 %v11709_v28  ;;  %v11909_v28 = vcombine.high %v335_v19, %v339_v20  ;;  %v11735_v11 = vcombine.high %v160_v5, %v164_v6  ;;  %v276_v24 = vld [vmem:[#allocation2 + $0x478] sm:$0xff] }
 0x101   :  { %1958 = vmatpush1.bf16.msra.mxu1 %v11844_v59  ;;  %v331_v59 = vld [vmem:[#allocation2 + $0x630] sm:$0xff] }
 0x102   :  { %1959 = vmatprep.subr.bf16.mxu1 %v11837_v31  ;;  %v196_v31 = vld [vmem:[#allocation2 + $0x1f8] sm:$0xff]  ;;  %v11900_v38 = vcombine.low %v327_v56, %v331_v59 }
 0x103   :  { %1919 = vmatpush1.bf16.msra.mxu0 %v11708_v32  ;;  %v11908_v32 = vcombine.low %v335_v19, %v339_v20  ;;  %v11766_v45 = vcombine.low %v192_v30, %v196_v31  ;;  %v11855_v20 = vcombine.high %v280_v14, %v284_v15 }
 0x104   :  { %1920 = vmatprep.subr.bf16.mxu0 %v11829_v36  ;;  %v11901_v36 = vcombine.high %v327_v56, %v331_v59  ;;  %v11847_v59 = vcombine.high %v272_v23, %v276_v24 }
 0x105   :  { %1960 = vmatpush1.bf16.msra.mxu1 %v11836_v35  ;;  %v324_v35 = vld [vmem:[#allocation2 + $0x5f8] sm:$0xff] }
 0x106   :  { %1961 = vmatprep.subr.bf16.mxu1 %v11957_v39  ;;  %v11767_v39 = vcombine.high %v192_v30, %v196_v31  ;;  %v11895_v41 = vcombine.high %v320_v34, %v324_v35  ;;  %v11894_v47 = vcombine.low %v320_v34, %v324_v35  ;;  %v264_v30 = vld [vmem:[#allocation2 + $0x418] sm:$0xff] }
 0x107   :  { %1921 = vmatpush2.bf16.msra.mxu0 %v11828_v40  ;;  %v184_v40 = vld [vmem:[#allocation2 + $0x198] sm:$0xff] }
 0x108   :  { %1922 = vmatprep.subr.bf16.mxu0 %v11821_v44  ;;  %v316_v44 = vld [vmem:[#allocation2 + $0x5b8] sm:$0xff]  ;;  %v11758_v54 = vcombine.low %v184_v40, %v188_v42 }
 0x109   :  { %1962 = vmatpush2.bf16.msra.mxu1 %v11956_v43  ;;  %v312_v43 = vld [vmem:[#allocation2 + $0x598] sm:$0xff] }
 0x10a   :  { %1963 = vmatprep.subr.bf16.mxu1 %v11949_v48  ;;  %v11759_v48 = vcombine.high %v184_v40, %v188_v42  ;;  %v11886_v55 = vcombine.low %v312_v43, %v316_v44  ;;  %v268_v31 = vld [vmem:[#allocation2 + $0x438] sm:$0xff] }
 0x10b   :  { %1923 = vmatpush2.bf16.msra.mxu0 %v11820_v49  ;;  %v11887_v49 = vcombine.high %v312_v43, %v316_v44  ;;  %v11839_v35 = vcombine.high %v264_v30, %v268_v31  ;;  %v248_v44 = vld [vmem:[#allocation2 + $0x398] sm:$0xff] }
 0x10c   :  { %1924 = vmatprep.subr.bf16.mxu0 %v11813_v53  ;;  %v308_v53 = vld [vmem:[#allocation2 + $0x578] sm:$0xff] }
 0x10d   :  { %1964 = vmatpush2.bf16.msra.mxu1 %v11948_v52  ;;  %v304_v52 = vld [vmem:[#allocation2 + $0x558] sm:$0xff] }
 0x10e   :  { %1965 = vmatprep.subr.bf16.mxu1 %v11941_v57  ;;  %v11751_v57 = vcombine.high %v176_v50, %v180_v51  ;;  %v11878_v1 = vcombine.low %v304_v52, %v308_v53 }
 0x10f   :  { %1925 = vmatpush2.bf16.msra.mxu0 %v11812_v58  ;;  %v11879_v58 = vcombine.high %v304_v52, %v308_v53  ;;  %v240_v53 = vld [vmem:[#allocation2 + $0x358] sm:$0xff] }
 0x110   :  { %1926 = vmatprep.subr.bf16.mxu0 %v11805_v63  ;;  %v300_v63 = vld [vmem:[#allocation2 + $0x538] sm:$0xff] }
 0x111   :  { %1966 = vmatpush2.bf16.msra.mxu1 %v11940_v62  ;;  %v296_v62 = vld [vmem:[#allocation2 + $0x518] sm:$0xff] }
 0x112   :  { %1967 = vmatprep.subr.bf16.mxu1 %v11933_v2  ;;  %v11743_v2 = vcombine.high %v168_v60, %v172_v61 }
 0x113   :  { %1927 = vmatpush2.bf16.msra.mxu0 %v11804_v4  ;;  %v11871_v4 = vcombine.high %v296_v62, %v300_v63 }
 0x114   :  { %1928 = vmatprep.subr.bf16.mxu0 %v11797_v8  ;;  %v292_v8 = vld [vmem:[#allocation2 + $0x4f8] sm:$0xff] }
 0x115   :  { %1968 = vmatpush2.bf16.msra.mxu1 %v11932_v7  ;;  %v288_v7 = vld [vmem:[#allocation2 + $0x4d8] sm:$0xff] }
 0x116   :  { %1969 = vmatprep.subr.bf16.mxu1 %v11925_v12  ;;  %v152_v12 = vld [vmem:[#allocation2 + $0x98] sm:$0xff] }
 0x117   :  { %1929 = vmatpush2.bf16.msra.mxu0 %v11796_v13  ;;  %v156_v13 = vld [vmem:[#allocation2 + $0xb8] sm:$0xff] }
 0x118   :  { %1930 = vmatprep.subr.bf16.mxu0 %v11789_v17  ;;  %v11862_v17 = vcombine.low %v288_v7, %v292_v8  ;;  %v11727_v19 = vcombine.high %v152_v12, %v156_v13 }
 0x119   :  { %1970 = vmatpush2.bf16.msra.mxu1 %v11924_v16  ;;  %v11734_v16 = vcombine.low %v160_v5, %v164_v6 }
 0x11a   :  { %1971 = vmatprep.subr.bf16.mxu1 %v11917_v21  ;;  %v144_v21 = vld [vmem:[#allocation2 + $0x58] sm:$0xff] }
 0x11b   :  { %1931 = vmatpush2.bf16.msra.mxu0 %v11788_v22  ;;  %v148_v22 = vld [vmem:[#allocation2 + $0x78] sm:$0xff] }
 0x11c   :  { %1932 = vmatprep.subr.bf16.mxu0 %v11781_v27  ;;  %v11854_v27 = vcombine.low %v280_v14, %v284_v15  ;;  %v11719_v56 = vcombine.high %v144_v21, %v148_v22  ;;  %v216_v15 = vld [vmem:[#allocation2 + $0x298] sm:$0xff] }
 0x11d   :  { %1972 = vmatpush2.bf16.msra.mxu1 %v11916_v25  ;;  %v11726_v25 = vcombine.low %v152_v12, %v156_v13 }
 0x11e   :  { %1973 = vmatprep.subr.bf16.mxu1 %v11909_v28  ;;  %v136_v28 = vld [vmem:[#allocation2 + $0x18] sm:$0xff] }
 0x11f   :  { %1933 = vmatpush2.bf16.msra.mxu0 %v11780_v29  ;;  %v140_v29 = vld [vmem:[#allocation2 + $0x38] sm:$0xff] }
 0x120   :  { %1934 = vmatprep.subr.bf16.mxu0 %v11773_v33  ;;  %v11846_v33 = vcombine.low %v272_v23, %v276_v24  ;;  %v11711_v34 = vcombine.high %v136_v28, %v140_v29  ;;  %v11710_v40 = vcombine.low %v136_v28, %v140_v29  ;;  %v208_v24 = vld [vmem:[#allocation2 + $0x258] sm:$0xff] }
 0x121   :  { %1974 = vmatpush2.bf16.msra.mxu1 %v11908_v32  ;;  %v11718_v32 = vcombine.low %v144_v21, %v148_v22 }
 0x122   :  { %1975 = vmatprep.subr.bf16.mxu1 %v11901_v36  ;;  %v256_v36 = vld [vmem:[#allocation2 + $0x3d8] sm:$0xff] }
 0x123   :  { %1935 = vmatpush2.bf16.msra.mxu0 %v11772_v37  ;;  %v260_v37 = vld [vmem:[#allocation2 + $0x3f8] sm:$0xff] }
 0x124   :  { %1986 = vmatprep.subr.bf16.mxu0 %v11767_v39  ;;  %v388_v39 = vld [vmem:[#allocation2 + $0x7f8] sm:$0xff]  ;;  %v11831_v42 = vcombine.high %v256_v36, %v260_v37 }
 0x125   :  { %1976 = vmatpush2.bf16.msra.mxu1 %v11900_v38  ;;  %v384_v38 = vld [vmem:[#allocation2 + $0x7d8] sm:$0xff] }
 0x126   :  { %2027 = vmatprep.subr.bf16.mxu1 %v11895_v41  ;;  %1937 = vmatmul.mubr.bf16.vlgmr.msra.gmra.mxu0 %v13947_v18  ;;  %v11838_v41 = vcombine.low %v264_v30, %v268_v31  ;;  %v11959_v43 = vcombine.high %v384_v38, %v388_v39  ;;  %v11958_v50 = vcombine.low %v384_v38, %v388_v39  ;;  %v200_v31 = vld [vmem:[#allocation2 + $0x218] sm:$0xff]  ;;  %v2196_v39 = vld [vmem:[#allocation6 + $0x380] sm:$0xff] }
 0x127   :  { %1987 = vmatpush1.bf16.msra.mxu0 %v11766_v45  ;;  %2018 = vmatprep.mubr.bf16.mxu0 %v13937_v3  ;;  %v11870_v3 = vcombine.low %v296_v62, %v300_v63  ;;  %v252_v45 = vld [vmem:[#allocation2 + $0x3b8] sm:$0xff] }
 0x128   :  { %1978 = vmatmul.mubr.bf16.vlgmr.msra.gmra.mxu1 %v13951_v26  ;;  %1988 = vmatprep.subr.bf16.mxu0 %v11759_v48  ;;  %v380_v48 = vld [vmem:[#allocation2 + $0x7b8] sm:$0xff]  ;;  %v11823_v51 = vcombine.high %v248_v44, %v252_v45 }
 0x129   :  { %2028 = vmatpush1.bf16.msra.mxu1 %v11894_v47  ;;  %2059 = vmatprep.mubr.bf16.mxu1 %v13942_v9  ;;  %v11863_v9 = vcombine.high %v288_v7, %v292_v8  ;;  %v376_v47 = vld [vmem:[#allocation2 + $0x798] sm:$0xff] }
 0x12a   :  { %2029 = vmatprep.subr.bf16.mxu1 %v11887_v49  ;;  %v11830_v49 = vcombine.low %v256_v36, %v260_v37  ;;  %v11951_v52 = vcombine.high %v376_v47, %v380_v48  ;;  %v11950_v60 = vcombine.low %v376_v47, %v380_v48  ;;  %v232_v63 = vld [vmem:[#allocation2 + $0x318] sm:$0xff]  ;;  %v13966_v47 = vsub.s32 1, %v13924_v46  ;;  %v2180_v48 = vld [vmem:[#allocation6 + $0x300] sm:$0xff] }
 0x12b   :  { %1989 = vmatpush1.bf16.msra.mxu0 %v11758_v54  ;;  %v244_v54 = vld [vmem:[#allocation2 + $0x378] sm:$0xff] }
 0x12c   :  { %1990 = vmatprep.subr.bf16.mxu0 %v11751_v57  ;;  %v372_v57 = vld [vmem:[#allocation2 + $0x778] sm:$0xff]  ;;  %v11815_v61 = vcombine.high %v240_v53, %v244_v54 }
 0x12d   :  { %2030 = vmatpush1.bf16.msra.mxu1 %v11886_v55  ;;  %v368_v55 = vld [vmem:[#allocation2 + $0x758] sm:$0xff] }
 0x12e   :  { %2031 = vmatprep.subr.bf16.mxu1 %v11879_v58  ;;  %v11822_v58 = vcombine.low %v248_v44, %v252_v45  ;;  %v11943_v62 = vcombine.high %v368_v55, %v372_v57  ;;  %v11942_v5 = vcombine.low %v368_v55, %v372_v57  ;;  %v224_v8 = vld [vmem:[#allocation2 + $0x2d8] sm:$0xff] }
 0x12f   :  { %1991 = vmatpush1.bf16.msra.mxu0 %v11750_v0  ;;  %v236_v0 = vld [vmem:[#allocation2 + $0x338] sm:$0xff] }
 0x130   :  { %1992 = vmatprep.subr.bf16.mxu0 %v11743_v2  ;;  %v364_v2 = vld [vmem:[#allocation2 + $0x738] sm:$0xff]  ;;  %v11807_v6 = vcombine.high %v232_v63, %v236_v0 }
 0x131   :  { %2032 = vmatpush1.bf16.msra.mxu1 %v11878_v1  ;;  %v360_v1 = vld [vmem:[#allocation2 + $0x718] sm:$0xff] }
 0x132   :  { %2033 = vmatprep.subr.bf16.mxu1 %v11871_v4  ;;  %v11814_v4 = vcombine.low %v240_v53, %v244_v54  ;;  %v11935_v7 = vcombine.high %v360_v1, %v364_v2  ;;  %v11934_v12 = vcombine.low %v360_v1, %v364_v2  ;;  %v2444_v53 = vld [vmem:[#allocation6 + $0xb40] sm:$0xff] }
 0x133   :  { %1993 = vmatpush1.bf16.msra.mxu0 %v11742_v10  ;;  %v228_v10 = vld [vmem:[#allocation2 + $0x2f8] sm:$0xff]  ;;  %v2428_v1 = vld [vmem:[#allocation6 + $0xac0] sm:$0xff] }
 0x134   :  { %1994 = vmatprep.subr.bf16.mxu0 %v11735_v11  ;;  %v356_v11 = vld [vmem:[#allocation2 + $0x6f8] sm:$0xff]  ;;  %v11799_v13 = vcombine.high %v224_v8, %v228_v10 }
 0x135   :  { %2034 = vmatpush1.bf16.msra.mxu1 %v11870_v3  ;;  %v352_v3 = vld [vmem:[#allocation2 + $0x6d8] sm:$0xff] }
 0x136   :  { %2035 = vmatprep.subr.bf16.mxu1 %v11863_v9  ;;  %v11806_v9 = vcombine.low %v232_v63, %v236_v0  ;;  %v11927_v14 = vcombine.high %v352_v3, %v356_v11  ;;  %v11926_v21 = vcombine.low %v352_v3, %v356_v11  ;;  %v2420_v0 = vld [vmem:[#allocation6 + $0xa80] sm:$0xff] }
 0x137   :  { %1995 = vmatpush1.bf16.msra.mxu0 %v11734_v16  ;;  %v220_v16 = vld [vmem:[#allocation2 + $0x2b8] sm:$0xff]  ;;  %v2148_v3 = vld [vmem:[#allocation6 + $0x200] sm:$0xff] }
 0x138   :  { %1996 = vmatprep.subr.bf16.mxu0 %v11727_v19  ;;  %v348_v19 = vld [vmem:[#allocation2 + $0x6b8] sm:$0xff]  ;;  %v11791_v22 = vcombine.high %v216_v15, %v220_v16  ;;  %v2156_v11 = vld [vmem:[#allocation6 + $0x240] sm:$0xff] }
 0x139   :  { %2036 = vmatpush1.bf16.msra.mxu1 %v11862_v17  ;;  %v344_v17 = vld [vmem:[#allocation2 + $0x698] sm:$0xff] }
 0x13a   :  { %2037 = vmatprep.subr.bf16.mxu1 %v11855_v20  ;;  %v11798_v20 = vcombine.low %v224_v8, %v228_v10  ;;  %v11919_v23 = vcombine.high %v344_v17, %v348_v19  ;;  %v11918_v28 = vcombine.low %v344_v17, %v348_v19  ;;  %v12025_v17 = vcombine.high %v2148_v3, %v2156_v11 }
 0x13b   :  { %1997 = vmatpush1.bf16.msra.mxu0 %v11726_v25  ;;  %v212_v25 = vld [vmem:[#allocation2 + $0x278] sm:$0xff]  ;;  %v12296_v19 = vcombine.low %v2420_v0, %v2428_v1 }
 0x13c   :  { %1998 = vmatprep.subr.bf16.mxu0 %v11719_v56  ;;  %v340_v56 = vld [vmem:[#allocation2 + $0x678] sm:$0xff]  ;;  %v11783_v29 = vcombine.high %v208_v24, %v212_v25 }
 0x13d   :  { %2038 = vmatpush1.bf16.msra.mxu1 %v11854_v27  ;;  %v336_v27 = vld [vmem:[#allocation2 + $0x658] sm:$0xff] }
 0x13e   :  { %2039 = vmatprep.subr.bf16.mxu1 %v11847_v59  ;;  %v11790_v59 = vcombine.low %v216_v15, %v220_v16  ;;  %v11911_v30 = vcombine.high %v336_v27, %v340_v56  ;;  %v11910_v36 = vcombine.low %v336_v27, %v340_v56  ;;  %v2396_v27 = vld [vmem:[#allocation6 + $0x9c0] sm:$0xff] }
 0x13f   :  { %1999 = vmatpush1.bf16.msra.mxu0 %v11718_v32  ;;  %v204_v32 = vld [vmem:[#allocation2 + $0x238] sm:$0xff] }
 0x140   :  { %2000 = vmatprep.subr.bf16.mxu0 %v11711_v34  ;;  %v332_v34 = vld [vmem:[#allocation2 + $0x638] sm:$0xff]  ;;  %v11775_v37 = vcombine.high %v200_v31, %v204_v32 }
 0x141   :  { %2040 = vmatpush1.bf16.msra.mxu1 %v11846_v33  ;;  %v328_v33 = vld [vmem:[#allocation2 + $0x618] sm:$0xff] }
 0x142   :  { %2041 = vmatprep.subr.bf16.mxu1 %v11839_v35  ;;  %v11782_v35 = vcombine.low %v208_v24, %v212_v25  ;;  %v11903_v38 = vcombine.high %v328_v33, %v332_v34  ;;  %v11902_v44 = vcombine.low %v328_v33, %v332_v34  ;;  %v2388_v25 = vld [vmem:[#allocation6 + $0x980] sm:$0xff] }
 0x143   :  { %2001 = vmatpush1.bf16.msra.mxu0 %v11710_v40  ;;  %v2204_v40 = vld [vmem:[#allocation6 + $0x3c0] sm:$0xff] }
 0x144   :  { %2002 = vmatprep.subr.bf16.mxu0 %v11831_v42  ;;  %v2460_v42 = vld [vmem:[#allocation6 + $0xbc0] sm:$0xff]  ;;  %v12073_v45 = vcombine.high %v2196_v39, %v2204_v40  ;;  %v12072_v54 = vcombine.low %v2196_v39, %v2204_v40 }
 0x145   :  { %2042 = vmatpush1.bf16.msra.mxu1 %v11838_v41  ;;  %v2452_v41 = vld [vmem:[#allocation6 + $0xb80] sm:$0xff] }
 0x146   :  { %2043 = vmatprep.subr.bf16.mxu1 %v11959_v43  ;;  %v11774_v43 = vcombine.low %v200_v31, %v204_v32  ;;  %v12328_v57 = vcombine.low %v2452_v41, %v2460_v42  ;;  %v2124_v31 = vld [vmem:[#allocation6 + $0x140] sm:$0xff]  ;;  %v12265_v32 = vcombine.high %v2388_v25, %v2396_v27 }
 0x147   :  { %2003 = vmatpush2.bf16.msra.mxu0 %v11830_v49  ;;  %v2188_v49 = vld [vmem:[#allocation6 + $0x340] sm:$0xff] }
 0x148   :  { %2004 = vmatprep.subr.bf16.mxu0 %v11823_v51  ;;  %v13968_v51 = vld [vmem:[#allocation4] sm:$0xff]  ;;  %v12057_v55 = vcombine.high %v2180_v48, %v2188_v49  ;;  %v2372_v33 = vld [vmem:[#allocation6 + $0x900] sm:$0xff] }
 0x149   :  { %2044 = vmatpush2.bf16.msra.mxu1 %v11958_v50  ;;  %v12329_v50 = vcombine.high %v2452_v41, %v2460_v42  ;;  %v2380_v34 = vld [vmem:[#allocation6 + $0x940] sm:$0xff] }
 0x14a   :  { %2045 = vmatprep.subr.bf16.mxu1 %v11951_v52  ;;  %v2436_v52 = vld [vmem:[#allocation6 + $0xb00] sm:$0xff]  ;;  %v12249_v40 = vcombine.high %v2372_v33, %v2380_v34 }
 0x14b   :  { %2005 = vmatpush2.bf16.msra.mxu0 %v11822_v58  ;;  %v398_v58 = vrot.slane %v13968_v51, %v13966_v47  ;;  %v2108_v39 = vld [vmem:[#allocation6 + $0xc0] sm:$0xff] }
 0x14c   :  { %2006 = vmatprep.subr.bf16.mxu0 %v11815_v61  ;;  %v2172_v61 = vld [vmem:[#allocation6 + $0x2c0] sm:$0xff] }
 0x14d   :  { %2046 = vmatpush2.bf16.msra.mxu1 %v11950_v60  ;;  %v2164_v60 = vld [vmem:[#allocation6 + $0x280] sm:$0xff] }
 0x14e   :  { %2047 = vmatprep.subr.bf16.mxu1 %v11943_v62  ;;  %v12313_v62 = vcombine.high %v2436_v52, %v2444_v53  ;;  %v2356_v41 = vld [vmem:[#allocation6 + $0x880] sm:$0xff] }
 0x14f   :  { %2007 = vmatpush2.bf16.msra.mxu0 %v11814_v4  ;;  %v12056_v4 = vcombine.low %v2180_v48, %v2188_v49  ;;  %v2364_v42 = vld [vmem:[#allocation6 + $0x8c0] sm:$0xff] }
 0x150   :  { %2008 = vmatprep.subr.bf16.mxu0 %v11807_v6  ;;  %v12041_v6 = vcombine.high %v2164_v60, %v2172_v61  ;;  %v2084_v48 = vld [vmem:[#allocation6] sm:$0xff] }
 0x151   :  { %2048 = vmatpush2.bf16.msra.mxu1 %v11942_v5  ;;  %v2092_v49 = vld [vmem:[#allocation6 + $0x40] sm:$0xff] }
 0x152   :  { %2049 = vmatprep.subr.bf16.mxu1 %v11935_v7  ;;  %v12312_v7 = vcombine.low %v2436_v52, %v2444_v53  ;;  %v2340_v52 = vld [vmem:[#allocation6 + $0x800] sm:$0xff] }
 0x153   :  { %2009 = vmatpush2.bf16.msra.mxu0 %v11806_v9  ;;  %v12297_v9 = vcombine.high %v2420_v0, %v2428_v1  ;;  %v2348_v53 = vld [vmem:[#allocation6 + $0x840] sm:$0xff]  ;;  %v11960_v1 = vcombine.low %v2084_v48, %v2092_v49 }
 0x154   :  { %2010 = vmatprep.subr.bf16.mxu0 %v11799_v13  ;;  %v2412_v13 = vld [vmem:[#allocation6 + $0xa40] sm:$0xff] }
 0x155   :  { %2050 = vmatpush2.bf16.msra.mxu1 %v11934_v12  ;;  %v2404_v12 = vld [vmem:[#allocation6 + $0xa00] sm:$0xff] }
 0x156   :  { %2051 = vmatprep.subr.bf16.mxu1 %v11927_v14  ;;  %v12281_v24 = vcombine.high %v2404_v12, %v2412_v13  ;;  %v2588_v0 = vld [vmem:[#allocation6 + $0xfc0] sm:$0xff] }
 0x157   :  { %2011 = vmatpush2.bf16.msra.mxu0 %v11798_v20 }
 0x158   :  { %2012 = vmatprep.subr.bf16.mxu0 %v11791_v22  ;;  %v2132_v22 = vld [vmem:[#allocation6 + $0x180] sm:$0xff] }
 0x159   :  { %2052 = vmatpush2.bf16.msra.mxu1 %v11926_v21 }
 0x15a   :  { %2053 = vmatprep.subr.bf16.mxu1 %v11919_v23  ;;  %v2140_v23 = vld [vmem:[#allocation6 + $0x1c0] sm:$0xff] }
 0x15b   :  { %2013 = vmatpush2.bf16.msra.mxu0 %v11790_v59  ;;  %v12024_v59 = vcombine.low %v2148_v3, %v2156_v11  ;;  %v2572_v3 = vld [vmem:[#allocation6 + $0xf40] sm:$0xff] }
 0x15c   :  { %2014 = vmatprep.subr.bf16.mxu0 %v11783_v29  ;;  %v12280_v29 = vcombine.low %v2404_v12, %v2412_v13  ;;  %v2292_v12 = vld [vmem:[#allocation6 + $0x680] sm:$0xff] }
 0x15d   :  { %2054 = vmatpush2.bf16.msra.mxu1 %v11918_v28  ;;  %v12009_v28 = vcombine.high %v2132_v22, %v2140_v23  ;;  %v2300_v13 = vld [vmem:[#allocation6 + $0x6c0] sm:$0xff] }
 0x15e   :  { %2055 = vmatprep.subr.bf16.mxu1 %v11911_v30  ;;  %v2116_v30 = vld [vmem:[#allocation6 + $0x100] sm:$0xff] }
 0x15f   :  { %2015 = vmatpush2.bf16.msra.mxu0 %v11782_v35  ;;  %v12008_v35 = vcombine.low %v2132_v22, %v2140_v23  ;;  %v2532_v23 = vld [vmem:[#allocation6 + $0xe00] sm:$0xff] }
 0x160   :  { %2016 = vmatprep.subr.bf16.mxu0 %v11775_v37  ;;  %v12264_v37 = vcombine.low %v2388_v25, %v2396_v27  ;;  %v12168_v25 = vcombine.low %v2292_v12, %v2300_v13 }
 0x161   :  { %2056 = vmatpush2.bf16.msra.mxu1 %v11910_v36  ;;  %v11993_v36 = vcombine.high %v2116_v30, %v2124_v31 }
 0x162   :  { %2057 = vmatprep.subr.bf16.mxu1 %v11903_v38  ;;  %v2100_v38 = vld [vmem:[#allocation6 + $0x80] sm:$0xff] }
 0x163   :  { %2017 = vmatpush2.bf16.msra.mxu0 %v11774_v43  ;;  %v11992_v43 = vcombine.low %v2116_v30, %v2124_v31  ;;  %v2516_v31 = vld [vmem:[#allocation6 + $0xd80] sm:$0xff] }
 0x164   :  { %8312 = vmatprep.subr.bf16.mxu0 %v12073_v45  ;;  %v12248_v45 = vcombine.low %v2372_v33, %v2380_v34  ;;  %v13982_v34 = vsub.s32 0, %v13924_v46 }
 0x165   :  { %2058 = vmatpush2.bf16.msra.mxu1 %v11902_v44  ;;  %v11977_v44 = vcombine.high %v2100_v38, %v2108_v39 }
 0x166   :  { %8353 = vmatprep.subr.bf16.mxu1 %v12329_v50  ;;  %v13972_v63 = vpop.f32.mrf.mxu0  ;;  %2019 = vmatmul.mubr.bf16.vlgmr.msra.gmra.mxu0 %v13947_v18  ;;  %v12233_v50 = vcombine.high %v2356_v41, %v2364_v42 }
 0x167   :  { %8313 = vmatpush1.bf16.msra.mxu0 %v12072_v54  ;;  %v11976_v54 = vcombine.low %v2100_v38, %v2108_v39  ;;  %v2252_v38 = vld [vmem:[#allocation6 + $0x540] sm:$0xff] }
 0x168   :  { %v13975_v2 = vpop.f32.mrf.mxu1  ;;  %2060 = vmatmul.mubr.bf16.vlgmr.msra.gmra.mxu1 %v13951_v26  ;;  %v1776_v5 = vpop.f32.mrf.mxu0  ;;  %8314 = vmatprep.subr.bf16.mxu0 %v12057_v55  ;;  %v12040_v26 = vcombine.low %v2164_v60, %v2172_v61  ;;  %v11961_v55 = vcombine.high %v2084_v48, %v2092_v49  ;;  %v2332_v60 = vld [vmem:[#allocation6 + $0x7c0] sm:$0xff]  ;;  %v12217_v61 = vcombine.high %v2340_v52, %v2348_v53 }
 0x169   :  { %8354 = vmatpush1.bf16.msra.mxu1 %v12328_v57  ;;  %v1777_v8 = vadd.f32 %v1776_v5, %v398_v58  ;;  %v12232_v57 = vcombine.low %v2356_v41, %v2364_v42  ;;  %v2324_v58 = vld [vmem:[#allocation6 + $0x780] sm:$0xff]  ;;  %v12216_v5 = vcombine.low %v2340_v52, %v2348_v53 }
 0x16a   :  { %v1817_v10 = vpop.f32.mrf.mxu1  ;;  %8355 = vmatprep.subr.bf16.mxu1 %v12313_v62  ;;  %v1778_v18 = vpop.f32.mrf.mxu0  ;;  %v2580_v62 = vld [vmem:[#allocation6 + $0xf80] sm:$0xff]  ;;  %v12200_v11 = vcombine.low %v2324_v58, %v2332_v60 }
 0x16b   :  { %v1818_v14 = vadd.f32 %v1817_v10, %v1777_v8  ;;  %8315 = vmatpush1.bf16.msra.mxu0 %v12056_v4  ;;  %v12201_v4 = vcombine.high %v2324_v58, %v2332_v60  ;;  %v12457_v8 = vcombine.high %v2580_v62, %v2588_v0  ;;  %v2564_v10 = vld [vmem:[#allocation6 + $0xf00] sm:$0xff]  ;;  %v12456_v18 = vcombine.low %v2580_v62, %v2588_v0 }
 0x16c   :  { %v1819_v15 = vpop.f32.mrf.mxu1  ;;  %v1779_v16 = vpop.f32.mrf.mxu0  ;;  %8316 = vmatprep.subr.bf16.mxu0 %v12041_v6  ;;  %v2308_v6 = vld [vmem:[#allocation6 + $0x700] sm:$0xff] }
 0x16d   :  { %8356 = vmatpush1.bf16.msra.mxu1 %v12312_v7  ;;  %v2069_v20 = vmax.f32 %v1818_v14, 0.0  ;;  %v2316_v7 = vld [vmem:[#allocation6 + $0x740] sm:$0xff]  ;;  %v12441_v14 = vcombine.high %v2564_v10, %v2572_v3 }
 0x16e   :  { %v1820_v21 = vpop.f32.mrf.mxu1  ;;  %8357 = vmatprep.subr.bf16.mxu1 %v12297_v9  ;;  %v12185_v9 = vcombine.high %v2308_v6, %v2316_v7  ;;  %v2548_v15 = vld [vmem:[#allocation6 + $0xe80] sm:$0xff]  ;;  %v12184_v16 = vcombine.low %v2308_v6, %v2316_v7 }
 0x16f   :  { %v13978_v56 = vpack.c.bf16 %v2069_v20, %v2069_v20  ;;  %8317 = vmatpush1.bf16.msra.mxu0 %v12040_v26  ;;  %v2556_v26 = vld [vmem:[#allocation6 + $0xec0] sm:$0xff] }
 0x170   :  { %8318 = vmatprep.subr.bf16.mxu0 %v12025_v17  ;;  %v12169_v17 = vcombine.high %v2292_v12, %v2300_v13  ;;  %v2276_v20 = vld [vmem:[#allocation6 + $0x600] sm:$0xff]  ;;  %v12425_v22 = vcombine.high %v2548_v15, %v2556_v26 }
 0x171   :  { %8358 = vmatpush1.bf16.msra.mxu1 %v12296_v19  ;;  %8344 = vmatprep.mubr.bf16.mxu0 %v13978_v56  ;;  %v12440_v19 = vcombine.low %v2564_v10, %v2572_v3  ;;  %v2284_v21 = vld [vmem:[#allocation6 + $0x640] sm:$0xff] }
 0x172   :  { %8359 = vmatprep.subr.bf16.mxu1 %v12281_v24  ;;  %v2540_v24 = vld [vmem:[#allocation6 + $0xe40] sm:$0xff]  ;;  %v12153_v27 = vcombine.high %v2276_v20, %v2284_v21  ;;  %v12152_v33 = vcombine.low %v2276_v20, %v2284_v21 }
 0x173   :  { %8319 = vmatpush1.bf16.msra.mxu0 %v12024_v59  ;;  %v12424_v59 = vcombine.low %v2548_v15, %v2556_v26  ;;  %v12409_v30 = vcombine.high %v2532_v23, %v2540_v24  ;;  %v2508_v41 = vld [vmem:[#allocation6 + $0xd40] sm:$0xff] }
 0x174   :  { %8320 = vmatprep.subr.bf16.mxu0 %v12009_v28  ;;  %v2260_v28 = vld [vmem:[#allocation6 + $0x580] sm:$0xff] }
 0x175   :  { %8360 = vmatpush1.bf16.msra.mxu1 %v12280_v29  ;;  %v2268_v29 = vld [vmem:[#allocation6 + $0x5c0] sm:$0xff] }
 0x176   :  { %8361 = vmatprep.subr.bf16.mxu1 %v12265_v32  ;;  %v2524_v32 = vld [vmem:[#allocation6 + $0xdc0] sm:$0xff]  ;;  %v12136_v42 = vcombine.low %v2260_v28, %v2268_v29 }
 0x177   :  { %8321 = vmatpush1.bf16.msra.mxu0 %v12008_v35  ;;  %v12137_v35 = vcombine.high %v2260_v28, %v2268_v29  ;;  %v12393_v39 = vcombine.high %v2516_v31, %v2524_v32  ;;  %v2228_v48 = vld [vmem:[#allocation6 + $0x480] sm:$0xff] }
 0x178   :  { %8322 = vmatprep.subr.bf16.mxu0 %v11993_v36  ;;  %v12408_v36 = vcombine.low %v2532_v23, %v2540_v24  ;;  %v2236_v49 = vld [vmem:[#allocation6 + $0x4c0] sm:$0xff] }
 0x179   :  { %8362 = vmatpush1.bf16.msra.mxu1 %v12264_v37  ;;  %v2244_v37 = vld [vmem:[#allocation6 + $0x500] sm:$0xff] }
 0x17a   :  { %8363 = vmatprep.subr.bf16.mxu1 %v12249_v40  ;;  %v2500_v40 = vld [vmem:[#allocation6 + $0xd00] sm:$0xff] }
 0x17b   :  { %8323 = vmatpush1.bf16.msra.mxu0 %v11992_v43  ;;  %v394_v43 = vrot.slane %v13968_v51, %v13982_v34  ;;  %v2484_v52 = vld [vmem:[#allocation6 + $0xc80] sm:$0xff]  ;;  %v12376_v58 = vcombine.low %v2500_v40, %v2508_v41 }
 0x17c   :  { %8324 = vmatprep.subr.bf16.mxu0 %v11977_v44  ;;  %v12121_v44 = vcombine.high %v2244_v37, %v2252_v38  ;;  %v2492_v53 = vld [vmem:[#allocation6 + $0xcc0] sm:$0xff] }
 0x17d   :  { %8364 = vmatpush1.bf16.msra.mxu1 %v12248_v45  ;;  %v12392_v45 = vcombine.low %v2516_v31, %v2524_v32  ;;  %v2212_v60 = vld [vmem:[#allocation6 + $0x400] sm:$0xff]  ;;  %v12361_v62 = vcombine.high %v2484_v52, %v2492_v53  ;;  %v12360_v7 = vcombine.low %v2484_v52, %v2492_v53 }
 0x17e   :  { %8365 = vmatprep.subr.bf16.mxu1 %v12233_v50  ;;  %v12377_v50 = vcombine.high %v2500_v40, %v2508_v41  ;;  %v2468_v0 = vld [vmem:[#allocation6 + $0xc00] sm:$0xff] }
 0x17f   :  { %8325 = vmatpush1.bf16.msra.mxu0 %v11976_v54  ;;  %v12120_v54 = vcombine.low %v2244_v37, %v2252_v38  ;;  %v2716_v10 = vld [vmem:[#allocation6 + $0x13c0] sm:$0xff] }
 0x180   :  { %8326 = vmatprep.subr.bf16.mxu0 %v11961_v55  ;;  %v1775_v55 = vadd.f32 %v13972_v63, %v394_v43  ;;  %v13988_v3 = vld [vmem:[#allocation6 + $0x1b80] sm:$0xff] }
 0x181   :  { %8366 = vmatpush1.bf16.msra.mxu1 %v12232_v57  ;;  %v12105_v57 = vcombine.high %v2228_v48, %v2236_v49  ;;  %v2692_v15 = vld [vmem:[#allocation6 + $0x1300] sm:$0xff] }
 0x182   :  { %8367 = vmatprep.subr.bf16.mxu1 %v12217_v61  ;;  %v2220_v61 = vld [vmem:[#allocation6 + $0x440] sm:$0xff] }
 0x183   :  { %8327 = vmatpush1.bf16.msra.mxu0 %v11960_v1  ;;  %v2476_v1 = vld [vmem:[#allocation6 + $0xc40] sm:$0xff]  ;;  %v12089_v6 = vcombine.high %v2212_v60, %v2220_v61 }
 0x184   :  { %8328 = vmatprep.subr.bf16.mxu0 %v12201_v4  ;;  %v12104_v4 = vcombine.low %v2228_v48, %v2236_v49  ;;  %v12345_v63 = vcombine.high %v2468_v0, %v2476_v1  ;;  %v2700_v26 = vld [vmem:[#allocation6 + $0x1340] sm:$0xff] }
 0x185   :  { %8368 = vmatpush1.bf16.msra.mxu1 %v12216_v5  ;;  %v1816_v5 = vadd.f32 %v13975_v2, %v1775_v55  ;;  %v12344_v2 = vcombine.low %v2468_v0, %v2476_v1  ;;  %v12569_v21 = vcombine.high %v2692_v15, %v2700_v26  ;;  %v2676_v23 = vld [vmem:[#allocation6 + $0x1280] sm:$0xff]  ;;  %v12568_v28 = vcombine.low %v2692_v15, %v2700_v26 }
 0x186   :  { %8369 = vmatprep.subr.bf16.mxu1 %v12457_v8  ;;  %v2708_v8 = vld [vmem:[#allocation6 + $0x1380] sm:$0xff] }
 0x187   :  { %8329 = vmatpush2.bf16.msra.mxu0 %v12200_v11  ;;  %v13990_v11 = vld [vmem:[#allocation6 + $0x1bc0] sm:$0xff]  ;;  %v2068_v12 = vmax.f32 %v1816_v5, 0.0  ;;  %v12585_v13 = vcombine.high %v2708_v8, %v2716_v10 }
 0x188   :  { %8330 = vmatprep.subr.bf16.mxu0 %v12185_v9  ;;  %v12088_v9 = vcombine.low %v2212_v60, %v2220_v61  ;;  %v2684_v24 = vld [vmem:[#allocation6 + $0x12c0] sm:$0xff]  ;;  %v12840_v55 = vcombine.low %v13988_v3, %v13990_v11 }
 0x189   :  { %8370 = vmatpush2.bf16.msra.mxu1 %v12456_v18  ;;  %v13993_v18 = vsub.s32 2, %v13924_v46  ;;  %v14002_v20 = vpack.c.bf16 %v2068_v12, %v2068_v12  ;;  %v12552_v40 = vcombine.low %v2676_v23, %v2684_v24  ;;  %v2652_v49 = vld [vmem:[#allocation6 + $0x11c0] sm:$0xff] }
 0x18a   :  { %8371 = vmatprep.subr.bf16.mxu1 %v12441_v14  ;;  %v13996_v14 = vsub.s32 3, %v13924_v46  ;;  %v2956_v52 = vld [vmem:[#allocation6 + $0x1b40] sm:$0xff] }
 0x18b   :  { %8331 = vmatpush2.bf16.msra.mxu0 %v12184_v16  ;;  %v12841_v16 = vcombine.high %v13988_v3, %v13990_v11  ;;  %v2636_v1 = vld [vmem:[#allocation6 + $0x1140] sm:$0xff] }
 0x18c   :  { %8332 = vmatprep.subr.bf16.mxu0 %v12169_v17  ;;  %v402_v17 = vrot.slane %v13968_v51, %v13993_v18  ;;  %v2940_v5 = vld [vmem:[#allocation6 + $0x1ac0] sm:$0xff] }
 0x18d   :  { %8372 = vmatpush2.bf16.msra.mxu1 %v12440_v19  ;;  %v12584_v19 = vcombine.low %v2708_v8, %v2716_v10  ;;  %v2612_v10 = vld [vmem:[#allocation6 + $0x1080] sm:$0xff] }
 0x18e   :  { %8373 = vmatprep.subr.bf16.mxu1 %v12425_v22  ;;  %v406_v22 = vrot.slane %v13968_v51, %v13996_v14  ;;  %v2620_v11 = vld [vmem:[#allocation6 + $0x10c0] sm:$0xff] }
 0x18f   :  { %8333 = vmatpush2.bf16.msra.mxu0 %v12168_v25  ;;  %v2924_v12 = vld [vmem:[#allocation6 + $0x1a40] sm:$0xff]  ;;  %v12489_v15 = vcombine.high %v2612_v10, %v2620_v11 }
 0x190   :  { %8334 = vmatprep.subr.bf16.mxu0 %v12153_v27  ;;  %v2596_v26 = vld [vmem:[#allocation6 + $0x1000] sm:$0xff] }
 0x191   :  { %8374 = vmatpush2.bf16.msra.mxu1 %v12424_v59 }
 0x192   :  { %8375 = vmatprep.subr.bf16.mxu1 %v12409_v30  ;;  %v12553_v30 = vcombine.high %v2676_v23, %v2684_v24 }
 0x193   :  { %8335 = vmatpush2.bf16.msra.mxu0 %v12152_v33 }
 0x194   :  { %8336 = vmatprep.subr.bf16.mxu0 %v12137_v35  ;;  %v2660_v35 = vld [vmem:[#allocation6 + $0x1200] sm:$0xff] }
 0x195   :  { %8376 = vmatpush2.bf16.msra.mxu1 %v12408_v36  ;;  %v2668_v36 = vld [vmem:[#allocation6 + $0x1240] sm:$0xff] }
 0x196   :  { %8377 = vmatprep.subr.bf16.mxu1 %v12393_v39  ;;  %v12537_v43 = vcombine.high %v2660_v35, %v2668_v36 }
 0x197   :  { %8337 = vmatpush2.bf16.msra.mxu0 %v12136_v42 }
 0x198   :  { %8338 = vmatprep.subr.bf16.mxu0 %v12121_v44  ;;  %v2644_v44 = vld [vmem:[#allocation6 + $0x1180] sm:$0xff] }
 0x199   :  { %8378 = vmatpush2.bf16.msra.mxu1 %v12392_v45  ;;  %v12521_v61 = vcombine.high %v2644_v44, %v2652_v49 }
 0x19a   :  { %8379 = vmatprep.subr.bf16.mxu1 %v12377_v50  ;;  %v2948_v50 = vld [vmem:[#allocation6 + $0x1b00] sm:$0xff] }
 0x19b   :  { %8339 = vmatpush2.bf16.msra.mxu0 %v12120_v54  ;;  %v12536_v54 = vcombine.low %v2660_v35, %v2668_v36  ;;  %v12825_v0 = vcombine.high %v2948_v50, %v2956_v52  ;;  %v2828_v36 = vld [vmem:[#allocation6 + $0x1740] sm:$0xff] }
 0x19c   :  { %8340 = vmatprep.subr.bf16.mxu0 %v12105_v57  ;;  %v14011_v57 = vld [vmem:[#allocation6 + $0xb88] sm:$0xff] }
 0x19d   :  { %8380 = vmatpush2.bf16.msra.mxu1 %v12376_v58  ;;  %v14013_v58 = vld [vmem:[#allocation6 + $0xbc8] sm:$0xff] }
 0x19e   :  { %8381 = vmatprep.subr.bf16.mxu1 %v12361_v62  ;;  %v2628_v62 = vld [vmem:[#allocation6 + $0x1100] sm:$0xff] }
 0x19f   :  { %8341 = vmatpush2.bf16.msra.mxu0 %v12104_v4  ;;  %v2932_v4 = vld [vmem:[#allocation6 + $0x1a80] sm:$0xff]  ;;  %v12505_v8 = vcombine.high %v2628_v62, %v2636_v1 }
 0x1a0   :  { %8342 = vmatprep.subr.bf16.mxu0 %v12089_v6  ;;  %v12330_v6 = vcombine.low %v14011_v57, %v14013_v58  ;;  %v12809_v3 = vcombine.high %v2932_v4, %v2940_v5 }
 0x1a1   :  { %8382 = vmatpush2.bf16.msra.mxu1 %v12360_v7  ;;  %v12520_v7 = vcombine.low %v2644_v44, %v2652_v49  ;;  %v2812_v44 = vld [vmem:[#allocation6 + $0x16c0] sm:$0xff] }
 0x1a2   :  { %8383 = vmatprep.subr.bf16.mxu1 %v12345_v63  ;;  %v12824_v63 = vcombine.low %v2948_v50, %v2956_v52 }
 0x1a3   :  { %8343 = vmatpush2.bf16.msra.mxu0 %v12088_v9  ;;  %v2916_v9 = vld [vmem:[#allocation6 + $0x1a00] sm:$0xff] }
 0x1a4   :  { %8394 = vmatprep.subr.bf16.mxu0 %v12585_v13  ;;  %v12808_v13 = vcombine.low %v2932_v4, %v2940_v5  ;;  %v12792_v23 = vcombine.low %v2916_v9, %v2924_v12 }
 0x1a5   :  { %8384 = vmatpush2.bf16.msra.mxu1 %v12344_v2  ;;  %v12504_v2 = vcombine.low %v2628_v62, %v2636_v1  ;;  %v3092_v62 = vld [vmem:[#allocation6 + $0x1f80] sm:$0xff] }
 0x1a6   :  { %8435 = vmatprep.subr.bf16.mxu1 %v12841_v16  ;;  %v1856_v25 = vpop.f32.mrf.mxu0  ;;  %8345 = vmatmul.mubr.bf16.vlgmr.msra.gmra.mxu0 %v14002_v20  ;;  %v12793_v16 = vcombine.high %v2916_v9, %v2924_v12 }
 0x1a7   :  { %v1857_v27 = vadd.f32 %v1856_v25, %v402_v17  ;;  %8395 = vmatpush1.bf16.msra.mxu0 %v12584_v19  ;;  %v2604_v17 = vld [vmem:[#allocation6 + $0x1040] sm:$0xff] }
 0x1a8   :  { %v1897_v59 = vpop.f32.mrf.mxu1  ;;  %v1858_v29 = vpop.f32.mrf.mxu0  ;;  %8396 = vmatprep.subr.bf16.mxu0 %v12569_v21  ;;  %v2900_v19 = vld [vmem:[#allocation6 + $0x1980] sm:$0xff]  ;;  %v12473_v24 = vcombine.high %v2596_v26, %v2604_v17 }
 0x1a9   :  { %v1898_v31 = vadd.f32 %v1897_v59, %v1857_v27  ;;  %v1859_v32 = vadd.f32 %v1858_v29, %v406_v22  ;;  %v2908_v21 = vld [vmem:[#allocation6 + $0x19c0] sm:$0xff]  ;;  %v12488_v22 = vcombine.low %v2612_v10, %v2620_v11 }
 0x1aa   :  { %v1899_v33 = vpop.f32.mrf.mxu1  ;;  %v1860_v37 = vpop.f32.mrf.mxu0  ;;  %v2836_v25 = vld [vmem:[#allocation6 + $0x1780] sm:$0xff]  ;;  %v12777_v27 = vcombine.high %v2900_v19, %v2908_v21 }
 0x1ab   :  { %v1900_v38 = vadd.f32 %v1899_v33, %v1859_v32  ;;  %8397 = vmatpush1.bf16.msra.mxu0 %v12568_v28  ;;  %v2070_v41 = vmax.f32 %v1898_v31, 0.0  ;;  %v2844_v59 = vld [vmem:[#allocation6 + $0x17c0] sm:$0xff]  ;;  %v12776_v31 = vcombine.low %v2900_v19, %v2908_v21 }
 0x1ac   :  { %v1901_v39 = vpop.f32.mrf.mxu1  ;;  %v1861_v42 = vpop.f32.mrf.mxu0  ;;  %8398 = vmatprep.subr.bf16.mxu0 %v12553_v30  ;;  %v2884_v28 = vld [vmem:[#allocation6 + $0x1900] sm:$0xff]  ;;  %v12472_v30 = vcombine.low %v2596_v26, %v2604_v17  ;;  %v12713_v32 = vcombine.high %v2836_v25, %v2844_v59 }
 0x1ad   :  { %v2071_v45 = vmax.f32 %v1900_v38, 0.0  ;;  %v14015_v60 = vpack.c.bf16 %v2070_v41, %v2070_v41  ;;  %v2892_v29 = vld [vmem:[#allocation6 + $0x1940] sm:$0xff]  ;;  %v12712_v39 = vcombine.low %v2836_v25, %v2844_v59 }
 0x1ae   :  { %v1902_v48 = vpop.f32.mrf.mxu1  ;;  %v2820_v33 = vld [vmem:[#allocation6 + $0x1700] sm:$0xff]  ;;  %v12761_v35 = vcombine.high %v2884_v28, %v2892_v29 }
 0x1af   :  { %v14007_v53 = vpack.c.bf16 %v2071_v45, %v2071_v45  ;;  %8399 = vmatpush1.bf16.msra.mxu0 %v12552_v40  ;;  %v2868_v37 = vld [vmem:[#allocation6 + $0x1880] sm:$0xff]  ;;  %v12760_v40 = vcombine.low %v2884_v28, %v2892_v29  ;;  %v12697_v41 = vcombine.high %v2820_v33, %v2828_v36  ;;  %v12696_v49 = vcombine.low %v2820_v33, %v2828_v36 }
 0x1b0   :  { %8400 = vmatprep.subr.bf16.mxu0 %v12537_v43  ;;  %v2876_v38 = vld [vmem:[#allocation6 + $0x18c0] sm:$0xff] }
 0x1b1   :  { %8385 = vmatprep.mubr.bf16.mxu1 %v14007_v53  ;;  %v2804_v42 = vld [vmem:[#allocation6 + $0x1680] sm:$0xff]  ;;  %v12745_v43 = vcombine.high %v2868_v37, %v2876_v38  ;;  %v12744_v50 = vcombine.low %v2868_v37, %v2876_v38 }
 0x1b2   :  { %8386 = vmatmul.mubr.bf16.vlgmr.msra.gmra.mxu1 %v14015_v60  ;;  %v2852_v45 = vld [vmem:[#allocation6 + $0x1800] sm:$0xff]  ;;  %v12681_v52 = vcombine.high %v2804_v42, %v2812_v44  ;;  %v12680_v1 = vcombine.low %v2804_v42, %v2812_v44  ;;  %v14022_v44 = vsub.s32 4, %v13924_v46 }
 0x1b3   :  { %8401 = vmatpush1.bf16.msra.mxu0 %v12536_v54  ;;  %8436 = vmatpush1.bf16.msra.mxu1 %v12840_v55  ;;  %v2860_v48 = vld [vmem:[#allocation6 + $0x1840] sm:$0xff] }
 0x1b4   :  { %8402 = vmatprep.subr.bf16.mxu0 %v12521_v61  ;;  %8437 = vmatprep.subr.bf16.mxu1 %v12825_v0  ;;  %v2788_v54 = vld [vmem:[#allocation6 + $0x1600] sm:$0xff]  ;;  %v12729_v55 = vcombine.high %v2852_v45, %v2860_v48  ;;  %v12728_v4 = vcombine.low %v2852_v45, %v2860_v48 }
 0x1b5   :  { %v2796_v61 = vld [vmem:[#allocation6 + $0x1640] sm:$0xff] }
 0x1b6   :  { %v3100_v0 = vld [vmem:[#allocation6 + $0x1fc0] sm:$0xff]  ;;  %v12665_v5 = vcombine.high %v2788_v54, %v2796_v61  ;;  %v12664_v11 = vcombine.low %v2788_v54, %v2796_v61  ;;  %v410_v61 = vrot.slane %v13968_v51, %v14022_v44 }
 0x1b7   :  { %8403 = vmatpush1.bf16.msra.mxu0 %v12520_v7  ;;  %8438 = vmatpush1.bf16.msra.mxu1 %v12824_v63  ;;  %v2772_v7 = vld [vmem:[#allocation6 + $0x1580] sm:$0xff]  ;;  %v12969_v63 = vcombine.high %v3092_v62, %v3100_v0  ;;  %v12968_v9 = vcombine.low %v3092_v62, %v3100_v0 }
 0x1b8   :  { %8404 = vmatprep.subr.bf16.mxu0 %v12505_v8  ;;  %8439 = vmatprep.subr.bf16.mxu1 %v12809_v3  ;;  %v2780_v8 = vld [vmem:[#allocation6 + $0x15c0] sm:$0xff] }
 0x1b9   :  { %v3076_v10 = vld [vmem:[#allocation6 + $0x1f00] sm:$0xff]  ;;  %v12649_v12 = vcombine.high %v2772_v7, %v2780_v8  ;;  %v12648_v17 = vcombine.low %v2772_v7, %v2780_v8 }
 0x1ba   :  { %v3084_v3 = vld [vmem:[#allocation6 + $0x1f40] sm:$0xff] }
 0x1bb   :  { %8405 = vmatpush1.bf16.msra.mxu0 %v12504_v2  ;;  %8440 = vmatpush1.bf16.msra.mxu1 %v12808_v13  ;;  %v2756_v2 = vld [vmem:[#allocation6 + $0x1500] sm:$0xff]  ;;  %v12953_v13 = vcombine.high %v3076_v10, %v3084_v3  ;;  %v12952_v19 = vcombine.low %v3076_v10, %v3084_v3 }
 0x1bc   :  { %8406 = vmatprep.subr.bf16.mxu0 %v12489_v15  ;;  %8441 = vmatprep.subr.bf16.mxu1 %v12793_v16  ;;  %v2764_v15 = vld [vmem:[#allocation6 + $0x1540] sm:$0xff] }
 0x1bd   :  { %v3060_v26 = vld [vmem:[#allocation6 + $0x1e80] sm:$0xff]  ;;  %v12633_v21 = vcombine.high %v2756_v2, %v2764_v15  ;;  %v12632_v59 = vcombine.low %v2756_v2, %v2764_v15 }
 0x1be   :  { %v3068_v16 = vld [vmem:[#allocation6 + $0x1ec0] sm:$0xff] }
 0x1bf   :  { %8407 = vmatpush1.bf16.msra.mxu0 %v12488_v22  ;;  %8442 = vmatpush1.bf16.msra.mxu1 %v12792_v23  ;;  %v2740_v22 = vld [vmem:[#allocation6 + $0x1480] sm:$0xff]  ;;  %v12937_v23 = vcombine.high %v3060_v26, %v3068_v16  ;;  %v12936_v28 = vcombine.low %v3060_v26, %v3068_v16 }
 0x1c0   :  { %8408 = vmatprep.subr.bf16.mxu0 %v12473_v24  ;;  %8443 = vmatprep.subr.bf16.mxu1 %v12777_v27  ;;  %v2748_v24 = vld [vmem:[#allocation6 + $0x14c0] sm:$0xff] }
 0x1c1   :  { %v3044_v25 = vld [vmem:[#allocation6 + $0x1e00] sm:$0xff]  ;;  %v12617_v29 = vcombine.high %v2740_v22, %v2748_v24  ;;  %v12616_v36 = vcombine.low %v2740_v22, %v2748_v24  ;;  %v2189_v24 = vld [vmem:[#allocation6 + $0x348] sm:$0xff] }
 0x1c2   :  { %v3052_v27 = vld [vmem:[#allocation6 + $0x1e40] sm:$0xff] }
 0x1c3   :  { %8409 = vmatpush1.bf16.msra.mxu0 %v12472_v30  ;;  %8444 = vmatpush1.bf16.msra.mxu1 %v12776_v31  ;;  %v2724_v30 = vld [vmem:[#allocation6 + $0x1400] sm:$0xff]  ;;  %v12921_v31 = vcombine.high %v3044_v25, %v3052_v27  ;;  %v12920_v37 = vcombine.low %v3044_v25, %v3052_v27 }
 0x1c4   :  { %8410 = vmatprep.subr.bf16.mxu0 %v12713_v32  ;;  %8445 = vmatprep.subr.bf16.mxu1 %v12761_v35  ;;  %v2732_v32 = vld [vmem:[#allocation6 + $0x1440] sm:$0xff] }
 0x1c5   :  { %v3028_v33 = vld [vmem:[#allocation6 + $0x1d80] sm:$0xff]  ;;  %v12601_v38 = vcombine.high %v2724_v30, %v2732_v32  ;;  %v12600_v45 = vcombine.low %v2724_v30, %v2732_v32  ;;  %v2173_v30 = vld [vmem:[#allocation6 + $0x2c8] sm:$0xff] }
 0x1c6   :  { %v3036_v35 = vld [vmem:[#allocation6 + $0x1dc0] sm:$0xff] }
 0x1c7   :  { %8411 = vmatpush2.bf16.msra.mxu0 %v12712_v39  ;;  %8446 = vmatpush1.bf16.msra.mxu1 %v12760_v40  ;;  %v2197_v39 = vld [vmem:[#allocation6 + $0x388] sm:$0xff]  ;;  %v12905_v40 = vcombine.high %v3028_v33, %v3036_v35  ;;  %v3012_v42 = vld [vmem:[#allocation6 + $0x1d00] sm:$0xff]  ;;  %v12904_v48 = vcombine.low %v3028_v33, %v3036_v35 }
 0x1c8   :  { %8412 = vmatprep.subr.bf16.mxu0 %v12697_v41  ;;  %8447 = vmatprep.subr.bf16.mxu1 %v12745_v43  ;;  %v2205_v41 = vld [vmem:[#allocation6 + $0x3c8] sm:$0xff]  ;;  %v3020_v43 = vld [vmem:[#allocation6 + $0x1d40] sm:$0xff] }
 0x1c9   :  { %v2996_v54 = vld [vmem:[#allocation6 + $0x1c80] sm:$0xff]  ;;  %v12888_v62 = vcombine.low %v3012_v42, %v3020_v43  ;;  %v12074_v27 = vcombine.low %v2197_v39, %v2205_v41  ;;  %v2149_v33 = vld [vmem:[#allocation6 + $0x208] sm:$0xff] }
 0x1ca   :  { %v2157_v35 = vld [vmem:[#allocation6 + $0x248] sm:$0xff] }
 0x1cb   :  { %8413 = vmatpush2.bf16.msra.mxu0 %v12696_v49  ;;  %8448 = vmatpush1.bf16.msra.mxu1 %v12744_v50  ;;  %v12075_v49 = vcombine.high %v2197_v39, %v2205_v41  ;;  %v12889_v50 = vcombine.high %v3012_v42, %v3020_v43  ;;  %v2141_v39 = vld [vmem:[#allocation6 + $0x1c8] sm:$0xff] }
 0x1cc   :  { %8414 = vmatprep.subr.bf16.mxu0 %v12681_v52  ;;  %8449 = vmatprep.subr.bf16.mxu1 %v12729_v55  ;;  %v14025_v52 = vsub.s32 5, %v13924_v46  ;;  %v3004_v55 = vld [vmem:[#allocation6 + $0x1cc0] sm:$0xff]  ;;  %v2117_v42 = vld [vmem:[#allocation6 + $0x108] sm:$0xff] }
 0x1cd   :  { %v12873_v0 = vcombine.high %v2996_v54, %v3004_v55  ;;  %v12872_v10 = vcombine.low %v2996_v54, %v3004_v55  ;;  %v2125_v43 = vld [vmem:[#allocation6 + $0x148] sm:$0xff] }
 0x1ce   :  { %v11994_v54 = vcombine.low %v2117_v42, %v2125_v43 }
 0x1cf   :  { %8415 = vmatpush2.bf16.msra.mxu0 %v12680_v1  ;;  %8450 = vmatpush1.bf16.msra.mxu1 %v12728_v4  ;;  %v414_v1 = vrot.slane %v13968_v51, %v14025_v52  ;;  %v2980_v4 = vld [vmem:[#allocation6 + $0x1c00] sm:$0xff] }
 0x1d0   :  { %8416 = vmatprep.subr.bf16.mxu0 %v12665_v5  ;;  %8451 = vmatprep.subr.bf16.mxu1 %v12969_v63  ;;  %v2988_v5 = vld [vmem:[#allocation6 + $0x1c40] sm:$0xff] }
 0x1d1   :  { %v12856_v16 = vcombine.low %v2980_v4, %v2988_v5 }
 0x1d3   :  { %8417 = vmatpush2.bf16.msra.mxu0 %v12664_v11  ;;  %8452 = vmatpush2.bf16.msra.mxu1 %v12968_v9  ;;  %v12857_v11 = vcombine.high %v2980_v4, %v2988_v5  ;;  %v2325_v4 = vld [vmem:[#allocation6 + $0x788] sm:$0xff] }
 0x1d4   :  { %8418 = vmatprep.subr.bf16.mxu0 %v12649_v12  ;;  %8453 = vmatprep.subr.bf16.mxu1 %v12953_v13  ;;  %v2333_v5 = vld [vmem:[#allocation6 + $0x7c8] sm:$0xff] }
 0x1d7   :  { %8419 = vmatpush2.bf16.msra.mxu0 %v12648_v17  ;;  %8454 = vmatpush2.bf16.msra.mxu1 %v12952_v19  ;;  %v12331_v19 = vcombine.high %v14011_v57, %v14013_v58 }
 0x1d8   :  { %8420 = vmatprep.subr.bf16.mxu0 %v12633_v21  ;;  %8455 = vmatprep.subr.bf16.mxu1 %v12937_v23  ;;  %v2181_v23 = vld [vmem:[#allocation6 + $0x308] sm:$0xff] }
 0x1db   :  { %8421 = vmatpush2.bf16.msra.mxu0 %v12632_v59  ;;  %8456 = vmatpush2.bf16.msra.mxu1 %v12936_v28  ;;  %v12059_v28 = vcombine.high %v2181_v23, %v2189_v24 }
 0x1dc   :  { %8422 = vmatprep.subr.bf16.mxu0 %v12617_v29  ;;  %8457 = vmatprep.subr.bf16.mxu1 %v12921_v31  ;;  %v2165_v29 = vld [vmem:[#allocation6 + $0x288] sm:$0xff]  ;;  %v12058_v31 = vcombine.low %v2181_v23, %v2189_v24 }
 0x1dd   :  { %v12043_v32 = vcombine.high %v2165_v29, %v2173_v30  ;;  %v2245_v23 = vld [vmem:[#allocation6 + $0x508] sm:$0xff] }
 0x1de   :  { %v2253_v24 = vld [vmem:[#allocation6 + $0x548] sm:$0xff] }
 0x1df   :  { %8423 = vmatpush2.bf16.msra.mxu0 %v12616_v36  ;;  %8458 = vmatpush2.bf16.msra.mxu1 %v12920_v37  ;;  %v12042_v36 = vcombine.low %v2165_v29, %v2173_v30  ;;  %v12027_v37 = vcombine.high %v2149_v33, %v2157_v35  ;;  %v12123_v29 = vcombine.high %v2245_v23, %v2253_v24  ;;  %v14044_v30 = vsub.s32 7, %v13924_v46 }
 0x1e0   :  { %8424 = vmatprep.subr.bf16.mxu0 %v12601_v38  ;;  %8459 = vmatprep.subr.bf16.mxu1 %v12905_v40  ;;  %v2133_v38 = vld [vmem:[#allocation6 + $0x188] sm:$0xff]  ;;  %v12026_v40 = vcombine.low %v2149_v33, %v2157_v35  ;;  %v12122_v33 = vcombine.low %v2245_v23, %v2253_v24  ;;  %v13655_v35 = vld [vmem:[#allocation4] sm:$0xff] }
 0x1e1   :  { %v12011_v41 = vcombine.high %v2133_v38, %v2141_v39 }
 0x1e3   :  { %8425 = vmatpush2.bf16.msra.mxu0 %v12600_v45  ;;  %8460 = vmatpush2.bf16.msra.mxu1 %v12904_v48  ;;  %v12010_v45 = vcombine.low %v2133_v38, %v2141_v39  ;;  %v11995_v48 = vcombine.high %v2117_v42, %v2125_v43  ;;  %v422_v38 = vrot.slane %v13655_v35, %v14044_v30  ;;  %v2213_v39 = vld [vmem:[#allocation6 + $0x408] sm:$0xff] }
 0x1e4   :  { %8476 = vmatprep.subr.bf16.mxu0 %v12075_v49  ;;  %8461 = vmatprep.subr.bf16.mxu1 %v12889_v50  ;;  %v2101_v49 = vld [vmem:[#allocation6 + $0x88] sm:$0xff] }
 0x1e5   :  { %v2109_v50 = vld [vmem:[#allocation6 + $0xc8] sm:$0xff] }
 0x1e6   :  { %v1938_v7 = vpop.f32.mrf.mxu0  ;;  %v11979_v55 = vcombine.high %v2101_v49, %v2109_v50 }
 0x1e7   :  { %v1939_v63 = vadd.f32 %v1938_v7, %v410_v61  ;;  %8462 = vmatpush2.bf16.msra.mxu1 %v12888_v62  ;;  %v2085_v61 = vld [vmem:[#allocation6 + $0x8] sm:$0xff] }
 0x1e8   :  { %v1979_v8 = vpop.f32.mrf.mxu1  ;;  %v1940_v3 = vpop.f32.mrf.mxu0  ;;  %8463 = vmatprep.subr.bf16.mxu1 %v12873_v0  ;;  %v2093_v62 = vld [vmem:[#allocation6 + $0x48] sm:$0xff]  ;;  %v11978_v0 = vcombine.low %v2101_v49, %v2109_v50 }
 0x1e9   :  { %v1980_v9 = vadd.f32 %v1979_v8, %v1939_v63  ;;  %v1941_v12 = vadd.f32 %v1940_v3, %v414_v1  ;;  %v11963_v1 = vcombine.high %v2085_v61, %v2093_v62  ;;  %v11962_v7 = vcombine.low %v2085_v61, %v2093_v62  ;;  %v2309_v8 = vld [vmem:[#allocation6 + $0x708] sm:$0xff] }
 0x1ea   :  { %v1981_v2 = vpop.f32.mrf.mxu1  ;;  %v1942_v13 = vpop.f32.mrf.mxu0  ;;  %v12203_v63 = vcombine.high %v2325_v4, %v2333_v5  ;;  %v12202_v3 = vcombine.low %v2325_v4, %v2333_v5  ;;  %v2709_v61 = vld [vmem:[#allocation6 + $0x1388] sm:$0xff] }
 0x1eb   :  { %v1982_v15 = vadd.f32 %v1981_v2, %v1941_v12  ;;  %8464 = vmatpush2.bf16.msra.mxu1 %v12872_v10  ;;  %v2072_v17 = vmax.f32 %v1980_v9, 0.0  ;;  %v2317_v10 = vld [vmem:[#allocation6 + $0x748] sm:$0xff] }
 0x1ec   :  { %v1983_v26 = vpop.f32.mrf.mxu1  ;;  %v1943_v51 = vpop.f32.mrf.mxu0  ;;  %8465 = vmatprep.subr.bf16.mxu1 %v12857_v11  ;;  %v12187_v11 = vcombine.high %v2309_v8, %v2317_v10  ;;  %v2293_v9 = vld [vmem:[#allocation6 + $0x688] sm:$0xff]  ;;  %v12186_v2 = vcombine.low %v2309_v8, %v2317_v10 }
 0x1ed   :  { %v2073_v21 = vmax.f32 %v1982_v15, 0.0  ;;  %v14035_v59 = vpack.c.bf16 %v2072_v17, %v2072_v17  ;;  %v2301_v12 = vld [vmem:[#allocation6 + $0x6c8] sm:$0xff] }
 0x1ee   :  { %v1984_v22 = vpop.f32.mrf.mxu1  ;;  %v12171_v13 = vcombine.high %v2293_v9, %v2301_v12  ;;  %v2277_v15 = vld [vmem:[#allocation6 + $0x608] sm:$0xff] }
 0x1ef   :  { %v14033_v25 = vpack.c.bf16 %v2073_v21, %v2073_v21  ;;  %8466 = vmatpush2.bf16.msra.mxu1 %v12856_v16  ;;  %v2285_v26 = vld [vmem:[#allocation6 + $0x648] sm:$0xff]  ;;  %v12170_v16 = vcombine.low %v2293_v9, %v2301_v12 }
 0x1f0   :  { %8517 = vmatprep.subr.bf16.mxu1 %v12331_v19  ;;  %v12155_v17 = vcombine.high %v2277_v15, %v2285_v26  ;;  %v2261_v51 = vld [vmem:[#allocation6 + $0x588] sm:$0xff]  ;;  %v12154_v21 = vcombine.low %v2277_v15, %v2285_v26 }
 0x1f1   :  { %8426 = vmatprep.mubr.bf16.mxu0 %v14033_v25  ;;  %v2269_v19 = vld [vmem:[#allocation6 + $0x5c8] sm:$0xff] }
 0x1f2   :  { %8427 = vmatmul.mubr.bf16.vlgmr.msra.gmra.mxu0 %v14035_v59  ;;  %v12139_v22 = vcombine.high %v2261_v51, %v2269_v19  ;;  %v2717_v62 = vld [vmem:[#allocation6 + $0x13c8] sm:$0xff] }
 0x1f3   :  { %8477 = vmatpush1.bf16.msra.mxu0 %v12074_v27  ;;  %8508 = vmatprep.mubr.bf16.mxu0 %v13978_v56  ;;  %v12138_v27 = vcombine.low %v2261_v51, %v2269_v19  ;;  %v12587_v8 = vcombine.high %v2709_v61, %v2717_v62  ;;  %v2445_v9 = vld [vmem:[#allocation6 + $0xb48] sm:$0xff]  ;;  %v12586_v15 = vcombine.low %v2709_v61, %v2717_v62 }
 0x1f4   :  { %8478 = vmatprep.subr.bf16.mxu0 %v12059_v28  ;;  %v14041_v28 = vsub.s32 6, %v13924_v46  ;;  %v2693_v12 = vld [vmem:[#allocation6 + $0x1308] sm:$0xff] }
 0x1f5   :  { %v2429_v19 = vld [vmem:[#allocation6 + $0xac8] sm:$0xff] }
 0x1f7   :  { %8479 = vmatpush1.bf16.msra.mxu0 %v12058_v31  ;;  %v2229_v31 = vld [vmem:[#allocation6 + $0x488] sm:$0xff] }
 0x1f8   :  { %8480 = vmatprep.subr.bf16.mxu0 %v12043_v32  ;;  %v2237_v32 = vld [vmem:[#allocation6 + $0x4c8] sm:$0xff] }
 0x1fb   :  { %8481 = vmatpush1.bf16.msra.mxu0 %v12042_v36  ;;  %v418_v36 = vrot.slane %v13655_v35, %v14041_v28  ;;  %v2669_v35 = vld [vmem:[#allocation6 + $0x1248] sm:$0xff] }
 0x1fc   :  { %8482 = vmatprep.subr.bf16.mxu0 %v12027_v37  ;;  %v12107_v37 = vcombine.high %v2229_v31, %v2237_v32 }
 0x1ff   :  { %8483 = vmatpush1.bf16.msra.mxu0 %v12026_v40  ;;  %v2221_v40 = vld [vmem:[#allocation6 + $0x448] sm:$0xff] }
 0x200   :  { %8484 = vmatprep.subr.bf16.mxu0 %v12011_v41  ;;  %v12091_v49 = vcombine.high %v2213_v39, %v2221_v40  ;;  %v12090_v5 = vcombine.low %v2213_v39, %v2221_v40  ;;  %v2645_v39 = vld [vmem:[#allocation6 + $0x1188] sm:$0xff] }
 0x201   :  { %v2653_v40 = vld [vmem:[#allocation6 + $0x11c8] sm:$0xff] }
 0x202   :  { %v12522_v61 = vcombine.low %v2645_v39, %v2653_v40 }
 0x203   :  { %8485 = vmatpush1.bf16.msra.mxu0 %v12010_v45  ;;  %v12106_v45 = vcombine.low %v2229_v31, %v2237_v32  ;;  %v2405_v31 = vld [vmem:[#allocation6 + $0xa08] sm:$0xff] }
 0x204   :  { %8486 = vmatprep.subr.bf16.mxu0 %v11995_v48  ;;  %v2413_v32 = vld [vmem:[#allocation6 + $0xa48] sm:$0xff] }
 0x205   :  { %v12283_v58 = vcombine.high %v2405_v31, %v2413_v32 }
 0x207   :  { %8487 = vmatpush1.bf16.msra.mxu0 %v11994_v54 }
 0x208   :  { %8488 = vmatprep.subr.bf16.mxu0 %v11979_v55 }
 0x20b   :  { %8489 = vmatpush1.bf16.msra.mxu0 %v11978_v0 }
 0x20c   :  { %8490 = vmatprep.subr.bf16.mxu0 %v11963_v1 }
 0x20f   :  { %8491 = vmatpush1.bf16.msra.mxu0 %v11962_v7 }
 0x210   :  { %8492 = vmatprep.subr.bf16.mxu0 %v12203_v63 }
 0x213   :  { %8493 = vmatpush2.bf16.msra.mxu0 %v12202_v3 }
 0x214   :  { %8494 = vmatprep.subr.bf16.mxu0 %v12187_v11  ;;  %v2437_v11 = vld [vmem:[#allocation6 + $0xb08] sm:$0xff] }
 0x215   :  { %v12314_v23 = vcombine.low %v2437_v11, %v2445_v9 }
 0x217   :  { %8495 = vmatpush2.bf16.msra.mxu0 %v12186_v2  ;;  %v2701_v2 = vld [vmem:[#allocation6 + $0x1348] sm:$0xff] }
 0x218   :  { %8496 = vmatprep.subr.bf16.mxu0 %v12171_v13  ;;  %v12571_v51 = vcombine.high %v2693_v12, %v2701_v2  ;;  %v12570_v24 = vcombine.low %v2693_v12, %v2701_v2  ;;  %v2597_v12 = vld [vmem:[#allocation6 + $0x1008] sm:$0xff] }
 0x219   :  { %v2605_v2 = vld [vmem:[#allocation6 + $0x1048] sm:$0xff] }
 0x21b   :  { %8497 = vmatpush2.bf16.msra.mxu0 %v12170_v16  ;;  %v2421_v16 = vld [vmem:[#allocation6 + $0xa88] sm:$0xff] }
 0x21c   :  { %8498 = vmatprep.subr.bf16.mxu0 %v12155_v17  ;;  %v12315_v17 = vcombine.high %v2437_v11, %v2445_v9  ;;  %v2341_v11 = vld [vmem:[#allocation6 + $0x808] sm:$0xff] }
 0x21d   :  { %v2349_v9 = vld [vmem:[#allocation6 + $0x848] sm:$0xff] }
 0x21f   :  { %8499 = vmatpush2.bf16.msra.mxu0 %v12154_v21  ;;  %v2677_v21 = vld [vmem:[#allocation6 + $0x1288] sm:$0xff] }
 0x220   :  { %8500 = vmatprep.subr.bf16.mxu0 %v12139_v22  ;;  %v2685_v22 = vld [vmem:[#allocation6 + $0x12c8] sm:$0xff] }
 0x221   :  { %v12554_v57 = vcombine.low %v2677_v21, %v2685_v22 }
 0x223   :  { %8501 = vmatpush2.bf16.msra.mxu0 %v12138_v27  ;;  %v12299_v27 = vcombine.high %v2421_v16, %v2429_v19 }
 0x224   :  { %8502 = vmatprep.subr.bf16.mxu0 %v12123_v29  ;;  %v12555_v29 = vcombine.high %v2677_v21, %v2685_v22  ;;  %v2589_v21 = vld [vmem:[#allocation6 + $0xfc8] sm:$0xff] }
 0x225   :  { %v2837_v22 = vld [vmem:[#allocation6 + $0x1788] sm:$0xff] }
 0x226   :  { %v2020_v41 = vpop.f32.mrf.mxu0 }
 0x227   :  { %v2021_v42 = vadd.f32 %v2020_v41, %v418_v36  ;;  %8503 = vmatpush2.bf16.msra.mxu0 %v12122_v33  ;;  %v2661_v33 = vld [vmem:[#allocation6 + $0x1208] sm:$0xff]  ;;  %v12298_v36 = vcombine.low %v2421_v16, %v2429_v19  ;;  %v12282_v41 = vcombine.low %v2405_v31, %v2413_v32 }
 0x228   :  { %v2061_v43 = vpop.f32.mrf.mxu1  ;;  %v2022_v48 = vpop.f32.mrf.mxu0  ;;  %8504 = vmatprep.subr.bf16.mxu0 %v12107_v37  ;;  %v2389_v37 = vld [vmem:[#allocation6 + $0x988] sm:$0xff] }
 0x229   :  { %v2062_v50 = vadd.f32 %v2061_v43, %v2021_v42  ;;  %v2023_v54 = vadd.f32 %v2022_v48, %v422_v38  ;;  %v2397_v38 = vld [vmem:[#allocation6 + $0x9c8] sm:$0xff]  ;;  %v12538_v42 = vcombine.low %v2661_v33, %v2669_v35 }
 0x22a   :  { %v2063_v55 = vpop.f32.mrf.mxu1  ;;  %v2024_v0 = vpop.f32.mrf.mxu0  ;;  %v12267_v43 = vcombine.high %v2389_v37, %v2397_v38  ;;  %v2373_v48 = vld [vmem:[#allocation6 + $0x908] sm:$0xff] }
 0x22b   :  { %v2064_v1 = vadd.f32 %v2063_v55, %v2023_v54  ;;  %8505 = vmatpush2.bf16.msra.mxu0 %v12106_v45  ;;  %v2074_v7 = vmax.f32 %v2062_v50, 0.0  ;;  %v12523_v45 = vcombine.high %v2645_v39, %v2653_v40  ;;  %v2629_v50 = vld [vmem:[#allocation6 + $0x1108] sm:$0xff]  ;;  %v12266_v55 = vcombine.low %v2389_v37, %v2397_v38 }
 0x22c   :  { %v2065_v4 = vpop.f32.mrf.mxu1  ;;  %v2025_v63 = vpop.f32.mrf.mxu0  ;;  %8506 = vmatprep.subr.bf16.mxu0 %v12091_v49  ;;  %v2381_v49 = vld [vmem:[#allocation6 + $0x948] sm:$0xff] }
 0x22d   :  { %v2075_v10 = vmax.f32 %v2064_v1, 0.0  ;;  %v14050_v26 = vpack.c.bf16 %v2074_v7, %v2074_v7  ;;  %v2637_v54 = vld [vmem:[#allocation6 + $0x1148] sm:$0xff]  ;;  %v12251_v62 = vcombine.high %v2373_v48, %v2381_v49  ;;  %v12250_v63 = vcombine.low %v2373_v48, %v2381_v49 }
 0x22e   :  { %v2066_v3 = vpop.f32.mrf.mxu1  ;;  %v12507_v0 = vcombine.high %v2629_v50, %v2637_v54  ;;  %v2357_v1 = vld [vmem:[#allocation6 + $0x888] sm:$0xff] }
 0x22f   :  { %v14048_v13 = vpack.c.bf16 %v2075_v10, %v2075_v10  ;;  %8507 = vmatpush2.bf16.msra.mxu0 %v12090_v5  ;;  %v2365_v4 = vld [vmem:[#allocation6 + $0x8c8] sm:$0xff] }
 0x230   :  { %8558 = vmatprep.subr.bf16.mxu0 %v12587_v8  ;;  %v2613_v5 = vld [vmem:[#allocation6 + $0x1088] sm:$0xff]  ;;  %v12506_v8 = vcombine.low %v2629_v50, %v2637_v54  ;;  %v12235_v10 = vcombine.high %v2357_v1, %v2365_v4 }
 0x231   :  { %8467 = vmatprep.mubr.bf16.mxu1 %v14048_v13  ;;  %v2621_v7 = vld [vmem:[#allocation6 + $0x10c8] sm:$0xff] }
 0x232   :  { %8509 = vmatmul.mubr.bf16.vlgmr.msra.gmra.mxu0 %v14002_v20  ;;  %8468 = vmatmul.mubr.bf16.vlgmr.msra.gmra.mxu1 %v14050_v26  ;;  %v12491_v3 = vcombine.high %v2613_v5, %v2621_v7  ;;  %v12490_v16 = vcombine.low %v2613_v5, %v2621_v7  ;;  %v2581_v19 = vld [vmem:[#allocation6 + $0xf88] sm:$0xff] }
 0x233   :  { %8518 = vmatpush1.bf16.msra.mxu1 %v12330_v6  ;;  %8559 = vmatpush1.bf16.msra.mxu0 %v12586_v15  ;;  %v12539_v6 = vcombine.high %v2661_v33, %v2669_v35  ;;  %v12234_v15 = vcombine.low %v2357_v1, %v2365_v4  ;;  %v2565_v32 = vld [vmem:[#allocation6 + $0xf08] sm:$0xff] }
 0x234   :  { %8590 = vmatprep.mubr.bf16.mxu0 %v14033_v25  ;;  %8549 = vmatprep.mubr.bf16.mxu1 %v14007_v53  ;;  %v2573_v33 = vld [vmem:[#allocation6 + $0xf48] sm:$0xff] }
 0x235   :  { %8519 = vmatprep.subr.bf16.mxu1 %v12315_v17  ;;  %8560 = vmatprep.subr.bf16.mxu0 %v12571_v51  ;;  %v12219_v17 = vcombine.high %v2341_v11, %v2349_v9  ;;  %v12475_v51 = vcombine.high %v2597_v12, %v2605_v2  ;;  %v2821_v35 = vld [vmem:[#allocation6 + $0x1708] sm:$0xff] }
 0x236   :  { %v2549_v38 = vld [vmem:[#allocation6 + $0xe88] sm:$0xff] }
 0x237   :  { %8520 = vmatpush1.bf16.msra.mxu1 %v12314_v23  ;;  %8561 = vmatpush1.bf16.msra.mxu0 %v12570_v24  ;;  %v2845_v23 = vld [vmem:[#allocation6 + $0x17c8] sm:$0xff]  ;;  %v12218_v24 = vcombine.low %v2341_v11, %v2349_v9 }
 0x238   :  { %8521 = vmatprep.subr.bf16.mxu1 %v12299_v27  ;;  %8562 = vmatprep.subr.bf16.mxu0 %v12555_v29  ;;  %v12474_v27 = vcombine.low %v2597_v12, %v2605_v2  ;;  %v12459_v29 = vcombine.high %v2581_v19, %v2589_v21  ;;  %v12715_v31 = vcombine.high %v2837_v22, %v2845_v23  ;;  %v2557_v39 = vld [vmem:[#allocation6 + $0xec8] sm:$0xff] }
 0x239   :  { %v2805_v40 = vld [vmem:[#allocation6 + $0x1688] sm:$0xff] }
 0x23a   :  { %v2533_v49 = vld [vmem:[#allocation6 + $0xe08] sm:$0xff] }
 0x23b   :  { %8522 = vmatpush1.bf16.msra.mxu1 %v12298_v36  ;;  %8563 = vmatpush1.bf16.msra.mxu0 %v12554_v57  ;;  %v2829_v36 = vld [vmem:[#allocation6 + $0x1748] sm:$0xff]  ;;  %v12458_v57 = vcombine.low %v2581_v19, %v2589_v21 }
 0x23c   :  { %8523 = vmatprep.subr.bf16.mxu1 %v12283_v58  ;;  %8564 = vmatprep.subr.bf16.mxu0 %v12539_v6  ;;  %v12714_v58 = vcombine.low %v2837_v22, %v2845_v23  ;;  %v12443_v6 = vcombine.high %v2565_v32, %v2573_v33  ;;  %v12699_v37 = vcombine.high %v2821_v35, %v2829_v36  ;;  %v2541_v50 = vld [vmem:[#allocation6 + $0xe48] sm:$0xff] }
 0x23d   :  { %v2789_v54 = vld [vmem:[#allocation6 + $0x1608] sm:$0xff] }
 0x23e   :  { %v2517_v4 = vld [vmem:[#allocation6 + $0xd88] sm:$0xff] }
 0x23f   :  { %8524 = vmatpush1.bf16.msra.mxu1 %v12282_v41  ;;  %8565 = vmatpush1.bf16.msra.mxu0 %v12538_v42  ;;  %v2813_v41 = vld [vmem:[#allocation6 + $0x16c8] sm:$0xff]  ;;  %v12442_v42 = vcombine.low %v2565_v32, %v2573_v33 }
 0x240   :  { %8525 = vmatprep.subr.bf16.mxu1 %v12267_v43  ;;  %8566 = vmatprep.subr.bf16.mxu0 %v12523_v45  ;;  %v12698_v43 = vcombine.low %v2821_v35, %v2829_v36  ;;  %v12427_v45 = vcombine.high %v2549_v38, %v2557_v39  ;;  %v12683_v48 = vcombine.high %v2805_v40, %v2813_v41  ;;  %v2525_v5 = vld [vmem:[#allocation6 + $0xdc8] sm:$0xff] }
 0x241   :  { %v2773_v7 = vld [vmem:[#allocation6 + $0x1588] sm:$0xff] }
 0x242   :  { %v2501_v9 = vld [vmem:[#allocation6 + $0xd08] sm:$0xff] }
 0x243   :  { %8526 = vmatpush1.bf16.msra.mxu1 %v12266_v55  ;;  %8567 = vmatpush1.bf16.msra.mxu0 %v12522_v61  ;;  %v2797_v55 = vld [vmem:[#allocation6 + $0x1648] sm:$0xff]  ;;  %v12426_v61 = vcombine.low %v2549_v38, %v2557_v39 }
 0x244   :  { %8527 = vmatprep.subr.bf16.mxu1 %v12251_v62  ;;  %8568 = vmatprep.subr.bf16.mxu0 %v12507_v0  ;;  %v12682_v62 = vcombine.low %v2805_v40, %v2813_v41  ;;  %v12411_v0 = vcombine.high %v2533_v49, %v2541_v50  ;;  %v12667_v1 = vcombine.high %v2789_v54, %v2797_v55  ;;  %v2509_v12 = vld [vmem:[#allocation6 + $0xd48] sm:$0xff] }
 0x245   :  { %v2757_v2 = vld [vmem:[#allocation6 + $0x1508] sm:$0xff] }
 0x246   :  { %v2485_v21 = vld [vmem:[#allocation6 + $0xc88] sm:$0xff] }
 0x247   :  { %8528 = vmatpush1.bf16.msra.mxu1 %v12250_v63  ;;  %8569 = vmatpush1.bf16.msra.mxu0 %v12506_v8  ;;  %v2781_v63 = vld [vmem:[#allocation6 + $0x15c8] sm:$0xff]  ;;  %v12410_v8 = vcombine.low %v2533_v49, %v2541_v50 }
 0x248   :  { %8529 = vmatprep.subr.bf16.mxu1 %v12235_v10  ;;  %8570 = vmatprep.subr.bf16.mxu0 %v12491_v3  ;;  %v12666_v10 = vcombine.low %v2789_v54, %v2797_v55  ;;  %v12395_v3 = vcombine.high %v2517_v4, %v2525_v5  ;;  %v12651_v11 = vcombine.high %v2773_v7, %v2781_v63  ;;  %v2493_v22 = vld [vmem:[#allocation6 + $0xcc8] sm:$0xff] }
 0x249   :  { %v2741_v23 = vld [vmem:[#allocation6 + $0x1488] sm:$0xff] }
 0x24a   :  { %v2469_v33 = vld [vmem:[#allocation6 + $0xc08] sm:$0xff] }
 0x24b   :  { %8530 = vmatpush1.bf16.msra.mxu1 %v12234_v15  ;;  %8571 = vmatpush1.bf16.msra.mxu0 %v12490_v16  ;;  %v2765_v15 = vld [vmem:[#allocation6 + $0x1548] sm:$0xff]  ;;  %v12394_v16 = vcombine.low %v2517_v4, %v2525_v5  ;;  %v2182_v5 = vld [vmem:[#allocation6 + $0x310] sm:$0xff] }
 0x24c   :  { %8531 = vmatprep.subr.bf16.mxu1 %v12219_v17  ;;  %8572 = vmatprep.subr.bf16.mxu0 %v12475_v51  ;;  %v12650_v17 = vcombine.low %v2773_v7, %v2781_v63  ;;  %v12379_v51 = vcombine.high %v2501_v9, %v2509_v12  ;;  %v12635_v19 = vcombine.high %v2757_v2, %v2765_v15  ;;  %v2477_v35 = vld [vmem:[#allocation6 + $0xc48] sm:$0xff]  ;;  %v2190_v7 = vld [vmem:[#allocation6 + $0x350] sm:$0xff] }
 0x24d   :  { %v2725_v36 = vld [vmem:[#allocation6 + $0x1408] sm:$0xff]  ;;  %v12347_v39 = vcombine.high %v2469_v33, %v2477_v35  ;;  %v12346_v50 = vcombine.low %v2469_v33, %v2477_v35  ;;  %v2150_v35 = vld [vmem:[#allocation6 + $0x210] sm:$0xff] }
 0x24e   :  { %v2965_v41 = vld [vmem:[#allocation6 + $0x1b88] sm:$0xff] }
 0x24f   :  { %8532 = vmatpush1.bf16.msra.mxu1 %v12218_v24  ;;  %8573 = vmatpush1.bf16.msra.mxu0 %v12474_v27  ;;  %v2749_v24 = vld [vmem:[#allocation6 + $0x14c8] sm:$0xff]  ;;  %v12378_v27 = vcombine.low %v2501_v9, %v2509_v12  ;;  %v12061_v9 = vcombine.high %v2182_v5, %v2190_v7 }
 0x250   :  { %8533 = vmatprep.subr.bf16.mxu1 %v12459_v29  ;;  %8574 = vmatprep.subr.bf16.mxu0 %v12715_v31  ;;  %v12634_v29 = vcombine.low %v2757_v2, %v2765_v15  ;;  %v12363_v31 = vcombine.high %v2485_v21, %v2493_v22  ;;  %v12619_v32 = vcombine.high %v2741_v23, %v2749_v24  ;;  %v2957_v4 = vld [vmem:[#allocation6 + $0x1b48] sm:$0xff] }
 0x251   :  { %v2933_v12 = vld [vmem:[#allocation6 + $0x1a88] sm:$0xff] }
 0x252   :  { %v2941_v2 = vld [vmem:[#allocation6 + $0x1ac8] sm:$0xff] }
 0x253   :  { %8534 = vmatpush2.bf16.msra.mxu1 %v12458_v57  ;;  %8575 = vmatpush2.bf16.msra.mxu0 %v12714_v58  ;;  %v2733_v57 = vld [vmem:[#allocation6 + $0x1448] sm:$0xff] }
 0x254   :  { %8535 = vmatprep.subr.bf16.mxu1 %v12443_v6  ;;  %8576 = vmatprep.subr.bf16.mxu0 %v12699_v37  ;;  %v12362_v6 = vcombine.low %v2485_v21, %v2493_v22  ;;  %v12618_v37 = vcombine.low %v2741_v23, %v2749_v24  ;;  %v12603_v40 = vcombine.high %v2725_v36, %v2733_v57 }
 0x255   :  { %v12602_v54 = vcombine.low %v2725_v36, %v2733_v57  ;;  %v12060_v23 = vcombine.low %v2182_v5, %v2190_v7  ;;  %v12811_v24 = vcombine.high %v2933_v12, %v2941_v2  ;;  %v2158_v36 = vld [vmem:[#allocation6 + $0x250] sm:$0xff]  ;;  %v12810_v57 = vcombine.low %v2933_v12, %v2941_v2  ;;  %v2869_v5 = vld [vmem:[#allocation6 + $0x1888] sm:$0xff] }
 0x256   :  { %v2877_v7 = vld [vmem:[#allocation6 + $0x18c8] sm:$0xff] }
 0x257   :  { %8536 = vmatpush2.bf16.msra.mxu1 %v12442_v42  ;;  %8577 = vmatpush2.bf16.msra.mxu0 %v12698_v43  ;;  %v2973_v42 = vld [vmem:[#allocation6 + $0x1bc8] sm:$0xff]  ;;  %v2198_v43 = vld [vmem:[#allocation6 + $0x390] sm:$0xff] }
 0x258   :  { %8537 = vmatprep.subr.bf16.mxu1 %v12427_v45  ;;  %8578 = vmatprep.subr.bf16.mxu0 %v12683_v48  ;;  %v2206_v45 = vld [vmem:[#allocation6 + $0x3d0] sm:$0xff]  ;;  %v3108_v48 = vld [vmem:[#allocation7] sm:$0xff]  ;;  %v2853_v12 = vld [vmem:[#allocation6 + $0x1808] sm:$0xff] }
 0x259   :  { %v3119_v63 = vrot.slane %v3108_v48, %v13966_v47  ;;  %v2861_v2 = vld [vmem:[#allocation6 + $0x1848] sm:$0xff] }
 0x25b   :  { %8538 = vmatpush2.bf16.msra.mxu1 %v12426_v61  ;;  %8579 = vmatpush2.bf16.msra.mxu0 %v12682_v62  ;;  %v12843_v61 = vcombine.high %v2965_v41, %v2973_v42  ;;  %v12077_v62 = vcombine.high %v2198_v43, %v2206_v45 }
 0x25c   :  { %8539 = vmatprep.subr.bf16.mxu1 %v12411_v0  ;;  %8580 = vmatprep.subr.bf16.mxu0 %v12667_v1  ;;  %v3115_v0 = vrot.slane %v3108_v48, %v13982_v34  ;;  %v2949_v1 = vld [vmem:[#allocation6 + $0x1b08] sm:$0xff] }
 0x25d   :  { %v12826_v21 = vcombine.low %v2949_v1, %v2957_v4 }
 0x25f   :  { %8540 = vmatpush2.bf16.msra.mxu1 %v12410_v8  ;;  %8581 = vmatpush2.bf16.msra.mxu0 %v12666_v10  ;;  %v12842_v8 = vcombine.low %v2965_v41, %v2973_v42  ;;  %v12076_v10 = vcombine.low %v2198_v43, %v2206_v45  ;;  %v2134_v41 = vld [vmem:[#allocation6 + $0x190] sm:$0xff]  ;;  %v12028_v45 = vcombine.low %v2150_v35, %v2158_v36 }
 0x260   :  { %8541 = vmatprep.subr.bf16.mxu1 %v12395_v3  ;;  %8582 = vmatprep.subr.bf16.mxu0 %v12651_v11  ;;  %v12827_v11 = vcombine.high %v2949_v1, %v2957_v4  ;;  %v2142_v42 = vld [vmem:[#allocation6 + $0x1d0] sm:$0xff] }
 0x263   :  { %8542 = vmatpush2.bf16.msra.mxu1 %v12394_v16  ;;  %8583 = vmatpush2.bf16.msra.mxu0 %v12650_v17  ;;  %v2166_v16 = vld [vmem:[#allocation6 + $0x290] sm:$0xff] }
 0x264   :  { %8543 = vmatprep.subr.bf16.mxu1 %v12379_v51  ;;  %8584 = vmatprep.subr.bf16.mxu0 %v12635_v19  ;;  %v2174_v17 = vld [vmem:[#allocation6 + $0x2d0] sm:$0xff] }
 0x266   :  { %v8346_v58 = vpop.f32.mrf.mxu0 }
 0x267   :  { %8544 = vmatpush2.bf16.msra.mxu1 %v12378_v27  ;;  %8585 = vmatpush2.bf16.msra.mxu0 %v12634_v29  ;;  %v8347_v3 = vadd.f32 %v8346_v58, %v3115_v0  ;;  %v12045_v29 = vcombine.high %v2166_v16, %v2174_v17  ;;  %v12012_v0 = vcombine.low %v2134_v41, %v2142_v42 }
 0x268   :  { %v8348_v38 = vpop.f32.mrf.mxu0  ;;  %8545 = vmatprep.subr.bf16.mxu1 %v12363_v31  ;;  %8586 = vmatprep.subr.bf16.mxu0 %v12619_v32  ;;  %v2917_v31 = vld [vmem:[#allocation6 + $0x1a08] sm:$0xff] }
 0x269   :  { %v8349_v51 = vadd.f32 %v8348_v38, %v3119_v63  ;;  %v2925_v32 = vld [vmem:[#allocation6 + $0x1a48] sm:$0xff]  ;;  %v12029_v38 = vcombine.high %v2150_v35, %v2158_v36  ;;  %v2102_v63 = vld [vmem:[#allocation6 + $0x90] sm:$0xff] }
 0x26a   :  { %v8350_v49 = vpop.f32.mrf.mxu0  ;;  %v12794_v43 = vcombine.low %v2917_v31, %v2925_v32 }
 0x26b   :  { %8546 = vmatpush2.bf16.msra.mxu1 %v12362_v6  ;;  %8587 = vmatpush2.bf16.msra.mxu0 %v12618_v37  ;;  %v12044_v6 = vcombine.low %v2166_v16, %v2174_v17  ;;  %v12795_v37 = vcombine.high %v2917_v31, %v2925_v32  ;;  %v12013_v49 = vcombine.high %v2134_v41, %v2142_v42  ;;  %v2094_v16 = vld [vmem:[#allocation6 + $0x50] sm:$0xff]  ;;  %v3061_v42 = vld [vmem:[#allocation6 + $0x1e88] sm:$0xff] }
 0x26c   :  { %v8351_v55 = vpop.f32.mrf.mxu0  ;;  %8547 = vmatprep.subr.bf16.mxu1 %v12347_v39  ;;  %8588 = vmatprep.subr.bf16.mxu0 %v12603_v40  ;;  %v2901_v39 = vld [vmem:[#allocation6 + $0x1988] sm:$0xff]  ;;  %v12746_v17 = vcombine.low %v2869_v5, %v2877_v7  ;;  %v2334_v31 = vld [vmem:[#allocation6 + $0x7d0] sm:$0xff]  ;;  %v12730_v32 = vcombine.low %v2853_v12, %v2861_v2 }
 0x26d   :  { %v2909_v40 = vld [vmem:[#allocation6 + $0x19c8] sm:$0xff]  ;;  %v2118_v55 = vld [vmem:[#allocation6 + $0x110] sm:$0xff] }
 0x26e   :  { %v12779_v48 = vcombine.high %v2901_v39, %v2909_v40 }
 0x26f   :  { %8548 = vmatpush2.bf16.msra.mxu1 %v12346_v50  ;;  %8589 = vmatpush2.bf16.msra.mxu0 %v12602_v54  ;;  %v2885_v50 = vld [vmem:[#allocation6 + $0x1908] sm:$0xff] }
 0x270   :  { %8599 = vmatprep.subr.bf16.mxu1 %v12843_v61  ;;  %8640 = vmatprep.subr.bf16.mxu0 %v12077_v62  ;;  %v2893_v54 = vld [vmem:[#allocation6 + $0x1948] sm:$0xff]  ;;  %v2126_v61 = vld [vmem:[#allocation6 + $0x150] sm:$0xff]  ;;  %v12778_v62 = vcombine.low %v2901_v39, %v2909_v40 }
 0x271   :  { %v12763_v1 = vcombine.high %v2885_v50, %v2893_v54  ;;  %v11997_v4 = vcombine.high %v2118_v55, %v2126_v61 }
 0x272   :  { %8550 = vmatmul.mubr.bf16.vlgmr.msra.gmra.mxu1 %v14015_v60  ;;  %8591 = vmatmul.mubr.bf16.vlgmr.msra.gmra.mxu0 %v14035_v59  ;;  %v8387_v15 = vpop.f32.mrf.mxu1 }
 0x273   :  { %v14064_v19 = vadd.f32 %v8387_v15, %v8347_v3  ;;  %8600 = vmatpush1.bf16.msra.mxu1 %v12842_v8  ;;  %8631 = vmatprep.mubr.bf16.mxu1 %v14048_v13  ;;  %v2110_v8 = vld [vmem:[#allocation6 + $0xd0] sm:$0xff]  ;;  %v11996_v3 = vcombine.low %v2118_v55, %v2126_v61  ;;  %v3045_v61 = vld [vmem:[#allocation6 + $0x1e08] sm:$0xff] }
 0x274   :  { %8641 = vmatpush1.bf16.msra.mxu0 %v12076_v10  ;;  %8672 = vmatprep.mubr.bf16.mxu0 %v13978_v56  ;;  %v8389_v22 = vpop.f32.mrf.mxu1  ;;  %v12762_v10 = vcombine.low %v2885_v50, %v2893_v54  ;;  %v2086_v15 = vld [vmem:[#allocation6 + $0x10] sm:$0xff] }
 0x275   :  { %v14068_v27 = vadd.f32 %v8389_v22, %v8349_v51  ;;  %8601 = vmatprep.subr.bf16.mxu1 %v12827_v11  ;;  %8642 = vmatprep.subr.bf16.mxu0 %v12061_v9  ;;  %v12747_v11 = vcombine.high %v2869_v5, %v2877_v7  ;;  %v11981_v9 = vcombine.high %v2102_v63, %v2110_v8 }
 0x276   :  { %v8391_v33 = vpop.f32.mrf.mxu1  ;;  %v11980_v51 = vcombine.low %v2102_v63, %v2110_v8  ;;  %v11965_v22 = vcombine.high %v2086_v15, %v2094_v16  ;;  %v3029_v8 = vld [vmem:[#allocation6 + $0x1d88] sm:$0xff] }
 0x277   :  { %8602 = vmatpush1.bf16.msra.mxu1 %v12826_v21  ;;  %v12731_v21 = vcombine.high %v2853_v12, %v2861_v2  ;;  %v11964_v33 = vcombine.low %v2086_v15, %v2094_v16  ;;  %v3013_v16 = vld [vmem:[#allocation6 + $0x1d08] sm:$0xff] }
 0x278   :  { %8643 = vmatpush1.bf16.msra.mxu0 %v12060_v23  ;;  %v8392_v58 = vpop.f32.mrf.mxu1  ;;  %8603 = vmatprep.subr.bf16.mxu1 %v12811_v24  ;;  %v3093_v23 = vld [vmem:[#allocation6 + $0x1f88] sm:$0xff] }
 0x279   :  { %8644 = vmatprep.subr.bf16.mxu0 %v12045_v29  ;;  %v3101_v24 = vld [vmem:[#allocation6 + $0x1fc8] sm:$0xff]  ;;  %v2326_v29 = vld [vmem:[#allocation6 + $0x790] sm:$0xff] }
 0x27a   :  { %v12971_v35 = vcombine.high %v3093_v23, %v3101_v24  ;;  %v12205_v36 = vcombine.high %v2326_v29, %v2334_v31  ;;  %v3085_v58 = vld [vmem:[#allocation6 + $0x1f48] sm:$0xff]  ;;  %v12204_v39 = vcombine.low %v2326_v29, %v2334_v31 }
 0x27b   :  { %8604 = vmatpush1.bf16.msra.mxu1 %v12810_v57  ;;  %v3077_v57 = vld [vmem:[#allocation6 + $0x1f08] sm:$0xff] }
 0x27c   :  { %8645 = vmatpush1.bf16.msra.mxu0 %v12044_v6  ;;  %8605 = vmatprep.subr.bf16.mxu1 %v12795_v37  ;;  %v2310_v6 = vld [vmem:[#allocation6 + $0x710] sm:$0xff]  ;;  %v12955_v40 = vcombine.high %v3077_v57, %v3085_v58  ;;  %v2997_v31 = vld [vmem:[#allocation6 + $0x1c88] sm:$0xff] }
 0x27d   :  { %8646 = vmatprep.subr.bf16.mxu0 %v12029_v38  ;;  %v2318_v37 = vld [vmem:[#allocation6 + $0x750] sm:$0xff]  ;;  %v12970_v38 = vcombine.low %v3093_v23, %v3101_v24 }
 0x27e   :  { %v12189_v41 = vcombine.high %v2310_v6, %v2318_v37  ;;  %v12188_v50 = vcombine.low %v2310_v6, %v2318_v37  ;;  %v2981_v37 = vld [vmem:[#allocation6 + $0x1c08] sm:$0xff] }
 0x27f   :  { %8606 = vmatpush1.bf16.msra.mxu1 %v12794_v43  ;;  %v3069_v43 = vld [vmem:[#allocation6 + $0x1ec8] sm:$0xff] }
 0x280   :  { %8647 = vmatpush1.bf16.msra.mxu0 %v12028_v45  ;;  %8607 = vmatprep.subr.bf16.mxu1 %v12779_v48  ;;  %v2294_v45 = vld [vmem:[#allocation6 + $0x690] sm:$0xff]  ;;  %v12939_v54 = vcombine.high %v3061_v42, %v3069_v43 }
 0x281   :  { %8648 = vmatprep.subr.bf16.mxu0 %v12013_v49  ;;  %v2302_v48 = vld [vmem:[#allocation6 + $0x6d0] sm:$0xff]  ;;  %v12954_v49 = vcombine.low %v3077_v57, %v3085_v58 }
 0x282   :  { %v12173_v55 = vcombine.high %v2294_v45, %v2302_v48  ;;  %v12172_v5 = vcombine.low %v2294_v45, %v2302_v48  ;;  %v2454_v48 = vld [vmem:[#allocation6 + $0xb90] sm:$0xff] }
 0x283   :  { %8608 = vmatpush1.bf16.msra.mxu1 %v12778_v62  ;;  %v3053_v62 = vld [vmem:[#allocation6 + $0x1e48] sm:$0xff] }
 0x284   :  { %8649 = vmatpush1.bf16.msra.mxu0 %v12012_v0  ;;  %8609 = vmatprep.subr.bf16.mxu1 %v12763_v1  ;;  %v2278_v0 = vld [vmem:[#allocation6 + $0x610] sm:$0xff]  ;;  %v12923_v7 = vcombine.high %v3045_v61, %v3053_v62 }
 0x285   :  { %8650 = vmatprep.subr.bf16.mxu0 %v11997_v4  ;;  %v2286_v1 = vld [vmem:[#allocation6 + $0x650] sm:$0xff]  ;;  %v12938_v4 = vcombine.low %v3061_v42, %v3069_v43 }
 0x286   :  { %v12157_v63 = vcombine.high %v2278_v0, %v2286_v1  ;;  %v12156_v12 = vcombine.low %v2278_v0, %v2286_v1  ;;  %v2438_v1 = vld [vmem:[#allocation6 + $0xb10] sm:$0xff] }
 0x287   :  { %8610 = vmatpush1.bf16.msra.mxu1 %v12762_v10  ;;  %v3037_v10 = vld [vmem:[#allocation6 + $0x1dc8] sm:$0xff] }
 0x288   :  { %8651 = vmatpush1.bf16.msra.mxu0 %v11996_v3  ;;  %8611 = vmatprep.subr.bf16.mxu1 %v12747_v11  ;;  %v2262_v3 = vld [vmem:[#allocation6 + $0x590] sm:$0xff]  ;;  %v12907_v2 = vcombine.high %v3029_v8, %v3037_v10 }
 0x289   :  { %8652 = vmatprep.subr.bf16.mxu0 %v11981_v9  ;;  %v2270_v11 = vld [vmem:[#allocation6 + $0x5d0] sm:$0xff]  ;;  %v12922_v9 = vcombine.low %v3045_v61, %v3053_v62 }
 0x28a   :  { %v12141_v15 = vcombine.high %v2262_v3, %v2270_v11  ;;  %v12140_v23 = vcombine.low %v2262_v3, %v2270_v11  ;;  %v2422_v3 = vld [vmem:[#allocation6 + $0xa90] sm:$0xff] }
 0x28b   :  { %8612 = vmatpush1.bf16.msra.mxu1 %v12746_v17  ;;  %v3021_v17 = vld [vmem:[#allocation6 + $0x1d48] sm:$0xff]  ;;  %v2430_v11 = vld [vmem:[#allocation6 + $0xad0] sm:$0xff] }
 0x28c   :  { %8653 = vmatpush1.bf16.msra.mxu0 %v11980_v51  ;;  %8613 = vmatprep.subr.bf16.mxu1 %v12731_v21  ;;  %v2246_v51 = vld [vmem:[#allocation6 + $0x510] sm:$0xff]  ;;  %v12891_v24 = vcombine.high %v3013_v16, %v3021_v17 }
 0x28d   :  { %8654 = vmatprep.subr.bf16.mxu0 %v11965_v22  ;;  %v2254_v21 = vld [vmem:[#allocation6 + $0x550] sm:$0xff]  ;;  %v12906_v22 = vcombine.low %v3029_v8, %v3037_v10 }
 0x28e   :  { %v12125_v29 = vcombine.high %v2246_v51, %v2254_v21  ;;  %v12124_v57 = vcombine.low %v2246_v51, %v2254_v21 }
 0x28f   :  { %8614 = vmatpush1.bf16.msra.mxu1 %v12730_v32  ;;  %v3005_v32 = vld [vmem:[#allocation6 + $0x1cc8] sm:$0xff] }
 0x290   :  { %8655 = vmatpush1.bf16.msra.mxu0 %v11964_v33  ;;  %8615 = vmatprep.subr.bf16.mxu1 %v12971_v35  ;;  %v2230_v33 = vld [vmem:[#allocation6 + $0x490] sm:$0xff]  ;;  %v12875_v58 = vcombine.high %v2997_v31, %v3005_v32 }
 0x291   :  { %8656 = vmatprep.subr.bf16.mxu0 %v12205_v36  ;;  %v2238_v35 = vld [vmem:[#allocation6 + $0x4d0] sm:$0xff]  ;;  %v12890_v36 = vcombine.low %v3013_v16, %v3021_v17 }
 0x292   :  { %v12109_v6 = vcombine.high %v2230_v33, %v2238_v35  ;;  %v12108_v42 = vcombine.low %v2230_v33, %v2238_v35  ;;  %v2670_v33 = vld [vmem:[#allocation6 + $0x1250] sm:$0xff]  ;;  %v12300_v35 = vcombine.low %v2422_v3, %v2430_v11 }
 0x293   :  { %8616 = vmatpush2.bf16.msra.mxu1 %v12970_v38  ;;  %v2989_v38 = vld [vmem:[#allocation6 + $0x1c48] sm:$0xff] }
 0x294   :  { %8657 = vmatpush2.bf16.msra.mxu0 %v12204_v39  ;;  %8617 = vmatprep.subr.bf16.mxu1 %v12955_v40  ;;  %v2214_v39 = vld [vmem:[#allocation6 + $0x410] sm:$0xff]  ;;  %v12859_v43 = vcombine.high %v2981_v37, %v2989_v38 }
 0x295   :  { %8658 = vmatprep.subr.bf16.mxu0 %v12189_v41  ;;  %v2222_v40 = vld [vmem:[#allocation6 + $0x450] sm:$0xff]  ;;  %v12874_v41 = vcombine.low %v2997_v31, %v3005_v32 }
 0x296   :  { %v12093_v45 = vcombine.high %v2214_v39, %v2222_v40  ;;  %v12092_v61 = vcombine.low %v2214_v39, %v2222_v40  ;;  %v2414_v31 = vld [vmem:[#allocation6 + $0xa50] sm:$0xff] }
 0x297   :  { %8618 = vmatpush2.bf16.msra.mxu1 %v12954_v49  ;;  %v2462_v49 = vld [vmem:[#allocation6 + $0xbd0] sm:$0xff] }
 0x298   :  { %8659 = vmatpush2.bf16.msra.mxu0 %v12188_v50  ;;  %8619 = vmatprep.subr.bf16.mxu1 %v12939_v54  ;;  %v2710_v50 = vld [vmem:[#allocation6 + $0x1390] sm:$0xff]  ;;  %v12333_v62 = vcombine.high %v2454_v48, %v2462_v49 }
 0x299   :  { %8660 = vmatprep.subr.bf16.mxu0 %v12173_v55  ;;  %v2718_v54 = vld [vmem:[#allocation6 + $0x13d0] sm:$0xff]  ;;  %v12858_v55 = vcombine.low %v2981_v37, %v2989_v38 }
 0x29a   :  { %v12589_v0 = vcombine.high %v2710_v50, %v2718_v54  ;;  %v12588_v8 = vcombine.low %v2710_v50, %v2718_v54  ;;  %v2662_v32 = vld [vmem:[#allocation6 + $0x1210] sm:$0xff] }
 0x29b   :  { %8620 = vmatpush2.bf16.msra.mxu1 %v12938_v4  ;;  %v2446_v4 = vld [vmem:[#allocation6 + $0xb50] sm:$0xff] }
 0x29c   :  { %8661 = vmatpush2.bf16.msra.mxu0 %v12172_v5  ;;  %8621 = vmatprep.subr.bf16.mxu1 %v12923_v7  ;;  %v12332_v5 = vcombine.low %v2454_v48, %v2462_v49  ;;  %v2694_v7 = vld [vmem:[#allocation6 + $0x1310] sm:$0xff]  ;;  %v12317_v10 = vcombine.high %v2438_v1, %v2446_v4  ;;  %v12316_v17 = vcombine.low %v2438_v1, %v2446_v4 }
 0x29d   :  { %8662 = vmatprep.subr.bf16.mxu0 %v12157_v63  ;;  %v2702_v63 = vld [vmem:[#allocation6 + $0x1350] sm:$0xff] }
 0x29e   :  { %v12572_v21 = vcombine.low %v2694_v7, %v2702_v63  ;;  %v2390_v37 = vld [vmem:[#allocation6 + $0x990] sm:$0xff] }
 0x29f   :  { %8622 = vmatpush2.bf16.msra.mxu1 %v12922_v9  ;;  %v2646_v38 = vld [vmem:[#allocation6 + $0x1190] sm:$0xff] }
 0x2a0   :  { %8663 = vmatpush2.bf16.msra.mxu0 %v12156_v12  ;;  %8623 = vmatprep.subr.bf16.mxu1 %v12907_v2  ;;  %v12573_v12 = vcombine.high %v2694_v7, %v2702_v63  ;;  %v2678_v2 = vld [vmem:[#allocation6 + $0x1290] sm:$0xff] }
 0x2a1   :  { %8664 = vmatprep.subr.bf16.mxu0 %v12141_v15  ;;  %v2686_v15 = vld [vmem:[#allocation6 + $0x12d0] sm:$0xff] }
 0x2a2   :  { %v2654_v39 = vld [vmem:[#allocation6 + $0x11d0] sm:$0xff] }
 0x2a3   :  { %8624 = vmatpush2.bf16.msra.mxu1 %v12906_v22  ;;  %v12301_v22 = vcombine.high %v2422_v3, %v2430_v11  ;;  %v2382_v48 = vld [vmem:[#allocation6 + $0x950] sm:$0xff] }
 0x2a4   :  { %8665 = vmatpush2.bf16.msra.mxu0 %v12140_v23  ;;  %8625 = vmatprep.subr.bf16.mxu1 %v12891_v24  ;;  %v12557_v24 = vcombine.high %v2678_v2, %v2686_v15  ;;  %v2630_v49 = vld [vmem:[#allocation6 + $0x1110] sm:$0xff] }
 0x2a5   :  { %8666 = vmatprep.subr.bf16.mxu0 %v12125_v29  ;;  %v2406_v29 = vld [vmem:[#allocation6 + $0xa10] sm:$0xff] }
 0x2a6   :  { %v12284_v40 = vcombine.low %v2406_v29, %v2414_v31  ;;  %v2638_v50 = vld [vmem:[#allocation6 + $0x1150] sm:$0xff] }
 0x2a7   :  { %8626 = vmatpush2.bf16.msra.mxu1 %v12890_v36  ;;  %v2366_v1 = vld [vmem:[#allocation6 + $0x8d0] sm:$0xff]  ;;  %v12508_v63 = vcombine.low %v2630_v49, %v2638_v50 }
 0x2a8   :  { %8667 = vmatpush2.bf16.msra.mxu0 %v12124_v57  ;;  %8627 = vmatprep.subr.bf16.mxu1 %v12875_v58  ;;  %v12556_v57 = vcombine.low %v2678_v2, %v2686_v15  ;;  %v12285_v58 = vcombine.high %v2406_v29, %v2414_v31  ;;  %v2614_v4 = vld [vmem:[#allocation6 + $0x1090] sm:$0xff] }
 0x2a9   :  { %8668 = vmatprep.subr.bf16.mxu0 %v12109_v6  ;;  %v12541_v6 = vcombine.high %v2662_v32, %v2670_v33  ;;  %v2342_v3 = vld [vmem:[#allocation6 + $0x810] sm:$0xff] }
 0x2aa   :  { %v2350_v11 = vld [vmem:[#allocation6 + $0x850] sm:$0xff] }
 0x2ab   :  { %8628 = vmatpush2.bf16.msra.mxu1 %v12874_v41  ;;  %v12540_v41 = vcombine.low %v2662_v32, %v2670_v33  ;;  %v2846_v29 = vld [vmem:[#allocation6 + $0x17d0] sm:$0xff]  ;;  %v12220_v31 = vcombine.low %v2342_v3, %v2350_v11 }
 0x2ac   :  { %8669 = vmatpush2.bf16.msra.mxu0 %v12108_v42  ;;  %8629 = vmatprep.subr.bf16.mxu1 %v12859_v43  ;;  %v12525_v43 = vcombine.high %v2646_v38, %v2654_v39 }
 0x2ad   :  { %8670 = vmatprep.subr.bf16.mxu0 %v12093_v45  ;;  %v2374_v45 = vld [vmem:[#allocation6 + $0x910] sm:$0xff] }
 0x2ae   :  { %v12252_v7 = vcombine.low %v2374_v45, %v2382_v48 }
 0x2af   :  { %8630 = vmatpush2.bf16.msra.mxu1 %v12858_v55  ;;  %v12524_v55 = vcombine.low %v2646_v38, %v2654_v39  ;;  %v2550_v39 = vld [vmem:[#allocation6 + $0xe90] sm:$0xff] }
 0x2b0   :  { %8671 = vmatpush2.bf16.msra.mxu0 %v12092_v61  ;;  %8681 = vmatprep.subr.bf16.mxu1 %v12333_v62  ;;  %v12253_v61 = vcombine.high %v2374_v45, %v2382_v48  ;;  %v12509_v62 = vcombine.high %v2630_v49, %v2638_v50  ;;  %v2534_v50 = vld [vmem:[#allocation6 + $0xe10] sm:$0xff] }
 0x2b1   :  { %8722 = vmatprep.subr.bf16.mxu0 %v12589_v0  ;;  %v2358_v0 = vld [vmem:[#allocation6 + $0x890] sm:$0xff] }
 0x2b2   :  { %8632 = vmatmul.mubr.bf16.vlgmr.msra.gmra.mxu1 %v14050_v26  ;;  %v8428_v9 = vpop.f32.mrf.mxu0  ;;  %v12236_v2 = vcombine.low %v2358_v0, %v2366_v1 }
 0x2b3   :  { %8673 = vmatmul.mubr.bf16.vlgmr.msra.gmra.mxu0 %v14002_v20  ;;  %v14073_v16 = vadd.f32 %v8428_v9, %v14064_v19  ;;  %8682 = vmatpush1.bf16.msra.mxu1 %v12332_v5  ;;  %v2622_v5 = vld [vmem:[#allocation6 + $0x10d0] sm:$0xff] }
 0x2b4   :  { %8713 = vmatprep.mubr.bf16.mxu1 %v14007_v53  ;;  %8723 = vmatpush1.bf16.msra.mxu0 %v12588_v8  ;;  %v8430_v51 = vpop.f32.mrf.mxu0  ;;  %v12237_v8 = vcombine.high %v2358_v0, %v2366_v1  ;;  %v2598_v9 = vld [vmem:[#allocation6 + $0x1010] sm:$0xff]  ;;  %v12492_v15 = vcombine.low %v2614_v4, %v2622_v5 }
 0x2b5   :  { %8754 = vmatprep.mubr.bf16.mxu0 %v14033_v25  ;;  %v14078_v23 = vadd.f32 %v8430_v51, %v14068_v27  ;;  %8683 = vmatprep.subr.bf16.mxu1 %v12317_v10  ;;  %v2398_v27 = vld [vmem:[#allocation6 + $0x9d0] sm:$0xff]  ;;  %v12493_v10 = vcombine.high %v2614_v4, %v2622_v5 }
 0x2b6   :  { %8724 = vmatprep.subr.bf16.mxu0 %v12573_v12  ;;  %v8432_v19 = vpop.f32.mrf.mxu0  ;;  %v12269_v42 = vcombine.high %v2390_v37, %v2398_v27  ;;  %v12268_v54 = vcombine.low %v2390_v37, %v2398_v27  ;;  %v2606_v12 = vld [vmem:[#allocation6 + $0x1050] sm:$0xff] }
 0x2b7   :  { %8684 = vmatpush1.bf16.msra.mxu1 %v12316_v17  ;;  %v12221_v17 = vcombine.high %v2342_v3, %v2350_v11  ;;  %v12477_v51 = vcombine.high %v2598_v9, %v2606_v12  ;;  %v12476_v19 = vcombine.low %v2598_v9, %v2606_v12  ;;  %v2518_v5 = vld [vmem:[#allocation6 + $0xd90] sm:$0xff] }
 0x2b8   :  { %8725 = vmatpush1.bf16.msra.mxu0 %v12572_v21  ;;  %v8433_v36 = vpop.f32.mrf.mxu0  ;;  %8685 = vmatprep.subr.bf16.mxu1 %v12301_v22  ;;  %v2582_v21 = vld [vmem:[#allocation6 + $0xf90] sm:$0xff] }
 0x2b9   :  { %8726 = vmatprep.subr.bf16.mxu0 %v12557_v24  ;;  %v2590_v22 = vld [vmem:[#allocation6 + $0xfd0] sm:$0xff] }
 0x2ba   :  { %v2838_v24 = vld [vmem:[#allocation6 + $0x1790] sm:$0xff]  ;;  %v12461_v32 = vcombine.high %v2582_v21, %v2590_v22 }
 0x2bb   :  { %8686 = vmatpush1.bf16.msra.mxu1 %v12300_v35  ;;  %v12717_v33 = vcombine.high %v2838_v24, %v2846_v29  ;;  %v2566_v35 = vld [vmem:[#allocation6 + $0xf10] sm:$0xff]  ;;  %v12716_v37 = vcombine.low %v2838_v24, %v2846_v29 }
 0x2bc   :  { %8727 = vmatpush1.bf16.msra.mxu0 %v12556_v57  ;;  %8687 = vmatprep.subr.bf16.mxu1 %v12285_v58  ;;  %v2574_v36 = vld [vmem:[#allocation6 + $0xf50] sm:$0xff] }
 0x2bd   :  { %8728 = vmatprep.subr.bf16.mxu0 %v12541_v6  ;;  %v2822_v57 = vld [vmem:[#allocation6 + $0x1710] sm:$0xff]  ;;  %v12460_v6 = vcombine.low %v2582_v21, %v2590_v22  ;;  %v12445_v27 = vcombine.high %v2566_v35, %v2574_v36 }
 0x2be   :  { %v2830_v58 = vld [vmem:[#allocation6 + $0x1750] sm:$0xff] }
 0x2bf   :  { %8688 = vmatpush1.bf16.msra.mxu1 %v12284_v40  ;;  %v12701_v38 = vcombine.high %v2822_v57, %v2830_v58  ;;  %v2558_v40 = vld [vmem:[#allocation6 + $0xed0] sm:$0xff]  ;;  %v12700_v45 = vcombine.low %v2822_v57, %v2830_v58 }
 0x2c0   :  { %8729 = vmatpush1.bf16.msra.mxu0 %v12540_v41  ;;  %8689 = vmatprep.subr.bf16.mxu1 %v12269_v42  ;;  %v2806_v41 = vld [vmem:[#allocation6 + $0x1690] sm:$0xff]  ;;  %v12429_v48 = vcombine.high %v2550_v39, %v2558_v40 }
 0x2c1   :  { %8730 = vmatprep.subr.bf16.mxu0 %v12525_v43  ;;  %v2814_v42 = vld [vmem:[#allocation6 + $0x16d0] sm:$0xff]  ;;  %v12444_v43 = vcombine.low %v2566_v35, %v2574_v36 }
 0x2c2   :  { %v12685_v49 = vcombine.high %v2806_v41, %v2814_v42  ;;  %v12684_v0 = vcombine.low %v2806_v41, %v2814_v42  ;;  %v2502_v12 = vld [vmem:[#allocation6 + $0xd10] sm:$0xff] }
 0x2c3   :  { %8690 = vmatpush1.bf16.msra.mxu1 %v12268_v54  ;;  %v2542_v54 = vld [vmem:[#allocation6 + $0xe50] sm:$0xff] }
 0x2c4   :  { %8731 = vmatpush1.bf16.msra.mxu0 %v12524_v55  ;;  %8691 = vmatprep.subr.bf16.mxu1 %v12253_v61  ;;  %v2790_v55 = vld [vmem:[#allocation6 + $0x1610] sm:$0xff]  ;;  %v12413_v1 = vcombine.high %v2534_v50, %v2542_v54 }
 0x2c5   :  { %8732 = vmatprep.subr.bf16.mxu0 %v12509_v62  ;;  %v2798_v61 = vld [vmem:[#allocation6 + $0x1650] sm:$0xff]  ;;  %v12428_v62 = vcombine.low %v2550_v39, %v2558_v40 }
 0x2c6   :  { %v12669_v4 = vcombine.high %v2790_v55, %v2798_v61  ;;  %v12668_v3 = vcombine.low %v2790_v55, %v2798_v61  ;;  %v2486_v29 = vld [vmem:[#allocation6 + $0xc90] sm:$0xff] }
 0x2c7   :  { %8692 = vmatpush1.bf16.msra.mxu1 %v12252_v7  ;;  %v2526_v7 = vld [vmem:[#allocation6 + $0xdd0] sm:$0xff] }
 0x2c8   :  { %8733 = vmatpush1.bf16.msra.mxu0 %v12508_v63  ;;  %8693 = vmatprep.subr.bf16.mxu1 %v12237_v8  ;;  %v2774_v63 = vld [vmem:[#allocation6 + $0x1590] sm:$0xff]  ;;  %v12397_v11 = vcombine.high %v2518_v5, %v2526_v7 }
 0x2c9   :  { %8734 = vmatprep.subr.bf16.mxu0 %v12493_v10  ;;  %v2782_v8 = vld [vmem:[#allocation6 + $0x15d0] sm:$0xff]  ;;  %v12412_v10 = vcombine.low %v2534_v50, %v2542_v54 }
 0x2ca   :  { %v12653_v9 = vcombine.high %v2774_v63, %v2782_v8  ;;  %v12652_v21 = vcombine.low %v2774_v63, %v2782_v8  ;;  %v2470_v58 = vld [vmem:[#allocation6 + $0xc10] sm:$0xff] }
 0x2cb   :  { %8694 = vmatpush1.bf16.msra.mxu1 %v12236_v2  ;;  %v2510_v2 = vld [vmem:[#allocation6 + $0xd50] sm:$0xff] }
 0x2cc   :  { %8735 = vmatpush1.bf16.msra.mxu0 %v12492_v15  ;;  %8695 = vmatprep.subr.bf16.mxu1 %v12221_v17  ;;  %v2758_v15 = vld [vmem:[#allocation6 + $0x1510] sm:$0xff]  ;;  %v12381_v22 = vcombine.high %v2502_v12, %v2510_v2 }
 0x2cd   :  { %8736 = vmatprep.subr.bf16.mxu0 %v12477_v51  ;;  %v2766_v17 = vld [vmem:[#allocation6 + $0x1550] sm:$0xff]  ;;  %v12396_v51 = vcombine.low %v2518_v5, %v2526_v7 }
 0x2ce   :  { %v12637_v24 = vcombine.high %v2758_v15, %v2766_v17  ;;  %v12636_v35 = vcombine.low %v2758_v15, %v2766_v17  ;;  %v2966_v42 = vld [vmem:[#allocation6 + $0x1b90] sm:$0xff] }
 0x2cf   :  { %8696 = vmatpush1.bf16.msra.mxu1 %v12220_v31  ;;  %v2494_v31 = vld [vmem:[#allocation6 + $0xcd0] sm:$0xff] }
 0x2d0   :  { %8737 = vmatpush1.bf16.msra.mxu0 %v12476_v19  ;;  %8697 = vmatprep.subr.bf16.mxu1 %v12461_v32  ;;  %v2742_v19 = vld [vmem:[#allocation6 + $0x1490] sm:$0xff]  ;;  %v12365_v36 = vcombine.high %v2486_v29, %v2494_v31 }
 0x2d1   :  { %8738 = vmatprep.subr.bf16.mxu0 %v12717_v33  ;;  %v2750_v32 = vld [vmem:[#allocation6 + $0x14d0] sm:$0xff]  ;;  %v12380_v33 = vcombine.low %v2502_v12, %v2510_v2  ;;  %v2175_v12 = vld [vmem:[#allocation6 + $0x2d8] sm:$0xff] }
 0x2d2   :  { %v12621_v57 = vcombine.high %v2742_v19, %v2750_v32  ;;  %v12620_v39 = vcombine.low %v2742_v19, %v2750_v32  ;;  %v2950_v61 = vld [vmem:[#allocation6 + $0x1b10] sm:$0xff] }
 0x2d3   :  { %8698 = vmatpush2.bf16.msra.mxu1 %v12460_v6  ;;  %v2478_v6 = vld [vmem:[#allocation6 + $0xc50] sm:$0xff] }
 0x2d4   :  { %8739 = vmatpush2.bf16.msra.mxu0 %v12716_v37  ;;  %8699 = vmatprep.subr.bf16.mxu1 %v12445_v27  ;;  %v2726_v37 = vld [vmem:[#allocation6 + $0x1410] sm:$0xff]  ;;  %v12349_v40 = vcombine.high %v2470_v58, %v2478_v6 }
 0x2d5   :  { %8740 = vmatprep.subr.bf16.mxu0 %v12701_v38  ;;  %v2734_v27 = vld [vmem:[#allocation6 + $0x1450] sm:$0xff]  ;;  %v12364_v38 = vcombine.low %v2486_v29, %v2494_v31 }
 0x2d6   :  { %v12605_v41 = vcombine.high %v2726_v37, %v2734_v27  ;;  %v12604_v50 = vcombine.low %v2726_v37, %v2734_v27  ;;  %v2934_v63 = vld [vmem:[#allocation6 + $0x1a90] sm:$0xff] }
 0x2d7   :  { %8700 = vmatpush2.bf16.msra.mxu1 %v12444_v43  ;;  %v2974_v43 = vld [vmem:[#allocation6 + $0x1bd0] sm:$0xff] }
 0x2d8   :  { %8741 = vmatpush2.bf16.msra.mxu0 %v12700_v45  ;;  %8701 = vmatprep.subr.bf16.mxu1 %v12429_v48  ;;  %v2199_v45 = vld [vmem:[#allocation6 + $0x398] sm:$0xff]  ;;  %v12845_v54 = vcombine.high %v2966_v42, %v2974_v43  ;;  %v2942_v8 = vld [vmem:[#allocation6 + $0x1ad0] sm:$0xff] }
 0x2d9   :  { %8742 = vmatprep.subr.bf16.mxu0 %v12685_v49  ;;  %v2207_v48 = vld [vmem:[#allocation6 + $0x3d8] sm:$0xff]  ;;  %v12348_v49 = vcombine.low %v2470_v58, %v2478_v6  ;;  %v2918_v31 = vld [vmem:[#allocation6 + $0x1a10] sm:$0xff] }
 0x2da   :  { %v12079_v55 = vcombine.high %v2199_v45, %v2207_v48  ;;  %v12078_v5 = vcombine.low %v2199_v45, %v2207_v48  ;;  %v2902_v27 = vld [vmem:[#allocation6 + $0x1990] sm:$0xff] }
 0x2db   :  { %8702 = vmatpush2.bf16.msra.mxu1 %v12428_v62  ;;  %v2958_v62 = vld [vmem:[#allocation6 + $0x1b50] sm:$0xff] }
 0x2dc   :  { %8743 = vmatpush2.bf16.msra.mxu0 %v12684_v0  ;;  %8703 = vmatprep.subr.bf16.mxu1 %v12413_v1  ;;  %v12844_v0 = vcombine.low %v2966_v42, %v2974_v43  ;;  %v2183_v1 = vld [vmem:[#allocation6 + $0x318] sm:$0xff]  ;;  %v12829_v7 = vcombine.high %v2950_v61, %v2958_v62  ;;  %v12828_v15 = vcombine.low %v2950_v61, %v2958_v62  ;;  %v2886_v48 = vld [vmem:[#allocation6 + $0x1910] sm:$0xff] }
 0x2dd   :  { %8744 = vmatprep.subr.bf16.mxu0 %v12669_v4  ;;  %v2191_v4 = vld [vmem:[#allocation6 + $0x358] sm:$0xff] }
 0x2df   :  { %8704 = vmatpush2.bf16.msra.mxu1 %v12412_v10 }
 0x2e0   :  { %8745 = vmatpush2.bf16.msra.mxu0 %v12668_v3  ;;  %8705 = vmatprep.subr.bf16.mxu1 %v12397_v11  ;;  %v12063_v11 = vcombine.high %v2183_v1, %v2191_v4 }
 0x2e1   :  { %8746 = vmatprep.subr.bf16.mxu0 %v12653_v9  ;;  %v2167_v9 = vld [vmem:[#allocation6 + $0x298] sm:$0xff] }
 0x2e2   :  { %v12047_v29 = vcombine.high %v2167_v9, %v2175_v12  ;;  %v12046_v6 = vcombine.low %v2167_v9, %v2175_v12  ;;  %v2854_v9 = vld [vmem:[#allocation6 + $0x1810] sm:$0xff] }
 0x2e3   :  { %8706 = vmatpush2.bf16.msra.mxu1 %v12396_v51  ;;  %v2862_v12 = vld [vmem:[#allocation6 + $0x1850] sm:$0xff] }
 0x2e4   :  { %8747 = vmatpush2.bf16.msra.mxu0 %v12652_v21  ;;  %8707 = vmatprep.subr.bf16.mxu1 %v12381_v22  ;;  %v12062_v21 = vcombine.low %v2183_v1, %v2191_v4  ;;  %v12813_v22 = vcombine.high %v2934_v63, %v2942_v8  ;;  %v2870_v1 = vld [vmem:[#allocation6 + $0x1890] sm:$0xff] }
 0x2e5   :  { %8748 = vmatprep.subr.bf16.mxu0 %v12637_v24  ;;  %v2878_v4 = vld [vmem:[#allocation6 + $0x18d0] sm:$0xff] }
 0x2e7   :  { %8708 = vmatpush2.bf16.msra.mxu1 %v12380_v33  ;;  %v2151_v33 = vld [vmem:[#allocation6 + $0x218] sm:$0xff] }
 0x2e8   :  { %8749 = vmatpush2.bf16.msra.mxu0 %v12636_v35  ;;  %8709 = vmatprep.subr.bf16.mxu1 %v12365_v36  ;;  %v2159_v35 = vld [vmem:[#allocation6 + $0x258] sm:$0xff]  ;;  %v12812_v36 = vcombine.low %v2934_v63, %v2942_v8 }
 0x2e9   :  { %8750 = vmatprep.subr.bf16.mxu0 %v12621_v57  ;;  %v12030_v42 = vcombine.low %v2151_v33, %v2159_v35 }
 0x2eb   :  { %8710 = vmatpush2.bf16.msra.mxu1 %v12364_v38  ;;  %v2910_v38 = vld [vmem:[#allocation6 + $0x19d0] sm:$0xff] }
 0x2ec   :  { %8751 = vmatpush2.bf16.msra.mxu0 %v12620_v39  ;;  %8711 = vmatprep.subr.bf16.mxu1 %v12349_v40  ;;  %v2135_v39 = vld [vmem:[#allocation6 + $0x198] sm:$0xff]  ;;  %v12781_v43 = vcombine.high %v2902_v27, %v2910_v38 }
 0x2ed   :  { %8752 = vmatprep.subr.bf16.mxu0 %v12605_v41  ;;  %v2143_v40 = vld [vmem:[#allocation6 + $0x1d8] sm:$0xff] }
 0x2ee   :  { %v12015_v45 = vcombine.high %v2135_v39, %v2143_v40  ;;  %v12014_v61 = vcombine.low %v2135_v39, %v2143_v40 }
 0x2ef   :  { %8712 = vmatpush2.bf16.msra.mxu1 %v12348_v49  ;;  %v2894_v49 = vld [vmem:[#allocation6 + $0x1950] sm:$0xff] }
 0x2f0   :  { %8753 = vmatpush2.bf16.msra.mxu0 %v12604_v50  ;;  %8763 = vmatprep.subr.bf16.mxu1 %v12845_v54  ;;  %v2119_v50 = vld [vmem:[#allocation6 + $0x118] sm:$0xff]  ;;  %v12765_v62 = vcombine.high %v2886_v48, %v2894_v49  ;;  %v12764_v63 = vcombine.low %v2886_v48, %v2894_v49 }
 0x2f1   :  { %8804 = vmatprep.subr.bf16.mxu0 %v12079_v55  ;;  %v2127_v54 = vld [vmem:[#allocation6 + $0x158] sm:$0xff]  ;;  %v12780_v55 = vcombine.low %v2902_v27, %v2910_v38 }
 0x2f2   :  { %v14080_v10 = vpop.f32.mrf.mxu0  ;;  %8714 = vmatmul.mubr.bf16.vlgmr.msra.gmra.mxu1 %v14015_v60  ;;  %v8469_v3 = vpop.f32.mrf.mxu1  ;;  %v11998_v8 = vcombine.low %v2119_v50, %v2127_v54  ;;  %v2319_v27 = vld [vmem:[#allocation6 + $0x758] sm:$0xff] }
 0x2f3   :  { %8755 = vmatmul.mubr.bf16.vlgmr.msra.gmra.mxu0 %v14035_v59  ;;  %v14085_v2 = vadd.f32 %v8469_v3, %v14073_v16  ;;  %8764 = vmatpush1.bf16.msra.mxu1 %v12844_v0  ;;  %v2926_v16 = vld [vmem:[#allocation6 + $0x1a50] sm:$0xff]  ;;  %v11999_v0 = vcombine.high %v2119_v50, %v2127_v54  ;;  %v12749_v3 = vcombine.high %v2870_v1, %v2878_v4  ;;  %v2303_v48 = vld [vmem:[#allocation6 + $0x6d8] sm:$0xff] }
 0x2f4   :  { %8795 = vmatprep.mubr.bf16.mxu1 %v14048_v13  ;;  %8805 = vmatpush1.bf16.msra.mxu0 %v12078_v5  ;;  %v14088_v17 = vpop.f32.mrf.mxu0  ;;  %v8471_v51 = vpop.f32.mrf.mxu1  ;;  %v12797_v37 = vcombine.high %v2918_v31, %v2926_v16  ;;  %v12796_v41 = vcombine.low %v2918_v31, %v2926_v16  ;;  %v2103_v5 = vld [vmem:[#allocation6 + $0x98] sm:$0xff]  ;;  %v3094_v16 = vld [vmem:[#allocation6 + $0x1f90] sm:$0xff] }
 0x2f5   :  { %8836 = vmatprep.mubr.bf16.mxu0 %v13978_v56  ;;  %v14092_v24 = vadd.f32 %v8471_v51, %v14078_v23  ;;  %8765 = vmatprep.subr.bf16.mxu1 %v12829_v7  ;;  %v12031_v23 = vcombine.high %v2151_v33, %v2159_v35  ;;  %v2111_v7 = vld [vmem:[#allocation6 + $0xd8] sm:$0xff]  ;;  %v12732_v35 = vcombine.low %v2854_v9, %v2862_v12 }
 0x2f6   :  { %v8514_v19 = vpop.f32.mrf.mxu0  ;;  %8806 = vmatprep.subr.bf16.mxu0 %v12063_v11  ;;  %v8473_v32 = vpop.f32.mrf.mxu1  ;;  %v11983_v11 = vcombine.high %v2103_v5, %v2111_v7  ;;  %v2095_v51 = vld [vmem:[#allocation6 + $0x58] sm:$0xff] }
 0x2f7   :  { %8766 = vmatpush1.bf16.msra.mxu1 %v12828_v15  ;;  %v2087_v15 = vld [vmem:[#allocation6 + $0x18] sm:$0xff]  ;;  %v3102_v19 = vld [vmem:[#allocation6 + $0x1fd0] sm:$0xff] }
 0x2f8   :  { %8807 = vmatpush1.bf16.msra.mxu0 %v12062_v21  ;;  %v8515_v57 = vpop.f32.mrf.mxu0  ;;  %v8474_v58 = vpop.f32.mrf.mxu1  ;;  %8767 = vmatprep.subr.bf16.mxu1 %v12813_v22  ;;  %v12748_v21 = vcombine.low %v2870_v1, %v2878_v4  ;;  %v11982_v22 = vcombine.low %v2103_v5, %v2111_v7  ;;  %v11967_v31 = vcombine.high %v2087_v15, %v2095_v51  ;;  %v2327_v32 = vld [vmem:[#allocation6 + $0x798] sm:$0xff] }
 0x2f9   :  { %8808 = vmatprep.subr.bf16.mxu0 %v12047_v29  ;;  %v12733_v29 = vcombine.high %v2854_v9, %v2862_v12  ;;  %v2335_v33 = vld [vmem:[#allocation6 + $0x7d8] sm:$0xff]  ;;  %v12973_v57 = vcombine.high %v3094_v16, %v3102_v19  ;;  %v12972_v38 = vcombine.low %v3094_v16, %v3102_v19 }
 0x2fa   :  { %v12207_v58 = vcombine.high %v2327_v32, %v2335_v33  ;;  %v12206_v39 = vcombine.low %v2327_v32, %v2335_v33  ;;  %v2287_v1 = vld [vmem:[#allocation6 + $0x658] sm:$0xff] }
 0x2fb   :  { %8768 = vmatpush1.bf16.msra.mxu1 %v12812_v36  ;;  %v11966_v36 = vcombine.low %v2087_v15, %v2095_v51  ;;  %v2271_v9 = vld [vmem:[#allocation6 + $0x5d8] sm:$0xff] }
 0x2fc   :  { %8809 = vmatpush1.bf16.msra.mxu0 %v12046_v6  ;;  %8769 = vmatprep.subr.bf16.mxu1 %v12797_v37  ;;  %v3078_v6 = vld [vmem:[#allocation6 + $0x1f10] sm:$0xff]  ;;  %v2255_v16 = vld [vmem:[#allocation6 + $0x558] sm:$0xff] }
 0x2fd   :  { %8810 = vmatprep.subr.bf16.mxu0 %v12031_v23  ;;  %v3086_v37 = vld [vmem:[#allocation6 + $0x1f50] sm:$0xff]  ;;  %v2311_v23 = vld [vmem:[#allocation6 + $0x718] sm:$0xff] }
 0x2fe   :  { %v12957_v40 = vcombine.high %v3078_v6, %v3086_v37  ;;  %v12956_v49 = vcombine.low %v3078_v6, %v3086_v37  ;;  %v12190_v50 = vcombine.low %v2311_v23, %v2319_v27  ;;  %v2239_v6 = vld [vmem:[#allocation6 + $0x4d8] sm:$0xff] }
 0x2ff   :  { %8770 = vmatpush1.bf16.msra.mxu1 %v12796_v41  ;;  %v12191_v41 = vcombine.high %v2311_v23, %v2319_v27 }
 0x300   :  { %8811 = vmatpush1.bf16.msra.mxu0 %v12030_v42  ;;  %8771 = vmatprep.subr.bf16.mxu1 %v12781_v43  ;;  %v3062_v42 = vld [vmem:[#allocation6 + $0x1e90] sm:$0xff] }
 0x301   :  { %8812 = vmatprep.subr.bf16.mxu0 %v12015_v45  ;;  %v3070_v43 = vld [vmem:[#allocation6 + $0x1ed0] sm:$0xff]  ;;  %v2295_v45 = vld [vmem:[#allocation6 + $0x698] sm:$0xff] }
 0x302   :  { %v12941_v54 = vcombine.high %v3062_v42, %v3070_v43  ;;  %v12940_v4 = vcombine.low %v3062_v42, %v3070_v43  ;;  %v12174_v5 = vcombine.low %v2295_v45, %v2303_v48  ;;  %v2223_v42 = vld [vmem:[#allocation6 + $0x458] sm:$0xff] }
 0x303   :  { %8772 = vmatpush1.bf16.msra.mxu1 %v12780_v55  ;;  %v12175_v55 = vcombine.high %v2295_v45, %v2303_v48 }
 0x304   :  { %8813 = vmatpush1.bf16.msra.mxu0 %v12014_v61  ;;  %8773 = vmatprep.subr.bf16.mxu1 %v12765_v62  ;;  %v3046_v61 = vld [vmem:[#allocation6 + $0x1e10] sm:$0xff] }
 0x305   :  { %8814 = vmatprep.subr.bf16.mxu0 %v11999_v0  ;;  %v3054_v62 = vld [vmem:[#allocation6 + $0x1e50] sm:$0xff]  ;;  %v2279_v0 = vld [vmem:[#allocation6 + $0x618] sm:$0xff] }
 0x306   :  { %v12925_v7 = vcombine.high %v3046_v61, %v3054_v62  ;;  %v12924_v12 = vcombine.low %v3046_v61, %v3054_v62  ;;  %v12158_v15 = vcombine.low %v2279_v0, %v2287_v1  ;;  %v2719_v61 = vld [vmem:[#allocation6 + $0x13d8] sm:$0xff] }
 0x307   :  { %8774 = vmatpush1.bf16.msra.mxu1 %v12764_v63  ;;  %v12159_v63 = vcombine.high %v2279_v0, %v2287_v1 }
 0x308   :  { %8815 = vmatpush1.bf16.msra.mxu0 %v11998_v8  ;;  %8775 = vmatprep.subr.bf16.mxu1 %v12749_v3  ;;  %v3030_v8 = vld [vmem:[#allocation6 + $0x1d90] sm:$0xff] }
 0x309   :  { %8816 = vmatprep.subr.bf16.mxu0 %v11983_v11  ;;  %v3038_v3 = vld [vmem:[#allocation6 + $0x1dd0] sm:$0xff]  ;;  %v2263_v11 = vld [vmem:[#allocation6 + $0x598] sm:$0xff] }
 0x30a   :  { %v12909_v51 = vcombine.high %v3030_v8, %v3038_v3  ;;  %v12908_v19 = vcombine.low %v3030_v8, %v3038_v3  ;;  %v12142_v32 = vcombine.low %v2263_v11, %v2271_v9  ;;  %v2447_v8 = vld [vmem:[#allocation6 + $0xb58] sm:$0xff] }
 0x30b   :  { %8776 = vmatpush1.bf16.msra.mxu1 %v12748_v21  ;;  %v12143_v21 = vcombine.high %v2263_v11, %v2271_v9  ;;  %v2695_v9 = vld [vmem:[#allocation6 + $0x1318] sm:$0xff] }
 0x30c   :  { %8817 = vmatpush1.bf16.msra.mxu0 %v11982_v22  ;;  %8777 = vmatprep.subr.bf16.mxu1 %v12733_v29  ;;  %v3014_v22 = vld [vmem:[#allocation6 + $0x1d10] sm:$0xff] }
 0x30d   :  { %8818 = vmatprep.subr.bf16.mxu0 %v11967_v31  ;;  %v3022_v29 = vld [vmem:[#allocation6 + $0x1d50] sm:$0xff]  ;;  %v2247_v31 = vld [vmem:[#allocation6 + $0x518] sm:$0xff] }
 0x30e   :  { %v12893_v33 = vcombine.high %v3014_v22, %v3022_v29  ;;  %v12892_v37 = vcombine.low %v3014_v22, %v3022_v29  ;;  %v12126_v23 = vcombine.low %v2247_v31, %v2255_v16  ;;  %v2423_v22 = vld [vmem:[#allocation6 + $0xa98] sm:$0xff] }
 0x30f   :  { %8778 = vmatpush1.bf16.msra.mxu1 %v12732_v35  ;;  %v12127_v35 = vcombine.high %v2247_v31, %v2255_v16  ;;  %v2431_v29 = vld [vmem:[#allocation6 + $0xad8] sm:$0xff] }
 0x310   :  { %8819 = vmatpush1.bf16.msra.mxu0 %v11966_v36  ;;  %8779 = vmatprep.subr.bf16.mxu1 %v12973_v57  ;;  %v2998_v36 = vld [vmem:[#allocation6 + $0x1c90] sm:$0xff] }
 0x311   :  { %8820 = vmatprep.subr.bf16.mxu0 %v12207_v58  ;;  %v3006_v57 = vld [vmem:[#allocation6 + $0x1cd0] sm:$0xff]  ;;  %v2231_v58 = vld [vmem:[#allocation6 + $0x498] sm:$0xff] }
 0x312   :  { %v12877_v27 = vcombine.high %v2998_v36, %v3006_v57  ;;  %v12876_v43 = vcombine.low %v2998_v36, %v3006_v57  ;;  %v12110_v45 = vcombine.low %v2231_v58, %v2239_v6 }
 0x313   :  { %8780 = vmatpush2.bf16.msra.mxu1 %v12972_v38  ;;  %v12111_v38 = vcombine.high %v2231_v58, %v2239_v6 }
 0x314   :  { %8821 = vmatpush2.bf16.msra.mxu0 %v12206_v39  ;;  %8781 = vmatprep.subr.bf16.mxu1 %v12957_v40  ;;  %v2982_v39 = vld [vmem:[#allocation6 + $0x1c10] sm:$0xff] }
 0x315   :  { %8822 = vmatprep.subr.bf16.mxu0 %v12191_v41  ;;  %v2990_v40 = vld [vmem:[#allocation6 + $0x1c50] sm:$0xff]  ;;  %v2215_v41 = vld [vmem:[#allocation6 + $0x418] sm:$0xff] }
 0x316   :  { %v12861_v48 = vcombine.high %v2982_v39, %v2990_v40  ;;  %v12860_v62 = vcombine.low %v2982_v39, %v2990_v40  ;;  %v12094_v0 = vcombine.low %v2215_v41, %v2223_v42  ;;  %v2415_v39 = vld [vmem:[#allocation6 + $0xa58] sm:$0xff] }
 0x317   :  { %8782 = vmatpush2.bf16.msra.mxu1 %v12956_v49  ;;  %v12095_v49 = vcombine.high %v2215_v41, %v2223_v42  ;;  %v2663_v42 = vld [vmem:[#allocation6 + $0x1218] sm:$0xff] }
 0x318   :  { %8823 = vmatpush2.bf16.msra.mxu0 %v12190_v50  ;;  %8783 = vmatprep.subr.bf16.mxu1 %v12941_v54  ;;  %v2455_v50 = vld [vmem:[#allocation6 + $0xb98] sm:$0xff] }
 0x319   :  { %8824 = vmatprep.subr.bf16.mxu0 %v12175_v55  ;;  %v2463_v54 = vld [vmem:[#allocation6 + $0xbd8] sm:$0xff] }
 0x31a   :  { %v2711_v55 = vld [vmem:[#allocation6 + $0x1398] sm:$0xff]  ;;  %v12335_v1 = vcombine.high %v2455_v50, %v2463_v54  ;;  %v12334_v11 = vcombine.low %v2455_v50, %v2463_v54 }
 0x31b   :  { %8784 = vmatpush2.bf16.msra.mxu1 %v12940_v4  ;;  %v14094_v4 = vld [vmem:[#allocation7] sm:$0xff] }
 0x31c   :  { %8825 = vmatpush2.bf16.msra.mxu0 %v12174_v5  ;;  %8785 = vmatprep.subr.bf16.mxu1 %v12925_v7  ;;  %v3123_v5 = vrot.slane %v14094_v4, %v13993_v18  ;;  %v12591_v7 = vcombine.high %v2711_v55, %v2719_v61  ;;  %v3127_v3 = vrot.slane %v14094_v4, %v13996_v14 }
 0x31d   :  { %8826 = vmatprep.subr.bf16.mxu0 %v12159_v63  ;;  %v2439_v63 = vld [vmem:[#allocation6 + $0xb18] sm:$0xff] }
 0x31e   :  { %v12318_v57 = vcombine.low %v2439_v63, %v2447_v8 }
 0x31f   :  { %8786 = vmatpush2.bf16.msra.mxu1 %v12924_v12  ;;  %v2703_v12 = vld [vmem:[#allocation6 + $0x1358] sm:$0xff] }
 0x320   :  { %8827 = vmatpush2.bf16.msra.mxu0 %v12158_v15  ;;  %8787 = vmatprep.subr.bf16.mxu1 %v12909_v51  ;;  %v12590_v15 = vcombine.low %v2711_v55, %v2719_v61  ;;  %v8511_v51 = vadd.f32 %v14080_v10, %v3123_v5  ;;  %v12574_v6 = vcombine.low %v2695_v9, %v2703_v12  ;;  %v2655_v5 = vld [vmem:[#allocation6 + $0x11d8] sm:$0xff] }
 0x321   :  { %8828 = vmatprep.subr.bf16.mxu0 %v12143_v21  ;;  %v12319_v21 = vcombine.high %v2439_v63, %v2447_v8 }
 0x323   :  { %8788 = vmatpush2.bf16.msra.mxu1 %v12908_v19  ;;  %v12575_v19 = vcombine.high %v2695_v9, %v2703_v12  ;;  %v2383_v9 = vld [vmem:[#allocation6 + $0x958] sm:$0xff] }
 0x324   :  { %8829 = vmatpush2.bf16.msra.mxu0 %v12142_v32  ;;  %8789 = vmatprep.subr.bf16.mxu1 %v12893_v33  ;;  %v2679_v32 = vld [vmem:[#allocation6 + $0x1298] sm:$0xff] }
 0x325   :  { %8830 = vmatprep.subr.bf16.mxu0 %v12127_v35  ;;  %v2687_v33 = vld [vmem:[#allocation6 + $0x12d8] sm:$0xff]  ;;  %v8513_v35 = vadd.f32 %v14088_v17, %v3127_v3 }
 0x326   :  { %v2407_v17 = vld [vmem:[#allocation6 + $0xa18] sm:$0xff]  ;;  %v12558_v54 = vcombine.low %v2679_v32, %v2687_v33 }
 0x327   :  { %8790 = vmatpush2.bf16.msra.mxu1 %v12892_v37  ;;  %v12303_v37 = vcombine.high %v2423_v22, %v2431_v29  ;;  %v12287_v55 = vcombine.high %v2407_v17, %v2415_v39  ;;  %v2631_v12 = vld [vmem:[#allocation6 + $0x1118] sm:$0xff] }
 0x328   :  { %8831 = vmatpush2.bf16.msra.mxu0 %v12126_v23  ;;  %8791 = vmatprep.subr.bf16.mxu1 %v12877_v27 }
 0x329   :  { %8832 = vmatprep.subr.bf16.mxu0 %v12111_v38  ;;  %v12559_v38 = vcombine.high %v2679_v32, %v2687_v33  ;;  %v2623_v32 = vld [vmem:[#allocation6 + $0x10d8] sm:$0xff] }
 0x32b   :  { %8792 = vmatpush2.bf16.msra.mxu1 %v12876_v43  ;;  %v2671_v43 = vld [vmem:[#allocation6 + $0x1258] sm:$0xff] }
 0x32c   :  { %8833 = vmatpush2.bf16.msra.mxu0 %v12110_v45  ;;  %8793 = vmatprep.subr.bf16.mxu1 %v12861_v48  ;;  %v12302_v48 = vcombine.low %v2423_v22, %v2431_v29  ;;  %v12543_v61 = vcombine.high %v2663_v42, %v2671_v43  ;;  %v12542_v63 = vcombine.low %v2663_v42, %v2671_v43  ;;  %v2839_v42 = vld [vmem:[#allocation6 + $0x1798] sm:$0xff] }
 0x32d   :  { %8834 = vmatprep.subr.bf16.mxu0 %v12095_v49  ;;  %v2847_v43 = vld [vmem:[#allocation6 + $0x17d8] sm:$0xff] }
 0x32f   :  { %8794 = vmatpush2.bf16.msra.mxu1 %v12860_v62  ;;  %v2391_v62 = vld [vmem:[#allocation6 + $0x998] sm:$0xff] }
 0x330   :  { %8835 = vmatpush2.bf16.msra.mxu0 %v12094_v0  ;;  %8845 = vmatprep.subr.bf16.mxu1 %v12335_v1  ;;  %v2399_v0 = vld [vmem:[#allocation6 + $0x9d8] sm:$0xff] }
 0x331   :  { %8886 = vmatprep.subr.bf16.mxu0 %v12591_v7  ;;  %v2647_v1 = vld [vmem:[#allocation6 + $0x1198] sm:$0xff]  ;;  %v12286_v7 = vcombine.low %v2407_v17, %v2415_v39  ;;  %v12271_v8 = vcombine.high %v2391_v62, %v2399_v0 }
 0x332   :  { %v8551_v31 = vpop.f32.mrf.mxu1  ;;  %v8592_v16 = vpop.f32.mrf.mxu0  ;;  %8796 = vmatmul.mubr.bf16.vlgmr.msra.gmra.mxu1 %v14050_v26  ;;  %v12527_v3 = vcombine.high %v2647_v1, %v2655_v5 }
 0x333   :  { %v8552_v36 = vadd.f32 %v8551_v31, %v8511_v51  ;;  %8837 = vmatmul.mubr.bf16.vlgmr.msra.gmra.mxu0 %v14002_v20  ;;  %8846 = vmatpush1.bf16.msra.mxu1 %v12334_v11  ;;  %v2375_v11 = vld [vmem:[#allocation6 + $0x918] sm:$0xff]  ;;  %v12270_v51 = vcombine.low %v2391_v62, %v2399_v0 }
 0x334   :  { %8877 = vmatprep.mubr.bf16.mxu1 %v14007_v53  ;;  %8887 = vmatpush1.bf16.msra.mxu0 %v12590_v15  ;;  %v8553_v10 = vpop.f32.mrf.mxu1  ;;  %v8594_v58 = vpop.f32.mrf.mxu0  ;;  %v2639_v15 = vld [vmem:[#allocation6 + $0x1158] sm:$0xff]  ;;  %v12255_v22 = vcombine.high %v2375_v11, %v2383_v9  ;;  %v12254_v33 = vcombine.low %v2375_v11, %v2383_v9 }
 0x335   :  { %v14105_v23 = vadd.f32 %v8592_v16, %v8552_v36  ;;  %8918 = vmatprep.mubr.bf16.mxu0 %v14033_v25  ;;  %v8554_v27 = vadd.f32 %v8553_v10, %v8513_v35  ;;  %8847 = vmatprep.subr.bf16.mxu1 %v12319_v21  ;;  %v12526_v21 = vcombine.low %v2647_v1, %v2655_v5  ;;  %v2359_v31 = vld [vmem:[#allocation6 + $0x898] sm:$0xff] }
 0x336   :  { %v8555_v40 = vpop.f32.mrf.mxu1  ;;  %v8596_v41 = vpop.f32.mrf.mxu0  ;;  %8888 = vmatprep.subr.bf16.mxu0 %v12575_v19  ;;  %v12511_v29 = vcombine.high %v2631_v12, %v2639_v15  ;;  %v2367_v16 = vld [vmem:[#allocation6 + $0x8d8] sm:$0xff]  ;;  %v12510_v35 = vcombine.low %v2631_v12, %v2639_v15  ;;  %v12718_v5 = vcombine.low %v2839_v42, %v2847_v43 }
 0x337   :  { %v14108_v45 = vadd.f32 %v8594_v58, %v8554_v27  ;;  %8848 = vmatpush1.bf16.msra.mxu1 %v12318_v57  ;;  %v2615_v19 = vld [vmem:[#allocation6 + $0x1098] sm:$0xff]  ;;  %v12239_v36 = vcombine.high %v2359_v31, %v2367_v16  ;;  %v12238_v27 = vcombine.low %v2359_v31, %v2367_v16 }
 0x338   :  { %8889 = vmatpush1.bf16.msra.mxu0 %v12574_v6  ;;  %v8556_v49 = vpop.f32.mrf.mxu1  ;;  %v8597_v50 = vpop.f32.mrf.mxu0  ;;  %8849 = vmatprep.subr.bf16.mxu1 %v12303_v37  ;;  %v12495_v57 = vcombine.high %v2615_v19, %v2623_v32  ;;  %v2343_v10 = vld [vmem:[#allocation6 + $0x818] sm:$0xff] }
 0x339   :  { %8890 = vmatprep.subr.bf16.mxu0 %v12559_v38  ;;  %v2351_v58 = vld [vmem:[#allocation6 + $0x858] sm:$0xff]  ;;  %v12494_v38 = vcombine.low %v2615_v19, %v2623_v32 }
 0x33a   :  { %v2599_v6 = vld [vmem:[#allocation6 + $0x1018] sm:$0xff]  ;;  %v12223_v17 = vcombine.high %v2343_v10, %v2351_v58 }
 0x33b   :  { %8850 = vmatpush1.bf16.msra.mxu1 %v12302_v48  ;;  %v2607_v37 = vld [vmem:[#allocation6 + $0x1058] sm:$0xff]  ;;  %v12222_v48 = vcombine.low %v2343_v10, %v2351_v58 }
 0x33c   :  { %8891 = vmatpush1.bf16.msra.mxu0 %v12558_v54  ;;  %8851 = vmatprep.subr.bf16.mxu1 %v12287_v55  ;;  %v12479_v39 = vcombine.high %v2599_v6, %v2607_v37  ;;  %v2583_v40 = vld [vmem:[#allocation6 + $0xf98] sm:$0xff]  ;;  %v12478_v49 = vcombine.low %v2599_v6, %v2607_v37  ;;  %v12719_v54 = vcombine.high %v2839_v42, %v2847_v43 }
 0x33d   :  { %8892 = vmatprep.subr.bf16.mxu0 %v12543_v61  ;;  %v2591_v41 = vld [vmem:[#allocation6 + $0xfd8] sm:$0xff] }
 0x33e   :  { %v12463_v50 = vcombine.high %v2583_v40, %v2591_v41  ;;  %v2567_v55 = vld [vmem:[#allocation6 + $0xf18] sm:$0xff]  ;;  %v12462_v1 = vcombine.low %v2583_v40, %v2591_v41 }
 0x33f   :  { %8852 = vmatpush1.bf16.msra.mxu1 %v12286_v7  ;;  %v2575_v61 = vld [vmem:[#allocation6 + $0xf58] sm:$0xff] }
 0x340   :  { %8893 = vmatpush1.bf16.msra.mxu0 %v12542_v63  ;;  %8853 = vmatprep.subr.bf16.mxu1 %v12271_v8  ;;  %v2823_v62 = vld [vmem:[#allocation6 + $0x1718] sm:$0xff]  ;;  %v12447_v7 = vcombine.high %v2567_v55, %v2575_v61  ;;  %v12446_v12 = vcombine.low %v2567_v55, %v2575_v61 }
 0x341   :  { %8894 = vmatprep.subr.bf16.mxu0 %v12527_v3  ;;  %v2831_v0 = vld [vmem:[#allocation6 + $0x1758] sm:$0xff] }
 0x342   :  { %v12703_v63 = vcombine.high %v2823_v62, %v2831_v0  ;;  %v2551_v8 = vld [vmem:[#allocation6 + $0xe98] sm:$0xff]  ;;  %v12702_v15 = vcombine.low %v2823_v62, %v2831_v0 }
 0x343   :  { %8854 = vmatpush1.bf16.msra.mxu1 %v12270_v51  ;;  %v2559_v3 = vld [vmem:[#allocation6 + $0xed8] sm:$0xff] }
 0x344   :  { %8895 = vmatpush1.bf16.msra.mxu0 %v12526_v21  ;;  %8855 = vmatprep.subr.bf16.mxu1 %v12255_v22  ;;  %v2807_v11 = vld [vmem:[#allocation6 + $0x1698] sm:$0xff]  ;;  %v12431_v51 = vcombine.high %v2551_v8, %v2559_v3  ;;  %v12430_v19 = vcombine.low %v2551_v8, %v2559_v3 }
 0x345   :  { %8896 = vmatprep.subr.bf16.mxu0 %v12511_v29  ;;  %v2815_v9 = vld [vmem:[#allocation6 + $0x16d8] sm:$0xff] }
 0x346   :  { %v12687_v21 = vcombine.high %v2807_v11, %v2815_v9  ;;  %v2535_v22 = vld [vmem:[#allocation6 + $0xe18] sm:$0xff]  ;;  %v12686_v32 = vcombine.low %v2807_v11, %v2815_v9 }
 0x347   :  { %8856 = vmatpush1.bf16.msra.mxu1 %v12254_v33  ;;  %v2543_v29 = vld [vmem:[#allocation6 + $0xe58] sm:$0xff] }
 0x348   :  { %8897 = vmatpush1.bf16.msra.mxu0 %v12510_v35  ;;  %8857 = vmatprep.subr.bf16.mxu1 %v12239_v36  ;;  %v2791_v31 = vld [vmem:[#allocation6 + $0x1618] sm:$0xff]  ;;  %v12415_v33 = vcombine.high %v2535_v22, %v2543_v29  ;;  %v12414_v6 = vcombine.low %v2535_v22, %v2543_v29  ;;  %v2200_v22 = vld [vmem:[#allocation6 + $0x3a0] sm:$0xff] }
 0x349   :  { %8898 = vmatprep.subr.bf16.mxu0 %v12495_v57  ;;  %v2799_v16 = vld [vmem:[#allocation6 + $0x1658] sm:$0xff]  ;;  %v2208_v29 = vld [vmem:[#allocation6 + $0x3e0] sm:$0xff] }
 0x34a   :  { %v12671_v35 = vcombine.high %v2791_v31, %v2799_v16  ;;  %v2519_v36 = vld [vmem:[#allocation6 + $0xd98] sm:$0xff]  ;;  %v12670_v37 = vcombine.low %v2791_v31, %v2799_v16 }
 0x34b   :  { %8858 = vmatpush1.bf16.msra.mxu1 %v12238_v27  ;;  %v2527_v57 = vld [vmem:[#allocation6 + $0xdd8] sm:$0xff] }
 0x34c   :  { %8899 = vmatpush1.bf16.msra.mxu0 %v12494_v38  ;;  %8859 = vmatprep.subr.bf16.mxu1 %v12223_v17  ;;  %v2775_v10 = vld [vmem:[#allocation6 + $0x1598] sm:$0xff]  ;;  %v12399_v27 = vcombine.high %v2519_v36, %v2527_v57  ;;  %v12398_v42 = vcombine.low %v2519_v36, %v2527_v57  ;;  %v2184_v57 = vld [vmem:[#allocation6 + $0x320] sm:$0xff] }
 0x34d   :  { %8900 = vmatprep.subr.bf16.mxu0 %v12479_v39  ;;  %v2783_v58 = vld [vmem:[#allocation6 + $0x15d8] sm:$0xff] }
 0x34e   :  { %v12655_v38 = vcombine.high %v2775_v10, %v2783_v58  ;;  %v2503_v17 = vld [vmem:[#allocation6 + $0xd18] sm:$0xff]  ;;  %v12654_v43 = vcombine.low %v2775_v10, %v2783_v58  ;;  %v2192_v10 = vld [vmem:[#allocation6 + $0x360] sm:$0xff]  ;;  %v12080_v58 = vcombine.low %v2200_v22, %v2208_v29 }
 0x34f   :  { %8860 = vmatpush1.bf16.msra.mxu1 %v12222_v48  ;;  %v2511_v39 = vld [vmem:[#allocation6 + $0xd58] sm:$0xff] }
 0x350   :  { %8901 = vmatpush1.bf16.msra.mxu0 %v12478_v49  ;;  %8861 = vmatprep.subr.bf16.mxu1 %v12463_v50  ;;  %v2759_v40 = vld [vmem:[#allocation6 + $0x1518] sm:$0xff]  ;;  %v12383_v48 = vcombine.high %v2503_v17, %v2511_v39  ;;  %v12382_v62 = vcombine.low %v2503_v17, %v2511_v39  ;;  %v12065_v17 = vcombine.high %v2184_v57, %v2192_v10  ;;  %v2168_v39 = vld [vmem:[#allocation6 + $0x2a0] sm:$0xff] }
 0x351   :  { %8902 = vmatprep.subr.bf16.mxu0 %v12719_v54  ;;  %v2767_v41 = vld [vmem:[#allocation6 + $0x1558] sm:$0xff] }
 0x352   :  { %v12639_v49 = vcombine.high %v2759_v40, %v2767_v41  ;;  %v2487_v50 = vld [vmem:[#allocation6 + $0xc98] sm:$0xff]  ;;  %v12638_v0 = vcombine.low %v2759_v40, %v2767_v41  ;;  %v2176_v40 = vld [vmem:[#allocation6 + $0x2e0] sm:$0xff] }
 0x353   :  { %8862 = vmatpush2.bf16.msra.mxu1 %v12462_v1  ;;  %v2495_v54 = vld [vmem:[#allocation6 + $0xcd8] sm:$0xff] }
 0x354   :  { %8903 = vmatpush2.bf16.msra.mxu0 %v12718_v5  ;;  %8863 = vmatprep.subr.bf16.mxu1 %v12447_v7  ;;  %v2743_v55 = vld [vmem:[#allocation6 + $0x1498] sm:$0xff]  ;;  %v12367_v1 = vcombine.high %v2487_v50, %v2495_v54  ;;  %v12366_v11 = vcombine.low %v2487_v50, %v2495_v54 }
 0x355   :  { %8904 = vmatprep.subr.bf16.mxu0 %v12703_v63  ;;  %v2751_v61 = vld [vmem:[#allocation6 + $0x14d8] sm:$0xff] }
 0x356   :  { %v12623_v5 = vcombine.high %v2743_v55, %v2751_v61  ;;  %v2471_v7 = vld [vmem:[#allocation6 + $0xc18] sm:$0xff]  ;;  %v12622_v9 = vcombine.low %v2743_v55, %v2751_v61 }
 0x357   :  { %8864 = vmatpush2.bf16.msra.mxu1 %v12446_v12  ;;  %v2479_v63 = vld [vmem:[#allocation6 + $0xc58] sm:$0xff] }
 0x358   :  { %8905 = vmatpush2.bf16.msra.mxu0 %v12702_v15  ;;  %8865 = vmatprep.subr.bf16.mxu1 %v12431_v51  ;;  %v2727_v8 = vld [vmem:[#allocation6 + $0x1418] sm:$0xff]  ;;  %v12351_v12 = vcombine.high %v2471_v7, %v2479_v63  ;;  %v12350_v31 = vcombine.low %v2471_v7, %v2479_v63 }
 0x359   :  { %8906 = vmatprep.subr.bf16.mxu0 %v12687_v21  ;;  %v2735_v3 = vld [vmem:[#allocation6 + $0x1458] sm:$0xff] }
 0x35a   :  { %v12607_v15 = vcombine.high %v2727_v8, %v2735_v3  ;;  %v2967_v51 = vld [vmem:[#allocation6 + $0x1b98] sm:$0xff]  ;;  %v12606_v16 = vcombine.low %v2727_v8, %v2735_v3  ;;  %v12048_v3 = vcombine.low %v2168_v39, %v2176_v40 }
 0x35b   :  { %8866 = vmatpush2.bf16.msra.mxu1 %v12430_v19  ;;  %v2975_v21 = vld [vmem:[#allocation6 + $0x1bd8] sm:$0xff] }
 0x35c   :  { %8907 = vmatpush2.bf16.msra.mxu0 %v12686_v32  ;;  %8867 = vmatprep.subr.bf16.mxu1 %v12415_v33  ;;  %v12847_v19 = vcombine.high %v2967_v51, %v2975_v21  ;;  %v12081_v32 = vcombine.high %v2200_v22, %v2208_v29  ;;  %v2951_v33 = vld [vmem:[#allocation6 + $0x1b18] sm:$0xff]  ;;  %v12846_v36 = vcombine.low %v2967_v51, %v2975_v21  ;;  %v2136_v51 = vld [vmem:[#allocation6 + $0x1a0] sm:$0xff] }
 0x35d   :  { %8908 = vmatprep.subr.bf16.mxu0 %v12671_v35  ;;  %v2959_v35 = vld [vmem:[#allocation6 + $0x1b58] sm:$0xff]  ;;  %v2144_v21 = vld [vmem:[#allocation6 + $0x1e0] sm:$0xff] }
 0x35e   :  { %v2919_v61 = vld [vmem:[#allocation6 + $0x1a18] sm:$0xff] }
 0x35f   :  { %8868 = vmatpush2.bf16.msra.mxu1 %v12414_v6  ;;  %v12831_v6 = vcombine.high %v2951_v33, %v2959_v35 }
 0x360   :  { %8909 = vmatpush2.bf16.msra.mxu0 %v12670_v37  ;;  %8869 = vmatprep.subr.bf16.mxu1 %v12399_v27  ;;  %v2935_v37 = vld [vmem:[#allocation6 + $0x1a98] sm:$0xff] }
 0x361   :  { %8910 = vmatprep.subr.bf16.mxu0 %v12655_v38  ;;  %v2943_v27 = vld [vmem:[#allocation6 + $0x1ad8] sm:$0xff] }
 0x362   :  { %v12815_v50 = vcombine.high %v2935_v37, %v2943_v27  ;;  %v12814_v63 = vcombine.low %v2935_v37, %v2943_v27  ;;  %v2879_v37 = vld [vmem:[#allocation6 + $0x18d8] sm:$0xff]  ;;  %v2104_v27 = vld [vmem:[#allocation6 + $0xa0] sm:$0xff] }
 0x363   :  { %8870 = vmatpush2.bf16.msra.mxu1 %v12398_v42 }
 0x364   :  { %8911 = vmatpush2.bf16.msra.mxu0 %v12654_v43  ;;  %8871 = vmatprep.subr.bf16.mxu1 %v12383_v48  ;;  %v12830_v43 = vcombine.low %v2951_v33, %v2959_v35  ;;  %v2120_v33 = vld [vmem:[#allocation6 + $0x120] sm:$0xff] }
 0x365   :  { %8912 = vmatprep.subr.bf16.mxu0 %v12639_v49  ;;  %v12064_v49 = vcombine.low %v2184_v57, %v2192_v10  ;;  %v2128_v35 = vld [vmem:[#allocation6 + $0x160] sm:$0xff]  ;;  %v12016_v57 = vcombine.low %v2136_v51, %v2144_v21 }
 0x367   :  { %8872 = vmatpush2.bf16.msra.mxu1 %v12382_v62  ;;  %v2927_v62 = vld [vmem:[#allocation6 + $0x1a58] sm:$0xff] }
 0x368   :  { %8913 = vmatpush2.bf16.msra.mxu0 %v12638_v0  ;;  %8873 = vmatprep.subr.bf16.mxu1 %v12367_v1  ;;  %v2152_v1 = vld [vmem:[#allocation6 + $0x220] sm:$0xff]  ;;  %v12798_v22 = vcombine.low %v2919_v61, %v2927_v62 }
 0x369   :  { %8914 = vmatprep.subr.bf16.mxu0 %v12623_v5  ;;  %v2160_v5 = vld [vmem:[#allocation6 + $0x260] sm:$0xff] }
 0x36a   :  { %v12032_v29 = vcombine.low %v2152_v1, %v2160_v5 }
 0x36b   :  { %8874 = vmatpush2.bf16.msra.mxu1 %v12366_v11  ;;  %v12799_v11 = vcombine.high %v2919_v61, %v2927_v62 }
 0x36c   :  { %8915 = vmatpush2.bf16.msra.mxu0 %v12622_v9  ;;  %8875 = vmatprep.subr.bf16.mxu1 %v12351_v12  ;;  %v12033_v9 = vcombine.high %v2152_v1, %v2160_v5  ;;  %v2903_v12 = vld [vmem:[#allocation6 + $0x1998] sm:$0xff] }
 0x36d   :  { %8916 = vmatprep.subr.bf16.mxu0 %v12607_v15  ;;  %v2911_v15 = vld [vmem:[#allocation6 + $0x19d8] sm:$0xff] }
 0x36e   :  { %v3095_v5 = vld [vmem:[#allocation6 + $0x1f98] sm:$0xff] }
 0x36f   :  { %8876 = vmatpush2.bf16.msra.mxu1 %v12350_v31  ;;  %v12783_v31 = vcombine.high %v2903_v12, %v2911_v15 }
 0x370   :  { %8917 = vmatpush2.bf16.msra.mxu0 %v12606_v16  ;;  %8927 = vmatprep.subr.bf16.mxu1 %v12847_v19  ;;  %v12017_v16 = vcombine.high %v2136_v51, %v2144_v21  ;;  %v2887_v19 = vld [vmem:[#allocation6 + $0x1918] sm:$0xff]  ;;  %v2312_v51 = vld [vmem:[#allocation6 + $0x720] sm:$0xff] }
 0x371   :  { %8968 = vmatprep.subr.bf16.mxu0 %v12081_v32  ;;  %v2895_v32 = vld [vmem:[#allocation6 + $0x1958] sm:$0xff]  ;;  %v2320_v21 = vld [vmem:[#allocation6 + $0x760] sm:$0xff] }
 0x372   :  { %v8633_v38 = vpop.f32.mrf.mxu1  ;;  %8878 = vmatmul.mubr.bf16.vlgmr.msra.gmra.mxu1 %v14015_v60  ;;  %v12767_v10 = vcombine.high %v2887_v19, %v2895_v32 }
 0x373   :  { %v14112_v41 = vadd.f32 %v8633_v38, %v14105_v23  ;;  %v14114_v42 = vpop.f32.mrf.mxu0  ;;  %8919 = vmatmul.mubr.bf16.vlgmr.msra.gmra.mxu0 %v14035_v59  ;;  %8928 = vmatpush1.bf16.msra.mxu1 %v12846_v36  ;;  %v12049_v23 = vcombine.high %v2168_v39, %v2176_v40  ;;  %v12782_v36 = vcombine.low %v2903_v12, %v2911_v15  ;;  %v2112_v38 = vld [vmem:[#allocation6 + $0xe0] sm:$0xff]  ;;  %v3079_v12 = vld [vmem:[#allocation6 + $0x1f18] sm:$0xff] }
 0x374   :  { %8959 = vmatprep.mubr.bf16.mxu1 %v14048_v13  ;;  %8969 = vmatpush1.bf16.msra.mxu0 %v12080_v58  ;;  %v8635_v48 = vpop.f32.mrf.mxu1  ;;  %v12001_v58 = vcombine.high %v2120_v33, %v2128_v35  ;;  %v12000_v39 = vcombine.low %v2120_v33, %v2128_v35  ;;  %v11984_v62 = vcombine.low %v2104_v27, %v2112_v38  ;;  %v3087_v15 = vld [vmem:[#allocation6 + $0x1f58] sm:$0xff]  ;;  %v2296_v33 = vld [vmem:[#allocation6 + $0x6a0] sm:$0xff] }
 0x375   :  { %9000 = vmatprep.mubr.bf16.mxu0 %v13978_v56  ;;  %v14120_v54 = vadd.f32 %v8635_v48, %v14108_v45  ;;  %v14122_v55 = vpop.f32.mrf.mxu0  ;;  %8929 = vmatprep.subr.bf16.mxu1 %v12831_v6  ;;  %v2871_v6 = vld [vmem:[#allocation6 + $0x1898] sm:$0xff]  ;;  %v2304_v35 = vld [vmem:[#allocation6 + $0x6e0] sm:$0xff] }
 0x376   :  { %v8637_v0 = vpop.f32.mrf.mxu1  ;;  %8970 = vmatprep.subr.bf16.mxu0 %v12065_v17  ;;  %v12766_v17 = vcombine.low %v2887_v19, %v2895_v32  ;;  %v12751_v40 = vcombine.high %v2871_v6, %v2879_v37  ;;  %v2855_v48 = vld [vmem:[#allocation6 + $0x1818] sm:$0xff]  ;;  %v12750_v61 = vcombine.low %v2871_v6, %v2879_v37 }
 0x377   :  { %v8678_v7 = vpop.f32.mrf.mxu0  ;;  %8930 = vmatpush1.bf16.msra.mxu1 %v12830_v43  ;;  %v11985_v43 = vcombine.high %v2104_v27, %v2112_v38  ;;  %v3063_v19 = vld [vmem:[#allocation6 + $0x1e98] sm:$0xff]  ;;  %v2280_v27 = vld [vmem:[#allocation6 + $0x620] sm:$0xff] }
 0x378   :  { %8971 = vmatpush1.bf16.msra.mxu0 %v12064_v49  ;;  %v8638_v8 = vpop.f32.mrf.mxu1  ;;  %8931 = vmatprep.subr.bf16.mxu1 %v12815_v50  ;;  %v2863_v49 = vld [vmem:[#allocation6 + $0x1858] sm:$0xff]  ;;  %v2088_v50 = vld [vmem:[#allocation6 + $0x20] sm:$0xff] }
 0x379   :  { %v8679_v45 = vpop.f32.mrf.mxu0  ;;  %8972 = vmatprep.subr.bf16.mxu0 %v12049_v23  ;;  %v2096_v23 = vld [vmem:[#allocation6 + $0x60] sm:$0xff]  ;;  %v12735_v0 = vcombine.high %v2855_v48, %v2863_v49  ;;  %v3103_v7 = vld [vmem:[#allocation6 + $0x1fd8] sm:$0xff] }
 0x37a   :  { %v11969_v1 = vcombine.high %v2088_v50, %v2096_v23  ;;  %v2336_v8 = vld [vmem:[#allocation6 + $0x7e0] sm:$0xff]  ;;  %v12975_v45 = vcombine.high %v3095_v5, %v3103_v7  ;;  %v3071_v32 = vld [vmem:[#allocation6 + $0x1ed8] sm:$0xff] }
 0x37b   :  { %8932 = vmatpush1.bf16.msra.mxu1 %v12814_v63  ;;  %v2328_v63 = vld [vmem:[#allocation6 + $0x7a0] sm:$0xff]  ;;  %v3047_v6 = vld [vmem:[#allocation6 + $0x1e18] sm:$0xff] }
 0x37c   :  { %8973 = vmatpush1.bf16.msra.mxu0 %v12048_v3  ;;  %8933 = vmatprep.subr.bf16.mxu1 %v12799_v11  ;;  %v12734_v3 = vcombine.low %v2855_v48, %v2863_v49  ;;  %v11968_v11 = vcombine.low %v2088_v50, %v2096_v23  ;;  %v3055_v37 = vld [vmem:[#allocation6 + $0x1e58] sm:$0xff]  ;;  %v2288_v38 = vld [vmem:[#allocation6 + $0x660] sm:$0xff] }
 0x37d   :  { %8974 = vmatprep.subr.bf16.mxu0 %v12033_v9  ;;  %v12209_v9 = vcombine.high %v2328_v63, %v2336_v8  ;;  %v3031_v48 = vld [vmem:[#allocation6 + $0x1d98] sm:$0xff]  ;;  %v2264_v50 = vld [vmem:[#allocation6 + $0x5a0] sm:$0xff] }
 0x37e   :  { %v3039_v49 = vld [vmem:[#allocation6 + $0x1dd8] sm:$0xff]  ;;  %v2272_v23 = vld [vmem:[#allocation6 + $0x5e0] sm:$0xff] }
 0x37f   :  { %8934 = vmatpush1.bf16.msra.mxu1 %v12798_v22  ;;  %v12974_v22 = vcombine.low %v3095_v5, %v3103_v7  ;;  %v3015_v5 = vld [vmem:[#allocation6 + $0x1d18] sm:$0xff] }
 0x380   :  { %8975 = vmatpush1.bf16.msra.mxu0 %v12032_v29  ;;  %8935 = vmatprep.subr.bf16.mxu1 %v12783_v31  ;;  %v12208_v29 = vcombine.low %v2328_v63, %v2336_v8  ;;  %v12959_v31 = vcombine.high %v3079_v12, %v3087_v15  ;;  %v3023_v7 = vld [vmem:[#allocation6 + $0x1d58] sm:$0xff]  ;;  %v2248_v63 = vld [vmem:[#allocation6 + $0x520] sm:$0xff] }
 0x381   :  { %8976 = vmatprep.subr.bf16.mxu0 %v12017_v16  ;;  %v12193_v16 = vcombine.high %v2312_v51, %v2320_v21  ;;  %v2256_v8 = vld [vmem:[#allocation6 + $0x560] sm:$0xff] }
 0x383   :  { %8936 = vmatpush1.bf16.msra.mxu1 %v12782_v36  ;;  %v12958_v36 = vcombine.low %v3079_v12, %v3087_v15  ;;  %v2999_v12 = vld [vmem:[#allocation6 + $0x1c98] sm:$0xff] }
 0x384   :  { %8977 = vmatpush1.bf16.msra.mxu0 %v12016_v57  ;;  %8937 = vmatprep.subr.bf16.mxu1 %v12767_v10  ;;  %v12192_v57 = vcombine.low %v2312_v51, %v2320_v21  ;;  %v12943_v10 = vcombine.high %v3063_v19, %v3071_v32  ;;  %v3007_v15 = vld [vmem:[#allocation6 + $0x1cd8] sm:$0xff]  ;;  %v2232_v51 = vld [vmem:[#allocation6 + $0x4a0] sm:$0xff] }
 0x385   :  { %8978 = vmatprep.subr.bf16.mxu0 %v12001_v58  ;;  %v12177_v58 = vcombine.high %v2296_v33, %v2304_v35  ;;  %v2240_v21 = vld [vmem:[#allocation6 + $0x4e0] sm:$0xff] }
 0x387   :  { %8938 = vmatpush1.bf16.msra.mxu1 %v12766_v17  ;;  %v12942_v17 = vcombine.low %v3063_v19, %v3071_v32  ;;  %v2983_v19 = vld [vmem:[#allocation6 + $0x1c18] sm:$0xff] }
 0x388   :  { %8979 = vmatpush1.bf16.msra.mxu0 %v12000_v39  ;;  %8939 = vmatprep.subr.bf16.mxu1 %v12751_v40  ;;  %v12176_v39 = vcombine.low %v2296_v33, %v2304_v35  ;;  %v12927_v40 = vcombine.high %v3047_v6, %v3055_v37  ;;  %v2991_v32 = vld [vmem:[#allocation6 + $0x1c58] sm:$0xff]  ;;  %v2216_v33 = vld [vmem:[#allocation6 + $0x420] sm:$0xff] }
 0x389   :  { %8980 = vmatprep.subr.bf16.mxu0 %v11985_v43  ;;  %v12161_v43 = vcombine.high %v2280_v27, %v2288_v38  ;;  %v2224_v35 = vld [vmem:[#allocation6 + $0x460] sm:$0xff] }
 0x38b   :  { %8940 = vmatpush1.bf16.msra.mxu1 %v12750_v61  ;;  %v12926_v61 = vcombine.low %v3047_v6, %v3055_v37  ;;  %v2456_v6 = vld [vmem:[#allocation6 + $0xba0] sm:$0xff] }
 0x38c   :  { %8981 = vmatpush1.bf16.msra.mxu0 %v11984_v62  ;;  %8941 = vmatprep.subr.bf16.mxu1 %v12735_v0  ;;  %v12160_v62 = vcombine.low %v2280_v27, %v2288_v38  ;;  %v12911_v0 = vcombine.high %v3031_v48, %v3039_v49  ;;  %v2464_v37 = vld [vmem:[#allocation6 + $0xbe0] sm:$0xff] }
 0x38d   :  { %8982 = vmatprep.subr.bf16.mxu0 %v11969_v1  ;;  %v12145_v1 = vcombine.high %v2264_v50, %v2272_v23  ;;  %v2712_v27 = vld [vmem:[#allocation6 + $0x13a0] sm:$0xff] }
 0x38e   :  { %v2720_v38 = vld [vmem:[#allocation6 + $0x13e0] sm:$0xff] }
 0x38f   :  { %8942 = vmatpush1.bf16.msra.mxu1 %v12734_v3  ;;  %v12910_v3 = vcombine.low %v3031_v48, %v3039_v49  ;;  %v12593_v48 = vcombine.high %v2712_v27, %v2720_v38  ;;  %v2440_v49 = vld [vmem:[#allocation6 + $0xb20] sm:$0xff] }
 0x390   :  { %8983 = vmatpush1.bf16.msra.mxu0 %v11968_v11  ;;  %8943 = vmatprep.subr.bf16.mxu1 %v12975_v45  ;;  %v12144_v11 = vcombine.low %v2264_v50, %v2272_v23  ;;  %v12895_v45 = vcombine.high %v3015_v5, %v3023_v7  ;;  %v2448_v50 = vld [vmem:[#allocation6 + $0xb60] sm:$0xff]  ;;  %v3135_v23 = vrot.slane %v14094_v4, %v14025_v52 }
 0x391   :  { %8984 = vmatprep.subr.bf16.mxu0 %v12209_v9  ;;  %v12129_v9 = vcombine.high %v2248_v63, %v2256_v8 }
 0x393   :  { %8944 = vmatpush2.bf16.msra.mxu1 %v12974_v22  ;;  %v12894_v22 = vcombine.low %v3015_v5, %v3023_v7  ;;  %v12321_v7 = vcombine.high %v2440_v49, %v2448_v50 }
 0x394   :  { %8985 = vmatpush2.bf16.msra.mxu0 %v12208_v29  ;;  %8945 = vmatprep.subr.bf16.mxu1 %v12959_v31  ;;  %v12128_v29 = vcombine.low %v2248_v63, %v2256_v8  ;;  %v12879_v31 = vcombine.high %v2999_v12, %v3007_v15  ;;  %v2424_v63 = vld [vmem:[#allocation6 + $0xaa0] sm:$0xff] }
 0x395   :  { %8986 = vmatprep.subr.bf16.mxu0 %v12193_v16  ;;  %v12113_v16 = vcombine.high %v2232_v51, %v2240_v21  ;;  %v2432_v8 = vld [vmem:[#allocation6 + $0xae0] sm:$0xff] }
 0x397   :  { %8946 = vmatpush2.bf16.msra.mxu1 %v12958_v36  ;;  %v12878_v36 = vcombine.low %v2999_v12, %v3007_v15 }
 0x398   :  { %8987 = vmatpush2.bf16.msra.mxu0 %v12192_v57  ;;  %8947 = vmatprep.subr.bf16.mxu1 %v12943_v10  ;;  %v12112_v57 = vcombine.low %v2232_v51, %v2240_v21  ;;  %v12863_v10 = vcombine.high %v2983_v19, %v2991_v32  ;;  %v12320_v51 = vcombine.low %v2440_v49, %v2448_v50 }
 0x399   :  { %8988 = vmatprep.subr.bf16.mxu0 %v12177_v58  ;;  %v12097_v58 = vcombine.high %v2216_v33, %v2224_v35 }
 0x39b   :  { %8948 = vmatpush2.bf16.msra.mxu1 %v12942_v17  ;;  %v12862_v17 = vcombine.low %v2983_v19, %v2991_v32  ;;  %v2408_v19 = vld [vmem:[#allocation6 + $0xa20] sm:$0xff] }
 0x39c   :  { %8989 = vmatpush2.bf16.msra.mxu0 %v12176_v39  ;;  %8949 = vmatprep.subr.bf16.mxu1 %v12927_v40  ;;  %v12096_v39 = vcombine.low %v2216_v33, %v2224_v35  ;;  %v12337_v40 = vcombine.high %v2456_v6, %v2464_v37  ;;  %v2416_v32 = vld [vmem:[#allocation6 + $0xa60] sm:$0xff] }
 0x39d   :  { %8990 = vmatprep.subr.bf16.mxu0 %v12161_v43  ;;  %v3131_v43 = vrot.slane %v14094_v4, %v14022_v44  ;;  %v8677_v4 = vadd.f32 %v14122_v55, %v3135_v23  ;;  %v2664_v35 = vld [vmem:[#allocation6 + $0x1220] sm:$0xff]  ;;  %v12288_v49 = vcombine.low %v2408_v19, %v2416_v32 }
 0x39f   :  { %8950 = vmatpush2.bf16.msra.mxu1 %v12926_v61  ;;  %v12336_v61 = vcombine.low %v2456_v6, %v2464_v37  ;;  %v8675_v5 = vadd.f32 %v14114_v42, %v3131_v43  ;;  %v2648_v43 = vld [vmem:[#allocation6 + $0x11a0] sm:$0xff] }
 0x3a0   :  { %8991 = vmatpush2.bf16.msra.mxu0 %v12160_v62  ;;  %8951 = vmatprep.subr.bf16.mxu1 %v12911_v0  ;;  %v2696_v62 = vld [vmem:[#allocation6 + $0x1320] sm:$0xff] }
 0x3a1   :  { %8992 = vmatprep.subr.bf16.mxu0 %v12145_v1  ;;  %v2704_v0 = vld [vmem:[#allocation6 + $0x1360] sm:$0xff]  ;;  %v12592_v1 = vcombine.low %v2712_v27, %v2720_v38  ;;  %v12289_v27 = vcombine.high %v2408_v19, %v2416_v32 }
 0x3a2   :  { %v12576_v21 = vcombine.low %v2696_v62, %v2704_v0 }
 0x3a3   :  { %8952 = vmatpush2.bf16.msra.mxu1 %v12910_v3 }
 0x3a4   :  { %8993 = vmatpush2.bf16.msra.mxu0 %v12144_v11  ;;  %8953 = vmatprep.subr.bf16.mxu1 %v12895_v45  ;;  %v12577_v11 = vcombine.high %v2696_v62, %v2704_v0  ;;  %v2680_v45 = vld [vmem:[#allocation6 + $0x12a0] sm:$0xff] }
 0x3a5   :  { %8994 = vmatprep.subr.bf16.mxu0 %v12129_v9  ;;  %v2688_v9 = vld [vmem:[#allocation6 + $0x12e0] sm:$0xff] }
 0x3a6   :  { %v12561_v55 = vcombine.high %v2680_v45, %v2688_v9  ;;  %v12560_v37 = vcombine.low %v2680_v45, %v2688_v9  ;;  %v2376_v62 = vld [vmem:[#allocation6 + $0x920] sm:$0xff] }
 0x3a7   :  { %8954 = vmatpush2.bf16.msra.mxu1 %v12894_v22  ;;  %v12305_v22 = vcombine.high %v2424_v63, %v2432_v8  ;;  %v2384_v0 = vld [vmem:[#allocation6 + $0x960] sm:$0xff] }
 0x3a8   :  { %8995 = vmatpush2.bf16.msra.mxu0 %v12128_v29  ;;  %8955 = vmatprep.subr.bf16.mxu1 %v12879_v31  ;;  %v2368_v45 = vld [vmem:[#allocation6 + $0x8e0] sm:$0xff] }
 0x3a9   :  { %8996 = vmatprep.subr.bf16.mxu0 %v12113_v16  ;;  %v2616_v9 = vld [vmem:[#allocation6 + $0x10a0] sm:$0xff] }
 0x3ab   :  { %8956 = vmatpush2.bf16.msra.mxu1 %v12878_v36  ;;  %v2672_v36 = vld [vmem:[#allocation6 + $0x1260] sm:$0xff] }
 0x3ac   :  { %8997 = vmatpush2.bf16.msra.mxu0 %v12112_v57  ;;  %8957 = vmatprep.subr.bf16.mxu1 %v12863_v10  ;;  %v12544_v50 = vcombine.low %v2664_v35, %v2672_v36 }
 0x3ad   :  { %8998 = vmatprep.subr.bf16.mxu0 %v12097_v58  ;;  %v12304_v58 = vcombine.low %v2424_v63, %v2432_v8  ;;  %v12257_v8 = vcombine.high %v2376_v62, %v2384_v0 }
 0x3af   :  { %8958 = vmatpush2.bf16.msra.mxu1 %v12862_v17  ;;  %v12545_v17 = vcombine.high %v2664_v35, %v2672_v36  ;;  %v2584_v35 = vld [vmem:[#allocation6 + $0xfa0] sm:$0xff] }
 0x3b0   :  { %8999 = vmatpush2.bf16.msra.mxu0 %v12096_v39  ;;  %9009 = vmatprep.subr.bf16.mxu1 %v12337_v40  ;;  %v2392_v39 = vld [vmem:[#allocation6 + $0x9a0] sm:$0xff] }
 0x3b1   :  { %9050 = vmatprep.subr.bf16.mxu0 %v12593_v48  ;;  %v2400_v40 = vld [vmem:[#allocation6 + $0x9e0] sm:$0xff] }
 0x3b2   :  { %v8715_v3 = vpop.f32.mrf.mxu1  ;;  %8960 = vmatmul.mubr.bf16.vlgmr.msra.gmra.mxu1 %v14050_v26  ;;  %v2656_v48 = vld [vmem:[#allocation6 + $0x11e0] sm:$0xff]  ;;  %v12273_v23 = vcombine.high %v2392_v39, %v2400_v40 }
 0x3b3   :  { %v8716_v12 = vadd.f32 %v8715_v3, %v8675_v5  ;;  %v8756_v15 = vpop.f32.mrf.mxu0  ;;  %9001 = vmatmul.mubr.bf16.vlgmr.msra.gmra.mxu0 %v14002_v20  ;;  %9010 = vmatpush1.bf16.msra.mxu1 %v12336_v61  ;;  %v12529_v61 = vcombine.high %v2648_v43, %v2656_v48  ;;  %v2640_v5 = vld [vmem:[#allocation6 + $0x1160] sm:$0xff]  ;;  %v12528_v63 = vcombine.low %v2648_v43, %v2656_v48 }
 0x3b4   :  { %9041 = vmatprep.mubr.bf16.mxu1 %v14007_v53  ;;  %9051 = vmatpush1.bf16.msra.mxu0 %v12592_v1  ;;  %v8717_v42 = vpop.f32.mrf.mxu1  ;;  %v2632_v1 = vld [vmem:[#allocation6 + $0x1120] sm:$0xff] }
 0x3b5   :  { %v14133_v29 = vadd.f32 %v8756_v15, %v8716_v12  ;;  %9082 = vmatprep.mubr.bf16.mxu0 %v14033_v25  ;;  %v8718_v31 = vadd.f32 %v8717_v42, %v8677_v4  ;;  %v8758_v16 = vpop.f32.mrf.mxu0  ;;  %9011 = vmatprep.subr.bf16.mxu1 %v12321_v7  ;;  %v12272_v7 = vcombine.low %v2392_v39, %v2400_v40  ;;  %v2624_v4 = vld [vmem:[#allocation6 + $0x10e0] sm:$0xff] }
 0x3b6   :  { %v8719_v33 = vpop.f32.mrf.mxu1  ;;  %9052 = vmatprep.subr.bf16.mxu0 %v12577_v11  ;;  %v12513_v3 = vcombine.high %v2632_v1, %v2640_v5  ;;  %v2360_v11 = vld [vmem:[#allocation6 + $0x8a0] sm:$0xff]  ;;  %v12256_v12 = vcombine.low %v2376_v62, %v2384_v0  ;;  %v12512_v15 = vcombine.low %v2632_v1, %v2640_v5  ;;  %v12497_v42 = vcombine.high %v2616_v9, %v2624_v4 }
 0x3b7   :  { %v14136_v57 = vadd.f32 %v8758_v16, %v8718_v31  ;;  %v8760_v10 = vpop.f32.mrf.mxu0  ;;  %9012 = vmatpush1.bf16.msra.mxu1 %v12320_v51  ;;  %v12241_v51 = vcombine.high %v2360_v11, %v2368_v45  ;;  %v2600_v31 = vld [vmem:[#allocation6 + $0x1020] sm:$0xff]  ;;  %v12496_v19 = vcombine.low %v2616_v9, %v2624_v4 }
 0x3b8   :  { %9053 = vmatpush1.bf16.msra.mxu0 %v12576_v21  ;;  %v8720_v6 = vpop.f32.mrf.mxu1  ;;  %9013 = vmatprep.subr.bf16.mxu1 %v12305_v22  ;;  %v2344_v21 = vld [vmem:[#allocation6 + $0x820] sm:$0xff] }
 0x3b9   :  { %v8761_v38 = vpop.f32.mrf.mxu0  ;;  %9054 = vmatprep.subr.bf16.mxu0 %v12561_v55  ;;  %v2352_v22 = vld [vmem:[#allocation6 + $0x860] sm:$0xff]  ;;  %v12240_v55 = vcombine.low %v2360_v11, %v2368_v45 }
 0x3ba   :  { %v2608_v16 = vld [vmem:[#allocation6 + $0x1060] sm:$0xff]  ;;  %v12225_v32 = vcombine.high %v2344_v21, %v2352_v22  ;;  %v12224_v6 = vcombine.low %v2344_v21, %v2352_v22 }
 0x3bb   :  { %9014 = vmatpush1.bf16.msra.mxu1 %v12304_v58  ;;  %v12481_v33 = vcombine.high %v2600_v31, %v2608_v16  ;;  %v2592_v36 = vld [vmem:[#allocation6 + $0xfe0] sm:$0xff] }
 0x3bc   :  { %9055 = vmatpush1.bf16.msra.mxu0 %v12560_v37  ;;  %9015 = vmatprep.subr.bf16.mxu1 %v12289_v27  ;;  %v2840_v10 = vld [vmem:[#allocation6 + $0x17a0] sm:$0xff]  ;;  %v12480_v37 = vcombine.low %v2600_v31, %v2608_v16  ;;  %v12465_v27 = vcombine.high %v2584_v35, %v2592_v36  ;;  %v12464_v48 = vcombine.low %v2584_v35, %v2592_v36 }
 0x3bd   :  { %9056 = vmatprep.subr.bf16.mxu0 %v12545_v17  ;;  %v2848_v58 = vld [vmem:[#allocation6 + $0x17e0] sm:$0xff] }
 0x3be   :  { %v12721_v38 = vcombine.high %v2840_v10, %v2848_v58  ;;  %v2568_v17 = vld [vmem:[#allocation6 + $0xf20] sm:$0xff] }
 0x3bf   :  { %9016 = vmatpush1.bf16.msra.mxu1 %v12288_v49  ;;  %v2576_v39 = vld [vmem:[#allocation6 + $0xf60] sm:$0xff]  ;;  %v12720_v49 = vcombine.low %v2840_v10, %v2848_v58 }
 0x3c0   :  { %9057 = vmatpush1.bf16.msra.mxu0 %v12544_v50  ;;  %9017 = vmatprep.subr.bf16.mxu1 %v12273_v23  ;;  %v2824_v40 = vld [vmem:[#allocation6 + $0x1720] sm:$0xff]  ;;  %v12449_v50 = vcombine.high %v2568_v17, %v2576_v39  ;;  %v12448_v5 = vcombine.low %v2568_v17, %v2576_v39 }
 0x3c1   :  { %9058 = vmatprep.subr.bf16.mxu0 %v12529_v61  ;;  %v2832_v43 = vld [vmem:[#allocation6 + $0x1760] sm:$0xff] }
 0x3c2   :  { %v12705_v23 = vcombine.high %v2824_v40, %v2832_v43  ;;  %v2552_v61 = vld [vmem:[#allocation6 + $0xea0] sm:$0xff] }
 0x3c3   :  { %9018 = vmatpush1.bf16.msra.mxu1 %v12272_v7  ;;  %v2560_v62 = vld [vmem:[#allocation6 + $0xee0] sm:$0xff]  ;;  %v12704_v7 = vcombine.low %v2824_v40, %v2832_v43 }
 0x3c4   :  { %9059 = vmatpush1.bf16.msra.mxu0 %v12528_v63  ;;  %9019 = vmatprep.subr.bf16.mxu1 %v12257_v8  ;;  %v2808_v0 = vld [vmem:[#allocation6 + $0x16a0] sm:$0xff]  ;;  %v12433_v63 = vcombine.high %v2552_v61, %v2560_v62  ;;  %v12432_v4 = vcombine.low %v2552_v61, %v2560_v62 }
 0x3c5   :  { %9060 = vmatprep.subr.bf16.mxu0 %v12513_v3  ;;  %v2816_v1 = vld [vmem:[#allocation6 + $0x16e0] sm:$0xff] }
 0x3c6   :  { %v12689_v8 = vcombine.high %v2808_v0, %v2816_v1  ;;  %v2536_v3 = vld [vmem:[#allocation6 + $0xe20] sm:$0xff] }
 0x3c7   :  { %9020 = vmatpush1.bf16.msra.mxu1 %v12256_v12  ;;  %v2544_v11 = vld [vmem:[#allocation6 + $0xe60] sm:$0xff]  ;;  %v12688_v12 = vcombine.low %v2808_v0, %v2816_v1 }
 0x3c8   :  { %9061 = vmatpush1.bf16.msra.mxu0 %v12512_v15  ;;  %9021 = vmatprep.subr.bf16.mxu1 %v12241_v51  ;;  %v2792_v45 = vld [vmem:[#allocation6 + $0x1620] sm:$0xff]  ;;  %v12417_v15 = vcombine.high %v2536_v3, %v2544_v11  ;;  %v12416_v16 = vcombine.low %v2536_v3, %v2544_v11  ;;  %v2201_v11 = vld [vmem:[#allocation6 + $0x3a8] sm:$0xff] }
 0x3c9   :  { %9062 = vmatprep.subr.bf16.mxu0 %v12497_v42  ;;  %v2800_v9 = vld [vmem:[#allocation6 + $0x1660] sm:$0xff] }
 0x3ca   :  { %v12673_v51 = vcombine.high %v2792_v45, %v2800_v9  ;;  %v2520_v42 = vld [vmem:[#allocation6 + $0xda0] sm:$0xff] }
 0x3cb   :  { %9022 = vmatpush1.bf16.msra.mxu1 %v12240_v55  ;;  %v2528_v21 = vld [vmem:[#allocation6 + $0xde0] sm:$0xff]  ;;  %v12672_v55 = vcombine.low %v2792_v45, %v2800_v9  ;;  %v2209_v45 = vld [vmem:[#allocation6 + $0x3e8] sm:$0xff] }
 0x3cc   :  { %9063 = vmatpush1.bf16.msra.mxu0 %v12496_v19  ;;  %9023 = vmatprep.subr.bf16.mxu1 %v12225_v32  ;;  %v2776_v22 = vld [vmem:[#allocation6 + $0x15a0] sm:$0xff]  ;;  %v12401_v19 = vcombine.high %v2520_v42, %v2528_v21  ;;  %v12400_v58 = vcombine.low %v2520_v42, %v2528_v21 }
 0x3cd   :  { %9064 = vmatprep.subr.bf16.mxu0 %v12481_v33  ;;  %v2784_v31 = vld [vmem:[#allocation6 + $0x15e0] sm:$0xff] }
 0x3ce   :  { %v12657_v32 = vcombine.high %v2776_v22, %v2784_v31  ;;  %v2504_v33 = vld [vmem:[#allocation6 + $0xd20] sm:$0xff] }
 0x3cf   :  { %9024 = vmatpush1.bf16.msra.mxu1 %v12224_v6  ;;  %v2512_v35 = vld [vmem:[#allocation6 + $0xd60] sm:$0xff]  ;;  %v12656_v6 = vcombine.low %v2776_v22, %v2784_v31  ;;  %v2185_v22 = vld [vmem:[#allocation6 + $0x328] sm:$0xff] }
 0x3d0   :  { %9065 = vmatpush1.bf16.msra.mxu0 %v12480_v37  ;;  %9025 = vmatprep.subr.bf16.mxu1 %v12465_v27  ;;  %v2760_v36 = vld [vmem:[#allocation6 + $0x1520] sm:$0xff]  ;;  %v12385_v37 = vcombine.high %v2504_v33, %v2512_v35  ;;  %v12384_v43 = vcombine.low %v2504_v33, %v2512_v35  ;;  %v2193_v31 = vld [vmem:[#allocation6 + $0x368] sm:$0xff] }
 0x3d1   :  { %9066 = vmatprep.subr.bf16.mxu0 %v12721_v38  ;;  %v2768_v10 = vld [vmem:[#allocation6 + $0x1560] sm:$0xff]  ;;  %v12067_v35 = vcombine.high %v2185_v22, %v2193_v31 }
 0x3d2   :  { %v12641_v27 = vcombine.high %v2760_v36, %v2768_v10  ;;  %v2488_v38 = vld [vmem:[#allocation6 + $0xca0] sm:$0xff] }
 0x3d3   :  { %9026 = vmatpush2.bf16.msra.mxu1 %v12464_v48  ;;  %v2496_v17 = vld [vmem:[#allocation6 + $0xce0] sm:$0xff]  ;;  %v12640_v48 = vcombine.low %v2760_v36, %v2768_v10  ;;  %v2169_v36 = vld [vmem:[#allocation6 + $0x2a8] sm:$0xff] }
 0x3d4   :  { %9067 = vmatpush2.bf16.msra.mxu0 %v12720_v49  ;;  %9027 = vmatprep.subr.bf16.mxu1 %v12449_v50  ;;  %v2744_v39 = vld [vmem:[#allocation6 + $0x14a0] sm:$0xff]  ;;  %v12369_v49 = vcombine.high %v2488_v38, %v2496_v17  ;;  %v12368_v1 = vcombine.low %v2488_v38, %v2496_v17  ;;  %v2177_v10 = vld [vmem:[#allocation6 + $0x2e8] sm:$0xff]  ;;  %v12066_v38 = vcombine.low %v2185_v22, %v2193_v31 }
 0x3d5   :  { %9068 = vmatprep.subr.bf16.mxu0 %v12705_v23  ;;  %v2752_v40 = vld [vmem:[#allocation6 + $0x14e0] sm:$0xff] }
 0x3d6   :  { %v12625_v50 = vcombine.high %v2744_v39, %v2752_v40  ;;  %v2472_v23 = vld [vmem:[#allocation6 + $0xc20] sm:$0xff] }
 0x3d7   :  { %9028 = vmatpush2.bf16.msra.mxu1 %v12448_v5  ;;  %v2480_v61 = vld [vmem:[#allocation6 + $0xc60] sm:$0xff]  ;;  %v12624_v5 = vcombine.low %v2744_v39, %v2752_v40 }
 0x3d8   :  { %9069 = vmatpush2.bf16.msra.mxu0 %v12704_v7  ;;  %9029 = vmatprep.subr.bf16.mxu1 %v12433_v63  ;;  %v2728_v62 = vld [vmem:[#allocation6 + $0x1420] sm:$0xff]  ;;  %v12353_v7 = vcombine.high %v2472_v23, %v2480_v61  ;;  %v12352_v9 = vcombine.low %v2472_v23, %v2480_v61  ;;  %v2161_v23 = vld [vmem:[#allocation6 + $0x268] sm:$0xff] }
 0x3d9   :  { %9070 = vmatprep.subr.bf16.mxu0 %v12689_v8  ;;  %v2736_v0 = vld [vmem:[#allocation6 + $0x1460] sm:$0xff] }
 0x3da   :  { %v12609_v63 = vcombine.high %v2728_v62, %v2736_v0  ;;  %v2968_v8 = vld [vmem:[#allocation6 + $0x1ba0] sm:$0xff] }
 0x3db   :  { %9030 = vmatpush2.bf16.msra.mxu1 %v12432_v4  ;;  %v2976_v3 = vld [vmem:[#allocation6 + $0x1be0] sm:$0xff]  ;;  %v12608_v4 = vcombine.low %v2728_v62, %v2736_v0 }
 0x3dc   :  { %9071 = vmatpush2.bf16.msra.mxu0 %v12688_v12  ;;  %9031 = vmatprep.subr.bf16.mxu1 %v12417_v15  ;;  %v12849_v12 = vcombine.high %v2968_v8, %v2976_v3  ;;  %v12083_v15 = vcombine.high %v2201_v11, %v2209_v45  ;;  %v2960_v42 = vld [vmem:[#allocation6 + $0x1b60] sm:$0xff]  ;;  %v12848_v21 = vcombine.low %v2968_v8, %v2976_v3  ;;  %v2137_v3 = vld [vmem:[#allocation6 + $0x1a8] sm:$0xff] }
 0x3dd   :  { %9072 = vmatprep.subr.bf16.mxu0 %v12673_v51  ;;  %v2952_v51 = vld [vmem:[#allocation6 + $0x1b20] sm:$0xff] }
 0x3de   :  { %v2912_v8 = vld [vmem:[#allocation6 + $0x19e0] sm:$0xff] }
 0x3df   :  { %9032 = vmatpush2.bf16.msra.mxu1 %v12416_v16  ;;  %v12082_v16 = vcombine.low %v2201_v11, %v2209_v45  ;;  %v2145_v11 = vld [vmem:[#allocation6 + $0x1e8] sm:$0xff] }
 0x3e0   :  { %9073 = vmatpush2.bf16.msra.mxu0 %v12672_v55  ;;  %9033 = vmatprep.subr.bf16.mxu1 %v12401_v19  ;;  %v12833_v55 = vcombine.high %v2952_v51, %v2960_v42  ;;  %v2936_v19 = vld [vmem:[#allocation6 + $0x1aa0] sm:$0xff]  ;;  %v12018_v31 = vcombine.low %v2137_v3, %v2145_v11 }
 0x3e1   :  { %9074 = vmatprep.subr.bf16.mxu0 %v12657_v32  ;;  %v2944_v32 = vld [vmem:[#allocation6 + $0x1ae0] sm:$0xff] }
 0x3e2   :  { %v12817_v17 = vcombine.high %v2936_v19, %v2944_v32  ;;  %v12816_v62 = vcombine.low %v2936_v19, %v2944_v32  ;;  %v2872_v19 = vld [vmem:[#allocation6 + $0x18a0] sm:$0xff] }
 0x3e3   :  { %9034 = vmatpush2.bf16.msra.mxu1 %v12400_v58  ;;  %v2880_v32 = vld [vmem:[#allocation6 + $0x18e0] sm:$0xff] }
 0x3e4   :  { %9075 = vmatpush2.bf16.msra.mxu0 %v12656_v6  ;;  %9035 = vmatprep.subr.bf16.mxu1 %v12385_v37  ;;  %v12832_v37 = vcombine.low %v2952_v51, %v2960_v42  ;;  %v2896_v51 = vld [vmem:[#allocation6 + $0x1960] sm:$0xff]  ;;  %v2121_v42 = vld [vmem:[#allocation6 + $0x128] sm:$0xff] }
 0x3e5   :  { %9076 = vmatprep.subr.bf16.mxu0 %v12641_v27 }
 0x3e7   :  { %9036 = vmatpush2.bf16.msra.mxu1 %v12384_v43  ;;  %v2920_v43 = vld [vmem:[#allocation6 + $0x1a20] sm:$0xff] }
 0x3e8   :  { %9077 = vmatpush2.bf16.msra.mxu0 %v12640_v48  ;;  %9037 = vmatprep.subr.bf16.mxu1 %v12369_v49  ;;  %v2928_v48 = vld [vmem:[#allocation6 + $0x1a60] sm:$0xff] }
 0x3e9   :  { %9078 = vmatprep.subr.bf16.mxu0 %v12625_v50  ;;  %v2153_v50 = vld [vmem:[#allocation6 + $0x228] sm:$0xff]  ;;  %v12800_v45 = vcombine.low %v2920_v43, %v2928_v48 }
 0x3eb   :  { %9038 = vmatpush2.bf16.msra.mxu1 %v12368_v1  ;;  %v12050_v1 = vcombine.low %v2169_v36, %v2177_v10 }
 0x3ec   :  { %9079 = vmatpush2.bf16.msra.mxu0 %v12624_v5  ;;  %9039 = vmatprep.subr.bf16.mxu1 %v12353_v7  ;;  %v12801_v5 = vcombine.high %v2920_v43, %v2928_v48  ;;  %v12035_v7 = vcombine.high %v2153_v50, %v2161_v23  ;;  %v2097_v43 = vld [vmem:[#allocation6 + $0x68] sm:$0xff]  ;;  %v12752_v48 = vcombine.low %v2872_v19, %v2880_v32 }
 0x3ed   :  { %9080 = vmatprep.subr.bf16.mxu0 %v12609_v63  ;;  %v2904_v63 = vld [vmem:[#allocation6 + $0x19a0] sm:$0xff] }
 0x3ee   :  { %v12784_v22 = vcombine.low %v2904_v63, %v2912_v8 }
 0x3ef   :  { %9040 = vmatpush2.bf16.msra.mxu1 %v12352_v9  ;;  %v12034_v9 = vcombine.low %v2153_v50, %v2161_v23 }
 0x3f0   :  { %9081 = vmatpush2.bf16.msra.mxu0 %v12608_v4  ;;  %9091 = vmatprep.subr.bf16.mxu1 %v12849_v12  ;;  %v12785_v4 = vcombine.high %v2904_v63, %v2912_v8  ;;  %v12019_v12 = vcombine.high %v2137_v3, %v2145_v11  ;;  %v3080_v8 = vld [vmem:[#allocation6 + $0x1f20] sm:$0xff]  ;;  %v2313_v11 = vld [vmem:[#allocation6 + $0x728] sm:$0xff] }
 0x3f1   :  { %9132 = vmatprep.subr.bf16.mxu0 %v12083_v15  ;;  %v2888_v15 = vld [vmem:[#allocation6 + $0x1920] sm:$0xff] }
 0x3f2   :  { %v8797_v33 = vpop.f32.mrf.mxu1  ;;  %9042 = vmatmul.mubr.bf16.vlgmr.msra.gmra.mxu1 %v14015_v60  ;;  %v3088_v3 = vld [vmem:[#allocation6 + $0x1f60] sm:$0xff] }
 0x3f3   :  { %v14140_v58 = vadd.f32 %v8797_v33, %v14133_v29  ;;  %v14142_v6 = vpop.f32.mrf.mxu0  ;;  %9083 = vmatmul.mubr.bf16.vlgmr.msra.gmra.mxu0 %v14035_v59  ;;  %9092 = vmatpush1.bf16.msra.mxu1 %v12848_v21  ;;  %v12051_v29 = vcombine.high %v2169_v36, %v2177_v10  ;;  %v2129_v21 = vld [vmem:[#allocation6 + $0x168] sm:$0xff]  ;;  %v12768_v36 = vcombine.low %v2888_v15, %v2896_v51 }
 0x3f4   :  { %9123 = vmatprep.mubr.bf16.mxu1 %v14048_v13  ;;  %9133 = vmatpush1.bf16.msra.mxu0 %v12082_v16  ;;  %v8799_v27 = vpop.f32.mrf.mxu1  ;;  %v12769_v16 = vcombine.high %v2888_v15, %v2896_v51  ;;  %v2105_v33 = vld [vmem:[#allocation6 + $0xa8] sm:$0xff]  ;;  %v12002_v10 = vcombine.low %v2121_v42, %v2129_v21  ;;  %v3064_v51 = vld [vmem:[#allocation6 + $0x1ea0] sm:$0xff] }
 0x3f5   :  { %9164 = vmatprep.mubr.bf16.mxu0 %v13978_v56  ;;  %v14148_v39 = vadd.f32 %v8799_v27, %v14136_v57  ;;  %v14150_v40 = vpop.f32.mrf.mxu0  ;;  %9093 = vmatprep.subr.bf16.mxu1 %v12833_v55  ;;  %v12003_v55 = vcombine.high %v2121_v42, %v2129_v21  ;;  %v3072_v42 = vld [vmem:[#allocation6 + $0x1ee0] sm:$0xff]  ;;  %v2297_v21 = vld [vmem:[#allocation6 + $0x6a8] sm:$0xff] }
 0x3f6   :  { %v8801_v49 = vpop.f32.mrf.mxu1  ;;  %9134 = vmatprep.subr.bf16.mxu0 %v12067_v35  ;;  %v2113_v35 = vld [vmem:[#allocation6 + $0xe8] sm:$0xff] }
 0x3f7   :  { %v8842_v61 = vpop.f32.mrf.mxu0  ;;  %9094 = vmatpush1.bf16.msra.mxu1 %v12832_v37  ;;  %v12753_v37 = vcombine.high %v2872_v19, %v2880_v32  ;;  %v11987_v27 = vcombine.high %v2105_v33, %v2113_v35  ;;  %v11986_v49 = vcombine.low %v2105_v33, %v2113_v35  ;;  %v3048_v32 = vld [vmem:[#allocation6 + $0x1e20] sm:$0xff]  ;;  %v2281_v35 = vld [vmem:[#allocation6 + $0x628] sm:$0xff] }
 0x3f8   :  { %9135 = vmatpush1.bf16.msra.mxu0 %v12066_v38  ;;  %v8802_v0 = vpop.f32.mrf.mxu1  ;;  %9095 = vmatprep.subr.bf16.mxu1 %v12817_v17  ;;  %v2856_v38 = vld [vmem:[#allocation6 + $0x1820] sm:$0xff] }
 0x3f9   :  { %v8843_v57 = vpop.f32.mrf.mxu0  ;;  %9136 = vmatprep.subr.bf16.mxu0 %v12051_v29  ;;  %v2864_v17 = vld [vmem:[#allocation6 + $0x1860] sm:$0xff]  ;;  %v2089_v29 = vld [vmem:[#allocation6 + $0x28] sm:$0xff] }
 0x3fa   :  { %v12737_v50 = vcombine.high %v2856_v38, %v2864_v17  ;;  %v11971_v23 = vcombine.high %v2089_v29, %v2097_v43  ;;  %v3096_v61 = vld [vmem:[#allocation6 + $0x1fa0] sm:$0xff]  ;;  %v2329_v0 = vld [vmem:[#allocation6 + $0x7a8] sm:$0xff]  ;;  %v11970_v57 = vcombine.low %v2089_v29, %v2097_v43 }
 0x3fb   :  { %9096 = vmatpush1.bf16.msra.mxu1 %v12816_v62  ;;  %v3104_v62 = vld [vmem:[#allocation6 + $0x1fe0] sm:$0xff]  ;;  %v2265_v43 = vld [vmem:[#allocation6 + $0x5a8] sm:$0xff] }
 0x3fc   :  { %9137 = vmatpush1.bf16.msra.mxu0 %v12050_v1  ;;  %9097 = vmatprep.subr.bf16.mxu1 %v12801_v5  ;;  %v2337_v1 = vld [vmem:[#allocation6 + $0x7e8] sm:$0xff]  ;;  %v12736_v5 = vcombine.low %v2856_v38, %v2864_v17  ;;  %v3056_v33 = vld [vmem:[#allocation6 + $0x1e60] sm:$0xff] }
 0x3fd   :  { %9138 = vmatprep.subr.bf16.mxu0 %v12035_v7  ;;  %v12977_v7 = vcombine.high %v3096_v61, %v3104_v62  ;;  %v12211_v63 = vcombine.high %v2329_v0, %v2337_v1  ;;  %v3032_v17 = vld [vmem:[#allocation6 + $0x1da0] sm:$0xff] }
 0x3fe   :  { %v3040_v29 = vld [vmem:[#allocation6 + $0x1de0] sm:$0xff] }
 0x3ff   :  { %9098 = vmatpush1.bf16.msra.mxu1 %v12800_v45  ;;  %v2321_v45 = vld [vmem:[#allocation6 + $0x768] sm:$0xff] }
 0x400   :  { %9139 = vmatpush1.bf16.msra.mxu0 %v12034_v9  ;;  %9099 = vmatprep.subr.bf16.mxu1 %v12785_v4  ;;  %v12976_v9 = vcombine.low %v3096_v61, %v3104_v62  ;;  %v12210_v4 = vcombine.low %v2329_v0, %v2337_v1  ;;  %v12195_v15 = vcombine.high %v2313_v11, %v2321_v45  ;;  %v3016_v62 = vld [vmem:[#allocation6 + $0x1d20] sm:$0xff]  ;;  %v2249_v1 = vld [vmem:[#allocation6 + $0x528] sm:$0xff] }
 0x401   :  { %9140 = vmatprep.subr.bf16.mxu0 %v12019_v12  ;;  %v12961_v12 = vcombine.high %v3080_v8, %v3088_v3  ;;  %v3024_v0 = vld [vmem:[#allocation6 + $0x1d60] sm:$0xff] }
 0x403   :  { %9100 = vmatpush1.bf16.msra.mxu1 %v12784_v22  ;;  %v2305_v22 = vld [vmem:[#allocation6 + $0x6e8] sm:$0xff] }
 0x404   :  { %9141 = vmatpush1.bf16.msra.mxu0 %v12018_v31  ;;  %9101 = vmatprep.subr.bf16.mxu1 %v12769_v16  ;;  %v12960_v31 = vcombine.low %v3080_v8, %v3088_v3  ;;  %v12194_v16 = vcombine.low %v2313_v11, %v2321_v45  ;;  %v12179_v19 = vcombine.high %v2297_v21, %v2305_v22  ;;  %v3000_v3 = vld [vmem:[#allocation6 + $0x1ca0] sm:$0xff]  ;;  %v2233_v45 = vld [vmem:[#allocation6 + $0x4a8] sm:$0xff] }
 0x405   :  { %9142 = vmatprep.subr.bf16.mxu0 %v12003_v55  ;;  %v12945_v55 = vcombine.high %v3064_v51, %v3072_v42  ;;  %v3008_v11 = vld [vmem:[#allocation6 + $0x1ce0] sm:$0xff] }
 0x407   :  { %9102 = vmatpush1.bf16.msra.mxu1 %v12768_v36  ;;  %v2289_v36 = vld [vmem:[#allocation6 + $0x668] sm:$0xff] }
 0x408   :  { %9143 = vmatpush1.bf16.msra.mxu0 %v12002_v10  ;;  %9103 = vmatprep.subr.bf16.mxu1 %v12753_v37  ;;  %v12944_v10 = vcombine.low %v3064_v51, %v3072_v42  ;;  %v12178_v37 = vcombine.low %v2297_v21, %v2305_v22  ;;  %v12163_v38 = vcombine.high %v2281_v35, %v2289_v36  ;;  %v2984_v42 = vld [vmem:[#allocation6 + $0x1c20] sm:$0xff]  ;;  %v2217_v22 = vld [vmem:[#allocation6 + $0x428] sm:$0xff] }
 0x409   :  { %9144 = vmatprep.subr.bf16.mxu0 %v11987_v27  ;;  %v12929_v27 = vcombine.high %v3048_v32, %v3056_v33  ;;  %v2992_v21 = vld [vmem:[#allocation6 + $0x1c60] sm:$0xff] }
 0x40b   :  { %9104 = vmatpush1.bf16.msra.mxu1 %v12752_v48  ;;  %v2273_v48 = vld [vmem:[#allocation6 + $0x5e8] sm:$0xff] }
 0x40c   :  { %9145 = vmatpush1.bf16.msra.mxu0 %v11986_v49  ;;  %9105 = vmatprep.subr.bf16.mxu1 %v12737_v50  ;;  %v12928_v49 = vcombine.low %v3048_v32, %v3056_v33  ;;  %v12162_v50 = vcombine.low %v2281_v35, %v2289_v36  ;;  %v12147_v61 = vcombine.high %v2265_v43, %v2273_v48  ;;  %v2457_v33 = vld [vmem:[#allocation6 + $0xba8] sm:$0xff] }
 0x40d   :  { %9146 = vmatprep.subr.bf16.mxu0 %v11971_v23  ;;  %v12913_v23 = vcombine.high %v3032_v17, %v3040_v29  ;;  %v2465_v35 = vld [vmem:[#allocation6 + $0xbe8] sm:$0xff] }
 0x40e   :  { %v2713_v36 = vld [vmem:[#allocation6 + $0x13a8] sm:$0xff] }
 0x40f   :  { %9106 = vmatpush1.bf16.msra.mxu1 %v12736_v5  ;;  %v2257_v5 = vld [vmem:[#allocation6 + $0x568] sm:$0xff] }
 0x410   :  { %9147 = vmatpush1.bf16.msra.mxu0 %v11970_v57  ;;  %9107 = vmatprep.subr.bf16.mxu1 %v12977_v7  ;;  %v12912_v57 = vcombine.low %v3032_v17, %v3040_v29  ;;  %v12146_v7 = vcombine.low %v2265_v43, %v2273_v48  ;;  %v12131_v8 = vcombine.high %v2249_v1, %v2257_v5  ;;  %v13657_v17 = vld [vmem:[#allocation7] sm:$0xff]  ;;  %v2441_v48 = vld [vmem:[#allocation6 + $0xb28] sm:$0xff] }
 0x411   :  { %9148 = vmatprep.subr.bf16.mxu0 %v12211_v63  ;;  %v12897_v63 = vcombine.high %v3016_v62, %v3024_v0  ;;  %v3139_v29 = vrot.slane %v13657_v17, %v14041_v28 }
 0x413   :  { %9108 = vmatpush2.bf16.msra.mxu1 %v12976_v9  ;;  %v2241_v9 = vld [vmem:[#allocation6 + $0x4e8] sm:$0xff] }
 0x414   :  { %9149 = vmatpush2.bf16.msra.mxu0 %v12210_v4  ;;  %9109 = vmatprep.subr.bf16.mxu1 %v12961_v12  ;;  %v12896_v4 = vcombine.low %v3016_v62, %v3024_v0  ;;  %v12130_v12 = vcombine.low %v2249_v1, %v2257_v5  ;;  %v12115_v51 = vcombine.high %v2233_v45, %v2241_v9  ;;  %v2705_v62 = vld [vmem:[#allocation6 + $0x1368] sm:$0xff] }
 0x415   :  { %9150 = vmatprep.subr.bf16.mxu0 %v12195_v15  ;;  %v12881_v15 = vcombine.high %v3000_v3, %v3008_v11  ;;  %v8839_v1 = vadd.f32 %v14142_v6, %v3139_v29  ;;  %v2393_v29 = vld [vmem:[#allocation6 + $0x9a8] sm:$0xff] }
 0x417   :  { %9110 = vmatpush2.bf16.msra.mxu1 %v12960_v31  ;;  %v2225_v31 = vld [vmem:[#allocation6 + $0x468] sm:$0xff] }
 0x418   :  { %9151 = vmatpush2.bf16.msra.mxu0 %v12194_v16  ;;  %9111 = vmatprep.subr.bf16.mxu1 %v12945_v55  ;;  %v12880_v16 = vcombine.low %v3000_v3, %v3008_v11  ;;  %v12114_v55 = vcombine.low %v2233_v45, %v2241_v9  ;;  %v12099_v32 = vcombine.high %v2217_v22, %v2225_v31  ;;  %v2681_v3 = vld [vmem:[#allocation6 + $0x12a8] sm:$0xff] }
 0x419   :  { %9152 = vmatprep.subr.bf16.mxu0 %v12179_v19  ;;  %v12865_v19 = vcombine.high %v2984_v42, %v2992_v21  ;;  %v2689_v11 = vld [vmem:[#allocation6 + $0x12e8] sm:$0xff] }
 0x41b   :  { %9112 = vmatpush2.bf16.msra.mxu1 %v12944_v10  ;;  %v2721_v10 = vld [vmem:[#allocation6 + $0x13e8] sm:$0xff] }
 0x41c   :  { %9153 = vmatpush2.bf16.msra.mxu0 %v12178_v37  ;;  %9113 = vmatprep.subr.bf16.mxu1 %v12929_v27  ;;  %v12864_v37 = vcombine.low %v2984_v42, %v2992_v21  ;;  %v12098_v27 = vcombine.low %v2217_v22, %v2225_v31  ;;  %v12595_v43 = vcombine.high %v2713_v36, %v2721_v10  ;;  %v2409_v31 = vld [vmem:[#allocation6 + $0xa28] sm:$0xff] }
 0x41d   :  { %9154 = vmatprep.subr.bf16.mxu0 %v12163_v38  ;;  %v12339_v38 = vcombine.high %v2457_v33, %v2465_v35  ;;  %v12594_v0 = vcombine.low %v2713_v36, %v2721_v10 }
 0x41f   :  { %9114 = vmatpush2.bf16.msra.mxu1 %v12928_v49  ;;  %v2449_v49 = vld [vmem:[#allocation6 + $0xb68] sm:$0xff] }
 0x420   :  { %9155 = vmatpush2.bf16.msra.mxu0 %v12162_v50  ;;  %9115 = vmatprep.subr.bf16.mxu1 %v12913_v23  ;;  %v3143_v50 = vrot.slane %v13657_v17, %v14044_v30  ;;  %v12338_v23 = vcombine.low %v2457_v33, %v2465_v35  ;;  %v12323_v5 = vcombine.high %v2441_v48, %v2449_v49 }
 0x421   :  { %9156 = vmatprep.subr.bf16.mxu0 %v12147_v61  ;;  %v2697_v61 = vld [vmem:[#allocation6 + $0x1328] sm:$0xff] }
 0x422   :  { %v8841_v45 = vadd.f32 %v14150_v40, %v3143_v50  ;;  %v12563_v40 = vcombine.high %v2681_v3, %v2689_v11 }
 0x423   :  { %9116 = vmatpush2.bf16.msra.mxu1 %v12912_v57  ;;  %v2425_v57 = vld [vmem:[#allocation6 + $0xaa8] sm:$0xff] }
 0x424   :  { %9157 = vmatpush2.bf16.msra.mxu0 %v12146_v7  ;;  %9117 = vmatprep.subr.bf16.mxu1 %v12897_v63  ;;  %v2433_v7 = vld [vmem:[#allocation6 + $0xae8] sm:$0xff] }
 0x425   :  { %9158 = vmatprep.subr.bf16.mxu0 %v12131_v8  ;;  %v12579_v8 = vcombine.high %v2697_v61, %v2705_v62  ;;  %v12306_v36 = vcombine.low %v2425_v57, %v2433_v7 }
 0x427   :  { %9118 = vmatpush2.bf16.msra.mxu1 %v12896_v4 }
 0x428   :  { %9159 = vmatpush2.bf16.msra.mxu0 %v12130_v12  ;;  %9119 = vmatprep.subr.bf16.mxu1 %v12881_v15  ;;  %v12322_v12 = vcombine.low %v2441_v48, %v2449_v49  ;;  %v12578_v15 = vcombine.low %v2697_v61, %v2705_v62  ;;  %v2649_v48 = vld [vmem:[#allocation6 + $0x11a8] sm:$0xff] }
 0x429   :  { %9160 = vmatprep.subr.bf16.mxu0 %v12115_v51  ;;  %v12307_v51 = vcombine.high %v2425_v57, %v2433_v7  ;;  %v2657_v49 = vld [vmem:[#allocation6 + $0x11e8] sm:$0xff] }
 0x42a   :  { %v12531_v62 = vcombine.high %v2649_v48, %v2657_v49  ;;  %v2641_v57 = vld [vmem:[#allocation6 + $0x1168] sm:$0xff] }
 0x42b   :  { %9120 = vmatpush2.bf16.msra.mxu1 %v12880_v16  ;;  %v2417_v16 = vld [vmem:[#allocation6 + $0xa68] sm:$0xff] }
 0x42c   :  { %9161 = vmatpush2.bf16.msra.mxu0 %v12114_v55  ;;  %9121 = vmatprep.subr.bf16.mxu1 %v12865_v19  ;;  %v2665_v19 = vld [vmem:[#allocation6 + $0x1228] sm:$0xff]  ;;  %v12290_v50 = vcombine.low %v2409_v31, %v2417_v16 }
 0x42d   :  { %9162 = vmatprep.subr.bf16.mxu0 %v12099_v32  ;;  %v2673_v32 = vld [vmem:[#allocation6 + $0x1268] sm:$0xff] }
 0x42e   :  { %v12547_v17 = vcombine.high %v2665_v19, %v2673_v32 }
 0x42f   :  { %9122 = vmatpush2.bf16.msra.mxu1 %v12864_v37  ;;  %v12562_v37 = vcombine.low %v2681_v3, %v2689_v11  ;;  %v2361_v11 = vld [vmem:[#allocation6 + $0x8a8] sm:$0xff] }
 0x430   :  { %9163 = vmatpush2.bf16.msra.mxu0 %v12098_v27  ;;  %9173 = vmatprep.subr.bf16.mxu1 %v12339_v38  ;;  %v12291_v27 = vcombine.high %v2409_v31, %v2417_v16  ;;  %v2609_v31 = vld [vmem:[#allocation6 + $0x1068] sm:$0xff] }
 0x431   :  { %9214 = vmatprep.subr.bf16.mxu0 %v12595_v43  ;;  %v2401_v43 = vld [vmem:[#allocation6 + $0x9e8] sm:$0xff] }
 0x432   :  { %v8879_v63 = vpop.f32.mrf.mxu1  ;;  %9124 = vmatmul.mubr.bf16.vlgmr.msra.gmra.mxu1 %v14050_v26  ;;  %v12275_v61 = vcombine.high %v2393_v29, %v2401_v43  ;;  %v12274_v7 = vcombine.low %v2393_v29, %v2401_v43  ;;  %v2569_v43 = vld [vmem:[#allocation6 + $0xf28] sm:$0xff] }
 0x433   :  { %v8880_v9 = vadd.f32 %v8879_v63, %v8839_v1  ;;  %v8920_v4 = vpop.f32.mrf.mxu0  ;;  %9165 = vmatmul.mubr.bf16.vlgmr.msra.gmra.mxu0 %v14002_v20  ;;  %9174 = vmatpush1.bf16.msra.mxu1 %v12338_v23  ;;  %v12546_v23 = vcombine.low %v2665_v19, %v2673_v32  ;;  %v2385_v1 = vld [vmem:[#allocation6 + $0x968] sm:$0xff]  ;;  %v12530_v63 = vcombine.low %v2649_v48, %v2657_v49 }
 0x434   :  { %9205 = vmatprep.mubr.bf16.mxu1 %v14007_v53  ;;  %9215 = vmatpush1.bf16.msra.mxu0 %v12594_v0  ;;  %v8881_v6 = vpop.f32.mrf.mxu1  ;;  %v2377_v0 = vld [vmem:[#allocation6 + $0x928] sm:$0xff] }
 0x435   :  { %v14159_v42 = vadd.f32 %v8920_v4, %v8880_v9  ;;  %9246 = vmatprep.mubr.bf16.mxu0 %v14033_v25  ;;  %v8882_v21 = vadd.f32 %v8881_v6, %v8841_v45  ;;  %v8922_v22 = vpop.f32.mrf.mxu0  ;;  %9175 = vmatprep.subr.bf16.mxu1 %v12323_v5  ;;  %v2633_v5 = vld [vmem:[#allocation6 + $0x1128] sm:$0xff] }
 0x436   :  { %v8883_v55 = vpop.f32.mrf.mxu1  ;;  %9216 = vmatprep.subr.bf16.mxu0 %v12579_v8  ;;  %v12259_v8 = vcombine.high %v2377_v0, %v2385_v1  ;;  %v12515_v3 = vcombine.high %v2633_v5, %v2641_v57  ;;  %v2369_v45 = vld [vmem:[#allocation6 + $0x8e8] sm:$0xff]  ;;  %v12514_v6 = vcombine.low %v2633_v5, %v2641_v57 }
 0x437   :  { %v14162_v33 = vadd.f32 %v8922_v22, %v8882_v21  ;;  %v8924_v35 = vpop.f32.mrf.mxu0  ;;  %9176 = vmatpush1.bf16.msra.mxu1 %v12322_v12  ;;  %v2617_v9 = vld [vmem:[#allocation6 + $0x10a8] sm:$0xff]  ;;  %v12258_v12 = vcombine.low %v2377_v0, %v2385_v1  ;;  %v12242_v16 = vcombine.low %v2361_v11, %v2369_v45 }
 0x438   :  { %9217 = vmatpush1.bf16.msra.mxu0 %v12578_v15  ;;  %v8884_v10 = vpop.f32.mrf.mxu1  ;;  %9177 = vmatprep.subr.bf16.mxu1 %v12307_v51  ;;  %v2625_v4 = vld [vmem:[#allocation6 + $0x10e8] sm:$0xff]  ;;  %v12243_v15 = vcombine.high %v2361_v11, %v2369_v45 }
 0x439   :  { %v8925_v38 = vpop.f32.mrf.mxu0  ;;  %9218 = vmatprep.subr.bf16.mxu0 %v12563_v40  ;;  %v12499_v51 = vcombine.high %v2617_v9, %v2625_v4  ;;  %v2345_v21 = vld [vmem:[#allocation6 + $0x828] sm:$0xff]  ;;  %v12498_v55 = vcombine.low %v2617_v9, %v2625_v4 }
 0x43a   :  { %v2353_v22 = vld [vmem:[#allocation6 + $0x868] sm:$0xff] }
 0x43b   :  { %9178 = vmatpush1.bf16.msra.mxu1 %v12306_v36  ;;  %v2601_v40 = vld [vmem:[#allocation6 + $0x1028] sm:$0xff]  ;;  %v12227_v19 = vcombine.high %v2345_v21, %v2353_v22 }
 0x43c   :  { %9219 = vmatpush1.bf16.msra.mxu0 %v12562_v37  ;;  %9179 = vmatprep.subr.bf16.mxu1 %v12291_v27  ;;  %v12483_v32 = vcombine.high %v2601_v40, %v2609_v31  ;;  %v2585_v35 = vld [vmem:[#allocation6 + $0xfa8] sm:$0xff]  ;;  %v12226_v27 = vcombine.low %v2345_v21, %v2353_v22  ;;  %v12482_v38 = vcombine.low %v2601_v40, %v2609_v31 }
 0x43d   :  { %9220 = vmatprep.subr.bf16.mxu0 %v12547_v17  ;;  %v2593_v36 = vld [vmem:[#allocation6 + $0xfe8] sm:$0xff] }
 0x43e   :  { %v2841_v10 = vld [vmem:[#allocation6 + $0x17a8] sm:$0xff]  ;;  %v12467_v17 = vcombine.high %v2585_v35, %v2593_v36 }
 0x43f   :  { %9180 = vmatpush1.bf16.msra.mxu1 %v12290_v50  ;;  %v2849_v37 = vld [vmem:[#allocation6 + $0x17e8] sm:$0xff] }
 0x440   :  { %9221 = vmatpush1.bf16.msra.mxu0 %v12546_v23  ;;  %9181 = vmatprep.subr.bf16.mxu1 %v12275_v61  ;;  %v12723_v29 = vcombine.high %v2841_v10, %v2849_v37  ;;  %v2577_v48 = vld [vmem:[#allocation6 + $0xf68] sm:$0xff]  ;;  %v12466_v23 = vcombine.low %v2585_v35, %v2593_v36  ;;  %v12722_v61 = vcombine.low %v2841_v10, %v2849_v37 }
 0x441   :  { %9222 = vmatprep.subr.bf16.mxu0 %v12531_v62  ;;  %v2825_v49 = vld [vmem:[#allocation6 + $0x1728] sm:$0xff]  ;;  %v12451_v62 = vcombine.high %v2569_v43, %v2577_v48 }
 0x442   :  { %v2833_v50 = vld [vmem:[#allocation6 + $0x1768] sm:$0xff] }
 0x443   :  { %9182 = vmatpush1.bf16.msra.mxu1 %v12274_v7  ;;  %v12707_v0 = vcombine.high %v2825_v49, %v2833_v50  ;;  %v2553_v1 = vld [vmem:[#allocation6 + $0xea8] sm:$0xff] }
 0x444   :  { %9223 = vmatpush1.bf16.msra.mxu0 %v12530_v63  ;;  %9183 = vmatprep.subr.bf16.mxu1 %v12259_v8  ;;  %v2561_v5 = vld [vmem:[#allocation6 + $0xee8] sm:$0xff]  ;;  %v12450_v63 = vcombine.low %v2569_v43, %v2577_v48  ;;  %v12706_v8 = vcombine.low %v2825_v49, %v2833_v50 }
 0x445   :  { %9224 = vmatprep.subr.bf16.mxu0 %v12515_v3  ;;  %v2809_v57 = vld [vmem:[#allocation6 + $0x16a8] sm:$0xff]  ;;  %v12435_v3 = vcombine.high %v2553_v1, %v2561_v5 }
 0x446   :  { %v2817_v7 = vld [vmem:[#allocation6 + $0x16e8] sm:$0xff] }
 0x447   :  { %9184 = vmatpush1.bf16.msra.mxu1 %v12258_v12  ;;  %v12691_v11 = vcombine.high %v2809_v57, %v2817_v7  ;;  %v2537_v45 = vld [vmem:[#allocation6 + $0xe28] sm:$0xff] }
 0x448   :  { %9225 = vmatpush1.bf16.msra.mxu0 %v12514_v6  ;;  %9185 = vmatprep.subr.bf16.mxu1 %v12243_v15  ;;  %v2545_v9 = vld [vmem:[#allocation6 + $0xe68] sm:$0xff]  ;;  %v12434_v6 = vcombine.low %v2553_v1, %v2561_v5  ;;  %v12690_v15 = vcombine.low %v2809_v57, %v2817_v7 }
 0x449   :  { %9226 = vmatprep.subr.bf16.mxu0 %v12499_v51  ;;  %v2793_v4 = vld [vmem:[#allocation6 + $0x1628] sm:$0xff]  ;;  %v12419_v51 = vcombine.high %v2537_v45, %v2545_v9 }
 0x44a   :  { %v2801_v12 = vld [vmem:[#allocation6 + $0x1668] sm:$0xff] }
 0x44b   :  { %9186 = vmatpush1.bf16.msra.mxu1 %v12242_v16  ;;  %v12675_v21 = vcombine.high %v2793_v4, %v2801_v12  ;;  %v2521_v22 = vld [vmem:[#allocation6 + $0xda8] sm:$0xff] }
 0x44c   :  { %9227 = vmatpush1.bf16.msra.mxu0 %v12498_v55  ;;  %9187 = vmatprep.subr.bf16.mxu1 %v12227_v19  ;;  %v2529_v40 = vld [vmem:[#allocation6 + $0xde8] sm:$0xff]  ;;  %v12418_v55 = vcombine.low %v2537_v45, %v2545_v9  ;;  %v12674_v19 = vcombine.low %v2793_v4, %v2801_v12  ;;  %v2202_v12 = vld [vmem:[#allocation6 + $0x3b0] sm:$0xff] }
 0x44d   :  { %9228 = vmatprep.subr.bf16.mxu0 %v12483_v32  ;;  %v2777_v31 = vld [vmem:[#allocation6 + $0x15a8] sm:$0xff]  ;;  %v12403_v32 = vcombine.high %v2521_v22, %v2529_v40 }
 0x44e   :  { %v2785_v16 = vld [vmem:[#allocation6 + $0x15e8] sm:$0xff] }
 0x44f   :  { %9188 = vmatpush1.bf16.msra.mxu1 %v12226_v27  ;;  %v12659_v35 = vcombine.high %v2777_v31, %v2785_v16  ;;  %v2505_v36 = vld [vmem:[#allocation6 + $0xd28] sm:$0xff] }
 0x450   :  { %9229 = vmatpush1.bf16.msra.mxu0 %v12482_v38  ;;  %9189 = vmatprep.subr.bf16.mxu1 %v12467_v17  ;;  %v2513_v10 = vld [vmem:[#allocation6 + $0xd68] sm:$0xff]  ;;  %v12402_v38 = vcombine.low %v2521_v22, %v2529_v40  ;;  %v12658_v17 = vcombine.low %v2777_v31, %v2785_v16 }
 0x451   :  { %9230 = vmatprep.subr.bf16.mxu0 %v12723_v29  ;;  %v2761_v37 = vld [vmem:[#allocation6 + $0x1528] sm:$0xff]  ;;  %v12387_v29 = vcombine.high %v2505_v36, %v2513_v10 }
 0x452   :  { %v2769_v27 = vld [vmem:[#allocation6 + $0x1568] sm:$0xff] }
 0x453   :  { %9190 = vmatpush2.bf16.msra.mxu1 %v12466_v23  ;;  %v12643_v43 = vcombine.high %v2761_v37, %v2769_v27  ;;  %v2489_v48 = vld [vmem:[#allocation6 + $0xca8] sm:$0xff] }
 0x454   :  { %9231 = vmatpush2.bf16.msra.mxu0 %v12722_v61  ;;  %9191 = vmatprep.subr.bf16.mxu1 %v12451_v62  ;;  %v2497_v49 = vld [vmem:[#allocation6 + $0xce8] sm:$0xff]  ;;  %v12386_v61 = vcombine.low %v2505_v36, %v2513_v10  ;;  %v12642_v62 = vcombine.low %v2761_v37, %v2769_v27 }
 0x455   :  { %9232 = vmatprep.subr.bf16.mxu0 %v12707_v0  ;;  %v2745_v50 = vld [vmem:[#allocation6 + $0x14a8] sm:$0xff]  ;;  %v12371_v0 = vcombine.high %v2489_v48, %v2497_v49 }
 0x456   :  { %v2753_v23 = vld [vmem:[#allocation6 + $0x14e8] sm:$0xff] }
 0x457   :  { %9192 = vmatpush2.bf16.msra.mxu1 %v12450_v63  ;;  %v12627_v1 = vcombine.high %v2745_v50, %v2753_v23  ;;  %v2473_v5 = vld [vmem:[#allocation6 + $0xc28] sm:$0xff] }
 0x458   :  { %9233 = vmatpush2.bf16.msra.mxu0 %v12706_v8  ;;  %9193 = vmatprep.subr.bf16.mxu1 %v12435_v3  ;;  %v2481_v57 = vld [vmem:[#allocation6 + $0xc68] sm:$0xff]  ;;  %v12370_v8 = vcombine.low %v2489_v48, %v2497_v49  ;;  %v12626_v3 = vcombine.low %v2745_v50, %v2753_v23 }
 0x459   :  { %9234 = vmatprep.subr.bf16.mxu0 %v12691_v11  ;;  %v2729_v7 = vld [vmem:[#allocation6 + $0x1428] sm:$0xff]  ;;  %v12355_v11 = vcombine.high %v2473_v5, %v2481_v57 }
 0x45a   :  { %v2737_v63 = vld [vmem:[#allocation6 + $0x1468] sm:$0xff] }
 0x45b   :  { %9194 = vmatpush2.bf16.msra.mxu1 %v12434_v6  ;;  %v12611_v45 = vcombine.high %v2729_v7, %v2737_v63  ;;  %v2969_v9 = vld [vmem:[#allocation6 + $0x1ba8] sm:$0xff]  ;;  %v2210_v6 = vld [vmem:[#allocation6 + $0x3f0] sm:$0xff] }
 0x45c   :  { %9235 = vmatpush2.bf16.msra.mxu0 %v12690_v15  ;;  %9195 = vmatprep.subr.bf16.mxu1 %v12419_v51  ;;  %v2977_v4 = vld [vmem:[#allocation6 + $0x1be8] sm:$0xff]  ;;  %v12354_v15 = vcombine.low %v2473_v5, %v2481_v57  ;;  %v12610_v51 = vcombine.low %v2729_v7, %v2737_v63  ;;  %v12085_v22 = vcombine.high %v2202_v12, %v2210_v6  ;;  %v2154_v57 = vld [vmem:[#allocation6 + $0x230] sm:$0xff] }
 0x45d   :  { %9236 = vmatprep.subr.bf16.mxu0 %v12675_v21  ;;  %v12851_v21 = vcombine.high %v2969_v9, %v2977_v4  ;;  %v2953_v40 = vld [vmem:[#allocation6 + $0x1b28] sm:$0xff]  ;;  %v12850_v16 = vcombine.low %v2969_v9, %v2977_v4  ;;  %v2162_v7 = vld [vmem:[#allocation6 + $0x270] sm:$0xff] }
 0x45e   :  { %v2961_v31 = vld [vmem:[#allocation6 + $0x1b68] sm:$0xff]  ;;  %v12037_v9 = vcombine.high %v2154_v57, %v2162_v7 }
 0x45f   :  { %9196 = vmatpush2.bf16.msra.mxu1 %v12418_v55  ;;  %v2186_v55 = vld [vmem:[#allocation6 + $0x330] sm:$0xff]  ;;  %v2937_v36 = vld [vmem:[#allocation6 + $0x1aa8] sm:$0xff]  ;;  %v12834_v48 = vcombine.low %v2953_v40, %v2961_v31 }
 0x460   :  { %9237 = vmatpush2.bf16.msra.mxu0 %v12674_v19  ;;  %9197 = vmatprep.subr.bf16.mxu1 %v12403_v32  ;;  %v2194_v19 = vld [vmem:[#allocation6 + $0x370] sm:$0xff]  ;;  %v12084_v32 = vcombine.low %v2202_v12, %v2210_v6  ;;  %v2945_v10 = vld [vmem:[#allocation6 + $0x1ae8] sm:$0xff] }
 0x461   :  { %9238 = vmatprep.subr.bf16.mxu0 %v12659_v35  ;;  %v12835_v35 = vcombine.high %v2953_v40, %v2961_v31  ;;  %v12069_v27 = vcombine.high %v2186_v55, %v2194_v19  ;;  %v12068_v50 = vcombine.low %v2186_v55, %v2194_v19  ;;  %v12819_v23 = vcombine.high %v2937_v36, %v2945_v10  ;;  %v2905_v4 = vld [vmem:[#allocation6 + $0x19a8] sm:$0xff]  ;;  %v2138_v6 = vld [vmem:[#allocation6 + $0x1b0] sm:$0xff] }
 0x462   :  { %v2913_v12 = vld [vmem:[#allocation6 + $0x19e8] sm:$0xff]  ;;  %v2122_v55 = vld [vmem:[#allocation6 + $0x130] sm:$0xff] }
 0x463   :  { %9198 = vmatpush2.bf16.msra.mxu1 %v12402_v38  ;;  %v2170_v38 = vld [vmem:[#allocation6 + $0x2b0] sm:$0xff]  ;;  %v2889_v31 = vld [vmem:[#allocation6 + $0x1928] sm:$0xff] }
 0x464   :  { %9239 = vmatpush2.bf16.msra.mxu0 %v12658_v17  ;;  %9199 = vmatprep.subr.bf16.mxu1 %v12387_v29  ;;  %v2178_v17 = vld [vmem:[#allocation6 + $0x2f0] sm:$0xff] }
 0x465   :  { %9240 = vmatprep.subr.bf16.mxu0 %v12643_v43  ;;  %v2130_v19 = vld [vmem:[#allocation6 + $0x170] sm:$0xff] }
 0x467   :  { %9200 = vmatpush2.bf16.msra.mxu1 %v12386_v61 }
 0x468   :  { %9241 = vmatpush2.bf16.msra.mxu0 %v12642_v62  ;;  %9201 = vmatprep.subr.bf16.mxu1 %v12371_v0  ;;  %v2921_v0 = vld [vmem:[#allocation6 + $0x1a28] sm:$0xff] }
 0x469   :  { %9242 = vmatprep.subr.bf16.mxu0 %v12627_v1  ;;  %v2929_v1 = vld [vmem:[#allocation6 + $0x1a68] sm:$0xff] }
 0x46b   :  { %9202 = vmatpush2.bf16.msra.mxu1 %v12370_v8  ;;  %v12818_v8 = vcombine.low %v2937_v36, %v2945_v10  ;;  %v12005_v10 = vcombine.high %v2122_v55, %v2130_v19 }
 0x46c   :  { %9243 = vmatpush2.bf16.msra.mxu0 %v12626_v3  ;;  %9203 = vmatprep.subr.bf16.mxu1 %v12355_v11  ;;  %v12052_v11 = vcombine.low %v2170_v38, %v2178_v17 }
 0x46d   :  { %9244 = vmatprep.subr.bf16.mxu0 %v12611_v45  ;;  %v12803_v45 = vcombine.high %v2921_v0, %v2929_v1 }
 0x46f   :  { %9204 = vmatpush2.bf16.msra.mxu1 %v12354_v15  ;;  %v2146_v15 = vld [vmem:[#allocation6 + $0x1f0] sm:$0xff] }
 0x470   :  { %9245 = vmatpush2.bf16.msra.mxu0 %v12610_v51  ;;  %9255 = vmatprep.subr.bf16.mxu1 %v12851_v21  ;;  %v12802_v51 = vcombine.low %v2921_v0, %v2929_v1  ;;  %v12036_v21 = vcombine.low %v2154_v57, %v2162_v7  ;;  %v12021_v40 = vcombine.high %v2138_v6, %v2146_v15  ;;  %v2865_v0 = vld [vmem:[#allocation6 + $0x1868] sm:$0xff]  ;;  %v2090_v1 = vld [vmem:[#allocation6 + $0x30] sm:$0xff] }
 0x471   :  { %9296 = vmatprep.subr.bf16.mxu0 %v12085_v22  ;;  %v12787_v22 = vcombine.high %v2905_v4, %v2913_v12 }
 0x472   :  { %v8961_v37 = vpop.f32.mrf.mxu1  ;;  %9206 = vmatmul.mubr.bf16.vlgmr.msra.gmra.mxu1 %v14015_v60 }
 0x473   :  { %v14166_v29 = vadd.f32 %v8961_v37, %v14159_v42  ;;  %v14168_v43 = vpop.f32.mrf.mxu0  ;;  %9247 = vmatmul.mubr.bf16.vlgmr.msra.gmra.mxu0 %v14035_v59  ;;  %9256 = vmatpush1.bf16.msra.mxu1 %v12850_v16  ;;  %v12053_v42 = vcombine.high %v2170_v38, %v2178_v17  ;;  %v2897_v16 = vld [vmem:[#allocation6 + $0x1968] sm:$0xff]  ;;  %v2106_v38 = vld [vmem:[#allocation6 + $0xb0] sm:$0xff] }
 0x474   :  { %9287 = vmatprep.mubr.bf16.mxu1 %v14048_v13  ;;  %9297 = vmatpush1.bf16.msra.mxu0 %v12084_v32  ;;  %v8963_v49 = vpop.f32.mrf.mxu1  ;;  %v12786_v32 = vcombine.low %v2905_v4, %v2913_v12  ;;  %v12771_v36 = vcombine.high %v2889_v31, %v2897_v16  ;;  %v2873_v37 = vld [vmem:[#allocation6 + $0x18a8] sm:$0xff]  ;;  %v2114_v17 = vld [vmem:[#allocation6 + $0xf0] sm:$0xff] }
 0x475   :  { %9328 = vmatprep.mubr.bf16.mxu0 %v13978_v56  ;;  %v14174_v61 = vadd.f32 %v8963_v49, %v14162_v33  ;;  %v14176_v62 = vpop.f32.mrf.mxu0  ;;  %9257 = vmatprep.subr.bf16.mxu1 %v12835_v35  ;;  %v12020_v35 = vcombine.low %v2138_v6, %v2146_v15  ;;  %v12004_v49 = vcombine.low %v2122_v55, %v2130_v19  ;;  %v3081_v15 = vld [vmem:[#allocation6 + $0x1f28] sm:$0xff] }
 0x476   :  { %v8965_v5 = vpop.f32.mrf.mxu1  ;;  %9298 = vmatprep.subr.bf16.mxu0 %v12069_v27  ;;  %v2881_v27 = vld [vmem:[#allocation6 + $0x18e8] sm:$0xff]  ;;  %v11988_v7 = vcombine.low %v2106_v38, %v2114_v17 }
 0x477   :  { %v9006_v63 = vpop.f32.mrf.mxu0  ;;  %9258 = vmatpush1.bf16.msra.mxu1 %v12834_v48  ;;  %v12770_v48 = vcombine.low %v2889_v31, %v2897_v16  ;;  %v2098_v5 = vld [vmem:[#allocation6 + $0x70] sm:$0xff]  ;;  %v12754_v57 = vcombine.low %v2873_v37, %v2881_v27  ;;  %v3065_v19 = vld [vmem:[#allocation6 + $0x1ea8] sm:$0xff] }
 0x478   :  { %9299 = vmatpush1.bf16.msra.mxu0 %v12068_v50  ;;  %v8966_v3 = vpop.f32.mrf.mxu1  ;;  %9259 = vmatprep.subr.bf16.mxu1 %v12819_v23  ;;  %v12755_v50 = vcombine.high %v2873_v37, %v2881_v27  ;;  %v11989_v23 = vcombine.high %v2106_v38, %v2114_v17  ;;  %v11972_v4 = vcombine.low %v2090_v1, %v2098_v5  ;;  %v3049_v17 = vld [vmem:[#allocation6 + $0x1e28] sm:$0xff] }
 0x479   :  { %v9007_v33 = vpop.f32.mrf.mxu0  ;;  %9300 = vmatprep.subr.bf16.mxu0 %v12053_v42  ;;  %v2857_v42 = vld [vmem:[#allocation6 + $0x1828] sm:$0xff] }
 0x47a   :  { %v12739_v63 = vcombine.high %v2857_v42, %v2865_v0  ;;  %v3097_v3 = vld [vmem:[#allocation6 + $0x1fa8] sm:$0xff]  ;;  %v2338_v33 = vld [vmem:[#allocation6 + $0x7f0] sm:$0xff] }
 0x47b   :  { %9260 = vmatpush1.bf16.msra.mxu1 %v12818_v8  ;;  %v11973_v8 = vcombine.high %v2090_v1, %v2098_v5  ;;  %v3033_v5 = vld [vmem:[#allocation6 + $0x1da8] sm:$0xff] }
 0x47c   :  { %9301 = vmatpush1.bf16.msra.mxu0 %v12052_v11  ;;  %9261 = vmatprep.subr.bf16.mxu1 %v12803_v45  ;;  %v3105_v11 = vld [vmem:[#allocation6 + $0x1fe8] sm:$0xff]  ;;  %v2330_v45 = vld [vmem:[#allocation6 + $0x7b0] sm:$0xff] }
 0x47d   :  { %9302 = vmatprep.subr.bf16.mxu0 %v12037_v9  ;;  %v12738_v9 = vcombine.low %v2857_v42, %v2865_v0  ;;  %v12979_v12 = vcombine.high %v3097_v3, %v3105_v11  ;;  %v12213_v6 = vcombine.high %v2330_v45, %v2338_v33  ;;  %v12212_v31 = vcombine.low %v2330_v45, %v2338_v33  ;;  %v3017_v33 = vld [vmem:[#allocation6 + $0x1d28] sm:$0xff] }
 0x47f   :  { %9262 = vmatpush1.bf16.msra.mxu1 %v12802_v51  ;;  %v3089_v51 = vld [vmem:[#allocation6 + $0x1f68] sm:$0xff] }
 0x480   :  { %9303 = vmatpush1.bf16.msra.mxu0 %v12036_v21  ;;  %9263 = vmatprep.subr.bf16.mxu1 %v12787_v22  ;;  %v2314_v21 = vld [vmem:[#allocation6 + $0x730] sm:$0xff]  ;;  %v12963_v16 = vcombine.high %v3081_v15, %v3089_v51 }
 0x481   :  { %9304 = vmatprep.subr.bf16.mxu0 %v12021_v40  ;;  %v2322_v22 = vld [vmem:[#allocation6 + $0x770] sm:$0xff]  ;;  %v12978_v40 = vcombine.low %v3097_v3, %v3105_v11 }
 0x482   :  { %v12197_v55 = vcombine.high %v2314_v21, %v2322_v22  ;;  %v12196_v37 = vcombine.low %v2314_v21, %v2322_v22  ;;  %v3001_v22 = vld [vmem:[#allocation6 + $0x1ca8] sm:$0xff] }
 0x483   :  { %9264 = vmatpush1.bf16.msra.mxu1 %v12786_v32  ;;  %v3073_v32 = vld [vmem:[#allocation6 + $0x1ee8] sm:$0xff] }
 0x484   :  { %9305 = vmatpush1.bf16.msra.mxu0 %v12020_v35  ;;  %9265 = vmatprep.subr.bf16.mxu1 %v12771_v36  ;;  %v2298_v35 = vld [vmem:[#allocation6 + $0x6b0] sm:$0xff]  ;;  %v12947_v27 = vcombine.high %v3065_v19, %v3073_v32 }
 0x485   :  { %9306 = vmatprep.subr.bf16.mxu0 %v12005_v10  ;;  %v2306_v36 = vld [vmem:[#allocation6 + $0x6f0] sm:$0xff]  ;;  %v12962_v10 = vcombine.low %v3081_v15, %v3089_v51 }
 0x486   :  { %v12181_v38 = vcombine.high %v2298_v35, %v2306_v36  ;;  %v12180_v42 = vcombine.low %v2298_v35, %v2306_v36  ;;  %v2985_v36 = vld [vmem:[#allocation6 + $0x1c28] sm:$0xff] }
 0x487   :  { %9266 = vmatpush1.bf16.msra.mxu1 %v12770_v48  ;;  %v3057_v48 = vld [vmem:[#allocation6 + $0x1e68] sm:$0xff] }
 0x488   :  { %9307 = vmatpush1.bf16.msra.mxu0 %v12004_v49  ;;  %9267 = vmatprep.subr.bf16.mxu1 %v12755_v50  ;;  %v2282_v49 = vld [vmem:[#allocation6 + $0x630] sm:$0xff]  ;;  %v12931_v0 = vcombine.high %v3049_v17, %v3057_v48 }
 0x489   :  { %9308 = vmatprep.subr.bf16.mxu0 %v11989_v23  ;;  %v2290_v50 = vld [vmem:[#allocation6 + $0x670] sm:$0xff]  ;;  %v12946_v23 = vcombine.low %v3065_v19, %v3073_v32 }
 0x48a   :  { %v12165_v1 = vcombine.high %v2282_v49, %v2290_v50  ;;  %v12164_v3 = vcombine.low %v2282_v49, %v2290_v50  ;;  %v2458_v50 = vld [vmem:[#allocation6 + $0xbb0] sm:$0xff] }
 0x48b   :  { %9268 = vmatpush1.bf16.msra.mxu1 %v12754_v57  ;;  %v3041_v57 = vld [vmem:[#allocation6 + $0x1de8] sm:$0xff] }
 0x48c   :  { %9309 = vmatpush1.bf16.msra.mxu0 %v11988_v7  ;;  %9269 = vmatprep.subr.bf16.mxu1 %v12739_v63  ;;  %v2266_v7 = vld [vmem:[#allocation6 + $0x5b0] sm:$0xff]  ;;  %v12915_v11 = vcombine.high %v3033_v5, %v3041_v57 }
 0x48d   :  { %9310 = vmatprep.subr.bf16.mxu0 %v11973_v8  ;;  %v2274_v63 = vld [vmem:[#allocation6 + $0x5f0] sm:$0xff]  ;;  %v12930_v8 = vcombine.low %v3049_v17, %v3057_v48 }
 0x48e   :  { %v12149_v45 = vcombine.high %v2266_v7, %v2274_v63  ;;  %v12148_v15 = vcombine.low %v2266_v7, %v2274_v63 }
 0x48f   :  { %9270 = vmatpush1.bf16.msra.mxu1 %v12738_v9  ;;  %v3025_v9 = vld [vmem:[#allocation6 + $0x1d68] sm:$0xff] }
 0x490   :  { %9311 = vmatpush1.bf16.msra.mxu0 %v11972_v4  ;;  %9271 = vmatprep.subr.bf16.mxu1 %v12979_v12  ;;  %v2250_v4 = vld [vmem:[#allocation6 + $0x530] sm:$0xff]  ;;  %v12899_v51 = vcombine.high %v3017_v33, %v3025_v9 }
 0x491   :  { %9312 = vmatprep.subr.bf16.mxu0 %v12213_v6  ;;  %v2258_v12 = vld [vmem:[#allocation6 + $0x570] sm:$0xff]  ;;  %v12914_v6 = vcombine.low %v3033_v5, %v3041_v57 }
 0x492   :  { %v12133_v21 = vcombine.high %v2250_v4, %v2258_v12  ;;  %v12132_v19 = vcombine.low %v2250_v4, %v2258_v12  ;;  %v2706_v4 = vld [vmem:[#allocation6 + $0x1370] sm:$0xff] }
 0x493   :  { %9272 = vmatpush2.bf16.msra.mxu1 %v12978_v40  ;;  %v3009_v40 = vld [vmem:[#allocation6 + $0x1ce8] sm:$0xff] }
 0x494   :  { %9313 = vmatpush2.bf16.msra.mxu0 %v12212_v31  ;;  %9273 = vmatprep.subr.bf16.mxu1 %v12963_v16  ;;  %v2234_v31 = vld [vmem:[#allocation6 + $0x4b0] sm:$0xff]  ;;  %v12883_v32 = vcombine.high %v3001_v22, %v3009_v40 }
 0x495   :  { %9314 = vmatprep.subr.bf16.mxu0 %v12197_v55  ;;  %v2242_v16 = vld [vmem:[#allocation6 + $0x4f0] sm:$0xff]  ;;  %v12898_v55 = vcombine.low %v3017_v33, %v3025_v9 }
 0x496   :  { %v12117_v35 = vcombine.high %v2234_v31, %v2242_v16  ;;  %v12116_v17 = vcombine.low %v2234_v31, %v2242_v16  ;;  %v2698_v9 = vld [vmem:[#allocation6 + $0x1330] sm:$0xff] }
 0x497   :  { %9274 = vmatpush2.bf16.msra.mxu1 %v12962_v10  ;;  %v2993_v10 = vld [vmem:[#allocation6 + $0x1c68] sm:$0xff]  ;;  %v2682_v31 = vld [vmem:[#allocation6 + $0x12b0] sm:$0xff] }
 0x498   :  { %9315 = vmatpush2.bf16.msra.mxu0 %v12196_v37  ;;  %9275 = vmatprep.subr.bf16.mxu1 %v12947_v27  ;;  %v2218_v37 = vld [vmem:[#allocation6 + $0x430] sm:$0xff]  ;;  %v12867_v48 = vcombine.high %v2985_v36, %v2993_v10  ;;  %v12866_v5 = vcombine.low %v2985_v36, %v2993_v10  ;;  %v12580_v36 = vcombine.low %v2698_v9, %v2706_v4 }
 0x499   :  { %9316 = vmatprep.subr.bf16.mxu0 %v12181_v38  ;;  %v2226_v27 = vld [vmem:[#allocation6 + $0x470] sm:$0xff]  ;;  %v12882_v38 = vcombine.low %v3001_v22, %v3009_v40  ;;  %v12581_v40 = vcombine.high %v2698_v9, %v2706_v4 }
 0x49a   :  { %v12101_v49 = vcombine.high %v2218_v37, %v2226_v27  ;;  %v12100_v57 = vcombine.low %v2218_v37, %v2226_v27  ;;  %v2690_v16 = vld [vmem:[#allocation6 + $0x12f0] sm:$0xff] }
 0x49b   :  { %9276 = vmatpush2.bf16.msra.mxu1 %v12946_v23  ;;  %v2466_v23 = vld [vmem:[#allocation6 + $0xbf0] sm:$0xff] }
 0x49c   :  { %9317 = vmatpush2.bf16.msra.mxu0 %v12180_v42  ;;  %9277 = vmatprep.subr.bf16.mxu1 %v12931_v0  ;;  %v14178_v42 = vld [vmem:[#allocation7 + $0x8] sm:$0xff]  ;;  %v2714_v0 = vld [vmem:[#allocation6 + $0x13b0] sm:$0xff]  ;;  %v12341_v7 = vcombine.high %v2458_v50, %v2466_v23  ;;  %v12340_v33 = vcombine.low %v2458_v50, %v2466_v23 }
 0x49d   :  { %9318 = vmatprep.subr.bf16.mxu0 %v12165_v1  ;;  %v2722_v1 = vld [vmem:[#allocation6 + $0x13f0] sm:$0xff]  ;;  %v3147_v63 = vrot.slane %v14178_v42, %v13982_v34 }
 0x49e   :  { %v12596_v12 = vcombine.low %v2714_v0, %v2722_v1  ;;  %v2666_v50 = vld [vmem:[#allocation6 + $0x1230] sm:$0xff] }
 0x49f   :  { %9278 = vmatpush2.bf16.msra.mxu1 %v12930_v8  ;;  %v12597_v8 = vcombine.high %v2714_v0, %v2722_v1  ;;  %v2674_v23 = vld [vmem:[#allocation6 + $0x1270] sm:$0xff] }
 0x4a0   :  { %9319 = vmatpush2.bf16.msra.mxu0 %v12164_v3  ;;  %9279 = vmatprep.subr.bf16.mxu1 %v12915_v11  ;;  %v2442_v3 = vld [vmem:[#allocation6 + $0xb30] sm:$0xff] }
 0x4a1   :  { %9320 = vmatprep.subr.bf16.mxu0 %v12149_v45  ;;  %v2450_v11 = vld [vmem:[#allocation6 + $0xb70] sm:$0xff]  ;;  %v3151_v45 = vrot.slane %v14178_v42, %v13966_v47 }
 0x4a2   :  { %v2658_v9 = vld [vmem:[#allocation6 + $0x11f0] sm:$0xff] }
 0x4a3   :  { %9280 = vmatpush2.bf16.msra.mxu1 %v12914_v6  ;;  %v9003_v6 = vadd.f32 %v14168_v43, %v3147_v63 }
 0x4a4   :  { %9321 = vmatpush2.bf16.msra.mxu0 %v12148_v15  ;;  %9281 = vmatprep.subr.bf16.mxu1 %v12899_v51  ;;  %v12325_v15 = vcombine.high %v2442_v3, %v2450_v11  ;;  %v2426_v51 = vld [vmem:[#allocation6 + $0xab0] sm:$0xff] }
 0x4a5   :  { %9322 = vmatprep.subr.bf16.mxu0 %v12133_v21  ;;  %v2434_v21 = vld [vmem:[#allocation6 + $0xaf0] sm:$0xff] }
 0x4a6   :  { %v12309_v10 = vcombine.high %v2426_v51, %v2434_v21 }
 0x4a7   :  { %9282 = vmatpush2.bf16.msra.mxu1 %v12898_v55  ;;  %v9005_v55 = vadd.f32 %v14176_v62, %v3151_v45  ;;  %v12565_v62 = vcombine.high %v2682_v31, %v2690_v16  ;;  %v2402_v45 = vld [vmem:[#allocation6 + $0x9f0] sm:$0xff] }
 0x4a8   :  { %9323 = vmatpush2.bf16.msra.mxu0 %v12132_v19  ;;  %9283 = vmatprep.subr.bf16.mxu1 %v12883_v32 }
 0x4a9   :  { %9324 = vmatprep.subr.bf16.mxu0 %v12117_v35  ;;  %v12324_v35 = vcombine.low %v2442_v3, %v2450_v11  ;;  %v12549_v3 = vcombine.high %v2666_v50, %v2674_v23  ;;  %v2394_v11 = vld [vmem:[#allocation6 + $0x9b0] sm:$0xff] }
 0x4ab   :  { %9284 = vmatpush2.bf16.msra.mxu1 %v12882_v38 }
 0x4ac   :  { %9325 = vmatpush2.bf16.msra.mxu0 %v12116_v17  ;;  %9285 = vmatprep.subr.bf16.mxu1 %v12867_v48  ;;  %v2410_v17 = vld [vmem:[#allocation6 + $0xa30] sm:$0xff] }
 0x4ad   :  { %9326 = vmatprep.subr.bf16.mxu0 %v12101_v49  ;;  %v2418_v48 = vld [vmem:[#allocation6 + $0xa70] sm:$0xff] }
 0x4ae   :  { %v12293_v63 = vcombine.high %v2410_v17, %v2418_v48  ;;  %v12292_v4 = vcombine.low %v2410_v17, %v2418_v48  ;;  %v2346_v17 = vld [vmem:[#allocation6 + $0x830] sm:$0xff] }
 0x4af   :  { %9286 = vmatpush2.bf16.msra.mxu1 %v12866_v5  ;;  %v12308_v5 = vcombine.low %v2426_v51, %v2434_v21  ;;  %v2378_v51 = vld [vmem:[#allocation6 + $0x930] sm:$0xff] }
 0x4b0   :  { %9327 = vmatpush2.bf16.msra.mxu0 %v12100_v57  ;;  %9337 = vmatprep.subr.bf16.mxu1 %v12341_v7  ;;  %v12564_v7 = vcombine.low %v2682_v31, %v2690_v16  ;;  %v2386_v21 = vld [vmem:[#allocation6 + $0x970] sm:$0xff]  ;;  %v12276_v31 = vcombine.low %v2394_v11, %v2402_v45 }
 0x4b1   :  { %9378 = vmatprep.subr.bf16.mxu0 %v12597_v8  ;;  %v2354_v48 = vld [vmem:[#allocation6 + $0x870] sm:$0xff] }
 0x4b2   :  { %v9043_v22 = vpop.f32.mrf.mxu1  ;;  %9288 = vmatmul.mubr.bf16.vlgmr.msra.gmra.mxu1 %v14050_v26 }
 0x4b3   :  { %v9044_v19 = vadd.f32 %v9043_v22, %v9003_v6  ;;  %v9084_v32 = vpop.f32.mrf.mxu0  ;;  %9329 = vmatmul.mubr.bf16.vlgmr.msra.gmra.mxu0 %v14002_v20  ;;  %9338 = vmatpush1.bf16.msra.mxu1 %v12340_v33  ;;  %v2650_v33 = vld [vmem:[#allocation6 + $0x11b0] sm:$0xff]  ;;  %v12277_v6 = vcombine.high %v2394_v11, %v2402_v45  ;;  %v12228_v11 = vcombine.low %v2346_v17, %v2354_v48 }
 0x4b4   :  { %9369 = vmatprep.mubr.bf16.mxu1 %v14007_v53  ;;  %9379 = vmatpush1.bf16.msra.mxu0 %v12596_v12  ;;  %v9045_v43 = vpop.f32.mrf.mxu1  ;;  %v12548_v12 = vcombine.low %v2666_v50, %v2674_v23  ;;  %v2634_v22 = vld [vmem:[#allocation6 + $0x1130] sm:$0xff]  ;;  %v12532_v16 = vcombine.low %v2650_v33, %v2658_v9 }
 0x4b5   :  { %v14189_v37 = vadd.f32 %v9084_v32, %v9044_v19  ;;  %9410 = vmatprep.mubr.bf16.mxu0 %v14033_v25  ;;  %v9046_v27 = vadd.f32 %v9045_v43, %v9005_v55  ;;  %v9086_v38 = vpop.f32.mrf.mxu0  ;;  %9339 = vmatprep.subr.bf16.mxu1 %v12325_v15  ;;  %v12533_v15 = vcombine.high %v2650_v33, %v2658_v9  ;;  %v2362_v32 = vld [vmem:[#allocation6 + $0x8b0] sm:$0xff] }
 0x4b6   :  { %v9047_v49 = vpop.f32.mrf.mxu1  ;;  %9380 = vmatprep.subr.bf16.mxu0 %v12581_v40  ;;  %v2642_v40 = vld [vmem:[#allocation6 + $0x1170] sm:$0xff]  ;;  %v12261_v55 = vcombine.high %v2378_v51, %v2386_v21 }
 0x4b7   :  { %v14192_v0 = vadd.f32 %v9086_v38, %v9046_v27  ;;  %v9088_v1 = vpop.f32.mrf.mxu0  ;;  %9340 = vmatpush1.bf16.msra.mxu1 %v12324_v35  ;;  %v12517_v19 = vcombine.high %v2634_v22, %v2642_v40  ;;  %v2370_v35 = vld [vmem:[#allocation6 + $0x8f0] sm:$0xff]  ;;  %v12516_v27 = vcombine.low %v2634_v22, %v2642_v40 }
 0x4b8   :  { %9381 = vmatpush1.bf16.msra.mxu0 %v12580_v36  ;;  %v9048_v57 = vpop.f32.mrf.mxu1  ;;  %9341 = vmatprep.subr.bf16.mxu1 %v12309_v10  ;;  %v2618_v43 = vld [vmem:[#allocation6 + $0x10b0] sm:$0xff]  ;;  %v12260_v10 = vcombine.low %v2378_v51, %v2386_v21  ;;  %v12245_v38 = vcombine.high %v2362_v32, %v2370_v35  ;;  %v12244_v23 = vcombine.low %v2362_v32, %v2370_v35 }
 0x4b9   :  { %v9089_v8 = vpop.f32.mrf.mxu0  ;;  %9382 = vmatprep.subr.bf16.mxu0 %v12565_v62  ;;  %v2626_v36 = vld [vmem:[#allocation6 + $0x10f0] sm:$0xff] }
 0x4ba   :  { %v12501_v62 = vcombine.high %v2618_v43, %v2626_v36  ;;  %v2602_v49 = vld [vmem:[#allocation6 + $0x1030] sm:$0xff]  ;;  %v12500_v1 = vcombine.low %v2618_v43, %v2626_v36 }
 0x4bb   :  { %9342 = vmatpush1.bf16.msra.mxu1 %v12308_v5  ;;  %v2610_v50 = vld [vmem:[#allocation6 + $0x1070] sm:$0xff]  ;;  %v12229_v5 = vcombine.high %v2346_v17, %v2354_v48 }
 0x4bc   :  { %9383 = vmatpush1.bf16.msra.mxu0 %v12564_v7  ;;  %9343 = vmatprep.subr.bf16.mxu1 %v12293_v63  ;;  %v12485_v57 = vcombine.high %v2602_v49, %v2610_v50  ;;  %v2586_v7 = vld [vmem:[#allocation6 + $0xfb0] sm:$0xff]  ;;  %v12484_v45 = vcombine.low %v2602_v49, %v2610_v50 }
 0x4bd   :  { %9384 = vmatprep.subr.bf16.mxu0 %v12549_v3  ;;  %v2594_v63 = vld [vmem:[#allocation6 + $0xff0] sm:$0xff] }
 0x4be   :  { %v2842_v8 = vld [vmem:[#allocation6 + $0x17b0] sm:$0xff]  ;;  %v12469_v33 = vcombine.high %v2586_v7, %v2594_v63  ;;  %v12468_v51 = vcombine.low %v2586_v7, %v2594_v63 }
 0x4bf   :  { %9344 = vmatpush1.bf16.msra.mxu1 %v12292_v4  ;;  %v2850_v3 = vld [vmem:[#allocation6 + $0x17f0] sm:$0xff] }
 0x4c0   :  { %9385 = vmatpush1.bf16.msra.mxu0 %v12548_v12  ;;  %9345 = vmatprep.subr.bf16.mxu1 %v12277_v6  ;;  %v12725_v9 = vcombine.high %v2842_v8, %v2850_v3  ;;  %v2570_v4 = vld [vmem:[#allocation6 + $0xf30] sm:$0xff]  ;;  %v12724_v21 = vcombine.low %v2842_v8, %v2850_v3 }
 0x4c1   :  { %9386 = vmatprep.subr.bf16.mxu0 %v12533_v15  ;;  %v2578_v12 = vld [vmem:[#allocation6 + $0xf70] sm:$0xff] }
 0x4c2   :  { %v2826_v6 = vld [vmem:[#allocation6 + $0x1730] sm:$0xff]  ;;  %v12453_v22 = vcombine.high %v2570_v4, %v2578_v12  ;;  %v12452_v32 = vcombine.low %v2570_v4, %v2578_v12 }
 0x4c3   :  { %9346 = vmatpush1.bf16.msra.mxu1 %v12276_v31  ;;  %v2834_v15 = vld [vmem:[#allocation6 + $0x1770] sm:$0xff] }
 0x4c4   :  { %9387 = vmatpush1.bf16.msra.mxu0 %v12532_v16  ;;  %9347 = vmatprep.subr.bf16.mxu1 %v12261_v55  ;;  %v12709_v40 = vcombine.high %v2826_v6, %v2834_v15  ;;  %v2554_v31 = vld [vmem:[#allocation6 + $0xeb0] sm:$0xff]  ;;  %v12708_v35 = vcombine.low %v2826_v6, %v2834_v15 }
 0x4c5   :  { %9388 = vmatprep.subr.bf16.mxu0 %v12517_v19  ;;  %v2562_v16 = vld [vmem:[#allocation6 + $0xef0] sm:$0xff] }
 0x4c6   :  { %v2810_v55 = vld [vmem:[#allocation6 + $0x16b0] sm:$0xff]  ;;  %v12437_v43 = vcombine.high %v2554_v31, %v2562_v16  ;;  %v12436_v17 = vcombine.low %v2554_v31, %v2562_v16 }
 0x4c7   :  { %9348 = vmatpush1.bf16.msra.mxu1 %v12260_v10  ;;  %v2818_v19 = vld [vmem:[#allocation6 + $0x16f0] sm:$0xff] }
 0x4c8   :  { %9389 = vmatpush1.bf16.msra.mxu0 %v12516_v27  ;;  %9349 = vmatprep.subr.bf16.mxu1 %v12245_v38  ;;  %v12693_v36 = vcombine.high %v2810_v55, %v2818_v19  ;;  %v2538_v10 = vld [vmem:[#allocation6 + $0xe30] sm:$0xff]  ;;  %v12692_v48 = vcombine.low %v2810_v55, %v2818_v19 }
 0x4c9   :  { %9390 = vmatprep.subr.bf16.mxu0 %v12501_v62  ;;  %v2546_v27 = vld [vmem:[#allocation6 + $0xe70] sm:$0xff] }
 0x4ca   :  { %v2794_v38 = vld [vmem:[#allocation6 + $0x1630] sm:$0xff]  ;;  %v12421_v49 = vcombine.high %v2538_v10, %v2546_v27  ;;  %v12420_v7 = vcombine.low %v2538_v10, %v2546_v27 }
 0x4cb   :  { %9350 = vmatpush1.bf16.msra.mxu1 %v12244_v23  ;;  %v2802_v62 = vld [vmem:[#allocation6 + $0x1670] sm:$0xff] }
 0x4cc   :  { %9391 = vmatpush1.bf16.msra.mxu0 %v12500_v1  ;;  %9351 = vmatprep.subr.bf16.mxu1 %v12229_v5  ;;  %v12677_v50 = vcombine.high %v2794_v38, %v2802_v62  ;;  %v2522_v23 = vld [vmem:[#allocation6 + $0xdb0] sm:$0xff]  ;;  %v12676_v63 = vcombine.low %v2794_v38, %v2802_v62 }
 0x4cd   :  { %9392 = vmatprep.subr.bf16.mxu0 %v12485_v57  ;;  %v2530_v1 = vld [vmem:[#allocation6 + $0xdf0] sm:$0xff] }
 0x4ce   :  { %v2778_v5 = vld [vmem:[#allocation6 + $0x15b0] sm:$0xff]  ;;  %v12405_v8 = vcombine.high %v2522_v23, %v2530_v1  ;;  %v12404_v4 = vcombine.low %v2522_v23, %v2530_v1 }
 0x4cf   :  { %9352 = vmatpush1.bf16.msra.mxu1 %v12228_v11  ;;  %v2786_v57 = vld [vmem:[#allocation6 + $0x15f0] sm:$0xff] }
 0x4d0   :  { %9393 = vmatpush1.bf16.msra.mxu0 %v12484_v45  ;;  %9353 = vmatprep.subr.bf16.mxu1 %v12469_v33  ;;  %v12661_v3 = vcombine.high %v2778_v5, %v2786_v57  ;;  %v2506_v11 = vld [vmem:[#allocation6 + $0xd30] sm:$0xff]  ;;  %v12660_v12 = vcombine.low %v2778_v5, %v2786_v57 }
 0x4d1   :  { %9394 = vmatprep.subr.bf16.mxu0 %v12725_v9  ;;  %v2514_v45 = vld [vmem:[#allocation6 + $0xd70] sm:$0xff] }
 0x4d2   :  { %v2762_v33 = vld [vmem:[#allocation6 + $0x1530] sm:$0xff]  ;;  %v12389_v6 = vcombine.high %v2506_v11, %v2514_v45  ;;  %v12388_v31 = vcombine.low %v2506_v11, %v2514_v45  ;;  %v2195_v11 = vld [vmem:[#allocation6 + $0x378] sm:$0xff] }
 0x4d3   :  { %9354 = vmatpush2.bf16.msra.mxu1 %v12468_v51  ;;  %v2770_v9 = vld [vmem:[#allocation6 + $0x1570] sm:$0xff] }
 0x4d4   :  { %9395 = vmatpush2.bf16.msra.mxu0 %v12724_v21  ;;  %9355 = vmatprep.subr.bf16.mxu1 %v12453_v22  ;;  %v12645_v15 = vcombine.high %v2762_v33, %v2770_v9  ;;  %v2490_v51 = vld [vmem:[#allocation6 + $0xcb0] sm:$0xff]  ;;  %v12644_v16 = vcombine.low %v2762_v33, %v2770_v9 }
 0x4d5   :  { %9396 = vmatprep.subr.bf16.mxu0 %v12709_v40  ;;  %v2498_v21 = vld [vmem:[#allocation6 + $0xcf0] sm:$0xff] }
 0x4d6   :  { %v2746_v22 = vld [vmem:[#allocation6 + $0x14b0] sm:$0xff]  ;;  %v12373_v55 = vcombine.high %v2490_v51, %v2498_v21  ;;  %v12372_v10 = vcombine.low %v2490_v51, %v2498_v21  ;;  %v2179_v51 = vld [vmem:[#allocation6 + $0x2f8] sm:$0xff] }
 0x4d7   :  { %9356 = vmatpush2.bf16.msra.mxu1 %v12452_v32  ;;  %v2754_v40 = vld [vmem:[#allocation6 + $0x14f0] sm:$0xff] }
 0x4d8   :  { %9397 = vmatpush2.bf16.msra.mxu0 %v12708_v35  ;;  %9357 = vmatprep.subr.bf16.mxu1 %v12437_v43  ;;  %v12629_v19 = vcombine.high %v2746_v22, %v2754_v40  ;;  %v2474_v32 = vld [vmem:[#allocation6 + $0xc30] sm:$0xff]  ;;  %v12628_v27 = vcombine.low %v2746_v22, %v2754_v40 }
 0x4d9   :  { %9398 = vmatprep.subr.bf16.mxu0 %v12693_v36  ;;  %v2482_v35 = vld [vmem:[#allocation6 + $0xc70] sm:$0xff] }
 0x4da   :  { %v2730_v43 = vld [vmem:[#allocation6 + $0x1430] sm:$0xff]  ;;  %v12357_v38 = vcombine.high %v2474_v32, %v2482_v35  ;;  %v12356_v23 = vcombine.low %v2474_v32, %v2482_v35 }
 0x4db   :  { %9358 = vmatpush2.bf16.msra.mxu1 %v12436_v17  ;;  %v2738_v36 = vld [vmem:[#allocation6 + $0x1470] sm:$0xff] }
 0x4dc   :  { %9399 = vmatpush2.bf16.msra.mxu0 %v12692_v48  ;;  %9359 = vmatprep.subr.bf16.mxu1 %v12421_v49  ;;  %v12613_v62 = vcombine.high %v2730_v43, %v2738_v36  ;;  %v2970_v17 = vld [vmem:[#allocation6 + $0x1bb0] sm:$0xff]  ;;  %v2203_v49 = vld [vmem:[#allocation6 + $0x3b8] sm:$0xff]  ;;  %v12612_v1 = vcombine.low %v2730_v43, %v2738_v36 }
 0x4dd   :  { %9400 = vmatprep.subr.bf16.mxu0 %v12677_v50  ;;  %v2978_v48 = vld [vmem:[#allocation6 + $0x1bf0] sm:$0xff]  ;;  %v2211_v50 = vld [vmem:[#allocation6 + $0x3f8] sm:$0xff] }
 0x4de   :  { %v12853_v5 = vcombine.high %v2970_v17, %v2978_v48  ;;  %v12087_v57 = vcombine.high %v2203_v49, %v2211_v50  ;;  %v12086_v45 = vcombine.low %v2203_v49, %v2211_v50  ;;  %v2938_v9 = vld [vmem:[#allocation6 + $0x1ab0] sm:$0xff] }
 0x4df   :  { %9360 = vmatpush2.bf16.msra.mxu1 %v12420_v7  ;;  %v2954_v7 = vld [vmem:[#allocation6 + $0x1b30] sm:$0xff] }
 0x4e0   :  { %9401 = vmatpush2.bf16.msra.mxu0 %v12676_v63  ;;  %9361 = vmatprep.subr.bf16.mxu1 %v12405_v8  ;;  %v2962_v63 = vld [vmem:[#allocation6 + $0x1b70] sm:$0xff]  ;;  %v12852_v8 = vcombine.low %v2970_v17, %v2978_v48 }
 0x4e1   :  { %9402 = vmatprep.subr.bf16.mxu0 %v12661_v3  ;;  %v2187_v3 = vld [vmem:[#allocation6 + $0x338] sm:$0xff]  ;;  %v12837_v33 = vcombine.high %v2954_v7, %v2962_v63  ;;  %v12836_v40 = vcombine.low %v2954_v7, %v2962_v63  ;;  %v2922_v35 = vld [vmem:[#allocation6 + $0x1a30] sm:$0xff] }
 0x4e2   :  { %v2930_v43 = vld [vmem:[#allocation6 + $0x1a70] sm:$0xff] }
 0x4e3   :  { %9362 = vmatpush2.bf16.msra.mxu1 %v12404_v4  ;;  %v2946_v4 = vld [vmem:[#allocation6 + $0x1af0] sm:$0xff]  ;;  %v12805_v48 = vcombine.high %v2922_v35, %v2930_v43 }
 0x4e4   :  { %9403 = vmatpush2.bf16.msra.mxu0 %v12660_v12  ;;  %9363 = vmatprep.subr.bf16.mxu1 %v12389_v6  ;;  %v12071_v6 = vcombine.high %v2187_v3, %v2195_v11  ;;  %v2906_v50 = vld [vmem:[#allocation6 + $0x19b0] sm:$0xff] }
 0x4e5   :  { %9404 = vmatprep.subr.bf16.mxu0 %v12645_v15  ;;  %v2171_v15 = vld [vmem:[#allocation6 + $0x2b8] sm:$0xff] }
 0x4e7   :  { %9364 = vmatpush2.bf16.msra.mxu1 %v12388_v31 }
 0x4e8   :  { %9405 = vmatpush2.bf16.msra.mxu0 %v12644_v16  ;;  %9365 = vmatprep.subr.bf16.mxu1 %v12373_v55  ;;  %v12070_v16 = vcombine.low %v2187_v3, %v2195_v11  ;;  %v12821_v55 = vcombine.high %v2938_v9, %v2946_v4  ;;  %v2890_v3 = vld [vmem:[#allocation6 + $0x1930] sm:$0xff] }
 0x4e9   :  { %9406 = vmatprep.subr.bf16.mxu0 %v12629_v19  ;;  %v2898_v11 = vld [vmem:[#allocation6 + $0x1970] sm:$0xff] }
 0x4eb   :  { %9366 = vmatpush2.bf16.msra.mxu1 %v12372_v10  ;;  %v2155_v10 = vld [vmem:[#allocation6 + $0x238] sm:$0xff] }
 0x4ec   :  { %9407 = vmatpush2.bf16.msra.mxu0 %v12628_v27  ;;  %9367 = vmatprep.subr.bf16.mxu1 %v12357_v38  ;;  %v2163_v27 = vld [vmem:[#allocation6 + $0x278] sm:$0xff] }
 0x4ed   :  { %9408 = vmatprep.subr.bf16.mxu0 %v12613_v62  ;;  %v12820_v62 = vcombine.low %v2938_v9, %v2946_v4  ;;  %v12039_v49 = vcombine.high %v2155_v10, %v2163_v27  ;;  %v12038_v7 = vcombine.low %v2155_v10, %v2163_v27  ;;  %v2091_v10 = vld [vmem:[#allocation6 + $0x38] sm:$0xff] }
 0x4ee   :  { %v2099_v27 = vld [vmem:[#allocation6 + $0x78] sm:$0xff] }
 0x4ef   :  { %9368 = vmatpush2.bf16.msra.mxu1 %v12356_v23  ;;  %v2914_v23 = vld [vmem:[#allocation6 + $0x19f0] sm:$0xff] }
 0x4f0   :  { %9409 = vmatpush2.bf16.msra.mxu0 %v12612_v1  ;;  %9419 = vmatprep.subr.bf16.mxu1 %v12853_v5  ;;  %v2139_v1 = vld [vmem:[#allocation6 + $0x1b8] sm:$0xff]  ;;  %v12789_v63 = vcombine.high %v2906_v50, %v2914_v23  ;;  %v12788_v9 = vcombine.low %v2906_v50, %v2914_v23 }
 0x4f1   :  { %9460 = vmatprep.subr.bf16.mxu0 %v12087_v57  ;;  %v2147_v5 = vld [vmem:[#allocation6 + $0x1f8] sm:$0xff]  ;;  %v12804_v57 = vcombine.low %v2922_v35, %v2930_v43  ;;  %v2858_v43 = vld [vmem:[#allocation6 + $0x1830] sm:$0xff] }
 0x4f2   :  { %v9125_v12 = vpop.f32.mrf.mxu1  ;;  %9370 = vmatmul.mubr.bf16.vlgmr.msra.gmra.mxu1 %v14015_v60  ;;  %v12022_v4 = vcombine.low %v2139_v1, %v2147_v5  ;;  %v2339_v50 = vld [vmem:[#allocation6 + $0x7f8] sm:$0xff] }
 0x4f3   :  { %v14196_v21 = vadd.f32 %v9125_v12, %v14189_v37  ;;  %v14198_v22 = vpop.f32.mrf.mxu0  ;;  %9411 = vmatmul.mubr.bf16.vlgmr.msra.gmra.mxu0 %v14035_v59  ;;  %9420 = vmatpush1.bf16.msra.mxu1 %v12852_v8  ;;  %v12055_v37 = vcombine.high %v2171_v15, %v2179_v51  ;;  %v12023_v8 = vcombine.high %v2139_v1, %v2147_v5 }
 0x4f4   :  { %9451 = vmatprep.mubr.bf16.mxu1 %v14048_v13  ;;  %9461 = vmatpush1.bf16.msra.mxu0 %v12086_v45  ;;  %v9127_v31 = vpop.f32.mrf.mxu1  ;;  %v2123_v45 = vld [vmem:[#allocation6 + $0x138] sm:$0xff]  ;;  %v12773_v12 = vcombine.high %v2890_v3, %v2898_v11  ;;  %v11974_v1 = vcombine.low %v2091_v10, %v2099_v27 }
 0x4f5   :  { %9492 = vmatprep.mubr.bf16.mxu0 %v13978_v56  ;;  %v14204_v19 = vadd.f32 %v9127_v31, %v14192_v0  ;;  %v14206_v32 = vpop.f32.mrf.mxu0  ;;  %9421 = vmatprep.subr.bf16.mxu1 %v12837_v33  ;;  %v12054_v56 = vcombine.low %v2171_v15, %v2179_v51  ;;  %v2131_v33 = vld [vmem:[#allocation6 + $0x178] sm:$0xff]  ;;  %v2874_v15 = vld [vmem:[#allocation6 + $0x18b0] sm:$0xff] }
 0x4f6   :  { %v9129_v36 = vpop.f32.mrf.mxu1  ;;  %9462 = vmatprep.subr.bf16.mxu0 %v12071_v6  ;;  %v12007_v6 = vcombine.high %v2123_v45, %v2131_v33  ;;  %v2882_v51 = vld [vmem:[#allocation6 + $0x18f0] sm:$0xff]  ;;  %v2115_v31 = vld [vmem:[#allocation6 + $0xf8] sm:$0xff] }
 0x4f7   :  { %v9170_v38 = vpop.f32.mrf.mxu0  ;;  %9422 = vmatpush1.bf16.msra.mxu1 %v12836_v40  ;;  %v2107_v40 = vld [vmem:[#allocation6 + $0xb8] sm:$0xff]  ;;  %v2866_v36 = vld [vmem:[#allocation6 + $0x1870] sm:$0xff] }
 0x4f8   :  { %9463 = vmatpush1.bf16.msra.mxu0 %v12070_v16  ;;  %v9130_v17 = vpop.f32.mrf.mxu1  ;;  %9423 = vmatprep.subr.bf16.mxu1 %v12821_v55  ;;  %v12772_v16 = vcombine.low %v2890_v3, %v2898_v11  ;;  %v12006_v55 = vcombine.low %v2123_v45, %v2131_v33  ;;  %v11991_v35 = vcombine.high %v2107_v40, %v2115_v31  ;;  %v2323_v3 = vld [vmem:[#allocation6 + $0x778] sm:$0xff] }
 0x4f9   :  { %v9171_v0 = vpop.f32.mrf.mxu0  ;;  %9464 = vmatprep.subr.bf16.mxu0 %v12055_v37  ;;  %v12757_v37 = vcombine.high %v2874_v15, %v2882_v51  ;;  %v12756_v38 = vcombine.low %v2874_v15, %v2882_v51  ;;  %v12741_v17 = vcombine.high %v2858_v43, %v2866_v36  ;;  %v12740_v23 = vcombine.low %v2858_v43, %v2866_v36  ;;  %v2307_v15 = vld [vmem:[#allocation6 + $0x6f8] sm:$0xff] }
 0x4fa   :  { %v3106_v0 = vld [vmem:[#allocation6 + $0x1ff0] sm:$0xff]  ;;  %v2291_v43 = vld [vmem:[#allocation6 + $0x678] sm:$0xff] }
 0x4fb   :  { %9424 = vmatpush1.bf16.msra.mxu1 %v12820_v62  ;;  %v11990_v62 = vcombine.low %v2107_v40, %v2115_v31 }
 0x4fc   :  { %9465 = vmatpush1.bf16.msra.mxu0 %v12054_v56  ;;  %9425 = vmatprep.subr.bf16.mxu1 %v12805_v48  ;;  %v11975_v56 = vcombine.high %v2091_v10, %v2099_v27  ;;  %v3098_v48 = vld [vmem:[#allocation6 + $0x1fb0] sm:$0xff] }
 0x4fd   :  { %9466 = vmatprep.subr.bf16.mxu0 %v12039_v49  ;;  %v2331_v49 = vld [vmem:[#allocation6 + $0x7b8] sm:$0xff]  ;;  %v12981_v5 = vcombine.high %v3098_v48, %v3106_v0  ;;  %v12980_v11 = vcombine.low %v3098_v48, %v3106_v0 }
 0x4fe   :  { %v12214_v45 = vcombine.low %v2331_v49, %v2339_v50  ;;  %v2275_v48 = vld [vmem:[#allocation6 + $0x5f8] sm:$0xff] }
 0x4ff   :  { %9426 = vmatpush1.bf16.msra.mxu1 %v12804_v57  ;;  %v12215_v57 = vcombine.high %v2331_v49, %v2339_v50 }
 0x500   :  { %9467 = vmatpush1.bf16.msra.mxu0 %v12038_v7  ;;  %9427 = vmatprep.subr.bf16.mxu1 %v12789_v63  ;;  %v3082_v7 = vld [vmem:[#allocation6 + $0x1f30] sm:$0xff] }
 0x501   :  { %9468 = vmatprep.subr.bf16.mxu0 %v12023_v8  ;;  %v3090_v63 = vld [vmem:[#allocation6 + $0x1f70] sm:$0xff]  ;;  %v2315_v8 = vld [vmem:[#allocation6 + $0x738] sm:$0xff] }
 0x502   :  { %v12965_v33 = vcombine.high %v3082_v7, %v3090_v63  ;;  %v12964_v51 = vcombine.low %v3082_v7, %v3090_v63  ;;  %v12198_v40 = vcombine.low %v2315_v8, %v2323_v3  ;;  %v2259_v7 = vld [vmem:[#allocation6 + $0x578] sm:$0xff] }
 0x503   :  { %9428 = vmatpush1.bf16.msra.mxu1 %v12788_v9  ;;  %v12199_v9 = vcombine.high %v2315_v8, %v2323_v3 }
 0x504   :  { %9469 = vmatpush1.bf16.msra.mxu0 %v12022_v4  ;;  %9429 = vmatprep.subr.bf16.mxu1 %v12773_v12  ;;  %v3066_v4 = vld [vmem:[#allocation6 + $0x1eb0] sm:$0xff] }
 0x505   :  { %9470 = vmatprep.subr.bf16.mxu0 %v12007_v6  ;;  %v3074_v12 = vld [vmem:[#allocation6 + $0x1ef0] sm:$0xff]  ;;  %v2299_v6 = vld [vmem:[#allocation6 + $0x6b8] sm:$0xff] }
 0x506   :  { %v12949_v31 = vcombine.high %v3066_v4, %v3074_v12  ;;  %v12948_v36 = vcombine.low %v3066_v4, %v3074_v12  ;;  %v12182_v10 = vcombine.low %v2299_v6, %v2307_v15  ;;  %v2243_v4 = vld [vmem:[#allocation6 + $0x4f8] sm:$0xff] }
 0x507   :  { %9430 = vmatpush1.bf16.msra.mxu1 %v12772_v16  ;;  %v12183_v16 = vcombine.high %v2299_v6, %v2307_v15 }
 0x508   :  { %9471 = vmatpush1.bf16.msra.mxu0 %v12006_v55  ;;  %9431 = vmatprep.subr.bf16.mxu1 %v12757_v37  ;;  %v3050_v55 = vld [vmem:[#allocation6 + $0x1e30] sm:$0xff] }
 0x509   :  { %9472 = vmatprep.subr.bf16.mxu0 %v11991_v35  ;;  %v3058_v37 = vld [vmem:[#allocation6 + $0x1e70] sm:$0xff]  ;;  %v2283_v35 = vld [vmem:[#allocation6 + $0x638] sm:$0xff] }
 0x50a   :  { %v12933_v27 = vcombine.high %v3050_v55, %v3058_v37  ;;  %v12932_v0 = vcombine.low %v3050_v55, %v3058_v37  ;;  %v12166_v49 = vcombine.low %v2283_v35, %v2291_v43  ;;  %v2227_v55 = vld [vmem:[#allocation6 + $0x478] sm:$0xff] }
 0x50b   :  { %9432 = vmatpush1.bf16.msra.mxu1 %v12756_v38  ;;  %v12167_v38 = vcombine.high %v2283_v35, %v2291_v43 }
 0x50c   :  { %9473 = vmatpush1.bf16.msra.mxu0 %v11990_v62  ;;  %9433 = vmatprep.subr.bf16.mxu1 %v12741_v17  ;;  %v3034_v62 = vld [vmem:[#allocation6 + $0x1db0] sm:$0xff] }
 0x50d   :  { %9474 = vmatprep.subr.bf16.mxu0 %v11975_v56  ;;  %v3042_v17 = vld [vmem:[#allocation6 + $0x1df0] sm:$0xff]  ;;  %v2267_v56 = vld [vmem:[#allocation6 + $0x5b8] sm:$0xff] }
 0x50e   :  { %v12917_v50 = vcombine.high %v3034_v62, %v3042_v17  ;;  %v12916_v63 = vcombine.low %v3034_v62, %v3042_v17  ;;  %v12150_v8 = vcombine.low %v2267_v56, %v2275_v48  ;;  %v2723_v62 = vld [vmem:[#allocation6 + $0x13f8] sm:$0xff] }
 0x50f   :  { %9434 = vmatpush1.bf16.msra.mxu1 %v12740_v23  ;;  %v12151_v23 = vcombine.high %v2267_v56, %v2275_v48 }
 0x510   :  { %9475 = vmatpush1.bf16.msra.mxu0 %v11974_v1  ;;  %9435 = vmatprep.subr.bf16.mxu1 %v12981_v5  ;;  %v3018_v1 = vld [vmem:[#allocation6 + $0x1d30] sm:$0xff] }
 0x511   :  { %9476 = vmatprep.subr.bf16.mxu0 %v12215_v57  ;;  %v3026_v5 = vld [vmem:[#allocation6 + $0x1d70] sm:$0xff]  ;;  %v2251_v57 = vld [vmem:[#allocation6 + $0x538] sm:$0xff] }
 0x512   :  { %v12901_v3 = vcombine.high %v3018_v1, %v3026_v5  ;;  %v12900_v12 = vcombine.low %v3018_v1, %v3026_v5  ;;  %v12134_v6 = vcombine.low %v2251_v57, %v2259_v7  ;;  %v3159_v1 = vrot.slane %v14178_v42, %v13996_v14 }
 0x513   :  { %9436 = vmatpush2.bf16.msra.mxu1 %v12980_v11  ;;  %v12135_v11 = vcombine.high %v2251_v57, %v2259_v7  ;;  %v2699_v57 = vld [vmem:[#allocation6 + $0x1338] sm:$0xff] }
 0x514   :  { %9477 = vmatpush2.bf16.msra.mxu0 %v12214_v45  ;;  %9437 = vmatprep.subr.bf16.mxu1 %v12965_v33  ;;  %v3002_v45 = vld [vmem:[#allocation6 + $0x1cb0] sm:$0xff]  ;;  %v2707_v7 = vld [vmem:[#allocation6 + $0x1378] sm:$0xff]  ;;  %v9169_v14 = vadd.f32 %v14206_v32, %v3159_v1 }
 0x515   :  { %9478 = vmatprep.subr.bf16.mxu0 %v12199_v9  ;;  %v3010_v33 = vld [vmem:[#allocation6 + $0x1cf0] sm:$0xff]  ;;  %v2235_v9 = vld [vmem:[#allocation6 + $0x4b8] sm:$0xff] }
 0x516   :  { %v12885_v15 = vcombine.high %v3002_v45, %v3010_v33  ;;  %v12884_v37 = vcombine.low %v3002_v45, %v3010_v33  ;;  %v12118_v35 = vcombine.low %v2235_v9, %v2243_v4  ;;  %v12583_v33 = vcombine.high %v2699_v57, %v2707_v7 }
 0x517   :  { %9438 = vmatpush2.bf16.msra.mxu1 %v12964_v51  ;;  %v12119_v51 = vcombine.high %v2235_v9, %v2243_v4  ;;  %v2683_v9 = vld [vmem:[#allocation6 + $0x12b8] sm:$0xff] }
 0x518   :  { %9479 = vmatpush2.bf16.msra.mxu0 %v12198_v40  ;;  %9439 = vmatprep.subr.bf16.mxu1 %v12949_v31  ;;  %v2986_v40 = vld [vmem:[#allocation6 + $0x1c30] sm:$0xff]  ;;  %v2691_v4 = vld [vmem:[#allocation6 + $0x12f8] sm:$0xff] }
 0x519   :  { %9480 = vmatprep.subr.bf16.mxu0 %v12183_v16  ;;  %v2994_v31 = vld [vmem:[#allocation6 + $0x1c70] sm:$0xff]  ;;  %v2219_v16 = vld [vmem:[#allocation6 + $0x438] sm:$0xff]  ;;  %v12567_v32 = vcombine.high %v2683_v9, %v2691_v4 }
 0x51a   :  { %v12869_v43 = vcombine.high %v2986_v40, %v2994_v31  ;;  %v12868_v17 = vcombine.low %v2986_v40, %v2994_v31  ;;  %v12102_v56 = vcombine.low %v2219_v16, %v2227_v55 }
 0x51b   :  { %9440 = vmatpush2.bf16.msra.mxu1 %v12948_v36  ;;  %v12103_v36 = vcombine.high %v2219_v16, %v2227_v55  ;;  %v2411_v55 = vld [vmem:[#allocation6 + $0xa38] sm:$0xff] }
 0x51c   :  { %9481 = vmatpush2.bf16.msra.mxu0 %v12182_v10  ;;  %9441 = vmatprep.subr.bf16.mxu1 %v12933_v27  ;;  %v2459_v10 = vld [vmem:[#allocation6 + $0xbb8] sm:$0xff] }
 0x51d   :  { %9482 = vmatprep.subr.bf16.mxu0 %v12167_v38  ;;  %v2467_v27 = vld [vmem:[#allocation6 + $0xbf8] sm:$0xff] }
 0x51e   :  { %v2715_v38 = vld [vmem:[#allocation6 + $0x13b8] sm:$0xff]  ;;  %v12343_v48 = vcombine.high %v2459_v10, %v2467_v27  ;;  %v12342_v5 = vcombine.low %v2459_v10, %v2467_v27 }
 0x51f   :  { %9442 = vmatpush2.bf16.msra.mxu1 %v12932_v0  ;;  %v3155_v0 = vrot.slane %v14178_v42, %v13993_v18  ;;  %v2435_v18 = vld [vmem:[#allocation6 + $0xaf8] sm:$0xff] }
 0x520   :  { %9483 = vmatpush2.bf16.msra.mxu0 %v12166_v49  ;;  %9443 = vmatprep.subr.bf16.mxu1 %v12917_v50  ;;  %v12599_v49 = vcombine.high %v2715_v38, %v2723_v62  ;;  %v2443_v50 = vld [vmem:[#allocation6 + $0xb38] sm:$0xff] }
 0x521   :  { %9484 = vmatprep.subr.bf16.mxu0 %v12151_v23  ;;  %v2451_v23 = vld [vmem:[#allocation6 + $0xb78] sm:$0xff] }
 0x523   :  { %9444 = vmatpush2.bf16.msra.mxu1 %v12916_v63  ;;  %v12598_v63 = vcombine.low %v2715_v38, %v2723_v62  ;;  %v12566_v38 = vcombine.low %v2683_v9, %v2691_v4  ;;  %v2371_v9 = vld [vmem:[#allocation6 + $0x8f8] sm:$0xff] }
 0x524   :  { %9485 = vmatpush2.bf16.msra.mxu0 %v12150_v8  ;;  %9445 = vmatprep.subr.bf16.mxu1 %v12901_v3  ;;  %v9167_v8 = vadd.f32 %v14198_v22, %v3155_v0  ;;  %v12327_v3 = vcombine.high %v2443_v50, %v2451_v23  ;;  %v2651_v0 = vld [vmem:[#allocation6 + $0x11b8] sm:$0xff] }
 0x525   :  { %9486 = vmatprep.subr.bf16.mxu0 %v12135_v11  ;;  %v2427_v11 = vld [vmem:[#allocation6 + $0xab8] sm:$0xff] }
 0x526   :  { %v12310_v10 = vcombine.low %v2427_v11, %v2435_v18  ;;  %v2619_v4 = vld [vmem:[#allocation6 + $0x10b8] sm:$0xff] }
 0x527   :  { %9446 = vmatpush2.bf16.msra.mxu1 %v12900_v12 }
 0x528   :  { %9487 = vmatpush2.bf16.msra.mxu0 %v12134_v6  ;;  %9447 = vmatprep.subr.bf16.mxu1 %v12885_v15  ;;  %v12326_v6 = vcombine.low %v2443_v50, %v2451_v23  ;;  %v12582_v15 = vcombine.low %v2699_v57, %v2707_v7  ;;  %v2379_v57 = vld [vmem:[#allocation6 + $0x938] sm:$0xff] }
 0x529   :  { %9488 = vmatprep.subr.bf16.mxu0 %v12119_v51  ;;  %v12311_v51 = vcombine.high %v2427_v11, %v2435_v18  ;;  %v2387_v7 = vld [vmem:[#allocation6 + $0x978] sm:$0xff] }
 0x52a   :  { %v12263_v18 = vcombine.high %v2379_v57, %v2387_v7 }
 0x52b   :  { %9448 = vmatpush2.bf16.msra.mxu1 %v12884_v37  ;;  %v2419_v37 = vld [vmem:[#allocation6 + $0xa78] sm:$0xff] }
 0x52c   :  { %9489 = vmatpush2.bf16.msra.mxu0 %v12118_v35  ;;  %9449 = vmatprep.subr.bf16.mxu1 %v12869_v43  ;;  %v2675_v43 = vld [vmem:[#allocation6 + $0x1278] sm:$0xff]  ;;  %v12294_v50 = vcombine.low %v2411_v55, %v2419_v37 }
 0x52d   :  { %9490 = vmatprep.subr.bf16.mxu0 %v12103_v36 }
 0x52f   :  { %9450 = vmatpush2.bf16.msra.mxu1 %v12868_v17 }
 0x530   :  { %9491 = vmatpush2.bf16.msra.mxu0 %v12102_v56  ;;  %9501 = vmatprep.subr.bf16.mxu1 %v12343_v48  ;;  %v2395_v56 = vld [vmem:[#allocation6 + $0x9b8] sm:$0xff] }
 0x531   :  { %9542 = vmatprep.subr.bf16.mxu0 %v12599_v49  ;;  %v2403_v48 = vld [vmem:[#allocation6 + $0x9f8] sm:$0xff] }
 0x532   :  { %v9207_v45 = vpop.f32.mrf.mxu1  ;;  %9452 = vmatmul.mubr.bf16.vlgmr.msra.gmra.mxu1 %v14050_v26  ;;  %v2659_v49 = vld [vmem:[#allocation6 + $0x11f8] sm:$0xff]  ;;  %v12279_v1 = vcombine.high %v2395_v56, %v2403_v48 }
 0x533   :  { %v9208_v42 = vadd.f32 %v9207_v45, %v9167_v8  ;;  %v9248_v12 = vpop.f32.mrf.mxu0  ;;  %9493 = vmatmul.mubr.bf16.vlgmr.msra.gmra.mxu0 %v14002_v20  ;;  %9502 = vmatpush1.bf16.msra.mxu1 %v12342_v5  ;;  %v2667_v20 = vld [vmem:[#allocation6 + $0x1238] sm:$0xff]  ;;  %v12535_v5 = vcombine.high %v2651_v0, %v2659_v49  ;;  %v12534_v11 = vcombine.low %v2651_v0, %v2659_v49 }
 0x534   :  { %9533 = vmatprep.mubr.bf16.mxu1 %v14007_v53  ;;  %9543 = vmatpush1.bf16.msra.mxu0 %v12598_v63  ;;  %v9209_v22 = vpop.f32.mrf.mxu1  ;;  %v12551_v17 = vcombine.high %v2667_v20, %v2675_v43  ;;  %v12550_v23 = vcombine.low %v2667_v20, %v2675_v43  ;;  %v2635_v63 = vld [vmem:[#allocation6 + $0x1138] sm:$0xff] }
 0x535   :  { %v14217_v40 = vadd.f32 %v9248_v12, %v9208_v42  ;;  %9574 = vmatprep.mubr.bf16.mxu0 %v14033_v25  ;;  %v9210_v31 = vadd.f32 %v9209_v22, %v9169_v14  ;;  %v9250_v16 = vpop.f32.mrf.mxu0  ;;  %9503 = vmatprep.subr.bf16.mxu1 %v12327_v3  ;;  %v12295_v25 = vcombine.high %v2411_v55, %v2419_v37  ;;  %v2643_v8 = vld [vmem:[#allocation6 + $0x1178] sm:$0xff] }
 0x536   :  { %v9211_v35 = vpop.f32.mrf.mxu1  ;;  %9544 = vmatprep.subr.bf16.mxu0 %v12583_v33  ;;  %v12278_v3 = vcombine.low %v2395_v56, %v2403_v48  ;;  %v12519_v45 = vcombine.high %v2635_v63, %v2643_v8  ;;  %v2363_v33 = vld [vmem:[#allocation6 + $0x8b8] sm:$0xff]  ;;  %v12262_v42 = vcombine.low %v2379_v57, %v2387_v7  ;;  %v12518_v12 = vcombine.low %v2635_v63, %v2643_v8 }
 0x537   :  { %v14220_v36 = vadd.f32 %v9250_v16, %v9210_v31  ;;  %v9252_v53 = vpop.f32.mrf.mxu0  ;;  %9504 = vmatpush1.bf16.msra.mxu1 %v12326_v6  ;;  %v2627_v14 = vld [vmem:[#allocation6 + $0x10f8] sm:$0xff]  ;;  %v12247_v6 = vcombine.high %v2363_v33, %v2371_v9 }
 0x538   :  { %9545 = vmatpush1.bf16.msra.mxu0 %v12582_v15  ;;  %v9212_v27 = vpop.f32.mrf.mxu1  ;;  %9505 = vmatprep.subr.bf16.mxu1 %v12311_v51  ;;  %v12503_v22 = vcombine.high %v2619_v4, %v2627_v14  ;;  %v2347_v15 = vld [vmem:[#allocation6 + $0x838] sm:$0xff]  ;;  %v12502_v55 = vcombine.low %v2619_v4, %v2627_v14 }
 0x539   :  { %v9253_v62 = vpop.f32.mrf.mxu0  ;;  %9546 = vmatprep.subr.bf16.mxu0 %v12567_v32  ;;  %v2355_v51 = vld [vmem:[#allocation6 + $0x878] sm:$0xff]  ;;  %v12246_v32 = vcombine.low %v2363_v33, %v2371_v9 }
 0x53a   :  { %v2603_v31 = vld [vmem:[#allocation6 + $0x1038] sm:$0xff]  ;;  %v12231_v37 = vcombine.high %v2347_v15, %v2355_v51  ;;  %v12230_v27 = vcombine.low %v2347_v15, %v2355_v51 }
 0x53b   :  { %9506 = vmatpush1.bf16.msra.mxu1 %v12310_v10  ;;  %v2611_v16 = vld [vmem:[#allocation6 + $0x1078] sm:$0xff] }
 0x53c   :  { %9547 = vmatpush1.bf16.msra.mxu0 %v12566_v38  ;;  %9507 = vmatprep.subr.bf16.mxu1 %v12295_v25  ;;  %v12487_v35 = vcombine.high %v2603_v31, %v2611_v16  ;;  %v2587_v20 = vld [vmem:[#allocation6 + $0xfb8] sm:$0xff]  ;;  %v12486_v38 = vcombine.low %v2603_v31, %v2611_v16 }
 0x53d   :  { %9548 = vmatprep.subr.bf16.mxu0 %v12551_v17  ;;  %v2595_v43 = vld [vmem:[#allocation6 + $0xff8] sm:$0xff] }
 0x53e   :  { %v2843_v53 = vld [vmem:[#allocation6 + $0x17b8] sm:$0xff]  ;;  %v12471_v25 = vcombine.high %v2587_v20, %v2595_v43  ;;  %v12470_v49 = vcombine.low %v2587_v20, %v2595_v43 }
 0x53f   :  { %9508 = vmatpush1.bf16.msra.mxu1 %v12294_v50  ;;  %v2851_v10 = vld [vmem:[#allocation6 + $0x17f8] sm:$0xff] }
 0x540   :  { %9549 = vmatpush1.bf16.msra.mxu0 %v12550_v23  ;;  %9509 = vmatprep.subr.bf16.mxu1 %v12279_v1  ;;  %v12727_v62 = vcombine.high %v2843_v53, %v2851_v10  ;;  %v2571_v17 = vld [vmem:[#allocation6 + $0xf38] sm:$0xff]  ;;  %v12726_v50 = vcombine.low %v2843_v53, %v2851_v10 }
 0x541   :  { %9550 = vmatprep.subr.bf16.mxu0 %v12535_v5  ;;  %v2579_v56 = vld [vmem:[#allocation6 + $0xf78] sm:$0xff] }
 0x542   :  { %v2827_v48 = vld [vmem:[#allocation6 + $0x1738] sm:$0xff]  ;;  %v12455_v23 = vcombine.high %v2571_v17, %v2579_v56  ;;  %v12454_v8 = vcombine.low %v2571_v17, %v2579_v56 }
 0x543   :  { %9510 = vmatpush1.bf16.msra.mxu1 %v12278_v3  ;;  %v2835_v0 = vld [vmem:[#allocation6 + $0x1778] sm:$0xff] }
 0x544   :  { %9551 = vmatpush1.bf16.msra.mxu0 %v12534_v11  ;;  %9511 = vmatprep.subr.bf16.mxu1 %v12263_v18  ;;  %v12711_v1 = vcombine.high %v2827_v48, %v2835_v0  ;;  %v2555_v5 = vld [vmem:[#allocation6 + $0xeb8] sm:$0xff]  ;;  %v12710_v3 = vcombine.low %v2827_v48, %v2835_v0 }
 0x545   :  { %9552 = vmatprep.subr.bf16.mxu0 %v12519_v45  ;;  %v2563_v57 = vld [vmem:[#allocation6 + $0xef8] sm:$0xff] }
 0x546   :  { %v2811_v7 = vld [vmem:[#allocation6 + $0x16b8] sm:$0xff]  ;;  %v12439_v11 = vcombine.high %v2555_v5, %v2563_v57  ;;  %v12438_v14 = vcombine.low %v2555_v5, %v2563_v57 }
 0x547   :  { %9512 = vmatpush1.bf16.msra.mxu1 %v12262_v42  ;;  %v2819_v63 = vld [vmem:[#allocation6 + $0x16f8] sm:$0xff] }
 0x548   :  { %9553 = vmatpush1.bf16.msra.mxu0 %v12518_v12  ;;  %9513 = vmatprep.subr.bf16.mxu1 %v12247_v6  ;;  %v12695_v18 = vcombine.high %v2811_v7, %v2819_v63  ;;  %v2539_v45 = vld [vmem:[#allocation6 + $0xe38] sm:$0xff]  ;;  %v12694_v42 = vcombine.low %v2811_v7, %v2819_v63 }
 0x549   :  { %9554 = vmatprep.subr.bf16.mxu0 %v12503_v22  ;;  %v2547_v33 = vld [vmem:[#allocation6 + $0xe78] sm:$0xff] }
 0x54a   :  { %v2795_v9 = vld [vmem:[#allocation6 + $0x1638] sm:$0xff]  ;;  %v12423_v12 = vcombine.high %v2539_v45, %v2547_v33  ;;  %v12422_v16 = vcombine.low %v2539_v45, %v2547_v33 }
 0x54b   :  { %9514 = vmatpush1.bf16.msra.mxu1 %v12246_v32  ;;  %v2803_v4 = vld [vmem:[#allocation6 + $0x1678] sm:$0xff] }
 0x54c   :  { %9555 = vmatpush1.bf16.msra.mxu0 %v12502_v55  ;;  %9515 = vmatprep.subr.bf16.mxu1 %v12231_v37  ;;  %v12679_v6 = vcombine.high %v2795_v9, %v2803_v4  ;;  %v2523_v22 = vld [vmem:[#allocation6 + $0xdb8] sm:$0xff]  ;;  %v12678_v32 = vcombine.low %v2795_v9, %v2803_v4 }
 0x54d   :  { %9556 = vmatprep.subr.bf16.mxu0 %v12487_v35  ;;  %v2531_v15 = vld [vmem:[#allocation6 + $0xdf8] sm:$0xff] }
 0x54e   :  { %v2779_v51 = vld [vmem:[#allocation6 + $0x15b8] sm:$0xff]  ;;  %v12407_v55 = vcombine.high %v2523_v22, %v2531_v15  ;;  %v12406_v10 = vcombine.low %v2523_v22, %v2531_v15  ;;  %v13260_v15 = vld [vmem:[%s15084_s5 + $0x70] ss:$8 sps:$4 sm:$0xff]  }
 0x54f   :  { %9516 = vmatpush1.bf16.msra.mxu1 %v12230_v27  ;;  %v2787_v31 = vld [vmem:[#allocation6 + $0x15f8] sm:$0xff] }
 0x550   :  { %9557 = vmatpush1.bf16.msra.mxu0 %v12486_v38  ;;  %9517 = vmatprep.subr.bf16.mxu1 %v12471_v25  ;;  %v12663_v37 = vcombine.high %v2779_v51, %v2787_v31  ;;  %v2507_v35 = vld [vmem:[#allocation6 + $0xd38] sm:$0xff]  ;;  %v12662_v27 = vcombine.low %v2779_v51, %v2787_v31 }
 0x551   :  { %9558 = vmatprep.subr.bf16.mxu0 %v12727_v62  ;;  %v2515_v20 = vld [vmem:[#allocation6 + $0xd78] sm:$0xff] }
 0x552   :  { %v2763_v43 = vld [vmem:[#allocation6 + $0x1538] sm:$0xff]  ;;  %v12391_v38 = vcombine.high %v2507_v35, %v2515_v20  ;;  %v12390_v0 = vcombine.low %v2507_v35, %v2515_v20 }
 0x553   :  { %9518 = vmatpush2.bf16.msra.mxu1 %v12470_v49  ;;  %v2771_v53 = vld [vmem:[#allocation6 + $0x1578] sm:$0xff] }
 0x554   :  { %9559 = vmatpush2.bf16.msra.mxu0 %v12726_v50  ;;  %9519 = vmatprep.subr.bf16.mxu1 %v12455_v23  ;;  %v12647_v25 = vcombine.high %v2763_v43, %v2771_v53  ;;  %v2491_v62 = vld [vmem:[#allocation6 + $0xcb8] sm:$0xff]  ;;  %v12646_v49 = vcombine.low %v2763_v43, %v2771_v53 }
 0x555   :  { %9560 = vmatprep.subr.bf16.mxu0 %v12711_v1  ;;  %v2499_v17 = vld [vmem:[#allocation6 + $0xcf8] sm:$0xff] }
 0x556   :  { %v2747_v56 = vld [vmem:[#allocation6 + $0x14b8] sm:$0xff]  ;;  %v12375_v50 = vcombine.high %v2491_v62, %v2499_v17  ;;  %v12374_v63 = vcombine.low %v2491_v62, %v2499_v17 }
 0x557   :  { %9520 = vmatpush2.bf16.msra.mxu1 %v12454_v8  ;;  %v2755_v48 = vld [vmem:[#allocation6 + $0x14f8] sm:$0xff] }
 0x558   :  { %9561 = vmatpush2.bf16.msra.mxu0 %v12710_v3  ;;  %9521 = vmatprep.subr.bf16.mxu1 %v12439_v11  ;;  %v12631_v23 = vcombine.high %v2747_v56, %v2755_v48  ;;  %v2475_v1 = vld [vmem:[#allocation6 + $0xc38] sm:$0xff]  ;;  %v12630_v8 = vcombine.low %v2747_v56, %v2755_v48 }
 0x559   :  { %9562 = vmatprep.subr.bf16.mxu0 %v12695_v18  ;;  %v2483_v5 = vld [vmem:[#allocation6 + $0xc78] sm:$0xff] }
 0x55a   :  { %v2731_v57 = vld [vmem:[#allocation6 + $0x1438] sm:$0xff]  ;;  %v12359_v3 = vcombine.high %v2475_v1, %v2483_v5  ;;  %v12358_v33 = vcombine.low %v2475_v1, %v2483_v5 }
 0x55b   :  { %9522 = vmatpush2.bf16.msra.mxu1 %v12438_v14  ;;  %v2739_v7 = vld [vmem:[#allocation6 + $0x1478] sm:$0xff]  ;;  %v13262_v14 = vld [vmem:[%s15084_s5 + $0x74] ss:$8 sps:$4 sm:$0xff]  }
 0x55c   :  { %9563 = vmatpush2.bf16.msra.mxu0 %v12694_v42  ;;  %9523 = vmatprep.subr.bf16.mxu1 %v12423_v12  ;;  %v12615_v11 = vcombine.high %v2731_v57, %v2739_v7  ;;  %v2971_v18 = vld [vmem:[#allocation6 + $0x1bb8] sm:$0xff]  ;;  %v12614_v9 = vcombine.low %v2731_v57, %v2739_v7  ;;  %v13274_v57 = vld [vmem:[%s15084_s5 + $0x34] ss:$8 sps:$4 sm:$0xff]  }
 0x55d   :  { %9564 = vmatprep.subr.bf16.mxu0 %v12679_v6  ;;  %v2979_v45 = vld [vmem:[#allocation6 + $0x1bf8] sm:$0xff]  ;;  %v9625_v6 = vmax.f32 %v14092_v24, 0.0 }
 0x55e   :  { %v12855_v4 = vcombine.high %v2971_v18, %v2979_v45  ;;  %v2955_v42 = vld [vmem:[#allocation6 + $0x1b38] sm:$0xff]  ;;  %v12854_v22 = vcombine.low %v2971_v18, %v2979_v45 }
 0x55f   :  { %9524 = vmatpush2.bf16.msra.mxu1 %v12422_v16  ;;  %v2963_v12 = vld [vmem:[#allocation6 + $0x1b78] sm:$0xff]  ;;  %v9641_v24 = vpack.c.bf16 %v9625_v6, %v9625_v6 }
 0x560   :  { %9565 = vmatpush2.bf16.msra.mxu0 %v12678_v32  ;;  %9525 = vmatprep.subr.bf16.mxu1 %v12407_v55  ;;  %v12839_v51 = vcombine.high %v2955_v42, %v2963_v12  ;;  %v2939_v31 = vld [vmem:[#allocation6 + $0x1ab8] sm:$0xff]  ;;  %v12838_v20 = vcombine.low %v2955_v42, %v2963_v12  ;;  %v13280_v42 = vld [vmem:[%s15084_s5 + $0x14] ss:$8 sps:$4 sm:$0xff]  }
 0x561   :  { %9566 = vmatprep.subr.bf16.mxu0 %v12663_v37  ;;  %v2947_v16 = vld [vmem:[#allocation6 + $0x1af8] sm:$0xff] }
 0x562   :  { %v13265_v55 = vld [vmem:[%s15084_s5 + $0x64] ss:$8 sps:$4 sm:$0xff]   ;;  %v12823_v53 = vcombine.high %v2939_v31, %v2947_v16  ;;  %v12822_v62 = vcombine.low %v2939_v31, %v2947_v16  ;;  %v13269_v1 = vld [vmem:[%s15084_s5 + $0x40] ss:$8 sps:$4 sm:$0xff]  }
 0x563   :  { %9526 = vmatpush2.bf16.msra.mxu1 %v12406_v10  ;;  %v2891_v7 = vld [vmem:[#allocation6 + $0x1938] sm:$0xff] }
 0x564   :  { %9567 = vmatpush2.bf16.msra.mxu0 %v12662_v27  ;;  %9527 = vmatprep.subr.bf16.mxu1 %v12391_v38  ;;  %v2923_v27 = vld [vmem:[#allocation6 + $0x1a38] sm:$0xff] }
 0x565   :  { %9568 = vmatprep.subr.bf16.mxu0 %v12647_v25  ;;  %v13277_v18 = vld [vmem:[%s15084_s5 + $0x24] ss:$8 sps:$4 sm:$0xff]  }
 0x566   :  { %v2875_v45 = vld [vmem:[#allocation6 + $0x18b8] sm:$0xff] }
 0x567   :  { %9528 = vmatpush2.bf16.msra.mxu1 %v12390_v0  ;;  %v13271_v0 = vld [vmem:[%s15084_s5 + $0x44] ss:$8 sps:$4 sm:$0xff]  }
 0x568   :  { %9569 = vmatpush2.bf16.msra.mxu0 %v12646_v49  ;;  %9529 = vmatprep.subr.bf16.mxu1 %v12375_v50  ;;  %v2907_v49 = vld [vmem:[#allocation6 + $0x19b8] sm:$0xff] }
 0x569   :  { %9570 = vmatprep.subr.bf16.mxu0 %v12631_v23  ;;  %v2915_v50 = vld [vmem:[#allocation6 + $0x19f8] sm:$0xff] }
 0x56a   :  { %v12791_v5 = vcombine.high %v2907_v49, %v2915_v50  ;;  %v2859_v12 = vld [vmem:[#allocation6 + $0x1838] sm:$0xff] }
 0x56b   :  { %9530 = vmatpush2.bf16.msra.mxu1 %v12374_v63  ;;  %v2899_v63 = vld [vmem:[#allocation6 + $0x1978] sm:$0xff] }
 0x56c   :  { %9571 = vmatpush2.bf16.msra.mxu0 %v12630_v8  ;;  %9531 = vmatprep.subr.bf16.mxu1 %v12359_v3  ;;  %v12790_v8 = vcombine.low %v2907_v49, %v2915_v50  ;;  %v13272_v3 = vld [vmem:[%s15084_s5 + $0x30] ss:$8 sps:$4 sm:$0xff]   ;;  %v2867_v6 = vld [vmem:[#allocation6 + $0x1878] sm:$0xff] }
 0x56d   :  { %9572 = vmatprep.subr.bf16.mxu0 %v12615_v11  ;;  %v12775_v11 = vcombine.high %v2891_v7, %v2899_v63  ;;  %v13283_v31 = vld [vmem:[%s15084_s5 + $0x4] ss:$8 sps:$4 sm:$0xff]  }
 0x56e   :  { %v3099_v16 = vld [vmem:[#allocation6 + $0x1fb8] sm:$0xff] }
 0x56f   :  { %9532 = vmatpush2.bf16.msra.mxu1 %v12358_v33  ;;  %v2883_v33 = vld [vmem:[#allocation6 + $0x18f8] sm:$0xff] }
 0x570   :  { %9573 = vmatpush2.bf16.msra.mxu0 %v12614_v9  ;;  %9583 = vmatprep.subr.bf16.mxu1 %v12855_v4  ;;  %v12774_v9 = vcombine.low %v2891_v7, %v2899_v63  ;;  %v13275_v4 = vld [vmem:[%s15084_s5 + $0x20] ss:$8 sps:$4 sm:$0xff]  }
 0x571   :  { %11204 = vmatprep.subr.bf16.mxu0 %v13262_v14  ;;  %v12759_v14 = vcombine.high %v2875_v45, %v2883_v33  ;;  %v3059_v49 = vld [vmem:[#allocation6 + $0x1e78] sm:$0xff] }
 0x572   :  { %v9289_v32 = vpop.f32.mrf.mxu1  ;;  %9534 = vmatmul.mubr.bf16.vlgmr.msra.gmra.mxu1 %v14015_v60  ;;  %v13263_v60 = vld [vmem:[%s15084_s5 + $0x60] ss:$8 sps:$4 sm:$0xff]  }
 0x573   :  { %v14234_v37 = vadd.f32 %v9289_v32, %v14217_v40  ;;  %v14236_v35 = vpop.f32.mrf.mxu0  ;;  %9575 = vmatmul.mubr.bf16.vlgmr.msra.gmra.mxu0 %v14035_v59  ;;  %9584 = vmatpush1.bf16.msra.mxu1 %v12854_v22  ;;  %v13268_v59 = vld [vmem:[%s15084_s5 + $0x54] ss:$8 sps:$4 sm:$0xff]   ;;  %v12758_v22 = vcombine.low %v2875_v45, %v2883_v33  ;;  %v3107_v32 = vld [vmem:[#allocation6 + $0x1ff8] sm:$0xff] }
 0x574   :  { %9615 = vmatprep.mubr.bf16.mxu1 %v14048_v13  ;;  %11205 = vmatpush1.bf16.msra.mxu0 %v13260_v15  ;;  %v9291_v43 = vpop.f32.mrf.mxu1  ;;  %v2931_v13 = vld [vmem:[#allocation6 + $0x1a78] sm:$0xff]  ;;  %v13278_v15 = vld [vmem:[%s15084_s5 + $0x10] ss:$8 sps:$4 sm:$0xff]  }
 0x575   :  { %11236 = vmatprep.mubr.bf16.mxu0 %v9641_v24  ;;  %v14244_v10 = vadd.f32 %v9291_v43, %v14220_v36  ;;  %v14246_v40 = vpop.f32.mrf.mxu0  ;;  %9585 = vmatprep.subr.bf16.mxu1 %v12839_v51  ;;  %v13266_v36 = vld [vmem:[%s15084_s5 + $0x50] ss:$8 sps:$4 sm:$0xff]   ;;  %v12807_v56 = vcombine.high %v2923_v27, %v2931_v13  ;;  %v12806_v23 = vcombine.low %v2923_v27, %v2931_v13  ;;  %v13281_v24 = vld [vmem:[%s15084_s5] ss:$8 sps:$4 sm:$0xff]   ;;  %v13286_v43 = vld [vmem:[%s15084_s5 + $0xf4] ss:$8 sps:$4 sm:$0xff]  }
 0x576   :  { %v9293_v38 = vpop.f32.mrf.mxu1  ;;  %11206 = vmatprep.subr.bf16.mxu0 %v13265_v55  ;;  %v12743_v51 = vcombine.high %v2859_v12, %v2867_v6  ;;  %v12742_v55 = vcombine.low %v2859_v12, %v2867_v6  ;;  %v13284_v27 = vld [vmem:[%s15084_s5 + $0xf0] ss:$8 sps:$4 sm:$0xff]   ;;  %v3043_v7 = vld [vmem:[#allocation6 + $0x1df8] sm:$0xff] }
 0x577   :  { %v9334_v25 = vpop.f32.mrf.mxu0  ;;  %9586 = vmatpush1.bf16.msra.mxu1 %v12838_v20  ;;  %v12983_v20 = vcombine.high %v3099_v16, %v3107_v32  ;;  %v13289_v38 = vld [vmem:[%s15084_s5 + $0xe4] ss:$8 sps:$4 sm:$0xff]  }
 0x578   :  { %11207 = vmatpush1.bf16.msra.mxu0 %v13263_v60  ;;  %v9294_v17 = vpop.f32.mrf.mxu1  ;;  %9587 = vmatprep.subr.bf16.mxu1 %v12823_v53  ;;  %v3083_v60 = vld [vmem:[#allocation6 + $0x1f38] sm:$0xff] }
 0x579   :  { %v9335_v48 = vpop.f32.mrf.mxu0  ;;  %11208 = vmatprep.subr.bf16.mxu0 %v13268_v59  ;;  %v3091_v53 = vld [vmem:[#allocation6 + $0x1f78] sm:$0xff]  ;;  %v12982_v59 = vcombine.low %v3099_v16, %v3107_v32 }
 0x57a   :  { %v12967_v13 = vcombine.high %v3083_v60, %v3091_v53  ;;  %v3067_v25 = vld [vmem:[#allocation6 + $0x1eb8] sm:$0xff]  ;;  %v12966_v17 = vcombine.low %v3083_v60, %v3091_v53  ;;  %v13292_v48 = vld [vmem:[%s15084_s5 + $0xd4] ss:$8 sps:$4 sm:$0xff]  }
 0x57b   :  { %9588 = vmatpush1.bf16.msra.mxu1 %v12822_v62  ;;  %v3075_v62 = vld [vmem:[#allocation6 + $0x1ef8] sm:$0xff]  ;;  %v13310_v53 = vld [vmem:[%s15084_s5 + $0x174] ss:$8 sps:$4 sm:$0xff]  }
 0x57c   :  { %11209 = vmatpush1.bf16.msra.mxu0 %v13266_v36  ;;  %9589 = vmatprep.subr.bf16.mxu1 %v12807_v56  ;;  %v13287_v36 = vld [vmem:[%s15084_s5 + $0xe0] ss:$8 sps:$4 sm:$0xff]   ;;  %v12951_v56 = vcombine.high %v3067_v25, %v3075_v62  ;;  %v12950_v50 = vcombine.low %v3067_v25, %v3075_v62  ;;  %v9627_v25 = vmax.f32 %v14120_v54, 0.0  ;;  %v9629_v62 = vmax.f32 %v14148_v39, 0.0  ;;  %v13316_v54 = vld [vmem:[%s15084_s5 + $0x164] ss:$8 sps:$4 sm:$0xff]  }
 0x57d   :  { %11210 = vmatprep.subr.bf16.mxu0 %v13271_v0  ;;  %v3051_v0 = vld [vmem:[#allocation6 + $0x1e38] sm:$0xff] }
 0x57e   :  { %v12934_v63 = vcombine.low %v3051_v0, %v3059_v49  ;;  %v3027_v45 = vld [vmem:[#allocation6 + $0x1d78] sm:$0xff] }
 0x57f   :  { %9590 = vmatpush1.bf16.msra.mxu1 %v12806_v23  ;;  %v13290_v23 = vld [vmem:[%s15084_s5 + $0xd0] ss:$8 sps:$4 sm:$0xff]   ;;  %v3011_v12 = vld [vmem:[#allocation6 + $0x1cf8] sm:$0xff] }
 0x580   :  { %11211 = vmatpush1.bf16.msra.mxu0 %v13269_v1  ;;  %9591 = vmatprep.subr.bf16.mxu1 %v12791_v5  ;;  %v12935_v1 = vcombine.high %v3051_v0, %v3059_v49  ;;  %v13295_v5 = vld [vmem:[%s15084_s5 + $0xc4] ss:$8 sps:$4 sm:$0xff]   ;;  %v13305_v60 = vld [vmem:[%s15084_s5 + $0x80] ss:$8 sps:$4 sm:$0xff]   ;;  %v9645_v0 = vpack.c.bf16 %v9629_v62, %v9629_v62  ;;  %v13361_v62 = vld [vmem:[%s15084_s5 + $0x2f4] ss:$8 sps:$4 sm:$0xff]  }
 0x581   :  { %11212 = vmatprep.subr.bf16.mxu0 %v13274_v57  ;;  %v3035_v57 = vld [vmem:[#allocation6 + $0x1db8] sm:$0xff] }
 0x582   :  { %v12918_v33 = vcombine.low %v3035_v57, %v3043_v7  ;;  %v2995_v16 = vld [vmem:[#allocation6 + $0x1c78] sm:$0xff] }
 0x583   :  { %9592 = vmatpush1.bf16.msra.mxu1 %v12790_v8  ;;  %v13293_v8 = vld [vmem:[%s15084_s5 + $0xc0] ss:$8 sps:$4 sm:$0xff]  }
 0x584   :  { %11213 = vmatpush1.bf16.msra.mxu0 %v13272_v3  ;;  %9593 = vmatprep.subr.bf16.mxu1 %v12775_v11  ;;  %v12919_v3 = vcombine.high %v3035_v57, %v3043_v7  ;;  %v13298_v11 = vld [vmem:[%s15084_s5 + $0xb4] ss:$8 sps:$4 sm:$0xff]  }
 0x585   :  { %11214 = vmatprep.subr.bf16.mxu0 %v13277_v18  ;;  %v3019_v18 = vld [vmem:[#allocation6 + $0x1d38] sm:$0xff] }
 0x586   :  { %v12902_v6 = vcombine.low %v3019_v18, %v3027_v45 }
 0x587   :  { %9594 = vmatpush1.bf16.msra.mxu1 %v12774_v9  ;;  %v13296_v9 = vld [vmem:[%s15084_s5 + $0xb0] ss:$8 sps:$4 sm:$0xff]  }
 0x588   :  { %11215 = vmatpush1.bf16.msra.mxu0 %v13275_v4  ;;  %9595 = vmatprep.subr.bf16.mxu1 %v12759_v14  ;;  %v12903_v4 = vcombine.high %v3019_v18, %v3027_v45  ;;  %v13301_v14 = vld [vmem:[%s15084_s5 + $0xa4] ss:$8 sps:$4 sm:$0xff]   ;;  %v13320_v18 = vld [vmem:[%s15084_s5 + $0x150] ss:$8 sps:$4 sm:$0xff]  }
 0x589   :  { %11216 = vmatprep.subr.bf16.mxu0 %v13280_v42  ;;  %v3003_v42 = vld [vmem:[#allocation6 + $0x1cb8] sm:$0xff] }
 0x58a   :  { %v12886_v32 = vcombine.low %v3003_v42, %v3011_v12 }
 0x58b   :  { %9596 = vmatpush1.bf16.msra.mxu1 %v12758_v22  ;;  %v13299_v22 = vld [vmem:[%s15084_s5 + $0xa0] ss:$8 sps:$4 sm:$0xff]  }
 0x58c   :  { %11217 = vmatpush1.bf16.msra.mxu0 %v13278_v15  ;;  %9597 = vmatprep.subr.bf16.mxu1 %v12743_v51  ;;  %v12887_v15 = vcombine.high %v3003_v42, %v3011_v12  ;;  %v13304_v51 = vld [vmem:[%s15084_s5 + $0x94] ss:$8 sps:$4 sm:$0xff]   ;;  %v13326_v42 = vld [vmem:[%s15084_s5 + $0x140] ss:$8 sps:$4 sm:$0xff]  }
 0x58d   :  { %11218 = vmatprep.subr.bf16.mxu0 %v13283_v31  ;;  %v2987_v31 = vld [vmem:[#allocation6 + $0x1c38] sm:$0xff] }
 0x58e   :  { %v13329_v12 = vld [vmem:[%s15084_s5 + $0x240] ss:$8 sps:$4 sm:$0xff]  }
 0x58f   :  { %9598 = vmatpush1.bf16.msra.mxu1 %v12742_v55  ;;  %v13302_v55 = vld [vmem:[%s15084_s5 + $0x90] ss:$8 sps:$4 sm:$0xff]  }
 0x590   :  { %11219 = vmatpush1.bf16.msra.mxu0 %v13281_v24  ;;  %9599 = vmatprep.subr.bf16.mxu1 %v12983_v20  ;;  %v12871_v24 = vcombine.high %v2987_v31, %v2995_v16  ;;  %v13307_v20 = vld [vmem:[%s15084_s5 + $0x84] ss:$8 sps:$4 sm:$0xff]  }
 0x591   :  { %11220 = vmatprep.subr.bf16.mxu0 %v13286_v43  ;;  %v12870_v43 = vcombine.low %v2987_v31, %v2995_v16  ;;  %v13340_v31 = vld [vmem:[%s15084_s5 + $0x124] ss:$8 sps:$4 sm:$0xff]  }
 0x592   :  { %v13343_v16 = vld [vmem:[%s15084_s5 + $0x224] ss:$8 sps:$4 sm:$0xff]  }
 0x593   :  { %9600 = vmatpush2.bf16.msra.mxu1 %v12982_v59  ;;  %v9624_v59 = vmax.f32 %v14085_v2, 0.0  ;;  %v13308_v2 = vld [vmem:[%s15084_s5 + $0x170] ss:$8 sps:$4 sm:$0xff]  }
 0x594   :  { %11221 = vmatpush2.bf16.msra.mxu0 %v13284_v27  ;;  %9601 = vmatprep.subr.bf16.mxu1 %v12967_v13  ;;  %v14336_v27 = vld [vmem:[#allocation7 + $0x8] sm:$0xff] }
 0x595   :  { %11222 = vmatprep.subr.bf16.mxu0 %v13289_v38  ;;  %v3163_v13 = vrot.slane %v14336_v27, %v14022_v44  ;;  %v13313_v38 = vld [vmem:[%s15084_s5 + $0x274] ss:$8 sps:$4 sm:$0xff]   ;;  %v13311_v44 = vld [vmem:[%s15084_s5 + $0x270] ss:$8 sps:$4 sm:$0xff]  }
 0x597   :  { %9602 = vmatpush2.bf16.msra.mxu1 %v12966_v17  ;;  %v3167_v17 = vrot.slane %v14336_v27, %v14025_v52  ;;  %v9643_v52 = vpack.c.bf16 %v9627_v25, %v9627_v25  ;;  %v13358_v25 = vld [vmem:[%s15084_s5 + $0x1f4] ss:$8 sps:$4 sm:$0xff]  }
 0x598   :  { %11223 = vmatpush2.bf16.msra.mxu0 %v13287_v36  ;;  %9603 = vmatprep.subr.bf16.mxu1 %v12951_v56  ;;  %v9640_v36 = vpack.c.bf16 %v9624_v59, %v9624_v59  ;;  %v9331_v56 = vadd.f32 %v14236_v35, %v3163_v13  ;;  %v13314_v35 = vld [vmem:[%s15084_s5 + $0x160] ss:$8 sps:$4 sm:$0xff]   ;;  %v13355_v59 = vld [vmem:[%s15084_s5 + $0x204] ss:$8 sps:$4 sm:$0xff]  }
 0x599   :  { %11224 = vmatprep.subr.bf16.mxu0 %v13292_v48  ;;  %v13319_v48 = vld [vmem:[%s15084_s5 + $0x264] ss:$8 sps:$4 sm:$0xff]   ;;  %v9333_v49 = vadd.f32 %v14246_v40, %v3167_v17  ;;  %v13350_v13 = vld [vmem:[%s15084_s5 + $0x100] ss:$8 sps:$4 sm:$0xff]   ;;  %v13356_v17 = vld [vmem:[%s15084_s5 + $0x1f0] ss:$8 sps:$4 sm:$0xff]  }
 0x59b   :  { %9604 = vmatpush2.bf16.msra.mxu1 %v12950_v50 }
 0x59c   :  { %11225 = vmatpush2.bf16.msra.mxu0 %v13290_v23  ;;  %9605 = vmatprep.subr.bf16.mxu1 %v12935_v1 }
 0x59d   :  { %11226 = vmatprep.subr.bf16.mxu0 %v13295_v5  ;;  %v13322_v5 = vld [vmem:[%s15084_s5 + $0x154] ss:$8 sps:$4 sm:$0xff]  }
 0x59f   :  { %9606 = vmatpush2.bf16.msra.mxu1 %v12934_v63  ;;  %v13325_v63 = vld [vmem:[%s15084_s5 + $0x254] ss:$8 sps:$4 sm:$0xff]  }
 0x5a0   :  { %11227 = vmatpush2.bf16.msra.mxu0 %v13293_v8  ;;  %9607 = vmatprep.subr.bf16.mxu1 %v12919_v3 }
 0x5a1   :  { %11228 = vmatprep.subr.bf16.mxu0 %v13298_v11 }
 0x5a3   :  { %9608 = vmatpush2.bf16.msra.mxu1 %v12918_v33  ;;  %v13323_v33 = vld [vmem:[%s15084_s5 + $0x250] ss:$8 sps:$4 sm:$0xff]  }
 0x5a4   :  { %11229 = vmatpush2.bf16.msra.mxu0 %v13296_v9  ;;  %9609 = vmatprep.subr.bf16.mxu1 %v12903_v4  ;;  %v13328_v9 = vld [vmem:[%s15084_s5 + $0x144] ss:$8 sps:$4 sm:$0xff]  }
 0x5a5   :  { %11230 = vmatprep.subr.bf16.mxu0 %v13301_v14  ;;  %v13331_v14 = vld [vmem:[%s15084_s5 + $0x244] ss:$8 sps:$4 sm:$0xff]  }
 0x5a7   :  { %9610 = vmatpush2.bf16.msra.mxu1 %v12902_v6  ;;  %v13334_v6 = vld [vmem:[%s15084_s5 + $0x134] ss:$8 sps:$4 sm:$0xff]  }
 0x5a8   :  { %11231 = vmatpush2.bf16.msra.mxu0 %v13299_v22  ;;  %9611 = vmatprep.subr.bf16.mxu1 %v12887_v15  ;;  %v13337_v22 = vld [vmem:[%s15084_s5 + $0x234] ss:$8 sps:$4 sm:$0xff]   ;;  %v13332_v15 = vld [vmem:[%s15084_s5 + $0x130] ss:$8 sps:$4 sm:$0xff]  }
 0x5a9   :  { %11232 = vmatprep.subr.bf16.mxu0 %v13304_v51  ;;  %v13335_v51 = vld [vmem:[%s15084_s5 + $0x230] ss:$8 sps:$4 sm:$0xff]  }
 0x5ab   :  { %9612 = vmatpush2.bf16.msra.mxu1 %v12886_v32  ;;  %v13338_v32 = vld [vmem:[%s15084_s5 + $0x120] ss:$8 sps:$4 sm:$0xff]  }
 0x5ac   :  { %11233 = vmatpush2.bf16.msra.mxu0 %v13302_v55  ;;  %9613 = vmatprep.subr.bf16.mxu1 %v12871_v24  ;;  %v13341_v55 = vld [vmem:[%s15084_s5 + $0x220] ss:$8 sps:$4 sm:$0xff]   ;;  %v13346_v24 = vld [vmem:[%s15084_s5 + $0x114] ss:$8 sps:$4 sm:$0xff]  }
 0x5ad   :  { %11234 = vmatprep.subr.bf16.mxu0 %v13307_v20  ;;  %v13349_v20 = vld [vmem:[%s15084_s5 + $0x214] ss:$8 sps:$4 sm:$0xff]  }
 0x5af   :  { %9614 = vmatpush2.bf16.msra.mxu1 %v12870_v43  ;;  %v13344_v43 = vld [vmem:[%s15084_s5 + $0x110] ss:$8 sps:$4 sm:$0xff]  }
 0x5b0   :  { %11235 = vmatpush2.bf16.msra.mxu0 %v13305_v60  ;;  %11245 = vmatprep.subr.bf16.mxu1 %v13310_v53  ;;  %v13347_v60 = vld [vmem:[%s15084_s5 + $0x210] ss:$8 sps:$4 sm:$0xff]   ;;  %v13352_v53 = vld [vmem:[%s15084_s5 + $0x104] ss:$8 sps:$4 sm:$0xff]  }
 0x5b1   :  { %11286 = vmatprep.subr.bf16.mxu0 %v13313_v38  ;;  %v13353_v38 = vld [vmem:[%s15084_s5 + $0x200] ss:$8 sps:$4 sm:$0xff]  }
 0x5b2   :  { %v9371_v39 = vpop.f32.mrf.mxu1  ;;  %9616 = vmatmul.mubr.bf16.vlgmr.msra.gmra.mxu1 %v14050_v26  ;;  %v13317_v26 = vld [vmem:[%s15084_s5 + $0x260] ss:$8 sps:$4 sm:$0xff]  }
 0x5b3   :  { %v9372_v50 = vadd.f32 %v9371_v39, %v9331_v56  ;;  %v9412_v23 = vpop.f32.mrf.mxu0  ;;  %11237 = vmatmul.mubr.bf16.vlgmr.msra.gmra.mxu0 %v9640_v36  ;;  %11246 = vmatpush1.bf16.msra.mxu1 %v13308_v2  ;;  %v13359_v2 = vld [vmem:[%s15084_s5 + $0x2f0] ss:$8 sps:$4 sm:$0xff]   ;;  %v13367_v36 = vld [vmem:[%s15084_s5 + $0x2e4] ss:$8 sps:$4 sm:$0xff]   ;;  %v13362_v56 = vld [vmem:[%s15084_s5 + $0x1e0] ss:$8 sps:$4 sm:$0xff]  }
 0x5b4   :  { %11277 = vmatprep.mubr.bf16.mxu1 %v9643_v52  ;;  %11287 = vmatpush1.bf16.msra.mxu0 %v13311_v44  ;;  %v9373_v1 = vpop.f32.mrf.mxu1  ;;  %v13364_v44 = vld [vmem:[%s15084_s5 + $0x1e4] ss:$8 sps:$4 sm:$0xff]   ;;  %v13370_v52 = vld [vmem:[%s15084_s5 + $0x1d4] ss:$8 sps:$4 sm:$0xff]  }
 0x5b5   :  { %v14371_v40 = vadd.f32 %v9412_v23, %v9372_v50  ;;  %11318 = vmatprep.mubr.bf16.mxu0 %v9645_v0  ;;  %v9374_v57 = vadd.f32 %v9373_v1, %v9333_v49  ;;  %v9414_v7 = vpop.f32.mrf.mxu0  ;;  %11247 = vmatprep.subr.bf16.mxu1 %v13316_v54  ;;  %v13365_v54 = vld [vmem:[%s15084_s5 + $0x2e0] ss:$8 sps:$4 sm:$0xff]   ;;  %v13373_v39 = vld [vmem:[%s15084_s5 + $0x2d4] ss:$8 sps:$4 sm:$0xff]   ;;  %v13371_v0 = vld [vmem:[%s15084_s5 + $0x2d0] ss:$8 sps:$4 sm:$0xff]  }
 0x5b6   :  { %v9375_v8 = vpop.f32.mrf.mxu1  ;;  %11288 = vmatprep.subr.bf16.mxu0 %v13319_v48  ;;  %v13368_v48 = vld [vmem:[%s15084_s5 + $0x1d0] ss:$8 sps:$4 sm:$0xff]   ;;  %v13376_v49 = vld [vmem:[%s15084_s5 + $0x1c4] ss:$8 sps:$4 sm:$0xff]   ;;  %v13374_v23 = vld [vmem:[%s15084_s5 + $0x1c0] ss:$8 sps:$4 sm:$0xff]  }
 0x5b7   :  { %v14376_v3 = vadd.f32 %v9414_v7, %v9374_v57  ;;  %v9416_v11 = vpop.f32.mrf.mxu0  ;;  %11248 = vmatpush1.bf16.msra.mxu1 %v13314_v35  ;;  %v13379_v50 = vld [vmem:[%s15084_s5 + $0x2c4] ss:$8 sps:$4 sm:$0xff]   ;;  %v13377_v35 = vld [vmem:[%s15084_s5 + $0x2c0] ss:$8 sps:$4 sm:$0xff]   ;;  %v13382_v1 = vld [vmem:[%s15084_s5 + $0x1b4] ss:$8 sps:$4 sm:$0xff]  }
 0x5b8   :  { %11289 = vmatpush1.bf16.msra.mxu0 %v13317_v26  ;;  %v9376_v45 = vpop.f32.mrf.mxu1  ;;  %11249 = vmatprep.subr.bf16.mxu1 %v13322_v5  ;;  %v13385_v26 = vld [vmem:[%s15084_s5 + $0x2b4] ss:$8 sps:$4 sm:$0xff]   ;;  %v13380_v5 = vld [vmem:[%s15084_s5 + $0x1b0] ss:$8 sps:$4 sm:$0xff]   ;;  %v13388_v7 = vld [vmem:[%s15084_s5 + $0x1a4] ss:$8 sps:$4 sm:$0xff]  }
 0x5b9   :  { %v9417_v4 = vpop.f32.mrf.mxu0  ;;  %11290 = vmatprep.subr.bf16.mxu0 %v13325_v63  ;;  %v13383_v57 = vld [vmem:[%s15084_s5 + $0x2b0] ss:$8 sps:$4 sm:$0xff]   ;;  %v13391_v63 = vld [vmem:[%s15084_s5 + $0x2a4] ss:$8 sps:$4 sm:$0xff]   ;;  %v13386_v8 = vld [vmem:[%s15084_s5 + $0x1a0] ss:$8 sps:$4 sm:$0xff]  }
 0x5ba   :  { %v13389_v11 = vld [vmem:[%s15084_s5 + $0x2a0] ss:$8 sps:$4 sm:$0xff]   ;;  %v13397_v45 = vld [vmem:[%s15084_s5 + $0x294] ss:$8 sps:$4 sm:$0xff]   ;;  %v13400_v4 = vld [vmem:[%s15084_s5 + $0x184] ss:$8 sps:$4 sm:$0xff]  }
 0x5bb   :  { %11250 = vmatpush1.bf16.msra.mxu1 %v13320_v18  ;;  %v13394_v18 = vld [vmem:[%s15084_s5 + $0x194] ss:$8 sps:$4 sm:$0xff]  }
 0x5bc   :  { %11291 = vmatpush1.bf16.msra.mxu0 %v13323_v33  ;;  %11251 = vmatprep.subr.bf16.mxu1 %v13328_v9  ;;  %v13392_v33 = vld [vmem:[%s15084_s5 + $0x190] ss:$8 sps:$4 sm:$0xff]  }
 0x5bd   :  { %11292 = vmatprep.subr.bf16.mxu0 %v13331_v14  ;;  %v13395_v9 = vld [vmem:[%s15084_s5 + $0x290] ss:$8 sps:$4 sm:$0xff]   ;;  %v13403_v14 = vld [vmem:[%s15084_s5 + $0x284] ss:$8 sps:$4 sm:$0xff]  }
 0x5bf   :  { %11252 = vmatpush1.bf16.msra.mxu1 %v13326_v42  ;;  %v13398_v42 = vld [vmem:[%s15084_s5 + $0x180] ss:$8 sps:$4 sm:$0xff]  }
 0x5c0   :  { %11293 = vmatpush1.bf16.msra.mxu0 %v13329_v12  ;;  %11253 = vmatprep.subr.bf16.mxu1 %v13334_v6  ;;  %v9626_v12 = vmax.f32 %v14112_v41, 0.0  ;;  %v13401_v6 = vld [vmem:[%s15084_s5 + $0x280] ss:$8 sps:$4 sm:$0xff]   ;;  %v9633_v41 = vmax.f32 %v14204_v19, 0.0 }
 0x5c1   :  { %11294 = vmatprep.subr.bf16.mxu0 %v13337_v22  ;;  %v13406_v22 = vld [vmem:[%s15084_s5 + $0x374] ss:$8 sps:$4 sm:$0xff]  }
 0x5c3   :  { %11254 = vmatpush1.bf16.msra.mxu1 %v13332_v15  ;;  %v9628_v15 = vmax.f32 %v14140_v58, 0.0  ;;  %v13407_v58 = vld [vmem:[%s15084_s5 + $0x470] ss:$8 sps:$4 sm:$0xff]  }
 0x5c4   :  { %11295 = vmatpush1.bf16.msra.mxu0 %v13335_v51  ;;  %11255 = vmatprep.subr.bf16.mxu1 %v13340_v31  ;;  %v13409_v51 = vld [vmem:[%s15084_s5 + $0x474] ss:$8 sps:$4 sm:$0xff]   ;;  %v9631_v31 = vmax.f32 %v14174_v61, 0.0  ;;  %v13412_v61 = vld [vmem:[%s15084_s5 + $0x364] ss:$8 sps:$4 sm:$0xff]  }
 0x5c5   :  { %11296 = vmatprep.subr.bf16.mxu0 %v13343_v16  ;;  %v13404_v16 = vld [vmem:[%s15084_s5 + $0x370] ss:$8 sps:$4 sm:$0xff]  }
 0x5c7   :  { %11256 = vmatpush1.bf16.msra.mxu1 %v13338_v32  ;;  %v9642_v32 = vpack.c.bf16 %v9626_v12, %v9626_v12  ;;  %v13455_v12 = vld [vmem:[%s15084_s5 + $0x4f0] ss:$8 sps:$4 sm:$0xff]  }
 0x5c8   :  { %11297 = vmatpush1.bf16.msra.mxu0 %v13341_v55  ;;  %11257 = vmatprep.subr.bf16.mxu1 %v13346_v24  ;;  %v9644_v55 = vpack.c.bf16 %v9628_v15, %v9628_v15  ;;  %v9647_v24 = vpack.c.bf16 %v9631_v31, %v9631_v31  ;;  %v13458_v15 = vld [vmem:[%s15084_s5 + $0x3e0] ss:$8 sps:$4 sm:$0xff]   ;;  %v13466_v31 = vld [vmem:[%s15084_s5 + $0x3d4] ss:$8 sps:$4 sm:$0xff]  }
 0x5c9   :  { %11298 = vmatprep.subr.bf16.mxu0 %v13349_v20  ;;  %v13415_v20 = vld [vmem:[%s15084_s5 + $0x464] ss:$8 sps:$4 sm:$0xff]  }
 0x5cb   :  { %11258 = vmatpush1.bf16.msra.mxu1 %v13344_v43  ;;  %v9649_v43 = vpack.c.bf16 %v9633_v41, %v9633_v41  ;;  %v13469_v41 = vld [vmem:[%s15084_s5 + $0x4d4] ss:$8 sps:$4 sm:$0xff]  }
 0x5cc   :  { %11299 = vmatpush1.bf16.msra.mxu0 %v13347_v60  ;;  %11259 = vmatprep.subr.bf16.mxu1 %v13352_v53 }
 0x5cd   :  { %11300 = vmatprep.subr.bf16.mxu0 %v13355_v59  ;;  %v13410_v59 = vld [vmem:[%s15084_s5 + $0x360] ss:$8 sps:$4 sm:$0xff]  }
 0x5cf   :  { %11260 = vmatpush1.bf16.msra.mxu1 %v13350_v13 }
 0x5d0   :  { %11301 = vmatpush1.bf16.msra.mxu0 %v13353_v38  ;;  %11261 = vmatprep.subr.bf16.mxu1 %v13358_v25  ;;  %v13413_v38 = vld [vmem:[%s15084_s5 + $0x460] ss:$8 sps:$4 sm:$0xff]  }
 0x5d1   :  { %11302 = vmatprep.subr.bf16.mxu0 %v13361_v62  ;;  %v13421_v62 = vld [vmem:[%s15084_s5 + $0x454] ss:$8 sps:$4 sm:$0xff]  }
 0x5d3   :  { %11262 = vmatpush2.bf16.msra.mxu1 %v13356_v17 }
 0x5d4   :  { %11303 = vmatpush2.bf16.msra.mxu0 %v13359_v2  ;;  %11263 = vmatprep.subr.bf16.mxu1 %v13364_v44  ;;  %v13416_v44 = vld [vmem:[%s15084_s5 + $0x350] ss:$8 sps:$4 sm:$0xff]  }
 0x5d5   :  { %11304 = vmatprep.subr.bf16.mxu0 %v13367_v36 }
 0x5d7   :  { %11264 = vmatpush2.bf16.msra.mxu1 %v13362_v56  ;;  %v13419_v56 = vld [vmem:[%s15084_s5 + $0x450] ss:$8 sps:$4 sm:$0xff]  }
 0x5d8   :  { %11305 = vmatpush2.bf16.msra.mxu0 %v13365_v54  ;;  %11265 = vmatprep.subr.bf16.mxu1 %v13370_v52  ;;  %v13424_v54 = vld [vmem:[%s15084_s5 + $0x344] ss:$8 sps:$4 sm:$0xff]  }
 0x5d9   :  { %11306 = vmatprep.subr.bf16.mxu0 %v13373_v39  ;;  %v13427_v39 = vld [vmem:[%s15084_s5 + $0x444] ss:$8 sps:$4 sm:$0xff]  }
 0x5db   :  { %11266 = vmatpush2.bf16.msra.mxu1 %v13368_v48  ;;  %v13422_v48 = vld [vmem:[%s15084_s5 + $0x340] ss:$8 sps:$4 sm:$0xff]  }
 0x5dc   :  { %11307 = vmatpush2.bf16.msra.mxu0 %v13371_v0  ;;  %11267 = vmatprep.subr.bf16.mxu1 %v13376_v49  ;;  %v13425_v0 = vld [vmem:[%s15084_s5 + $0x440] ss:$8 sps:$4 sm:$0xff]   ;;  %v13430_v49 = vld [vmem:[%s15084_s5 + $0x334] ss:$8 sps:$4 sm:$0xff]  }
 0x5dd   :  { %11308 = vmatprep.subr.bf16.mxu0 %v13379_v50  ;;  %v13433_v50 = vld [vmem:[%s15084_s5 + $0x434] ss:$8 sps:$4 sm:$0xff]  }
 0x5df   :  { %11268 = vmatpush2.bf16.msra.mxu1 %v13374_v23  ;;  %v13428_v23 = vld [vmem:[%s15084_s5 + $0x330] ss:$8 sps:$4 sm:$0xff]  }
 0x5e0   :  { %11309 = vmatpush2.bf16.msra.mxu0 %v13377_v35  ;;  %11269 = vmatprep.subr.bf16.mxu1 %v13382_v1  ;;  %v13431_v35 = vld [vmem:[%s15084_s5 + $0x430] ss:$8 sps:$4 sm:$0xff]   ;;  %v13436_v1 = vld [vmem:[%s15084_s5 + $0x324] ss:$8 sps:$4 sm:$0xff]  }
 0x5e1   :  { %11310 = vmatprep.subr.bf16.mxu0 %v13385_v26  ;;  %v13439_v26 = vld [vmem:[%s15084_s5 + $0x424] ss:$8 sps:$4 sm:$0xff]  }
 0x5e3   :  { %11270 = vmatpush2.bf16.msra.mxu1 %v13380_v5  ;;  %v13434_v5 = vld [vmem:[%s15084_s5 + $0x320] ss:$8 sps:$4 sm:$0xff]  }
 0x5e4   :  { %11311 = vmatpush2.bf16.msra.mxu0 %v13383_v57  ;;  %11271 = vmatprep.subr.bf16.mxu1 %v13388_v7  ;;  %v13437_v57 = vld [vmem:[%s15084_s5 + $0x420] ss:$8 sps:$4 sm:$0xff]   ;;  %v13442_v7 = vld [vmem:[%s15084_s5 + $0x314] ss:$8 sps:$4 sm:$0xff]  }
 0x5e5   :  { %11312 = vmatprep.subr.bf16.mxu0 %v13391_v63  ;;  %v13445_v63 = vld [vmem:[%s15084_s5 + $0x414] ss:$8 sps:$4 sm:$0xff]  }
 0x5e7   :  { %11272 = vmatpush2.bf16.msra.mxu1 %v13386_v8  ;;  %v13440_v8 = vld [vmem:[%s15084_s5 + $0x310] ss:$8 sps:$4 sm:$0xff]  }
 0x5e8   :  { %11313 = vmatpush2.bf16.msra.mxu0 %v13389_v11  ;;  %11273 = vmatprep.subr.bf16.mxu1 %v13394_v18  ;;  %v13443_v11 = vld [vmem:[%s15084_s5 + $0x410] ss:$8 sps:$4 sm:$0xff]   ;;  %v13448_v18 = vld [vmem:[%s15084_s5 + $0x304] ss:$8 sps:$4 sm:$0xff]  }
 0x5e9   :  { %11314 = vmatprep.subr.bf16.mxu0 %v13397_v45  ;;  %v13451_v45 = vld [vmem:[%s15084_s5 + $0x404] ss:$8 sps:$4 sm:$0xff]  }
 0x5eb   :  { %11274 = vmatpush2.bf16.msra.mxu1 %v13392_v33  ;;  %v13446_v33 = vld [vmem:[%s15084_s5 + $0x300] ss:$8 sps:$4 sm:$0xff]  }
 0x5ec   :  { %11315 = vmatpush2.bf16.msra.mxu0 %v13395_v9  ;;  %11275 = vmatprep.subr.bf16.mxu1 %v13400_v4  ;;  %v13449_v9 = vld [vmem:[%s15084_s5 + $0x400] ss:$8 sps:$4 sm:$0xff]   ;;  %v13454_v4 = vld [vmem:[%s15084_s5 + $0x3f4] ss:$8 sps:$4 sm:$0xff]  }
 0x5ed   :  { %11316 = vmatprep.subr.bf16.mxu0 %v13403_v14  ;;  %v13457_v14 = vld [vmem:[%s15084_s5 + $0x4f4] ss:$8 sps:$4 sm:$0xff]  }
 0x5ef   :  { %11276 = vmatpush2.bf16.msra.mxu1 %v13398_v42  ;;  %v13452_v42 = vld [vmem:[%s15084_s5 + $0x3f0] ss:$8 sps:$4 sm:$0xff]  }
 0x5f0   :  { %11317 = vmatpush2.bf16.msra.mxu0 %v13401_v6  ;;  %11327 = vmatprep.subr.bf16.mxu1 %v13406_v22  ;;  %v13460_v6 = vld [vmem:[%s15084_s5 + $0x3e4] ss:$8 sps:$4 sm:$0xff]  }
 0x5f1   :  { %11368 = vmatprep.subr.bf16.mxu0 %v13409_v51  ;;  %v13463_v22 = vld [vmem:[%s15084_s5 + $0x4e4] ss:$8 sps:$4 sm:$0xff]   ;;  %v13461_v51 = vld [vmem:[%s15084_s5 + $0x4e0] ss:$8 sps:$4 sm:$0xff]  }
 0x5f2   :  { %v9453_v19 = vpop.f32.mrf.mxu1  ;;  %11278 = vmatmul.mubr.bf16.vlgmr.msra.gmra.mxu1 %v9642_v32  ;;  %v13467_v32 = vld [vmem:[%s15084_s5 + $0x4d0] ss:$8 sps:$4 sm:$0xff]  }
 0x5f3   :  { %v14563_v60 = vadd.f32 %v9453_v19, %v14371_v40  ;;  %v14565_v53 = vpop.f32.mrf.mxu0  ;;  %11319 = vmatmul.mubr.bf16.vlgmr.msra.gmra.mxu0 %v9644_v55  ;;  %11328 = vmatpush1.bf16.msra.mxu1 %v13404_v16  ;;  %v13418_v40 = vld [vmem:[%s15084_s5 + $0x354] ss:$8 sps:$4 sm:$0xff]   ;;  %v13464_v16 = vld [vmem:[%s15084_s5 + $0x3d0] ss:$8 sps:$4 sm:$0xff]   ;;  %v13475_v55 = vld [vmem:[%s15084_s5 + $0x4c4] ss:$8 sps:$4 sm:$0xff]  }
 0x5f4   :  { %11359 = vmatprep.mubr.bf16.mxu1 %v9647_v24  ;;  %11369 = vmatpush1.bf16.msra.mxu0 %v13407_v58  ;;  %v14570_v13 = vpop.f32.mrf.mxu1  ;;  %v13472_v58 = vld [vmem:[%s15084_s5 + $0x3c4] ss:$8 sps:$4 sm:$0xff]   ;;  %v13473_v24 = vld [vmem:[%s15084_s5 + $0x4c0] ss:$8 sps:$4 sm:$0xff]   ;;  %v13478_v19 = vld [vmem:[%s15084_s5 + $0x3b4] ss:$8 sps:$4 sm:$0xff]  }
 0x5f5   :  { %11400 = vmatprep.mubr.bf16.mxu0 %v9649_v43  ;;  %v14578_v25 = vpop.f32.mrf.mxu0  ;;  %11329 = vmatprep.subr.bf16.mxu1 %v13412_v61  ;;  %v13470_v61 = vld [vmem:[%s15084_s5 + $0x3c0] ss:$8 sps:$4 sm:$0xff]   ;;  %v13476_v43 = vld [vmem:[%s15084_s5 + $0x3b0] ss:$8 sps:$4 sm:$0xff]  }
 0x5f6   :  { %v9457_v17 = vpop.f32.mrf.mxu1  ;;  %11370 = vmatprep.subr.bf16.mxu0 %v13415_v20  ;;  %v13481_v20 = vld [vmem:[%s15084_s5 + $0x4b4] ss:$8 sps:$4 sm:$0xff]  }
 0x5f7   :  { %v9498_v2 = vpop.f32.mrf.mxu0  ;;  %11330 = vmatpush1.bf16.msra.mxu1 %v13410_v59  ;;  %v13479_v59 = vld [vmem:[%s15084_s5 + $0x4b0] ss:$8 sps:$4 sm:$0xff]   ;;  %v13485_v17 = vld [vmem:[%s15084_s5 + $0x4a0] ss:$8 sps:$4 sm:$0xff]  }
 0x5f8   :  { %11371 = vmatpush1.bf16.msra.mxu0 %v13413_v38  ;;  %v9458_v36 = vpop.f32.mrf.mxu1  ;;  %11331 = vmatprep.subr.bf16.mxu1 %v13418_v40  ;;  %v13484_v38 = vld [vmem:[%s15084_s5 + $0x3a4] ss:$8 sps:$4 sm:$0xff]   ;;  %v13490_v2 = vld [vmem:[%s15084_s5 + $0x394] ss:$8 sps:$4 sm:$0xff]  }
 0x5f9   :  { %v9499_v52 = vpop.f32.mrf.mxu0  ;;  %11372 = vmatprep.subr.bf16.mxu0 %v13421_v62  ;;  %v13487_v40 = vld [vmem:[%s15084_s5 + $0x4a4] ss:$8 sps:$4 sm:$0xff]   ;;  %v13482_v62 = vld [vmem:[%s15084_s5 + $0x3a0] ss:$8 sps:$4 sm:$0xff]   ;;  %v13488_v36 = vld [vmem:[%s15084_s5 + $0x390] ss:$8 sps:$4 sm:$0xff]  }
 0x5fa   :  { %v13499_v52 = vld [vmem:[%s15084_s5 + $0x484] ss:$8 sps:$4 sm:$0xff]  }
 0x5fb   :  { %11332 = vmatpush1.bf16.msra.mxu1 %v13416_v44  ;;  %v13493_v44 = vld [vmem:[%s15084_s5 + $0x494] ss:$8 sps:$4 sm:$0xff]  }
 0x5fc   :  { %11373 = vmatpush1.bf16.msra.mxu0 %v13419_v56  ;;  %11333 = vmatprep.subr.bf16.mxu1 %v13424_v54  ;;  %v13491_v56 = vld [vmem:[%s15084_s5 + $0x490] ss:$8 sps:$4 sm:$0xff]   ;;  %v13496_v54 = vld [vmem:[%s15084_s5 + $0x384] ss:$8 sps:$4 sm:$0xff]  }
 0x5fd   :  { %11374 = vmatprep.subr.bf16.mxu0 %v13427_v39  ;;  %v9456_v39 = vadd.f32 %v14570_v13, %v14376_v3  ;;  %v3171_v3 = vrot.slane %v14336_v27, %v14041_v28  ;;  %v9635_v13 = vmax.f32 %v14244_v10, 0.0  ;;  %v13503_v28 = vld [vmem:[%s15084_s5 + $0x670] ss:$8 sps:$4 sm:$0xff]   ;;  %v13508_v10 = vld [vmem:[%s15084_s5 + $0x564] ss:$8 sps:$4 sm:$0xff]  }
 0x5ff   :  { %11334 = vmatpush1.bf16.msra.mxu1 %v13422_v48  ;;  %v13494_v48 = vld [vmem:[%s15084_s5 + $0x380] ss:$8 sps:$4 sm:$0xff]  }
 0x600   :  { %11375 = vmatpush1.bf16.msra.mxu0 %v13425_v0  ;;  %11335 = vmatprep.subr.bf16.mxu1 %v13430_v49  ;;  %v9630_v0 = vmax.f32 %v14166_v29, 0.0  ;;  %v13497_v49 = vld [vmem:[%s15084_s5 + $0x480] ss:$8 sps:$4 sm:$0xff]   ;;  %v13505_v29 = vld [vmem:[%s15084_s5 + $0x674] ss:$8 sps:$4 sm:$0xff]  }
 0x601   :  { %11376 = vmatprep.subr.bf16.mxu0 %v13433_v50  ;;  %v13502_v50 = vld [vmem:[%s15084_s5 + $0x574] ss:$8 sps:$4 sm:$0xff]  }
 0x603   :  { %11336 = vmatpush1.bf16.msra.mxu1 %v13428_v23  ;;  %v9632_v23 = vmax.f32 %v14196_v21, 0.0 }
 0x604   :  { %11377 = vmatpush1.bf16.msra.mxu0 %v13431_v35  ;;  %11337 = vmatprep.subr.bf16.mxu1 %v13436_v1  ;;  %v9637_v35 = vmax.f32 %v9456_v39, 0.0  ;;  %v13500_v1 = vld [vmem:[%s15084_s5 + $0x570] ss:$8 sps:$4 sm:$0xff]   ;;  %v13553_v39 = vld [vmem:[%s15084_s5 + $0x6f4] ss:$8 sps:$4 sm:$0xff]  }
 0x605   :  { %11378 = vmatprep.subr.bf16.mxu0 %v13439_v26  ;;  %v9646_v26 = vpack.c.bf16 %v9630_v0, %v9630_v0  ;;  %v9648_v21 = vpack.c.bf16 %v9632_v23, %v9632_v23  ;;  %v13551_v0 = vld [vmem:[%s15084_s5 + $0x6f0] ss:$8 sps:$4 sm:$0xff]   ;;  %v13554_v23 = vld [vmem:[%s15084_s5 + $0x5e0] ss:$8 sps:$4 sm:$0xff]  }
 0x607   :  { %11338 = vmatpush1.bf16.msra.mxu1 %v13434_v5  ;;  %v9495_v5 = vadd.f32 %v14565_v53, %v3171_v3  ;;  %v13506_v53 = vld [vmem:[%s15084_s5 + $0x560] ss:$8 sps:$4 sm:$0xff]  }
 0x608   :  { %11379 = vmatpush1.bf16.msra.mxu0 %v13437_v57  ;;  %11339 = vmatprep.subr.bf16.mxu1 %v13442_v7  ;;  %v9651_v57 = vpack.c.bf16 %v9635_v13, %v9635_v13  ;;  %v13557_v3 = vld [vmem:[%s15084_s5 + $0x6e0] ss:$8 sps:$4 sm:$0xff]   ;;  %v13565_v13 = vld [vmem:[%s15084_s5 + $0x6d4] ss:$8 sps:$4 sm:$0xff]  }
 0x609   :  { %11380 = vmatprep.subr.bf16.mxu0 %v13445_v63  ;;  %v13511_v63 = vld [vmem:[%s15084_s5 + $0x664] ss:$8 sps:$4 sm:$0xff]  }
 0x60b   :  { %11340 = vmatpush1.bf16.msra.mxu1 %v13440_v8  ;;  %v9653_v8 = vpack.c.bf16 %v9637_v35, %v9637_v35  ;;  %v13560_v35 = vld [vmem:[%s15084_s5 + $0x5d0] ss:$8 sps:$4 sm:$0xff]  }
 0x60c   :  { %11381 = vmatpush1.bf16.msra.mxu0 %v13443_v11  ;;  %11341 = vmatprep.subr.bf16.mxu1 %v13448_v18 }
 0x60d   :  { %11382 = vmatprep.subr.bf16.mxu0 %v13451_v45 }
 0x60f   :  { %11342 = vmatpush1.bf16.msra.mxu1 %v13446_v33  ;;  %v13509_v33 = vld [vmem:[%s15084_s5 + $0x660] ss:$8 sps:$4 sm:$0xff]  }
 0x610   :  { %11383 = vmatpush1.bf16.msra.mxu0 %v13449_v9  ;;  %11343 = vmatprep.subr.bf16.mxu1 %v13454_v4  ;;  %v13514_v9 = vld [vmem:[%s15084_s5 + $0x554] ss:$8 sps:$4 sm:$0xff]  }
 0x611   :  { %11384 = vmatprep.subr.bf16.mxu0 %v13457_v14 }
 0x613   :  { %11344 = vmatpush2.bf16.msra.mxu1 %v13452_v42  ;;  %v13517_v42 = vld [vmem:[%s15084_s5 + $0x654] ss:$8 sps:$4 sm:$0xff]  }
 0x614   :  { %11385 = vmatpush2.bf16.msra.mxu0 %v13455_v12  ;;  %11345 = vmatprep.subr.bf16.mxu1 %v13460_v6 }
 0x615   :  { %11386 = vmatprep.subr.bf16.mxu0 %v13463_v22  ;;  %v13512_v22 = vld [vmem:[%s15084_s5 + $0x550] ss:$8 sps:$4 sm:$0xff]  }
 0x617   :  { %11346 = vmatpush2.bf16.msra.mxu1 %v13458_v15 }
 0x618   :  { %11387 = vmatpush2.bf16.msra.mxu0 %v13461_v51  ;;  %11347 = vmatprep.subr.bf16.mxu1 %v13466_v31  ;;  %v13515_v51 = vld [vmem:[%s15084_s5 + $0x650] ss:$8 sps:$4 sm:$0xff]   ;;  %v13520_v31 = vld [vmem:[%s15084_s5 + $0x544] ss:$8 sps:$4 sm:$0xff]  }
 0x619   :  { %11388 = vmatprep.subr.bf16.mxu0 %v13469_v41 }
 0x61b   :  { %11348 = vmatpush2.bf16.msra.mxu1 %v13464_v16  ;;  %v13523_v16 = vld [vmem:[%s15084_s5 + $0x644] ss:$8 sps:$4 sm:$0xff]  }
 0x61c   :  { %11389 = vmatpush2.bf16.msra.mxu0 %v13467_v32  ;;  %11349 = vmatprep.subr.bf16.mxu1 %v13472_v58  ;;  %v13518_v32 = vld [vmem:[%s15084_s5 + $0x540] ss:$8 sps:$4 sm:$0xff]  }
 0x61d   :  { %11390 = vmatprep.subr.bf16.mxu0 %v13475_v55  ;;  %v13521_v58 = vld [vmem:[%s15084_s5 + $0x640] ss:$8 sps:$4 sm:$0xff]   ;;  %v13526_v55 = vld [vmem:[%s15084_s5 + $0x534] ss:$8 sps:$4 sm:$0xff]  }
 0x61f   :  { %11350 = vmatpush2.bf16.msra.mxu1 %v13470_v61  ;;  %v13529_v61 = vld [vmem:[%s15084_s5 + $0x634] ss:$8 sps:$4 sm:$0xff]  }
 0x620   :  { %11391 = vmatpush2.bf16.msra.mxu0 %v13473_v24  ;;  %11351 = vmatprep.subr.bf16.mxu1 %v13478_v19  ;;  %v13524_v24 = vld [vmem:[%s15084_s5 + $0x530] ss:$8 sps:$4 sm:$0xff]  }
 0x621   :  { %11392 = vmatprep.subr.bf16.mxu0 %v13481_v20  ;;  %v13527_v19 = vld [vmem:[%s15084_s5 + $0x630] ss:$8 sps:$4 sm:$0xff]   ;;  %v13532_v20 = vld [vmem:[%s15084_s5 + $0x524] ss:$8 sps:$4 sm:$0xff]  }
 0x623   :  { %11352 = vmatpush2.bf16.msra.mxu1 %v13476_v43  ;;  %v13535_v43 = vld [vmem:[%s15084_s5 + $0x624] ss:$8 sps:$4 sm:$0xff]  }
 0x624   :  { %11393 = vmatpush2.bf16.msra.mxu0 %v13479_v59  ;;  %11353 = vmatprep.subr.bf16.mxu1 %v13484_v38  ;;  %v13530_v59 = vld [vmem:[%s15084_s5 + $0x520] ss:$8 sps:$4 sm:$0xff]  }
 0x625   :  { %11394 = vmatprep.subr.bf16.mxu0 %v13487_v40  ;;  %v13533_v38 = vld [vmem:[%s15084_s5 + $0x620] ss:$8 sps:$4 sm:$0xff]   ;;  %v13538_v40 = vld [vmem:[%s15084_s5 + $0x514] ss:$8 sps:$4 sm:$0xff]  }
 0x627   :  { %11354 = vmatpush2.bf16.msra.mxu1 %v13482_v62  ;;  %v13541_v62 = vld [vmem:[%s15084_s5 + $0x614] ss:$8 sps:$4 sm:$0xff]  }
 0x628   :  { %11395 = vmatpush2.bf16.msra.mxu0 %v13485_v17  ;;  %11355 = vmatprep.subr.bf16.mxu1 %v13490_v2  ;;  %v13536_v17 = vld [vmem:[%s15084_s5 + $0x510] ss:$8 sps:$4 sm:$0xff]  }
 0x629   :  { %11396 = vmatprep.subr.bf16.mxu0 %v13493_v44  ;;  %v13539_v2 = vld [vmem:[%s15084_s5 + $0x610] ss:$8 sps:$4 sm:$0xff]   ;;  %v13544_v44 = vld [vmem:[%s15084_s5 + $0x504] ss:$8 sps:$4 sm:$0xff]  }
 0x62b   :  { %11356 = vmatpush2.bf16.msra.mxu1 %v13488_v36  ;;  %v13547_v36 = vld [vmem:[%s15084_s5 + $0x604] ss:$8 sps:$4 sm:$0xff]  }
 0x62c   :  { %11397 = vmatpush2.bf16.msra.mxu0 %v13491_v56  ;;  %11357 = vmatprep.subr.bf16.mxu1 %v13496_v54  ;;  %v13542_v56 = vld [vmem:[%s15084_s5 + $0x500] ss:$8 sps:$4 sm:$0xff]  }
 0x62d   :  { %11398 = vmatprep.subr.bf16.mxu0 %v13499_v52  ;;  %v13545_v54 = vld [vmem:[%s15084_s5 + $0x600] ss:$8 sps:$4 sm:$0xff]   ;;  %v13550_v52 = vld [vmem:[%s15084_s5 + $0x5f4] ss:$8 sps:$4 sm:$0xff]  }
 0x62f   :  { %11358 = vmatpush2.bf16.msra.mxu1 %v13494_v48  ;;  %v13548_v48 = vld [vmem:[%s15084_s5 + $0x5f0] ss:$8 sps:$4 sm:$0xff]  }
 0x630   :  { %11399 = vmatpush2.bf16.msra.mxu0 %v13497_v49  ;;  %11409 = vmatprep.subr.bf16.mxu1 %v13502_v50  ;;  %v13556_v49 = vld [vmem:[%s15084_s5 + $0x5e4] ss:$8 sps:$4 sm:$0xff]  }
 0x631   :  { %11450 = vmatprep.subr.bf16.mxu0 %v13505_v29  ;;  %v13559_v50 = vld [vmem:[%s15084_s5 + $0x6e4] ss:$8 sps:$4 sm:$0xff]   ;;  %v13562_v29 = vld [vmem:[%s15084_s5 + $0x5d4] ss:$8 sps:$4 sm:$0xff]  }
 0x632   :  { %v9535_v7 = vpop.f32.mrf.mxu1  ;;  %11360 = vmatmul.mubr.bf16.vlgmr.msra.gmra.mxu1 %v9646_v26  ;;  %v13568_v26 = vld [vmem:[%s15084_s5 + $0x5c4] ss:$8 sps:$4 sm:$0xff]  }
 0x633   :  { %v9536_v11 = vadd.f32 %v9535_v7, %v9495_v5  ;;  %v9576_v18 = vpop.f32.mrf.mxu0  ;;  %11401 = vmatmul.mubr.bf16.vlgmr.msra.gmra.mxu0 %v9648_v21  ;;  %11410 = vmatpush1.bf16.msra.mxu1 %v13500_v1  ;;  %v13563_v1 = vld [vmem:[%s15084_s5 + $0x6d0] ss:$8 sps:$4 sm:$0xff]   ;;  %v13566_v21 = vld [vmem:[%s15084_s5 + $0x5c0] ss:$8 sps:$4 sm:$0xff]  }
 0x634   :  { %11441 = vmatprep.mubr.bf16.mxu1 %v9651_v57  ;;  %11451 = vmatpush1.bf16.msra.mxu0 %v13503_v28  ;;  %v14774_v45 = vpop.f32.mrf.mxu1  ;;  %v13571_v28 = vld [vmem:[%s15084_s5 + $0x6c4] ss:$8 sps:$4 sm:$0xff]   ;;  %v13569_v5 = vld [vmem:[%s15084_s5 + $0x6c0] ss:$8 sps:$4 sm:$0xff]   ;;  %v13577_v57 = vld [vmem:[%s15084_s5 + $0x6b4] ss:$8 sps:$4 sm:$0xff]  }
 0x635   :  { %v14782_v4 = vadd.f32 %v9576_v18, %v9536_v11  ;;  %11482 = vmatprep.mubr.bf16.mxu0 %v9653_v8  ;;  %v14784_v14 = vpop.f32.mrf.mxu0  ;;  %11411 = vmatprep.subr.bf16.mxu1 %v13508_v10  ;;  %v13574_v10 = vld [vmem:[%s15084_s5 + $0x5b4] ss:$8 sps:$4 sm:$0xff]   ;;  %v13572_v7 = vld [vmem:[%s15084_s5 + $0x5b0] ss:$8 sps:$4 sm:$0xff]   ;;  %v13580_v8 = vld [vmem:[%s15084_s5 + $0x5a4] ss:$8 sps:$4 sm:$0xff]  }
 0x636   :  { %v9539_v12 = vpop.f32.mrf.mxu1  ;;  %11452 = vmatprep.subr.bf16.mxu0 %v13511_v63  ;;  %v13575_v63 = vld [vmem:[%s15084_s5 + $0x6b0] ss:$8 sps:$4 sm:$0xff]   ;;  %v13583_v11 = vld [vmem:[%s15084_s5 + $0x6a4] ss:$8 sps:$4 sm:$0xff]   ;;  %v13578_v18 = vld [vmem:[%s15084_s5 + $0x5a0] ss:$8 sps:$4 sm:$0xff]  }
 0x637   :  { %v9580_v6 = vpop.f32.mrf.mxu0  ;;  %11412 = vmatpush1.bf16.msra.mxu1 %v13506_v53  ;;  %v13581_v53 = vld [vmem:[%s15084_s5 + $0x6a0] ss:$8 sps:$4 sm:$0xff]   ;;  %v13587_v12 = vld [vmem:[%s15084_s5 + $0x690] ss:$8 sps:$4 sm:$0xff]  }
 0x638   :  { %11453 = vmatpush1.bf16.msra.mxu0 %v13509_v33  ;;  %v9540_v15 = vpop.f32.mrf.mxu1  ;;  %11413 = vmatprep.subr.bf16.mxu1 %v13514_v9  ;;  %v13586_v33 = vld [vmem:[%s15084_s5 + $0x594] ss:$8 sps:$4 sm:$0xff]   ;;  %v13592_v6 = vld [vmem:[%s15084_s5 + $0x584] ss:$8 sps:$4 sm:$0xff]  }
 0x639   :  { %v9581_v41 = vpop.f32.mrf.mxu0  ;;  %11454 = vmatprep.subr.bf16.mxu0 %v13517_v42  ;;  %v13589_v9 = vld [vmem:[%s15084_s5 + $0x694] ss:$8 sps:$4 sm:$0xff]   ;;  %v13584_v42 = vld [vmem:[%s15084_s5 + $0x590] ss:$8 sps:$4 sm:$0xff]   ;;  %v13595_v15 = vld [vmem:[%s15084_s5 + $0x684] ss:$8 sps:$4 sm:$0xff]  }
 0x63a   :  { %v13593_v41 = vld [vmem:[%s15084_s5 + $0x680] ss:$8 sps:$4 sm:$0xff]  }
 0x63b   :  { %11414 = vmatpush1.bf16.msra.mxu1 %v13512_v22  ;;  %v3175_v22 = vrot.slane %v14336_v27, %v14044_v30  ;;  %v13598_v30 = vld [vmem:[%s15084_s5 + $0x774] ss:$8 sps:$4 sm:$0xff]   ;;  %v9636_v27 = vmax.f32 %v14563_v60, 0.0  ;;  %v13601_v60 = vld [vmem:[%s15084_s5 + $0x764] ss:$8 sps:$4 sm:$0xff]  }
 0x63c   :  { %11455 = vmatpush1.bf16.msra.mxu0 %v13515_v51  ;;  %11415 = vmatprep.subr.bf16.mxu1 %v13520_v31  ;;  %v13590_v51 = vld [vmem:[%s15084_s5 + $0x580] ss:$8 sps:$4 sm:$0xff]   ;;  %v9634_v31 = vmax.f32 %v14234_v37, 0.0  ;;  %v13596_v37 = vld [vmem:[%s15084_s5 + $0x770] ss:$8 sps:$4 sm:$0xff]  }
 0x63d   :  { %11456 = vmatprep.subr.bf16.mxu0 %v13523_v16  ;;  %v9497_v16 = vadd.f32 %v14578_v25, %v3175_v22  ;;  %v9652_v25 = vpack.c.bf16 %v9636_v27, %v9636_v27 }
 0x63f   :  { %11416 = vmatpush1.bf16.msra.mxu1 %v13518_v32  ;;  %v14959_v32 = vld [vmem:[#allocation9] sm:$0x3] }
 0x640   :  { %11457 = vmatpush1.bf16.msra.mxu0 %v13521_v58  ;;  %11417 = vmatprep.subr.bf16.mxu1 %v13526_v55  ;;  %v9538_v58 = vadd.f32 %v14774_v45, %v9497_v16  ;;  %v9650_v55 = vpack.c.bf16 %v9634_v31, %v9634_v31 }
 0x641   :  { %11458 = vmatprep.subr.bf16.mxu0 %v13529_v61  ;;  %v9917_v61 = vrot.slane %v14959_v32, %v13982_v34 }
 0x642   :  { %v9579_v45 = vadd.f32 %v14784_v14, %v9538_v58 }
 0x643   :  { %11418 = vmatpush1.bf16.msra.mxu1 %v13524_v24 }
 0x644   :  { %11459 = vmatpush1.bf16.msra.mxu0 %v13527_v19  ;;  %11419 = vmatprep.subr.bf16.mxu1 %v13532_v20  ;;  %v13599_v20 = vld [vmem:[%s15084_s5 + $0x760] ss:$8 sps:$4 sm:$0xff]  }
 0x645   :  { %11460 = vmatprep.subr.bf16.mxu0 %v13535_v43 }
 0x647   :  { %11420 = vmatpush1.bf16.msra.mxu1 %v13530_v59 }
 0x648   :  { %11461 = vmatpush1.bf16.msra.mxu0 %v13533_v38  ;;  %11421 = vmatprep.subr.bf16.mxu1 %v13538_v40  ;;  %v13604_v38 = vld [vmem:[%s15084_s5 + $0x754] ss:$8 sps:$4 sm:$0xff]  }
 0x649   :  { %11462 = vmatprep.subr.bf16.mxu0 %v13541_v62 }
 0x64b   :  { %11422 = vmatpush1.bf16.msra.mxu1 %v13536_v17 }
 0x64c   :  { %11463 = vmatpush1.bf16.msra.mxu0 %v13539_v2  ;;  %11423 = vmatprep.subr.bf16.mxu1 %v13544_v44  ;;  %v13602_v44 = vld [vmem:[%s15084_s5 + $0x750] ss:$8 sps:$4 sm:$0xff]  }
 0x64d   :  { %11464 = vmatprep.subr.bf16.mxu0 %v13547_v36 }
 0x64f   :  { %11424 = vmatpush1.bf16.msra.mxu1 %v13542_v56  ;;  %v13607_v56 = vld [vmem:[%s15084_s5 + $0x744] ss:$8 sps:$4 sm:$0xff]  }
 0x650   :  { %11465 = vmatpush1.bf16.msra.mxu0 %v13545_v54  ;;  %11425 = vmatprep.subr.bf16.mxu1 %v13550_v52 }
 0x651   :  { %11466 = vmatprep.subr.bf16.mxu0 %v13553_v39  ;;  %v13605_v39 = vld [vmem:[%s15084_s5 + $0x740] ss:$8 sps:$4 sm:$0xff]  }
 0x653   :  { %11426 = vmatpush2.bf16.msra.mxu1 %v13548_v48  ;;  %v13610_v48 = vld [vmem:[%s15084_s5 + $0x734] ss:$8 sps:$4 sm:$0xff]  }
 0x654   :  { %11467 = vmatpush2.bf16.msra.mxu0 %v13551_v0  ;;  %11427 = vmatprep.subr.bf16.mxu1 %v13556_v49  ;;  %v13608_v0 = vld [vmem:[%s15084_s5 + $0x730] ss:$8 sps:$4 sm:$0xff]   ;;  %v13613_v49 = vld [vmem:[%s15084_s5 + $0x724] ss:$8 sps:$4 sm:$0xff]  }
 0x655   :  { %11468 = vmatprep.subr.bf16.mxu0 %v13559_v50  ;;  %v13611_v50 = vld [vmem:[%s15084_s5 + $0x720] ss:$8 sps:$4 sm:$0xff]  }
 0x657   :  { %11428 = vmatpush2.bf16.msra.mxu1 %v13554_v23  ;;  %v13616_v23 = vld [vmem:[%s15084_s5 + $0x714] ss:$8 sps:$4 sm:$0xff]  }
 0x658   :  { %11469 = vmatpush2.bf16.msra.mxu0 %v13557_v3  ;;  %11429 = vmatprep.subr.bf16.mxu1 %v13562_v29  ;;  %v13614_v3 = vld [vmem:[%s15084_s5 + $0x710] ss:$8 sps:$4 sm:$0xff]   ;;  %v13619_v29 = vld [vmem:[%s15084_s5 + $0x704] ss:$8 sps:$4 sm:$0xff]  }
 0x659   :  { %11470 = vmatprep.subr.bf16.mxu0 %v13565_v13  ;;  %v13617_v13 = vld [vmem:[%s15084_s5 + $0x700] ss:$8 sps:$4 sm:$0xff]  }
 0x65b   :  { %11430 = vmatpush2.bf16.msra.mxu1 %v13560_v35  ;;  %v13622_v35 = vld [vmem:[%s15084_s5 + $0x7f4] ss:$8 sps:$4 sm:$0xff]  }
 0x65c   :  { %11471 = vmatpush2.bf16.msra.mxu0 %v13563_v1  ;;  %11431 = vmatprep.subr.bf16.mxu1 %v13568_v26  ;;  %v13620_v1 = vld [vmem:[%s15084_s5 + $0x7f0] ss:$8 sps:$4 sm:$0xff]   ;;  %v13625_v26 = vld [vmem:[%s15084_s5 + $0x7e4] ss:$8 sps:$4 sm:$0xff]  }
 0x65d   :  { %11472 = vmatprep.subr.bf16.mxu0 %v13571_v28  ;;  %v13623_v28 = vld [vmem:[%s15084_s5 + $0x7e0] ss:$8 sps:$4 sm:$0xff]  }
 0x65f   :  { %11432 = vmatpush2.bf16.msra.mxu1 %v13566_v21  ;;  %v13628_v21 = vld [vmem:[%s15084_s5 + $0x7d4] ss:$8 sps:$4 sm:$0xff]  }
 0x660   :  { %11473 = vmatpush2.bf16.msra.mxu0 %v13569_v5  ;;  %11433 = vmatprep.subr.bf16.mxu1 %v13574_v10  ;;  %v13626_v5 = vld [vmem:[%s15084_s5 + $0x7d0] ss:$8 sps:$4 sm:$0xff]   ;;  %v13631_v10 = vld [vmem:[%s15084_s5 + $0x7c4] ss:$8 sps:$4 sm:$0xff]  }
 0x661   :  { %11474 = vmatprep.subr.bf16.mxu0 %v13577_v57  ;;  %v13629_v57 = vld [vmem:[%s15084_s5 + $0x7c0] ss:$8 sps:$4 sm:$0xff]  }
 0x663   :  { %11434 = vmatpush2.bf16.msra.mxu1 %v13572_v7  ;;  %v13634_v7 = vld [vmem:[%s15084_s5 + $0x7b4] ss:$8 sps:$4 sm:$0xff]  }
 0x664   :  { %11475 = vmatpush2.bf16.msra.mxu0 %v13575_v63  ;;  %11435 = vmatprep.subr.bf16.mxu1 %v13580_v8  ;;  %v13632_v63 = vld [vmem:[%s15084_s5 + $0x7b0] ss:$8 sps:$4 sm:$0xff]   ;;  %v13637_v8 = vld [vmem:[%s15084_s5 + $0x7a4] ss:$8 sps:$4 sm:$0xff]  }
 0x665   :  { %11476 = vmatprep.subr.bf16.mxu0 %v13583_v11  ;;  %v13635_v11 = vld [vmem:[%s15084_s5 + $0x7a0] ss:$8 sps:$4 sm:$0xff]  }
 0x667   :  { %11436 = vmatpush2.bf16.msra.mxu1 %v13578_v18  ;;  %v13640_v18 = vld [vmem:[%s15084_s5 + $0x794] ss:$8 sps:$4 sm:$0xff]  }
 0x668   :  { %11477 = vmatpush2.bf16.msra.mxu0 %v13581_v53  ;;  %11437 = vmatprep.subr.bf16.mxu1 %v13586_v33  ;;  %v13638_v53 = vld [vmem:[%s15084_s5 + $0x790] ss:$8 sps:$4 sm:$0xff]  }
 0x669   :  { %11478 = vmatprep.subr.bf16.mxu0 %v13589_v9  ;;  %v13643_v9 = vld [vmem:[%s15084_s5 + $0x784] ss:$8 sps:$4 sm:$0xff]  }
 0x66b   :  { %11438 = vmatpush2.bf16.msra.mxu1 %v13584_v42  ;;  %v13641_v42 = vld [vmem:[%s15084_s5 + $0x780] ss:$8 sps:$4 sm:$0xff]  }
 0x66c   :  { %11479 = vmatpush2.bf16.msra.mxu0 %v13587_v12  ;;  %11439 = vmatprep.subr.bf16.mxu1 %v13592_v6  ;;  %v9921_v6 = vrot.slane %v14959_v32, %v13966_v47 }
 0x66d   :  { %11480 = vmatprep.subr.bf16.mxu0 %v13595_v15 }
 0x66f   :  { %11440 = vmatpush2.bf16.msra.mxu1 %v13590_v51 }
 0x670   :  { %11481 = vmatpush2.bf16.msra.mxu0 %v13593_v41  ;;  %11491 = vmatprep.subr.bf16.mxu1 %v13598_v30 }
 0x672   :  { %v14970_v24 = vpop.f32.mrf.mxu1  ;;  %11442 = vmatmul.mubr.bf16.vlgmr.msra.gmra.mxu1 %v9650_v55 }
 0x673   :  { %v11238_v19 = vpop.f32.mrf.mxu0  ;;  %11483 = vmatmul.mubr.bf16.vlgmr.msra.gmra.mxu0 %v9652_v25  ;;  %11492 = vmatpush1.bf16.msra.mxu1 %v13596_v37  ;;  %v9618_v33 = vadd.f32 %v14970_v24, %v14782_v4 }
 0x674   :  { %v14976_v43 = vadd.f32 %v11238_v19, %v9917_v61  ;;  %v9619_v59 = vpop.f32.mrf.mxu1  ;;  %11493 = vmatprep.subr.bf16.mxu1 %v13601_v60 }
 0x675   :  { %v9620_v40 = vadd.f32 %v9619_v59, %v9579_v45  ;;  %v14981_v62 = vpop.f32.mrf.mxu0  ;;  %v9638_v12 = vmax.f32 %v9618_v33, 0.0 }
 0x676   :  { %v9621_v17 = vpop.f32.mrf.mxu1  ;;  %v11241_v4 = vadd.f32 %v14981_v62, %v9921_v6 }
 0x677   :  { %v9639_v14 = vmax.f32 %v9620_v40, 0.0  ;;  %v11242_v2 = vpop.f32.mrf.mxu0  ;;  %11494 = vmatpush1.bf16.msra.mxu1 %v13599_v20  ;;  %v9654_v22 = vpack.c.bf16 %v9638_v12, %v9638_v12 }
 0x678   :  { %v9622_v36 = vpop.f32.mrf.mxu1  ;;  %11495 = vmatprep.subr.bf16.mxu1 %v13604_v38 }
 0x679   :  { %v9655_v54 = vpack.c.bf16 %v9639_v14, %v9639_v14  ;;  %v11243_v52 = vpop.f32.mrf.mxu0  ;;  %v11534_v14 = vld [vmem:[#allocation13] sm:$0x77] }
 0x67a   :  { %v11539_v2 = vcombine.high %v11534_v14, %v11534_v14 }
 0x67b   :  { %11496 = vmatpush1.bf16.msra.mxu1 %v13602_v44  ;;  %11523 = vmatprep.mubr.bf16.mxu1 %v9655_v54 }
 0x67c   :  { %11497 = vmatprep.subr.bf16.mxu1 %v13607_v56  ;;  %13240 = vmatprep.subr.msk.mxu0 %vm11543_vm0, %v11539_v2 }
 0x67d   :  { %13241 = vmatpush1.msk.msra.mxu0 %vm11543_vm0, %v11534_v14 }
 0x67f   :  { %11498 = vmatpush1.bf16.msra.mxu1 %v13605_v39 }
 0x680   :  { %11499 = vmatprep.subr.bf16.mxu1 %v13610_v48 }
 0x683   :  { %11500 = vmatpush1.bf16.msra.mxu1 %v13608_v0 }
 0x684   :  { %11501 = vmatprep.subr.bf16.mxu1 %v13613_v49 }
 0x687   :  { %11502 = vmatpush1.bf16.msra.mxu1 %v13611_v50 }
 0x688   :  { %11503 = vmatprep.subr.bf16.mxu1 %v13616_v23 }
 0x68b   :  { %11504 = vmatpush1.bf16.msra.mxu1 %v13614_v3 }
 0x68c   :  { %11505 = vmatprep.subr.bf16.mxu1 %v13619_v29 }
 0x68f   :  { %11506 = vmatpush1.bf16.msra.mxu1 %v13617_v13 }
 0x690   :  { %11507 = vmatprep.subr.bf16.mxu1 %v13622_v35 }
 0x693   :  { %11508 = vmatpush2.bf16.msra.mxu1 %v13620_v1 }
 0x694   :  { %11509 = vmatprep.subr.bf16.mxu1 %v13625_v26 }
 0x697   :  { %11510 = vmatpush2.bf16.msra.mxu1 %v13623_v28 }
 0x698   :  { %11511 = vmatprep.subr.bf16.mxu1 %v13628_v21 }
 0x69b   :  { %11512 = vmatpush2.bf16.msra.mxu1 %v13626_v5  ;;  %v13842_v5 = vmov 0.0  }
 0x69c   :  { %11513 = vmatprep.subr.bf16.mxu1 %v13631_v10  ;;  %11612 = vmatprep.mubr.f32.mxu0 %v13842_v5 }
 0x69f   :  { %11514 = vmatpush2.bf16.msra.mxu1 %v13629_v57 }
 0x6a0   :  { %11515 = vmatprep.subr.bf16.mxu1 %v13634_v7  ;;  %v11619_v7 = vld [vmem:[#allocation10] sm:$0x3] }
 0x6a3   :  { %11516 = vmatpush2.bf16.msra.mxu1 %v13632_v63  ;;  %v11624_v63 = vrot.slane %v11619_v7, %v13982_v34 }
 0x6a4   :  { %11517 = vmatprep.subr.bf16.mxu1 %v13637_v8  ;;  %v11628_v8 = vrot.slane %v11619_v7, %v13966_v47 }
 0x6a7   :  { %11518 = vmatpush2.bf16.msra.mxu1 %v13635_v11 }
 0x6a8   :  { %11519 = vmatprep.subr.bf16.mxu1 %v13640_v18 }
 0x6ab   :  { %11520 = vmatpush2.bf16.msra.mxu1 %v13638_v53 }
 0x6ac   :  { %11521 = vmatprep.subr.bf16.mxu1 %v13643_v9 }
 0x6af   :  { %11522 = vmatpush2.bf16.msra.mxu1 %v13641_v42 }
 0x6b2   :  { %v11279_v15 = vpop.f32.mrf.mxu1  ;;  %11524 = vmatmul.mubr.bf16.vlgmr.msra.gmra.mxu1 %v9654_v22  ;;  %v11645_v22 = vld [vmem:[#allocation12] sm:$0x3] }
 0x6b3   :  { %v11280_v51 = vadd.f32 %v11279_v15, %v14976_v43  ;;  %v11320_v31 = vpop.f32.mrf.mxu0  ;;  %v11650_v15 = vrot.slane %v11645_v22, %v13982_v34 }
 0x6b4   :  { %v11281_v41 = vpop.f32.mrf.mxu1 }
 0x6b5   :  { %v11321_v30 = vadd.f32 %v11320_v31, %v11280_v51  ;;  %v11282_v27 = vadd.f32 %v11281_v41, %v11241_v4  ;;  %v11322_v16 = vpop.f32.mrf.mxu0  ;;  %v11654_v51 = vrot.slane %v11645_v22, %v13966_v47 }
 0x6b6   :  { %v11283_v58 = vpop.f32.mrf.mxu1 }
 0x6b7   :  { %v11323_v37 = vadd.f32 %v11322_v16, %v11282_v27  ;;  %v11324_v55 = vpop.f32.mrf.mxu0 }
 0x6b8   :  { %v11284_v61 = vpop.f32.mrf.mxu1 }
 0x6b9   :  { %v11325_v60 = vpop.f32.mrf.mxu0 }
 0x6f2   :  { %v11361_v25 = vpop.f32.mrf.mxu1 }
 0x6f3   :  { %v11362_v32 = vadd.f32 %v11361_v25, %v11321_v30  ;;  %v11402_v24 = vpop.f32.mrf.mxu0 }
 0x6f4   :  { %v11363_v45 = vpop.f32.mrf.mxu1 }
 0x6f5   :  { %v11403_v19 = vadd.f32 %v11402_v24, %v11362_v32  ;;  %v11364_v20 = vadd.f32 %v11363_v45, %v11323_v37  ;;  %v11404_v59 = vpop.f32.mrf.mxu0  ;;  %v13843_v45 = vmov 1983009808  }
 0x6f6   :  { %v11365_v38 = vpop.f32.mrf.mxu1 }
 0x6f7   :  { %v11405_v40 = vadd.f32 %v11404_v59, %v11364_v20  ;;  %v11406_v43 = vpop.f32.mrf.mxu0 }
 0x6f8   :  { %v11366_v62 = vpop.f32.mrf.mxu1 }
 0x6f9   :  { %v11407_v17 = vpop.f32.mrf.mxu0 }
 0x732   :  { %v11443_v44 = vpop.f32.mrf.mxu1 }
 0x733   :  { %v11444_v36 = vadd.f32 %v11443_v44, %v11403_v19  ;;  %v11484_v56 = vpop.f32.mrf.mxu0  ;;  %v11683_v19 = vunpack.c.l.s4 %v13843_v45 }
 0x734   :  { %v11445_v54 = vpop.f32.mrf.mxu1 }
 0x735   :  { %v11485_v52 = vadd.f32 %v11484_v56, %v11444_v36  ;;  %v11486_v39 = vpop.f32.mrf.mxu0  ;;  %v11446_v23 = vadd.f32 %v11445_v54, %v11405_v40  ;;  %v11684_v62 = vunpack.c.0.s8 %v11683_v19 }
 0x736   :  { %v11447_v48 = vpop.f32.mrf.mxu1 }
 0x737   :  { %v11488_v0 = vpop.f32.mrf.mxu0  ;;  %v11487_v29 = vadd.f32 %v11486_v39, %v11446_v23  ;;  %v11687_v44 = vsub.s32 %v11684_v62, %v13924_v46 }
 0x738   :  { %v11448_v49 = vpop.f32.mrf.mxu1 }
 0x739   :  { %v11489_v50 = vpop.f32.mrf.mxu0 }
 0x772   :  { %v11525_v3 = vpop.f32.mrf.mxu1 }
 0x773   :  { %v11526_v13 = vadd.f32 %v11525_v3, %v11485_v52 }
 0x774   :  { %v11527_v35 = vpop.f32.mrf.mxu1 }
 0x775   :  { %v11528_v1 = vadd.f32 %v11527_v35, %v11487_v29  ;;  %v11631_v11 = vadd.f32 %v11624_v63, %v11526_v13 }
 0x776   :  { %v11529_v26 = vpop.f32.mrf.mxu1 }
 0x777   :  { %v11532_v28 = vmul.f32 0.1, %v11528_v1  ;;  %v11632_v18 = vadd.f32 %v11628_v8, %v11528_v1  ;;  %v13243_v53 = vmul.f32 -1.442695, %v11631_v11 }
 0x778   :  { %v11530_v21 = vpop.f32.mrf.mxu1 }
 0x779   :  { %13645 = vtanh.f32 %v11532_v28  ;;  %v13244_v33 = vmul.f32 -1.442695, %v11632_v18 }
 0x77a   :  { %13647 = vpow2.f32 %v13243_v53 }
 0x77b   :  { %13649 = vpow2.f32 %v13244_v33 }
 0x786   :  { %v13646_v10 = vpop.eup %13645 }
 0x787   :  { %11536 = vrot.lane.b32.xlu0 %v13646_v10, %s13837_s16  ;;  %v13648_v9 = vpop.eup %13647 }
 0x788   :  { %v13650_v42 = vpop.eup %13649  ;;  %v11639_v12 = vadd.f32 1.0, %v13648_v9 }
 0x789   :  { %v11640_v6 = vadd.f32 1.0, %v13650_v42 }
 0x78a   :  { %13651 = vrcp.f32 %v11639_v12 }
 0x78b   :  { %13653 = vrcp.f32 %v11640_v6 }
 0x797   :  { %v13652_v4 = vpop.eup %13651 }
 0x798   :  { %v13654_v31 = vpop.eup %13653  ;;  %v11657_v41 = vmul.f32 %v13652_v4, %v11650_v15 }
 0x799   :  { %v11658_v30 = vmul.f32 %v13654_v31, %v11654_v51 }
 0x79a   :  { %v11665_v27 = vsub.f32 0.0, %v11657_v41  ;;  %v11659_v37 = vmax.f32 %v11657_v41, 0.0 }
 0x79b   :  { %v11666_v16 = vsub.f32 0.0, %v11658_v30  ;;  %v11660_v32 = vmax.f32 %v11658_v30, 0.0 }
 0x79c   :  { %v11667_v61 = vmax.f32 %v11665_v27, 0.0 }
 0x79d   :  { %v11668_v24 = vmax.f32 %v11666_v16, 0.0 }
 0x7f9   :  { %v11537_v57 = vpop.permute.xlu0 %11536 }
 0x7fa   :  { %13242 = vmatmul.mubr.msk.f32.vlgmr.msra.gmra.mxu0 %vm11540_vm1, %v11537_v57 }
 0x8ba   :  { %v11614_v58 = vpop.f32.mrf.mxu0 }
 0x8bb   :  { %v11661_v55 = vsub.f32 1.0, %v11614_v58  ;;  %v11669_v60 = vadd.f32 1.0, %v11614_v58 }
 0x8bc   :  { %v11616_v25 = vpop.f32.mrf.mxu0 }
 0x8bd   :  { %v11663_v20 = vmul.f32 %v11661_v55, %v11659_v37  ;;  %v11671_v34 = vmul.f32 %v11669_v60, %v11667_v61  ;;  %v11662_v59 = vsub.f32 1.0, %v11616_v25  ;;  %v11670_v38 = vadd.f32 1.0, %v11616_v25 }
 0x8bf   :  { %v11673_v47 = vsub.f32 %v11663_v20, %v11671_v34  ;;  %v11664_v40 = vmul.f32 %v11662_v59, %v11660_v32  ;;  %v11672_v43 = vmul.f32 %v11670_v38, %v11668_v24 }
 0x8c1   :  { %v11675_v17 = vadd.f32 %v11673_v47, %v11614_v58  ;;  %v11674_v14 = vsub.f32 %v11664_v40, %v11672_v43 }
 0x8c3   :  { %v11676_v2 = vadd.f32 %v11674_v14, %v11616_v25  ;;  %v11677_v36 = vmul.f32 0.5, %v11675_v17 }
 0x8c5   :  { %v11678_v56 = vmul.f32 0.5, %v11676_v2 }
 0x8c7   :  { %v11681_v54 = vcombine.low %v11677_v36, %v11678_v56 }
 0x8c9   :  { %v11688_v52 = vrot.slane %v11681_v54, %v11687_v44 }
 0x8cb   :  { %11693 = vst.msk [vmem:[%s15089_s10] sm:$0xf] %vm11692_vm4, %v11688_v52 }
 0x8cc   :  { %11698 = vsyncpa [#allocation3], 1 }
 0x8cd   :  { %11699 = vsyncpa [#allocation5], 1 }
 0x8ce   :  { %11700 = vsyncpa [#allocation8], 1 }
 0x8cf   :  { %11701 = vsyncpa [#allocation11], 1 }
 0x8d0   :  { %11702 = vsyncpa [#allocation14], 1 }

</bundles_post_ra>
